<compile_context>
chip_gen: v6e
topology: v6e:2x2x1
jax: 0.10.0
libtpu: 0.0.40
codegen_flags: <defaults>
</compile_context>

<pallas_src>
import functools

import jax
import jax.numpy as jnp
from jax import lax
from jax.experimental import pallas as pl
from jax.experimental.pallas import tpu as pltpu


def _round_up(x, m):
    return ((x + m - 1) // m) * m


# --------------------------------------------------------------------------
# In-kernel helpers
# --------------------------------------------------------------------------
def _lstm_cell(gates, c_prev, m_pad):
    """gates: (B, 4*m_pad) f32 in PyTorch order i,f,g,o. Returns (h, c) f32."""
    i_g = jax.nn.sigmoid(gates[:, 0 * m_pad:1 * m_pad])
    f_g = jax.nn.sigmoid(gates[:, 1 * m_pad:2 * m_pad])
    g_g = jnp.tanh(gates[:, 2 * m_pad:3 * m_pad])
    o_g = jax.nn.sigmoid(gates[:, 3 * m_pad:4 * m_pad])
    c_new = f_g * c_prev + i_g * g_g
    h_new = o_g * jnp.tanh(c_new)
    return h_new, c_new


def _input_projection(x_ref, wih_ref, b_ref, xp_ref, T, B, G):
    """One (T*B, Din) x (Din, 8*M_pad) bf16 matmul; bias folded in once."""
    din = x_ref.shape[2]
    x2d = x_ref[...].reshape(T * B, din).astype(jnp.bfloat16)
    proj = jnp.dot(x2d, wih_ref[...], preferred_element_type=jnp.float32)
    xp_ref[...] = proj.reshape(T, B, 2 * G) + b_ref[...]


# --------------------------------------------------------------------------
# Pallas kernels
# --------------------------------------------------------------------------
def _bilstm_mid_kernel(x_ref, wih_ref, whh_f_ref, whh_b_ref, b_ref,
                       h0_ref, c0_ref, out_ref, xp_ref, *, T, m_pad, unroll):
    """Fused fwd+bwd LSTM layer, emits (T, B, 2*m_pad) hidden sequence."""
    B = x_ref.shape[1]
    G = 4 * m_pad

    _input_projection(x_ref, wih_ref, b_ref, xp_ref, T, B, G)

    whh_f = whh_f_ref[...]
    whh_b = whh_b_ref[...]

    def step(t, carry):
        h_f, c_f, h_b, c_b = carry
        tb = T - 1 - t
        xp_f = xp_ref[t]
        xp_b = xp_ref[tb]
        # The two directions are independent: interleave their matmuls.
        g_f = xp_f[:, :G] + jnp.dot(h_f.astype(jnp.bfloat16), whh_f,
                                    preferred_element_type=jnp.float32)
        g_b = xp_b[:, G:] + jnp.dot(h_b.astype(jnp.bfloat16), whh_b,
                                    preferred_element_type=jnp.float32)
        h_f, c_f = _lstm_cell(g_f, c_f, m_pad)
        h_b, c_b = _lstm_cell(g_b, c_b, m_pad)
        out_ref[t, :, pl.ds(0, m_pad)] = h_f
        out_ref[tb, :, pl.ds(m_pad, m_pad)] = h_b
        return h_f, c_f, h_b, c_b

    lax.fori_loop(0, T, step,
                  (h0_ref[0], c0_ref[0], h0_ref[1], c0_ref[1]),
                  unroll=unroll)


def _bilstm_last_kernel(x_ref, wih_ref, whh_f_ref, whh_b_ref, b_ref,
                        h0_ref, c0_ref, lin_w_ref, lin_b_ref,
                        out_ref, xp_ref, *, T, m_pad, unroll):
    """Last LSTM layer fused with the Linear head: emits (B, OUT_pad)."""
    B = x_ref.shape[1]
    G = 4 * m_pad

    _input_projection(x_ref, wih_ref, b_ref, xp_ref, T, B, G)

    whh_f = whh_f_ref[...]

    # output[:, -1]'s backward half only depends on the backward direction's
    # FIRST step (input x[T-1]); compute just that one step.
    g_b = xp_ref[T - 1][:, G:] + jnp.dot(
        h0_ref[1].astype(jnp.bfloat16), whh_b_ref[...],
        preferred_element_type=jnp.float32)
    h_b_last, _ = _lstm_cell(g_b, c0_ref[1], m_pad)

    def step(t, carry):
        h_f, c_f = carry
        g_f = xp_ref[t][:, :G] + jnp.dot(h_f.astype(jnp.bfloat16), whh_f,
                                         preferred_element_type=jnp.float32)
        return _lstm_cell(g_f, c_f, m_pad)

    h_f, _ = lax.fori_loop(0, T, step, (h0_ref[0], c0_ref[0]), unroll=unroll)

    last = jnp.concatenate([h_f, h_b_last], axis=1).astype(jnp.bfloat16)
    out_ref[...] = (jnp.dot(last, lin_w_ref[...],
                            preferred_element_type=jnp.float32)
                    + lin_b_ref[...])


# --------------------------------------------------------------------------
# pallas_call wrapper for one layer
# --------------------------------------------------------------------------
def _bilstm_layer(x_seq, lw, h0l, c0l, lin_w, lin_b, *, m_pad, last):
    T, B_pad, Din_pad = x_seq.shape
    nb = 2 if (B_pad >= 16 and B_pad % 16 == 0) else 1   # parallel batch blocks
    B_blk = B_pad // nb
    unroll = bool(T <= 32)

    bmap3 = lambda b: (0, b, 0)
    wmap = lambda b: (0, 0)

    in_arrays = [x_seq, lw["w_ih"], lw["w_hh_f"], lw["w_hh_b"], lw["b"],
                 h0l, c0l]
    in_specs = [
        pl.BlockSpec((T, B_blk, Din_pad), bmap3),
        pl.BlockSpec(lw["w_ih"].shape, wmap),
        pl.BlockSpec(lw["w_hh_f"].shape, wmap),
        pl.BlockSpec(lw["w_hh_b"].shape, wmap),
        pl.BlockSpec(lw["b"].shape, wmap),
        pl.BlockSpec((2, B_blk, m_pad), bmap3),
        pl.BlockSpec((2, B_blk, m_pad), bmap3),
    ]
    scratch = [pltpu.VMEM((T, B_blk, 8 * m_pad), jnp.float32)]
    cp = pltpu.CompilerParams(dimension_semantics=("parallel",))

    if last:
        out_pad = lin_w.shape[1]
        in_arrays += [lin_w, lin_b]
        in_specs += [pl.BlockSpec(lin_w.shape, wmap),
                     pl.BlockSpec(lin_b.shape, wmap)]
        kernel = functools.partial(_bilstm_last_kernel, T=T, m_pad=m_pad,
                                   unroll=unroll)
        return pl.pallas_call(
            kernel,
            out_shape=jax.ShapeDtypeStruct((B_pad, out_pad), jnp.float32),
            grid_spec=pltpu.PrefetchScalarGridSpec(
                num_scalar_prefetch=0, grid=(nb,),
                in_specs=in_specs,
                out_specs=pl.BlockSpec((B_blk, out_pad), lambda b: (b, 0)),
                scratch_shapes=scratch),
            compiler_params=cp,
        )(*in_arrays)

    kernel = functools.partial(_bilstm_mid_kernel, T=T, m_pad=m_pad,
                               unroll=unroll)
    return pl.pallas_call(
        kernel,
        out_shape=jax.ShapeDtypeStruct((T, B_pad, 2 * m_pad), jnp.float32),
        grid_spec=pltpu.PrefetchScalarGridSpec(
            num_scalar_prefetch=0, grid=(nb,),
            in_specs=in_specs,
            out_specs=pl.BlockSpec((T, B_blk, 2 * m_pad), bmap3),
            scratch_shapes=scratch),
        compiler_params=cp,
    )(*in_arrays)


# --------------------------------------------------------------------------
# Parameters: raw (PyTorch layout) init + one-time packing
# --------------------------------------------------------------------------
def init_params(key, vocab_len, emb_dim, hidden_dim, n_layers, out_len):
    n_keys = 1 + n_layers * 2 * 4 + 2
    keys = iter(jax.random.split(key, n_keys))
    bound = 1.0 / (hidden_dim ** 0.5)

    params = {}
    params["emb"] = jax.random.normal(next(keys), (vocab_len, emb_dim),
                                      jnp.float32)
    lstm = []
    for l in range(n_layers):
        din = emb_dim if l == 0 else 2 * hidden_dim
        dirs = []
        for _ in range(2):  # forward, backward
            w_ih = jax.random.uniform(next(keys), (4 * hidden_dim, din),
                                      jnp.float32, -bound, bound)
            w_hh = jax.random.uniform(next(keys), (4 * hidden_dim, hidden_dim),
                                      jnp.float32, -bound, bound)
            b_ih = jax.random.uniform(next(keys), (4 * hidden_dim,),
                                      jnp.float32, -bound, bound)
            b_hh = jax.random.uniform(next(keys), (4 * hidden_dim,),
                                      jnp.float32, -bound, bound)
            dirs.append((w_ih, w_hh, b_ih, b_hh))
        lstm.append(dirs)
    params["lstm"] = lstm
    params["lin_w"] = jax.random.uniform(next(keys), (out_len, 2 * hidden_dim),
                                         jnp.float32, -bound, bound)
    params["lin_b"] = jax.random.uniform(next(keys), (out_len,),
                                         jnp.float32, -bound, bound)
    return params


def pack_params(raw, *, emb_dim, hidden_dim, n_layers, out_len):
    """One-time transpose / pad / bias-combine / bf16 cast (not per call)."""
    M = hidden_dim
    m_pad = _round_up(M, 128)
    e_pad = _round_up(emb_dim, 128)
    out_pad = _round_up(out_len, 128)

    def pad_gate_cols(w_t):            # (R, 4M) -> (R, 4*m_pad)
        R = w_t.shape[0]
        out = jnp.zeros((R, 4 * m_pad), w_t.dtype)
        for k in range(4):
            out = out.at[:, k * m_pad:k * m_pad + M].set(
                w_t[:, k * M:(k + 1) * M])
        return out

    def pad_rows(w, row_map, r_pad):   # place real rows into padded rows
        out = jnp.zeros((r_pad, w.shape[1]), w.dtype)
        for s, d, n in row_map:
            out = out.at[d:d + n].set(w[s:s + n])
        return out

    packed = {"emb": jnp.pad(raw["emb"], ((0, 0), (0, e_pad - emb_dim)))}

    layers = []
    for l in range(n_layers):
        if l == 0:
            din_pad = e_pad
            row_map = [(0, 0, emb_dim)]
        else:
            din_pad = 2 * m_pad
            row_map = [(0, 0, M), (M, m_pad, M)]   # fwd rows | bwd rows
        w_ih_dirs, w_hh_dirs, b_dirs = [], [], []
        for d in range(2):
            w_ih, w_hh, b_ih, b_hh = raw["lstm"][l][d]
            w_ih_dirs.append(pad_rows(pad_gate_cols(w_ih.T), row_map, din_pad))
            w_hh_dirs.append(pad_rows(pad_gate_cols(w_hh.T),
                                      [(0, 0, M)], m_pad))
            b_dirs.append(pad_gate_cols((b_ih + b_hh)[None, :]))
        layers.append({
            "w_ih": jnp.concatenate(w_ih_dirs, axis=1).astype(jnp.bfloat16),
            "w_hh_f": w_hh_dirs[0].astype(jnp.bfloat16),
            "w_hh_b": w_hh_dirs[1].astype(jnp.bfloat16),
            "b": jnp.concatenate(b_dirs, axis=1),            # f32
        })
    packed["layers"] = layers

    lin_w_t = raw["lin_w"].T                                  # (2M, out_len)
    lin_w_p = jnp.zeros((2 * m_pad, out_pad), jnp.float32)
    lin_w_p = lin_w_p.at[0:M, 0:out_len].set(lin_w_t[0:M])
    lin_w_p = lin_w_p.at[m_pad:m_pad + M, 0:out_len].set(lin_w_t[M:2 * M])
    packed["lin_w"] = lin_w_p.astype(jnp.bfloat16)
    packed["lin_b"] = jnp.zeros((1, out_pad),
                                jnp.float32).at[0, 0:out_len].set(raw["lin_b"])
    return packed


# --------------------------------------------------------------------------
# Forward pass
# --------------------------------------------------------------------------
def bilstm_forward(x_tokens, h0, c0, params, *, emb_dim, hidden_dim,
                   n_layers, out_len):
    """x_tokens: (B, T) int32; h0/c0: (n_layers*2, B, M); returns (B, out_len)."""
    del emb_dim  # encoded in the packed embedding table
    M = hidden_dim
    m_pad = _round_up(M, 128)
    B, T = x_tokens.shape
    B_pad = _round_up(B, 8)

    # Embedding gather, produced directly time-major (plain-JAX glue).
    tok_p = jnp.pad(x_tokens, ((0, B_pad - B), (0, 0)))
    x = jnp.take(params["emb"], tok_p.T, axis=0)        # (T, B_pad, E_pad) f32

    # Zero-pad initial states (padded hidden lanes stay exactly 0 in-kernel).
    h0p = jnp.pad(h0, ((0, 0), (0, B_pad - B), (0, m_pad - M)))
    c0p = jnp.pad(c0, ((0, 0), (0, B_pad - B), (0, m_pad - M)))

    out = None
    for l in range(n_layers):
        lw = params["layers"][l]
        h0l = h0p[2 * l:2 * l + 2]
        c0l = c0p[2 * l:2 * l + 2]
        if l == n_layers - 1:
            out = _bilstm_layer(x, lw, h0l, c0l,
                                params["lin_w"], params["lin_b"],
                                m_pad=m_pad, last=True)
        else:
            x = _bilstm_layer(x, lw, h0l, c0l, None, None,
                              m_pad=m_pad, last=False)
    return out[:B, :out_len]


# --------------------------------------------------------------------------
if __name__ == "__main__":
    vocab_len, emb_dim, hidden_dim, n_layers, out_len = 50, 16, 32, 2, 5
    B, T = 2, 8

    key = jax.random.PRNGKey(0)
    k_param, k_tok, k_h0, k_c0 = jax.random.split(key, 4)

    raw = init_params(k_param, vocab_len, emb_dim, hidden_dim, n_layers,
                      out_len)
    params = pack_params(raw, emb_dim=emb_dim, hidden_dim=hidden_dim,
                         n_layers=n_layers, out_len=out_len)

    x = jax.random.randint(k_tok, (B, T), 0, vocab_len, dtype=jnp.int32)
    # Mirrors `torch.rand(L*2, B, M)` for the initial (h0, c0) in forward().
    h0 = jax.random.uniform(k_h0, (n_layers * 2, B, hidden_dim), jnp.float32)
    c0 = jax.random.uniform(k_c0, (n_layers * 2, B, hidden_dim), jnp.float32)

    fwd = jax.jit(functools.partial(bilstm_forward, emb_dim=emb_dim,
                                    hidden_dim=hidden_dim, n_layers=n_layers,
                                    out_len=out_len))
    out = fwd(x, h0, c0, params)
    jax.block_until_ready(out)
    assert out.shape == (B, out_len)
    assert bool(jnp.all(jnp.isfinite(out)))
    print("KERNEL_OK")
</pallas_src>

<mosaic_0001>
module attributes {stable_mosaic.version = 11 : i64} {
  func.func @_bilstm_last_kernel(%arg0: i32, %arg1: memref<8x8x256xf32, #tpu.memory_space<vmem>>, %arg2: memref<256x1024xbf16, #tpu.memory_space<vmem>>, %arg3: memref<128x512xbf16, #tpu.memory_space<vmem>>, %arg4: memref<128x512xbf16, #tpu.memory_space<vmem>>, %arg5: memref<1x1024xf32, #tpu.memory_space<vmem>>, %arg6: memref<2x8x128xf32, #tpu.memory_space<vmem>>, %arg7: memref<2x8x128xf32, #tpu.memory_space<vmem>>, %arg8: memref<256x128xbf16, #tpu.memory_space<vmem>>, %arg9: memref<1x128xf32, #tpu.memory_space<vmem>>, %arg10: memref<8x128xf32, #tpu.memory_space<vmem>>, %arg11: memref<8x8x1024xf32, #tpu.memory_space<vmem>>) attributes {dimension_semantics = [#tpu.dimension_semantics<parallel>], iteration_bounds = array<i64: 1>, scalar_prefetch = 0 : i64, scratch_operands = 1 : i64, tpu.core_type = #tpu.core_type<tc>, window_params = [{transform_indices = @transform_0, window_bounds = array<i64: 8, 8, 256>}, {pipeline_mode = #tpu.pipeline_mode<synchronous>, transform_indices = @transform_1, window_bounds = array<i64: 256, 1024>}, {pipeline_mode = #tpu.pipeline_mode<synchronous>, transform_indices = @transform_2, window_bounds = array<i64: 128, 512>}, {pipeline_mode = #tpu.pipeline_mode<synchronous>, transform_indices = @transform_3, window_bounds = array<i64: 128, 512>}, {pipeline_mode = #tpu.pipeline_mode<synchronous>, transform_indices = @transform_4, window_bounds = array<i64: 1, 1024>}, {transform_indices = @transform_5, window_bounds = array<i64: 2, 8, 128>}, {transform_indices = @transform_6, window_bounds = array<i64: 2, 8, 128>}, {pipeline_mode = #tpu.pipeline_mode<synchronous>, transform_indices = @transform_7, window_bounds = array<i64: 256, 128>}, {pipeline_mode = #tpu.pipeline_mode<synchronous>, transform_indices = @transform_8, window_bounds = array<i64: 1, 128>}, {transform_indices = @transform_9, window_bounds = array<i64: 8, 128>}]} {
    %c0 = arith.constant 0 : index
    %c0_0 = arith.constant 0 : index
    %c0_1 = arith.constant 0 : index
    %0 = vector.load %arg1[%c0, %c0_0, %c0_1] : memref<8x8x256xf32, #tpu.memory_space<vmem>>, vector<8x8x256xf32>
    %1 = vector.shape_cast %0 : vector<8x8x256xf32> to vector<64x256xf32>
    %2 = arith.truncf %1 : vector<64x256xf32> to vector<64x256xbf16>
    %c0_2 = arith.constant 0 : index
    %c0_3 = arith.constant 0 : index
    %3 = vector.load %arg2[%c0_2, %c0_3] : memref<256x1024xbf16, #tpu.memory_space<vmem>>, vector<256x1024xbf16>
    %cst = arith.constant dense<0.000000e+00> : vector<64x1024xf32>
    %4 = tpu.matmul %2, %3, %cst {dimension_numbers = #tpu.dot_dimension_numbers<[1], [0], [0], [1], [0, 0, 1, 1], [], []>} : vector<64x256xbf16>, vector<256x1024xbf16>, vector<64x1024xf32> -> vector<64x1024xf32>
    %5 = vector.shape_cast %4 : vector<64x1024xf32> to vector<8x8x1024xf32>
    %c0_4 = arith.constant 0 : index
    %c0_5 = arith.constant 0 : index
    %6 = vector.load %arg5[%c0_4, %c0_5] : memref<1x1024xf32, #tpu.memory_space<vmem>>, vector<1x1024xf32>
    %7 = vector.shape_cast %6 : vector<1x1024xf32> to vector<1x1x1024xf32>
    %8 = vector.broadcast %7 : vector<1x1x1024xf32> to vector<8x8x1024xf32>
    %9 = arith.addf %5, %8 : vector<8x8x1024xf32>
    %c0_6 = arith.constant 0 : index
    %c0_7 = arith.constant 0 : index
    %c0_8 = arith.constant 0 : index
    %10 = vector.load %arg11[%c0_6, %c0_7, %c0_8] : memref<8x8x1024xf32, #tpu.memory_space<vmem>>, vector<8x8x1024xf32>
    tpu.vector_store %arg11[%c0_6, %c0_7, %c0_8], %9 {strides = array<i32>} : memref<8x8x1024xf32, #tpu.memory_space<vmem>>, vector<8x8x1024xf32>,
    %c0_9 = arith.constant 0 : index
    %c0_10 = arith.constant 0 : index
    %11 = vector.load %arg3[%c0_9, %c0_10] : memref<128x512xbf16, #tpu.memory_space<vmem>>, vector<128x512xbf16>
    %c7 = arith.constant 7 : index
    %c0_11 = arith.constant 0 : index
    %c0_12 = arith.constant 0 : index
    %12 = vector.load %arg11[%c7, %c0_11, %c0_12] : memref<8x8x1024xf32, #tpu.memory_space<vmem>>, vector<1x8x1024xf32>
    %13 = vector.shape_cast %12 : vector<1x8x1024xf32> to vector<8x1024xf32>
    %14 = vector.extract_strided_slice %13 {offsets = [0, 512], sizes = [8, 512], strides = [1, 1]} : vector<8x1024xf32> to vector<8x512xf32>
    %c1 = arith.constant 1 : index
    %c0_13 = arith.constant 0 : index
    %c0_14 = arith.constant 0 : index
    %15 = vector.load %arg6[%c1, %c0_13, %c0_14] : memref<2x8x128xf32, #tpu.memory_space<vmem>>, vector<1x8x128xf32>
    %16 = vector.shape_cast %15 : vector<1x8x128xf32> to vector<8x128xf32>
    %17 = arith.truncf %16 : vector<8x128xf32> to vector<8x128xbf16>
    %c0_15 = arith.constant 0 : index
    %c0_16 = arith.constant 0 : index
    %18 = vector.load %arg4[%c0_15, %c0_16] : memref<128x512xbf16, #tpu.memory_space<vmem>>, vector<128x512xbf16>
    %cst_17 = arith.constant dense<0.000000e+00> : vector<8x512xf32>
    %19 = tpu.matmul %17, %18, %cst_17 {dimension_numbers = #tpu.dot_dimension_numbers<[1], [0], [0], [1], [0, 0, 1, 1], [], []>} : vector<8x128xbf16>, vector<128x512xbf16>, vector<8x512xf32> -> vector<8x512xf32>
    %20 = arith.addf %14, %19 : vector<8x512xf32>
    %c1_18 = arith.constant 1 : index
    %c0_19 = arith.constant 0 : index
    %c0_20 = arith.constant 0 : index
    %21 = vector.load %arg7[%c1_18, %c0_19, %c0_20] : memref<2x8x128xf32, #tpu.memory_space<vmem>>, vector<1x8x128xf32>
    %22 = vector.shape_cast %21 : vector<1x8x128xf32> to vector<8x128xf32>
    %23 = vector.extract_strided_slice %20 {offsets = [0, 0], sizes = [8, 128], strides = [1, 1]} : vector<8x512xf32> to vector<8x128xf32>
    %24 = arith.negf %23 : vector<8x128xf32>
    %25 = math.exp %24 : vector<8x128xf32>
    %cst_21 = arith.constant 1.000000e+00 : f32
    %26 = vector.broadcast %cst_21 : f32 to vector<8x128xf32>
    %27 = arith.addf %26, %25 : vector<8x128xf32>
    %28 = arith.divf %26, %27 : vector<8x128xf32>
    %29 = vector.extract_strided_slice %20 {offsets = [0, 128], sizes = [8, 128], strides = [1, 1]} : vector<8x512xf32> to vector<8x128xf32>
    %30 = arith.negf %29 : vector<8x128xf32>
    %31 = math.exp %30 : vector<8x128xf32>
    %cst_22 = arith.constant 1.000000e+00 : f32
    %32 = vector.broadcast %cst_22 : f32 to vector<8x128xf32>
    %33 = arith.addf %32, %31 : vector<8x128xf32>
    %34 = arith.divf %32, %33 : vector<8x128xf32>
    %35 = vector.extract_strided_slice %20 {offsets = [0, 256], sizes = [8, 128], strides = [1, 1]} : vector<8x512xf32> to vector<8x128xf32>
    %36 = math.tanh %35 : vector<8x128xf32>
    %37 = vector.extract_strided_slice %20 {offsets = [0, 384], sizes = [8, 128], strides = [1, 1]} : vector<8x512xf32> to vector<8x128xf32>
    %38 = arith.negf %37 : vector<8x128xf32>
    %39 = math.exp %38 : vector<8x128xf32>
    %cst_23 = arith.constant 1.000000e+00 : f32
    %40 = vector.broadcast %cst_23 : f32 to vector<8x128xf32>
    %41 = arith.addf %40, %39 : vector<8x128xf32>
    %42 = arith.divf %40, %41 : vector<8x128xf32>
    %43 = arith.mulf %34, %22 : vector<8x128xf32>
    %44 = arith.mulf %28, %36 : vector<8x128xf32>
    %45 = arith.addf %43, %44 : vector<8x128xf32>
    %46 = math.tanh %45 : vector<8x128xf32>
    %47 = arith.mulf %42, %46 : vector<8x128xf32>
    %c0_24 = arith.constant 0 : index
    %c0_25 = arith.constant 0 : index
    %c0_26 = arith.constant 0 : index
    %48 = vector.load %arg6[%c0_24, %c0_25, %c0_26] : memref<2x8x128xf32, #tpu.memory_space<vmem>>, vector<1x8x128xf32>
    %49 = vector.shape_cast %48 : vector<1x8x128xf32> to vector<8x128xf32>
    %c0_27 = arith.constant 0 : index
    %c0_28 = arith.constant 0 : index
    %c0_29 = arith.constant 0 : index
    %50 = vector.load %arg7[%c0_27, %c0_28, %c0_29] : memref<2x8x128xf32, #tpu.memory_space<vmem>>, vector<1x8x128xf32>
    %51 = vector.shape_cast %50 : vector<1x8x128xf32> to vector<8x128xf32>
    %c0_i32 = arith.constant 0 : i32
    %52 = arith.index_cast %c0_i32 : i32 to index
    %c0_30 = arith.constant 0 : index
    %c0_31 = arith.constant 0 : index
    %53 = vector.load %arg11[%52, %c0_30, %c0_31] : memref<8x8x1024xf32, #tpu.memory_space<vmem>>, vector<1x8x1024xf32>
    %54 = vector.shape_cast %53 : vector<1x8x1024xf32> to vector<8x1024xf32>
    %55 = vector.extract_strided_slice %54 {offsets = [0, 0], sizes = [8, 512], strides = [1, 1]} : vector<8x1024xf32> to vector<8x512xf32>
    %56 = arith.truncf %49 : vector<8x128xf32> to vector<8x128xbf16>
    %cst_32 = arith.constant dense<0.000000e+00> : vector<8x512xf32>
    %57 = tpu.matmul %56, %11, %cst_32 {dimension_numbers = #tpu.dot_dimension_numbers<[1], [0], [0], [1], [0, 0, 1, 1], [], []>} : vector<8x128xbf16>, vector<128x512xbf16>, vector<8x512xf32> -> vector<8x512xf32>
    %58 = arith.addf %55, %57 : vector<8x512xf32>
    %59 = vector.extract_strided_slice %58 {offsets = [0, 0], sizes = [8, 128], strides = [1, 1]} : vector<8x512xf32> to vector<8x128xf32>
    %60 = arith.negf %59 : vector<8x128xf32>
    %61 = math.exp %60 : vector<8x128xf32>
    %cst_33 = arith.constant 1.000000e+00 : f32
    %62 = vector.broadcast %cst_33 : f32 to vector<8x128xf32>
    %63 = arith.addf %62, %61 : vector<8x128xf32>
    %64 = arith.divf %62, %63 : vector<8x128xf32>
    %65 = vector.extract_strided_slice %58 {offsets = [0, 128], sizes = [8, 128], strides = [1, 1]} : vector<8x512xf32> to vector<8x128xf32>
    %66 = arith.negf %65 : vector<8x128xf32>
    %67 = math.exp %66 : vector<8x128xf32>
    %cst_34 = arith.constant 1.000000e+00 : f32
    %68 = vector.broadcast %cst_34 : f32 to vector<8x128xf32>
    %69 = arith.addf %68, %67 : vector<8x128xf32>
    %70 = arith.divf %68, %69 : vector<8x128xf32>
    %71 = vector.extract_strided_slice %58 {offsets = [0, 256], sizes = [8, 128], strides = [1, 1]} : vector<8x512xf32> to vector<8x128xf32>
    %72 = math.tanh %71 : vector<8x128xf32>
    %73 = vector.extract_strided_slice %58 {offsets = [0, 384], sizes = [8, 128], strides = [1, 1]} : vector<8x512xf32> to vector<8x128xf32>
    %74 = arith.negf %73 : vector<8x128xf32>
    %75 = math.exp %74 : vector<8x128xf32>
    %cst_35 = arith.constant 1.000000e+00 : f32
    %76 = vector.broadcast %cst_35 : f32 to vector<8x128xf32>
    %77 = arith.addf %76, %75 : vector<8x128xf32>
    %78 = arith.divf %76, %77 : vector<8x128xf32>
    %79 = arith.mulf %70, %51 : vector<8x128xf32>
    %80 = arith.mulf %64, %72 : vector<8x128xf32>
    %81 = arith.addf %79, %80 : vector<8x128xf32>
    %82 = math.tanh %81 : vector<8x128xf32>
    %83 = arith.mulf %78, %82 : vector<8x128xf32>
    %c1_i32 = arith.constant 1 : i32
    %84 = arith.index_cast %c1_i32 : i32 to index
    %c0_36 = arith.constant 0 : index
    %c0_37 = arith.constant 0 : index
    %85 = vector.load %arg11[%84, %c0_36, %c0_37] : memref<8x8x1024xf32, #tpu.memory_space<vmem>>, vector<1x8x1024xf32>
    %86 = vector.shape_cast %85 : vector<1x8x1024xf32> to vector<8x1024xf32>
    %87 = vector.extract_strided_slice %86 {offsets = [0, 0], sizes = [8, 512], strides = [1, 1]} : vector<8x1024xf32> to vector<8x512xf32>
    %88 = arith.truncf %83 : vector<8x128xf32> to vector<8x128xbf16>
    %cst_38 = arith.constant dense<0.000000e+00> : vector<8x512xf32>
    %89 = tpu.matmul %88, %11, %cst_38 {dimension_numbers = #tpu.dot_dimension_numbers<[1], [0], [0], [1], [0, 0, 1, 1], [], []>} : vector<8x128xbf16>, vector<128x512xbf16>, vector<8x512xf32> -> vector<8x512xf32>
    %90 = arith.addf %87, %89 : vector<8x512xf32>
    %91 = vector.extract_strided_slice %90 {offsets = [0, 0], sizes = [8, 128], strides = [1, 1]} : vector<8x512xf32> to vector<8x128xf32>
    %92 = arith.negf %91 : vector<8x128xf32>
    %93 = math.exp %92 : vector<8x128xf32>
    %cst_39 = arith.constant 1.000000e+00 : f32
    %94 = vector.broadcast %cst_39 : f32 to vector<8x128xf32>
    %95 = arith.addf %94, %93 : vector<8x128xf32>
    %96 = arith.divf %94, %95 : vector<8x128xf32>
    %97 = vector.extract_strided_slice %90 {offsets = [0, 128], sizes = [8, 128], strides = [1, 1]} : vector<8x512xf32> to vector<8x128xf32>
    %98 = arith.negf %97 : vector<8x128xf32>
    %99 = math.exp %98 : vector<8x128xf32>
    %cst_40 = arith.constant 1.000000e+00 : f32
    %100 = vector.broadcast %cst_40 : f32 to vector<8x128xf32>
    %101 = arith.addf %100, %99 : vector<8x128xf32>
    %102 = arith.divf %100, %101 : vector<8x128xf32>
    %103 = vector.extract_strided_slice %90 {offsets = [0, 256], sizes = [8, 128], strides = [1, 1]} : vector<8x512xf32> to vector<8x128xf32>
    %104 = math.tanh %103 : vector<8x128xf32>
    %105 = vector.extract_strided_slice %90 {offsets = [0, 384], sizes = [8, 128], strides = [1, 1]} : vector<8x512xf32> to vector<8x128xf32>
    %106 = arith.negf %105 : vector<8x128xf32>
    %107 = math.exp %106 : vector<8x128xf32>
    %cst_41 = arith.constant 1.000000e+00 : f32
    %108 = vector.broadcast %cst_41 : f32 to vector<8x128xf32>
    %109 = arith.addf %108, %107 : vector<8x128xf32>
    %110 = arith.divf %108, %109 : vector<8x128xf32>
    %111 = arith.mulf %102, %81 : vector<8x128xf32>
    %112 = arith.mulf %96, %104 : vector<8x128xf32>
    %113 = arith.addf %111, %112 : vector<8x128xf32>
    %114 = math.tanh %113 : vector<8x128xf32>
    %115 = arith.mulf %110, %114 : vector<8x128xf32>
    %c2_i32 = arith.constant 2 : i32
    %116 = arith.index_cast %c2_i32 : i32 to index
    %c0_42 = arith.constant 0 : index
    %c0_43 = arith.constant 0 : index
    %117 = vector.load %arg11[%116, %c0_42, %c0_43] : memref<8x8x1024xf32, #tpu.memory_space<vmem>>, vector<1x8x1024xf32>
    %118 = vector.shape_cast %117 : vector<1x8x1024xf32> to vector<8x1024xf32>
    %119 = vector.extract_strided_slice %118 {offsets = [0, 0], sizes = [8, 512], strides = [1, 1]} : vector<8x1024xf32> to vector<8x512xf32>
    %120 = arith.truncf %115 : vector<8x128xf32> to vector<8x128xbf16>
    %cst_44 = arith.constant dense<0.000000e+00> : vector<8x512xf32>
    %121 = tpu.matmul %120, %11, %cst_44 {dimension_numbers = #tpu.dot_dimension_numbers<[1], [0], [0], [1], [0, 0, 1, 1], [], []>} : vector<8x128xbf16>, vector<128x512xbf16>, vector<8x512xf32> -> vector<8x512xf32>
    %122 = arith.addf %119, %121 : vector<8x512xf32>
    %123 = vector.extract_strided_slice %122 {offsets = [0, 0], sizes = [8, 128], strides = [1, 1]} : vector<8x512xf32> to vector<8x128xf32>
    %124 = arith.negf %123 : vector<8x128xf32>
    %125 = math.exp %124 : vector<8x128xf32>
    %cst_45 = arith.constant 1.000000e+00 : f32
    %126 = vector.broadcast %cst_45 : f32 to vector<8x128xf32>
    %127 = arith.addf %126, %125 : vector<8x128xf32>
    %128 = arith.divf %126, %127 : vector<8x128xf32>
    %129 = vector.extract_strided_slice %122 {offsets = [0, 128], sizes = [8, 128], strides = [1, 1]} : vector<8x512xf32> to vector<8x128xf32>
    %130 = arith.negf %129 : vector<8x128xf32>
    %131 = math.exp %130 : vector<8x128xf32>
    %cst_46 = arith.constant 1.000000e+00 : f32
    %132 = vector.broadcast %cst_46 : f32 to vector<8x128xf32>
    %133 = arith.addf %132, %131 : vector<8x128xf32>
    %134 = arith.divf %132, %133 : vector<8x128xf32>
    %135 = vector.extract_strided_slice %122 {offsets = [0, 256], sizes = [8, 128], strides = [1, 1]} : vector<8x512xf32> to vector<8x128xf32>
    %136 = math.tanh %135 : vector<8x128xf32>
    %137 = vector.extract_strided_slice %122 {offsets = [0, 384], sizes = [8, 128], strides = [1, 1]} : vector<8x512xf32> to vector<8x128xf32>
    %138 = arith.negf %137 : vector<8x128xf32>
    %139 = math.exp %138 : vector<8x128xf32>
    %cst_47 = arith.constant 1.000000e+00 : f32
    %140 = vector.broadcast %cst_47 : f32 to vector<8x128xf32>
    %141 = arith.addf %140, %139 : vector<8x128xf32>
    %142 = arith.divf %140, %141 : vector<8x128xf32>
    %143 = arith.mulf %134, %113 : vector<8x128xf32>
    %144 = arith.mulf %128, %136 : vector<8x128xf32>
    %145 = arith.addf %143, %144 : vector<8x128xf32>
    %146 = math.tanh %145 : vector<8x128xf32>
    %147 = arith.mulf %142, %146 : vector<8x128xf32>
    %c3_i32 = arith.constant 3 : i32
    %148 = arith.index_cast %c3_i32 : i32 to index
    %c0_48 = arith.constant 0 : index
    %c0_49 = arith.constant 0 : index
    %149 = vector.load %arg11[%148, %c0_48, %c0_49] : memref<8x8x1024xf32, #tpu.memory_space<vmem>>, vector<1x8x1024xf32>
    %150 = vector.shape_cast %149 : vector<1x8x1024xf32> to vector<8x1024xf32>
    %151 = vector.extract_strided_slice %150 {offsets = [0, 0], sizes = [8, 512], strides = [1, 1]} : vector<8x1024xf32> to vector<8x512xf32>
    %152 = arith.truncf %147 : vector<8x128xf32> to vector<8x128xbf16>
    %cst_50 = arith.constant dense<0.000000e+00> : vector<8x512xf32>
    %153 = tpu.matmul %152, %11, %cst_50 {dimension_numbers = #tpu.dot_dimension_numbers<[1], [0], [0], [1], [0, 0, 1, 1], [], []>} : vector<8x128xbf16>, vector<128x512xbf16>, vector<8x512xf32> -> vector<8x512xf32>
    %154 = arith.addf %151, %153 : vector<8x512xf32>
    %155 = vector.extract_strided_slice %154 {offsets = [0, 0], sizes = [8, 128], strides = [1, 1]} : vector<8x512xf32> to vector<8x128xf32>
    %156 = arith.negf %155 : vector<8x128xf32>
    %157 = math.exp %156 : vector<8x128xf32>
    %cst_51 = arith.constant 1.000000e+00 : f32
    %158 = vector.broadcast %cst_51 : f32 to vector<8x128xf32>
    %159 = arith.addf %158, %157 : vector<8x128xf32>
    %160 = arith.divf %158, %159 : vector<8x128xf32>
    %161 = vector.extract_strided_slice %154 {offsets = [0, 128], sizes = [8, 128], strides = [1, 1]} : vector<8x512xf32> to vector<8x128xf32>
    %162 = arith.negf %161 : vector<8x128xf32>
    %163 = math.exp %162 : vector<8x128xf32>
    %cst_52 = arith.constant 1.000000e+00 : f32
    %164 = vector.broadcast %cst_52 : f32 to vector<8x128xf32>
    %165 = arith.addf %164, %163 : vector<8x128xf32>
    %166 = arith.divf %164, %165 : vector<8x128xf32>
    %167 = vector.extract_strided_slice %154 {offsets = [0, 256], sizes = [8, 128], strides = [1, 1]} : vector<8x512xf32> to vector<8x128xf32>
    %168 = math.tanh %167 : vector<8x128xf32>
    %169 = vector.extract_strided_slice %154 {offsets = [0, 384], sizes = [8, 128], strides = [1, 1]} : vector<8x512xf32> to vector<8x128xf32>
    %170 = arith.negf %169 : vector<8x128xf32>
    %171 = math.exp %170 : vector<8x128xf32>
    %cst_53 = arith.constant 1.000000e+00 : f32
    %172 = vector.broadcast %cst_53 : f32 to vector<8x128xf32>
    %173 = arith.addf %172, %171 : vector<8x128xf32>
    %174 = arith.divf %172, %173 : vector<8x128xf32>
    %175 = arith.mulf %166, %145 : vector<8x128xf32>
    %176 = arith.mulf %160, %168 : vector<8x128xf32>
    %177 = arith.addf %175, %176 : vector<8x128xf32>
    %178 = math.tanh %177 : vector<8x128xf32>
    %179 = arith.mulf %174, %178 : vector<8x128xf32>
    %c4_i32 = arith.constant 4 : i32
    %180 = arith.index_cast %c4_i32 : i32 to index
    %c0_54 = arith.constant 0 : index
    %c0_55 = arith.constant 0 : index
    %181 = vector.load %arg11[%180, %c0_54, %c0_55] : memref<8x8x1024xf32, #tpu.memory_space<vmem>>, vector<1x8x1024xf32>
    %182 = vector.shape_cast %181 : vector<1x8x1024xf32> to vector<8x1024xf32>
    %183 = vector.extract_strided_slice %182 {offsets = [0, 0], sizes = [8, 512], strides = [1, 1]} : vector<8x1024xf32> to vector<8x512xf32>
    %184 = arith.truncf %179 : vector<8x128xf32> to vector<8x128xbf16>
    %cst_56 = arith.constant dense<0.000000e+00> : vector<8x512xf32>
    %185 = tpu.matmul %184, %11, %cst_56 {dimension_numbers = #tpu.dot_dimension_numbers<[1], [0], [0], [1], [0, 0, 1, 1], [], []>} : vector<8x128xbf16>, vector<128x512xbf16>, vector<8x512xf32> -> vector<8x512xf32>
    %186 = arith.addf %183, %185 : vector<8x512xf32>
    %187 = vector.extract_strided_slice %186 {offsets = [0, 0], sizes = [8, 128], strides = [1, 1]} : vector<8x512xf32> to vector<8x128xf32>
    %188 = arith.negf %187 : vector<8x128xf32>
    %189 = math.exp %188 : vector<8x128xf32>
    %cst_57 = arith.constant 1.000000e+00 : f32
    %190 = vector.broadcast %cst_57 : f32 to vector<8x128xf32>
    %191 = arith.addf %190, %189 : vector<8x128xf32>
    %192 = arith.divf %190, %191 : vector<8x128xf32>
    %193 = vector.extract_strided_slice %186 {offsets = [0, 128], sizes = [8, 128], strides = [1, 1]} : vector<8x512xf32> to vector<8x128xf32>
    %194 = arith.negf %193 : vector<8x128xf32>
    %195 = math.exp %194 : vector<8x128xf32>
    %cst_58 = arith.constant 1.000000e+00 : f32
    %196 = vector.broadcast %cst_58 : f32 to vector<8x128xf32>
    %197 = arith.addf %196, %195 : vector<8x128xf32>
    %198 = arith.divf %196, %197 : vector<8x128xf32>
    %199 = vector.extract_strided_slice %186 {offsets = [0, 256], sizes = [8, 128], strides = [1, 1]} : vector<8x512xf32> to vector<8x128xf32>
    %200 = math.tanh %199 : vector<8x128xf32>
    %201 = vector.extract_strided_slice %186 {offsets = [0, 384], sizes = [8, 128], strides = [1, 1]} : vector<8x512xf32> to vector<8x128xf32>
    %202 = arith.negf %201 : vector<8x128xf32>
    %203 = math.exp %202 : vector<8x128xf32>
    %cst_59 = arith.constant 1.000000e+00 : f32
    %204 = vector.broadcast %cst_59 : f32 to vector<8x128xf32>
    %205 = arith.addf %204, %203 : vector<8x128xf32>
    %206 = arith.divf %204, %205 : vector<8x128xf32>
    %207 = arith.mulf %198, %177 : vector<8x128xf32>
    %208 = arith.mulf %192, %200 : vector<8x128xf32>
    %209 = arith.addf %207, %208 : vector<8x128xf32>
    %210 = math.tanh %209 : vector<8x128xf32>
    %211 = arith.mulf %206, %210 : vector<8x128xf32>
    %c5_i32 = arith.constant 5 : i32
    %212 = arith.index_cast %c5_i32 : i32 to index
    %c0_60 = arith.constant 0 : index
    %c0_61 = arith.constant 0 : index
    %213 = vector.load %arg11[%212, %c0_60, %c0_61] : memref<8x8x1024xf32, #tpu.memory_space<vmem>>, vector<1x8x1024xf32>
    %214 = vector.shape_cast %213 : vector<1x8x1024xf32> to vector<8x1024xf32>
    %215 = vector.extract_strided_slice %214 {offsets = [0, 0], sizes = [8, 512], strides = [1, 1]} : vector<8x1024xf32> to vector<8x512xf32>
    %216 = arith.truncf %211 : vector<8x128xf32> to vector<8x128xbf16>
    %cst_62 = arith.constant dense<0.000000e+00> : vector<8x512xf32>
    %217 = tpu.matmul %216, %11, %cst_62 {dimension_numbers = #tpu.dot_dimension_numbers<[1], [0], [0], [1], [0, 0, 1, 1], [], []>} : vector<8x128xbf16>, vector<128x512xbf16>, vector<8x512xf32> -> vector<8x512xf32>
    %218 = arith.addf %215, %217 : vector<8x512xf32>
    %219 = vector.extract_strided_slice %218 {offsets = [0, 0], sizes = [8, 128], strides = [1, 1]} : vector<8x512xf32> to vector<8x128xf32>
    %220 = arith.negf %219 : vector<8x128xf32>
    %221 = math.exp %220 : vector<8x128xf32>
    %cst_63 = arith.constant 1.000000e+00 : f32
    %222 = vector.broadcast %cst_63 : f32 to vector<8x128xf32>
    %223 = arith.addf %222, %221 : vector<8x128xf32>
    %224 = arith.divf %222, %223 : vector<8x128xf32>
    %225 = vector.extract_strided_slice %218 {offsets = [0, 128], sizes = [8, 128], strides = [1, 1]} : vector<8x512xf32> to vector<8x128xf32>
    %226 = arith.negf %225 : vector<8x128xf32>
    %227 = math.exp %226 : vector<8x128xf32>
    %cst_64 = arith.constant 1.000000e+00 : f32
    %228 = vector.broadcast %cst_64 : f32 to vector<8x128xf32>
    %229 = arith.addf %228, %227 : vector<8x128xf32>
    %230 = arith.divf %228, %229 : vector<8x128xf32>
    %231 = vector.extract_strided_slice %218 {offsets = [0, 256], sizes = [8, 128], strides = [1, 1]} : vector<8x512xf32> to vector<8x128xf32>
    %232 = math.tanh %231 : vector<8x128xf32>
    %233 = vector.extract_strided_slice %218 {offsets = [0, 384], sizes = [8, 128], strides = [1, 1]} : vector<8x512xf32> to vector<8x128xf32>
    %234 = arith.negf %233 : vector<8x128xf32>
    %235 = math.exp %234 : vector<8x128xf32>
    %cst_65 = arith.constant 1.000000e+00 : f32
    %236 = vector.broadcast %cst_65 : f32 to vector<8x128xf32>
    %237 = arith.addf %236, %235 : vector<8x128xf32>
    %238 = arith.divf %236, %237 : vector<8x128xf32>
    %239 = arith.mulf %230, %209 : vector<8x128xf32>
    %240 = arith.mulf %224, %232 : vector<8x128xf32>
    %241 = arith.addf %239, %240 : vector<8x128xf32>
    %242 = math.tanh %241 : vector<8x128xf32>
    %243 = arith.mulf %238, %242 : vector<8x128xf32>
    %c6_i32 = arith.constant 6 : i32
    %244 = arith.index_cast %c6_i32 : i32 to index
    %c0_66 = arith.constant 0 : index
    %c0_67 = arith.constant 0 : index
    %245 = vector.load %arg11[%244, %c0_66, %c0_67] : memref<8x8x1024xf32, #tpu.memory_space<vmem>>, vector<1x8x1024xf32>
    %246 = vector.shape_cast %245 : vector<1x8x1024xf32> to vector<8x1024xf32>
    %247 = vector.extract_strided_slice %246 {offsets = [0, 0], sizes = [8, 512], strides = [1, 1]} : vector<8x1024xf32> to vector<8x512xf32>
    %248 = arith.truncf %243 : vector<8x128xf32> to vector<8x128xbf16>
    %cst_68 = arith.constant dense<0.000000e+00> : vector<8x512xf32>
    %249 = tpu.matmul %248, %11, %cst_68 {dimension_numbers = #tpu.dot_dimension_numbers<[1], [0], [0], [1], [0, 0, 1, 1], [], []>} : vector<8x128xbf16>, vector<128x512xbf16>, vector<8x512xf32> -> vector<8x512xf32>
    %250 = arith.addf %247, %249 : vector<8x512xf32>
    %251 = vector.extract_strided_slice %250 {offsets = [0, 0], sizes = [8, 128], strides = [1, 1]} : vector<8x512xf32> to vector<8x128xf32>
    %252 = arith.negf %251 : vector<8x128xf32>
    %253 = math.exp %252 : vector<8x128xf32>
    %cst_69 = arith.constant 1.000000e+00 : f32
    %254 = vector.broadcast %cst_69 : f32 to vector<8x128xf32>
    %255 = arith.addf %254, %253 : vector<8x128xf32>
    %256 = arith.divf %254, %255 : vector<8x128xf32>
    %257 = vector.extract_strided_slice %250 {offsets = [0, 128], sizes = [8, 128], strides = [1, 1]} : vector<8x512xf32> to vector<8x128xf32>
    %258 = arith.negf %257 : vector<8x128xf32>
    %259 = math.exp %258 : vector<8x128xf32>
    %cst_70 = arith.constant 1.000000e+00 : f32
    %260 = vector.broadcast %cst_70 : f32 to vector<8x128xf32>
    %261 = arith.addf %260, %259 : vector<8x128xf32>
    %262 = arith.divf %260, %261 : vector<8x128xf32>
    %263 = vector.extract_strided_slice %250 {offsets = [0, 256], sizes = [8, 128], strides = [1, 1]} : vector<8x512xf32> to vector<8x128xf32>
    %264 = math.tanh %263 : vector<8x128xf32>
    %265 = vector.extract_strided_slice %250 {offsets = [0, 384], sizes = [8, 128], strides = [1, 1]} : vector<8x512xf32> to vector<8x128xf32>
    %266 = arith.negf %265 : vector<8x128xf32>
    %267 = math.exp %266 : vector<8x128xf32>
    %cst_71 = arith.constant 1.000000e+00 : f32
    %268 = vector.broadcast %cst_71 : f32 to vector<8x128xf32>
    %269 = arith.addf %268, %267 : vector<8x128xf32>
    %270 = arith.divf %268, %269 : vector<8x128xf32>
    %271 = arith.mulf %262, %241 : vector<8x128xf32>
    %272 = arith.mulf %256, %264 : vector<8x128xf32>
    %273 = arith.addf %271, %272 : vector<8x128xf32>
    %274 = math.tanh %273 : vector<8x128xf32>
    %275 = arith.mulf %270, %274 : vector<8x128xf32>
    %c7_i32 = arith.constant 7 : i32
    %276 = arith.index_cast %c7_i32 : i32 to index
    %c0_72 = arith.constant 0 : index
    %c0_73 = arith.constant 0 : index
    %277 = vector.load %arg11[%276, %c0_72, %c0_73] : memref<8x8x1024xf32, #tpu.memory_space<vmem>>, vector<1x8x1024xf32>
    %278 = vector.shape_cast %277 : vector<1x8x1024xf32> to vector<8x1024xf32>
    %279 = vector.extract_strided_slice %278 {offsets = [0, 0], sizes = [8, 512], strides = [1, 1]} : vector<8x1024xf32> to vector<8x512xf32>
    %280 = arith.truncf %275 : vector<8x128xf32> to vector<8x128xbf16>
    %cst_74 = arith.constant dense<0.000000e+00> : vector<8x512xf32>
    %281 = tpu.matmul %280, %11, %cst_74 {dimension_numbers = #tpu.dot_dimension_numbers<[1], [0], [0], [1], [0, 0, 1, 1], [], []>} : vector<8x128xbf16>, vector<128x512xbf16>, vector<8x512xf32> -> vector<8x512xf32>
    %282 = arith.addf %279, %281 : vector<8x512xf32>
    %283 = vector.extract_strided_slice %282 {offsets = [0, 0], sizes = [8, 128], strides = [1, 1]} : vector<8x512xf32> to vector<8x128xf32>
    %284 = arith.negf %283 : vector<8x128xf32>
    %285 = math.exp %284 : vector<8x128xf32>
    %cst_75 = arith.constant 1.000000e+00 : f32
    %286 = vector.broadcast %cst_75 : f32 to vector<8x128xf32>
    %287 = arith.addf %286, %285 : vector<8x128xf32>
    %288 = arith.divf %286, %287 : vector<8x128xf32>
    %289 = vector.extract_strided_slice %282 {offsets = [0, 128], sizes = [8, 128], strides = [1, 1]} : vector<8x512xf32> to vector<8x128xf32>
    %290 = arith.negf %289 : vector<8x128xf32>
    %291 = math.exp %290 : vector<8x128xf32>
    %cst_76 = arith.constant 1.000000e+00 : f32
    %292 = vector.broadcast %cst_76 : f32 to vector<8x128xf32>
    %293 = arith.addf %292, %291 : vector<8x128xf32>
    %294 = arith.divf %292, %293 : vector<8x128xf32>
    %295 = vector.extract_strided_slice %282 {offsets = [0, 256], sizes = [8, 128], strides = [1, 1]} : vector<8x512xf32> to vector<8x128xf32>
    %296 = math.tanh %295 : vector<8x128xf32>
    %297 = vector.extract_strided_slice %282 {offsets = [0, 384], sizes = [8, 128], strides = [1, 1]} : vector<8x512xf32> to vector<8x128xf32>
    %298 = arith.negf %297 : vector<8x128xf32>
    %299 = math.exp %298 : vector<8x128xf32>
    %cst_77 = arith.constant 1.000000e+00 : f32
    %300 = vector.broadcast %cst_77 : f32 to vector<8x128xf32>
    %301 = arith.addf %300, %299 : vector<8x128xf32>
    %302 = arith.divf %300, %301 : vector<8x128xf32>
    %303 = arith.mulf %294, %273 : vector<8x128xf32>
    %304 = arith.mulf %288, %296 : vector<8x128xf32>
    %305 = arith.addf %303, %304 : vector<8x128xf32>
    %306 = math.tanh %305 : vector<8x128xf32>
    %307 = arith.mulf %302, %306 : vector<8x128xf32>
    %c8_i32 = arith.constant 8 : i32
    %308 = tpu.concatenate %307, %47 in 1 : vector<8x128xf32>, vector<8x128xf32> -> vector<8x256xf32>
    %309 = arith.truncf %308 : vector<8x256xf32> to vector<8x256xbf16>
    %c0_78 = arith.constant 0 : index
    %c0_79 = arith.constant 0 : index
    %310 = vector.load %arg8[%c0_78, %c0_79] : memref<256x128xbf16, #tpu.memory_space<vmem>>, vector<256x128xbf16>
    %cst_80 = arith.constant dense<0.000000e+00> : vector<8x128xf32>
    %311 = tpu.matmul %309, %310, %cst_80 {dimension_numbers = #tpu.dot_dimension_numbers<[1], [0], [0], [1], [0, 0, 1, 1], [], []>} : vector<8x256xbf16>, vector<256x128xbf16>, vector<8x128xf32> -> vector<8x128xf32>
    %c0_81 = arith.constant 0 : index
    %c0_82 = arith.constant 0 : index
    %312 = vector.load %arg9[%c0_81, %c0_82] : memref<1x128xf32, #tpu.memory_space<vmem>>, vector<1x128xf32>
    %313 = vector.broadcast %312 : vector<1x128xf32> to vector<8x128xf32>
    %314 = arith.addf %311, %313 : vector<8x128xf32>
    %c0_83 = arith.constant 0 : index
    %c0_84 = arith.constant 0 : index
    %315 = vector.load %arg10[%c0_83, %c0_84] : memref<8x128xf32, #tpu.memory_space<vmem>>, vector<8x128xf32>
    tpu.vector_store %arg10[%c0_83, %c0_84], %314 {strides = array<i32>} : memref<8x128xf32, #tpu.memory_space<vmem>>, vector<8x128xf32>,
    return
  }
  func.func @transform_0(%arg0: i32) -> (i32, i32, i32) {
    %c0_i32 = arith.constant 0 : i32
    %c0_i32_0 = arith.constant 0 : i32
    %c0_i32_1 = arith.constant 0 : i32
    return %c0_i32, %arg0, %c0_i32_0 : i32, i32, i32
  }
  func.func @transform_1(%arg0: i32) -> (i32, i32) {
    %c0_i32 = arith.constant 0 : i32
    %c0_i32_0 = arith.constant 0 : i32
    %c0_i32_1 = arith.constant 0 : i32
    return %c0_i32, %c0_i32_0 : i32, i32
  }
  func.func @transform_2(%arg0: i32) -> (i32, i32) {
    %c0_i32 = arith.constant 0 : i32
    %c0_i32_0 = arith.constant 0 : i32
    %c0_i32_1 = arith.constant 0 : i32
    return %c0_i32, %c0_i32_0 : i32, i32
  }
  func.func @transform_3(%arg0: i32) -> (i32, i32) {
    %c0_i32 = arith.constant 0 : i32
    %c0_i32_0 = arith.constant 0 : i32
    %c0_i32_1 = arith.constant 0 : i32
    return %c0_i32, %c0_i32_0 : i32, i32
  }
  func.func @transform_4(%arg0: i32) -> (i32, i32) {
    %c0_i32 = arith.constant 0 : i32
    %c0_i32_0 = arith.constant 0 : i32
    %c0_i32_1 = arith.constant 0 : i32
    return %c0_i32, %c0_i32_0 : i32, i32
  }
  func.func @transform_5(%arg0: i32) -> (i32, i32, i32) {
    %c0_i32 = arith.constant 0 : i32
    %c0_i32_0 = arith.constant 0 : i32
    %c0_i32_1 = arith.constant 0 : i32
    return %c0_i32, %arg0, %c0_i32_0 : i32, i32, i32
  }
  func.func @transform_6(%arg0: i32) -> (i32, i32, i32) {
    %c0_i32 = arith.constant 0 : i32
    %c0_i32_0 = arith.constant 0 : i32
    %c0_i32_1 = arith.constant 0 : i32
    return %c0_i32, %arg0, %c0_i32_0 : i32, i32, i32
  }
  func.func @transform_7(%arg0: i32) -> (i32, i32) {
    %c0_i32 = arith.constant 0 : i32
    %c0_i32_0 = arith.constant 0 : i32
    %c0_i32_1 = arith.constant 0 : i32
    return %c0_i32, %c0_i32_0 : i32, i32
  }
  func.func @transform_8(%arg0: i32) -> (i32, i32) {
    %c0_i32 = arith.constant 0 : i32
    %c0_i32_0 = arith.constant 0 : i32
    %c0_i32_1 = arith.constant 0 : i32
    return %c0_i32, %c0_i32_0 : i32, i32
  }
  func.func @transform_9(%arg0: i32) -> (i32, i32) {
    %c0_i32 = arith.constant 0 : i32
    %c0_i32_0 = arith.constant 0 : i32
    return %arg0, %c0_i32 : i32, i32
  }
}

module attributes {stable_mosaic.version = 11 : i64} {
  func.func @_bilstm_mid_kernel(%arg0: i32, %arg1: memref<8x8x128xf32, #tpu.memory_space<vmem>>, %arg2: memref<128x1024xbf16, #tpu.memory_space<vmem>>, %arg3: memref<128x512xbf16, #tpu.memory_space<vmem>>, %arg4: memref<128x512xbf16, #tpu.memory_space<vmem>>, %arg5: memref<1x1024xf32, #tpu.memory_space<vmem>>, %arg6: memref<2x8x128xf32, #tpu.memory_space<vmem>>, %arg7: memref<2x8x128xf32, #tpu.memory_space<vmem>>, %arg8: memref<8x8x256xf32, #tpu.memory_space<vmem>>, %arg9: memref<8x8x1024xf32, #tpu.memory_space<vmem>>) attributes {dimension_semantics = [#tpu.dimension_semantics<parallel>], iteration_bounds = array<i64: 1>, scalar_prefetch = 0 : i64, scratch_operands = 1 : i64, tpu.core_type = #tpu.core_type<tc>, window_params = [{transform_indices = @transform_0, window_bounds = array<i64: 8, 8, 128>}, {pipeline_mode = #tpu.pipeline_mode<synchronous>, transform_indices = @transform_1, window_bounds = array<i64: 128, 1024>}, {pipeline_mode = #tpu.pipeline_mode<synchronous>, transform_indices = @transform_2, window_bounds = array<i64: 128, 512>}, {pipeline_mode = #tpu.pipeline_mode<synchronous>, transform_indices = @transform_3, window_bounds = array<i64: 128, 512>}, {pipeline_mode = #tpu.pipeline_mode<synchronous>, transform_indices = @transform_4, window_bounds = array<i64: 1, 1024>}, {transform_indices = @transform_5, window_bounds = array<i64: 2, 8, 128>}, {transform_indices = @transform_6, window_bounds = array<i64: 2, 8, 128>}, {transform_indices = @transform_7, window_bounds = array<i64: 8, 8, 256>}]} {
    %c0 = arith.constant 0 : index
    %c0_0 = arith.constant 0 : index
    %c0_1 = arith.constant 0 : index
    %0 = vector.load %arg1[%c0, %c0_0, %c0_1] : memref<8x8x128xf32, #tpu.memory_space<vmem>>, vector<8x8x128xf32>
    %1 = vector.shape_cast %0 : vector<8x8x128xf32> to vector<64x128xf32>
    %2 = arith.truncf %1 : vector<64x128xf32> to vector<64x128xbf16>
    %c0_2 = arith.constant 0 : index
    %c0_3 = arith.constant 0 : index
    %3 = vector.load %arg2[%c0_2, %c0_3] : memref<128x1024xbf16, #tpu.memory_space<vmem>>, vector<128x1024xbf16>
    %cst = arith.constant dense<0.000000e+00> : vector<64x1024xf32>
    %4 = tpu.matmul %2, %3, %cst {dimension_numbers = #tpu.dot_dimension_numbers<[1], [0], [0], [1], [0, 0, 1, 1], [], []>} : vector<64x128xbf16>, vector<128x1024xbf16>, vector<64x1024xf32> -> vector<64x1024xf32>
    %5 = vector.shape_cast %4 : vector<64x1024xf32> to vector<8x8x1024xf32>
    %c0_4 = arith.constant 0 : index
    %c0_5 = arith.constant 0 : index
    %6 = vector.load %arg5[%c0_4, %c0_5] : memref<1x1024xf32, #tpu.memory_space<vmem>>, vector<1x1024xf32>
    %7 = vector.shape_cast %6 : vector<1x1024xf32> to vector<1x1x1024xf32>
    %8 = vector.broadcast %7 : vector<1x1x1024xf32> to vector<8x8x1024xf32>
    %9 = arith.addf %5, %8 : vector<8x8x1024xf32>
    %c0_6 = arith.constant 0 : index
    %c0_7 = arith.constant 0 : index
    %c0_8 = arith.constant 0 : index
    %10 = vector.load %arg9[%c0_6, %c0_7, %c0_8] : memref<8x8x1024xf32, #tpu.memory_space<vmem>>, vector<8x8x1024xf32>
    tpu.vector_store %arg9[%c0_6, %c0_7, %c0_8], %9 {strides = array<i32>} : memref<8x8x1024xf32, #tpu.memory_space<vmem>>, vector<8x8x1024xf32>,
    %c0_9 = arith.constant 0 : index
    %c0_10 = arith.constant 0 : index
    %11 = vector.load %arg3[%c0_9, %c0_10] : memref<128x512xbf16, #tpu.memory_space<vmem>>, vector<128x512xbf16>
    %c0_11 = arith.constant 0 : index
    %c0_12 = arith.constant 0 : index
    %12 = vector.load %arg4[%c0_11, %c0_12] : memref<128x512xbf16, #tpu.memory_space<vmem>>, vector<128x512xbf16>
    %c0_13 = arith.constant 0 : index
    %c0_14 = arith.constant 0 : index
    %c0_15 = arith.constant 0 : index
    %13 = vector.load %arg6[%c0_13, %c0_14, %c0_15] : memref<2x8x128xf32, #tpu.memory_space<vmem>>, vector<1x8x128xf32>
    %14 = vector.shape_cast %13 : vector<1x8x128xf32> to vector<8x128xf32>
    %c0_16 = arith.constant 0 : index
    %c0_17 = arith.constant 0 : index
    %c0_18 = arith.constant 0 : index
    %15 = vector.load %arg7[%c0_16, %c0_17, %c0_18] : memref<2x8x128xf32, #tpu.memory_space<vmem>>, vector<1x8x128xf32>
    %16 = vector.shape_cast %15 : vector<1x8x128xf32> to vector<8x128xf32>
    %c1 = arith.constant 1 : index
    %c0_19 = arith.constant 0 : index
    %c0_20 = arith.constant 0 : index
    %17 = vector.load %arg6[%c1, %c0_19, %c0_20] : memref<2x8x128xf32, #tpu.memory_space<vmem>>, vector<1x8x128xf32>
    %18 = vector.shape_cast %17 : vector<1x8x128xf32> to vector<8x128xf32>
    %c1_21 = arith.constant 1 : index
    %c0_22 = arith.constant 0 : index
    %c0_23 = arith.constant 0 : index
    %19 = vector.load %arg7[%c1_21, %c0_22, %c0_23] : memref<2x8x128xf32, #tpu.memory_space<vmem>>, vector<1x8x128xf32>
    %20 = vector.shape_cast %19 : vector<1x8x128xf32> to vector<8x128xf32>
    %c0_i32 = arith.constant 0 : i32
    %c7_i32 = arith.constant 7 : i32
    %21 = arith.subi %c7_i32, %c0_i32 : i32
    %22 = arith.index_cast %c0_i32 : i32 to index
    %c0_24 = arith.constant 0 : index
    %c0_25 = arith.constant 0 : index
    %23 = vector.load %arg9[%22, %c0_24, %c0_25] : memref<8x8x1024xf32, #tpu.memory_space<vmem>>, vector<1x8x1024xf32>
    %24 = vector.shape_cast %23 : vector<1x8x1024xf32> to vector<8x1024xf32>
    %25 = arith.index_cast %21 : i32 to index
    %c0_26 = arith.constant 0 : index
    %c0_27 = arith.constant 0 : index
    %26 = vector.load %arg9[%25, %c0_26, %c0_27] : memref<8x8x1024xf32, #tpu.memory_space<vmem>>, vector<1x8x1024xf32>
    %27 = vector.shape_cast %26 : vector<1x8x1024xf32> to vector<8x1024xf32>
    %28 = vector.extract_strided_slice %24 {offsets = [0, 0], sizes = [8, 512], strides = [1, 1]} : vector<8x1024xf32> to vector<8x512xf32>
    %29 = arith.truncf %14 : vector<8x128xf32> to vector<8x128xbf16>
    %cst_28 = arith.constant dense<0.000000e+00> : vector<8x512xf32>
    %30 = tpu.matmul %29, %11, %cst_28 {dimension_numbers = #tpu.dot_dimension_numbers<[1], [0], [0], [1], [0, 0, 1, 1], [], []>} : vector<8x128xbf16>, vector<128x512xbf16>, vector<8x512xf32> -> vector<8x512xf32>
    %31 = arith.addf %28, %30 : vector<8x512xf32>
    %32 = vector.extract_strided_slice %27 {offsets = [0, 512], sizes = [8, 512], strides = [1, 1]} : vector<8x1024xf32> to vector<8x512xf32>
    %33 = arith.truncf %18 : vector<8x128xf32> to vector<8x128xbf16>
    %cst_29 = arith.constant dense<0.000000e+00> : vector<8x512xf32>
    %34 = tpu.matmul %33, %12, %cst_29 {dimension_numbers = #tpu.dot_dimension_numbers<[1], [0], [0], [1], [0, 0, 1, 1], [], []>} : vector<8x128xbf16>, vector<128x512xbf16>, vector<8x512xf32> -> vector<8x512xf32>
    %35 = arith.addf %32, %34 : vector<8x512xf32>
    %36 = vector.extract_strided_slice %31 {offsets = [0, 0], sizes = [8, 128], strides = [1, 1]} : vector<8x512xf32> to vector<8x128xf32>
    %37 = arith.negf %36 : vector<8x128xf32>
    %38 = math.exp %37 : vector<8x128xf32>
    %cst_30 = arith.constant 1.000000e+00 : f32
    %39 = vector.broadcast %cst_30 : f32 to vector<8x128xf32>
    %40 = arith.addf %39, %38 : vector<8x128xf32>
    %41 = arith.divf %39, %40 : vector<8x128xf32>
    %42 = vector.extract_strided_slice %31 {offsets = [0, 128], sizes = [8, 128], strides = [1, 1]} : vector<8x512xf32> to vector<8x128xf32>
    %43 = arith.negf %42 : vector<8x128xf32>
    %44 = math.exp %43 : vector<8x128xf32>
    %cst_31 = arith.constant 1.000000e+00 : f32
    %45 = vector.broadcast %cst_31 : f32 to vector<8x128xf32>
    %46 = arith.addf %45, %44 : vector<8x128xf32>
    %47 = arith.divf %45, %46 : vector<8x128xf32>
    %48 = vector.extract_strided_slice %31 {offsets = [0, 256], sizes = [8, 128], strides = [1, 1]} : vector<8x512xf32> to vector<8x128xf32>
    %49 = math.tanh %48 : vector<8x128xf32>
    %50 = vector.extract_strided_slice %31 {offsets = [0, 384], sizes = [8, 128], strides = [1, 1]} : vector<8x512xf32> to vector<8x128xf32>
    %51 = arith.negf %50 : vector<8x128xf32>
    %52 = math.exp %51 : vector<8x128xf32>
    %cst_32 = arith.constant 1.000000e+00 : f32
    %53 = vector.broadcast %cst_32 : f32 to vector<8x128xf32>
    %54 = arith.addf %53, %52 : vector<8x128xf32>
    %55 = arith.divf %53, %54 : vector<8x128xf32>
    %56 = arith.mulf %47, %16 : vector<8x128xf32>
    %57 = arith.mulf %41, %49 : vector<8x128xf32>
    %58 = arith.addf %56, %57 : vector<8x128xf32>
    %59 = math.tanh %58 : vector<8x128xf32>
    %60 = arith.mulf %55, %59 : vector<8x128xf32>
    %61 = vector.extract_strided_slice %35 {offsets = [0, 0], sizes = [8, 128], strides = [1, 1]} : vector<8x512xf32> to vector<8x128xf32>
    %62 = arith.negf %61 : vector<8x128xf32>
    %63 = math.exp %62 : vector<8x128xf32>
    %cst_33 = arith.constant 1.000000e+00 : f32
    %64 = vector.broadcast %cst_33 : f32 to vector<8x128xf32>
    %65 = arith.addf %64, %63 : vector<8x128xf32>
    %66 = arith.divf %64, %65 : vector<8x128xf32>
    %67 = vector.extract_strided_slice %35 {offsets = [0, 128], sizes = [8, 128], strides = [1, 1]} : vector<8x512xf32> to vector<8x128xf32>
    %68 = arith.negf %67 : vector<8x128xf32>
    %69 = math.exp %68 : vector<8x128xf32>
    %cst_34 = arith.constant 1.000000e+00 : f32
    %70 = vector.broadcast %cst_34 : f32 to vector<8x128xf32>
    %71 = arith.addf %70, %69 : vector<8x128xf32>
    %72 = arith.divf %70, %71 : vector<8x128xf32>
    %73 = vector.extract_strided_slice %35 {offsets = [0, 256], sizes = [8, 128], strides = [1, 1]} : vector<8x512xf32> to vector<8x128xf32>
    %74 = math.tanh %73 : vector<8x128xf32>
    %75 = vector.extract_strided_slice %35 {offsets = [0, 384], sizes = [8, 128], strides = [1, 1]} : vector<8x512xf32> to vector<8x128xf32>
    %76 = arith.negf %75 : vector<8x128xf32>
    %77 = math.exp %76 : vector<8x128xf32>
    %cst_35 = arith.constant 1.000000e+00 : f32
    %78 = vector.broadcast %cst_35 : f32 to vector<8x128xf32>
    %79 = arith.addf %78, %77 : vector<8x128xf32>
    %80 = arith.divf %78, %79 : vector<8x128xf32>
    %81 = arith.mulf %72, %20 : vector<8x128xf32>
    %82 = arith.mulf %66, %74 : vector<8x128xf32>
    %83 = arith.addf %81, %82 : vector<8x128xf32>
    %84 = math.tanh %83 : vector<8x128xf32>
    %85 = arith.mulf %80, %84 : vector<8x128xf32>
    %86 = arith.index_cast %c0_i32 : i32 to index
    %c0_36 = arith.constant 0 : index
    %c0_37 = arith.constant 0 : index
    %87 = vector.load %arg8[%86, %c0_36, %c0_37] : memref<8x8x256xf32, #tpu.memory_space<vmem>>, vector<1x8x128xf32>
    %88 = vector.shape_cast %87 : vector<1x8x128xf32> to vector<8x128xf32>
    %89 = vector.shape_cast %60 : vector<8x128xf32> to vector<1x8x128xf32>
    tpu.vector_store %arg8[%86, %c0_36, %c0_37], %89 {strides = array<i32>} : memref<8x8x256xf32, #tpu.memory_space<vmem>>, vector<1x8x128xf32>,
    %90 = arith.index_cast %21 : i32 to index
    %c0_38 = arith.constant 0 : index
    %c128 = arith.constant 128 : index
    %91 = vector.load %arg8[%90, %c0_38, %c128] : memref<8x8x256xf32, #tpu.memory_space<vmem>>, vector<1x8x128xf32>
    %92 = vector.shape_cast %91 : vector<1x8x128xf32> to vector<8x128xf32>
    %93 = vector.shape_cast %85 : vector<8x128xf32> to vector<1x8x128xf32>
    tpu.vector_store %arg8[%90, %c0_38, %c128], %93 {strides = array<i32>} : memref<8x8x256xf32, #tpu.memory_space<vmem>>, vector<1x8x128xf32>,
    %c1_i32 = arith.constant 1 : i32
    %c7_i32_39 = arith.constant 7 : i32
    %94 = arith.subi %c7_i32_39, %c1_i32 : i32
    %95 = arith.index_cast %c1_i32 : i32 to index
    %c0_40 = arith.constant 0 : index
    %c0_41 = arith.constant 0 : index
    %96 = vector.load %arg9[%95, %c0_40, %c0_41] : memref<8x8x1024xf32, #tpu.memory_space<vmem>>, vector<1x8x1024xf32>
    %97 = vector.shape_cast %96 : vector<1x8x1024xf32> to vector<8x1024xf32>
    %98 = arith.index_cast %94 : i32 to index
    %c0_42 = arith.constant 0 : index
    %c0_43 = arith.constant 0 : index
    %99 = vector.load %arg9[%98, %c0_42, %c0_43] : memref<8x8x1024xf32, #tpu.memory_space<vmem>>, vector<1x8x1024xf32>
    %100 = vector.shape_cast %99 : vector<1x8x1024xf32> to vector<8x1024xf32>
    %101 = vector.extract_strided_slice %97 {offsets = [0, 0], sizes = [8, 512], strides = [1, 1]} : vector<8x1024xf32> to vector<8x512xf32>
    %102 = arith.truncf %60 : vector<8x128xf32> to vector<8x128xbf16>
    %cst_44 = arith.constant dense<0.000000e+00> : vector<8x512xf32>
    %103 = tpu.matmul %102, %11, %cst_44 {dimension_numbers = #tpu.dot_dimension_numbers<[1], [0], [0], [1], [0, 0, 1, 1], [], []>} : vector<8x128xbf16>, vector<128x512xbf16>, vector<8x512xf32> -> vector<8x512xf32>
    %104 = arith.addf %101, %103 : vector<8x512xf32>
    %105 = vector.extract_strided_slice %100 {offsets = [0, 512], sizes = [8, 512], strides = [1, 1]} : vector<8x1024xf32> to vector<8x512xf32>
    %106 = arith.truncf %85 : vector<8x128xf32> to vector<8x128xbf16>
    %cst_45 = arith.constant dense<0.000000e+00> : vector<8x512xf32>
    %107 = tpu.matmul %106, %12, %cst_45 {dimension_numbers = #tpu.dot_dimension_numbers<[1], [0], [0], [1], [0, 0, 1, 1], [], []>} : vector<8x128xbf16>, vector<128x512xbf16>, vector<8x512xf32> -> vector<8x512xf32>
    %108 = arith.addf %105, %107 : vector<8x512xf32>
    %109 = vector.extract_strided_slice %104 {offsets = [0, 0], sizes = [8, 128], strides = [1, 1]} : vector<8x512xf32> to vector<8x128xf32>
    %110 = arith.negf %109 : vector<8x128xf32>
    %111 = math.exp %110 : vector<8x128xf32>
    %cst_46 = arith.constant 1.000000e+00 : f32
    %112 = vector.broadcast %cst_46 : f32 to vector<8x128xf32>
    %113 = arith.addf %112, %111 : vector<8x128xf32>
    %114 = arith.divf %112, %113 : vector<8x128xf32>
    %115 = vector.extract_strided_slice %104 {offsets = [0, 128], sizes = [8, 128], strides = [1, 1]} : vector<8x512xf32> to vector<8x128xf32>
    %116 = arith.negf %115 : vector<8x128xf32>
    %117 = math.exp %116 : vector<8x128xf32>
    %cst_47 = arith.constant 1.000000e+00 : f32
    %118 = vector.broadcast %cst_47 : f32 to vector<8x128xf32>
    %119 = arith.addf %118, %117 : vector<8x128xf32>
    %120 = arith.divf %118, %119 : vector<8x128xf32>
    %121 = vector.extract_strided_slice %104 {offsets = [0, 256], sizes = [8, 128], strides = [1, 1]} : vector<8x512xf32> to vector<8x128xf32>
    %122 = math.tanh %121 : vector<8x128xf32>
    %123 = vector.extract_strided_slice %104 {offsets = [0, 384], sizes = [8, 128], strides = [1, 1]} : vector<8x512xf32> to vector<8x128xf32>
    %124 = arith.negf %123 : vector<8x128xf32>
    %125 = math.exp %124 : vector<8x128xf32>
    %cst_48 = arith.constant 1.000000e+00 : f32
    %126 = vector.broadcast %cst_48 : f32 to vector<8x128xf32>
    %127 = arith.addf %126, %125 : vector<8x128xf32>
    %128 = arith.divf %126, %127 : vector<8x128xf32>
    %129 = arith.mulf %120, %58 : vector<8x128xf32>
    %130 = arith.mulf %114, %122 : vector<8x128xf32>
    %131 = arith.addf %129, %130 : vector<8x128xf32>
    %132 = math.tanh %131 : vector<8x128xf32>
    %133 = arith.mulf %128, %132 : vector<8x128xf32>
    %134 = vector.extract_strided_slice %108 {offsets = [0, 0], sizes = [8, 128], strides = [1, 1]} : vector<8x512xf32> to vector<8x128xf32>
    %135 = arith.negf %134 : vector<8x128xf32>
    %136 = math.exp %135 : vector<8x128xf32>
    %cst_49 = arith.constant 1.000000e+00 : f32
    %137 = vector.broadcast %cst_49 : f32 to vector<8x128xf32>
    %138 = arith.addf %137, %136 : vector<8x128xf32>
    %139 = arith.divf %137, %138 : vector<8x128xf32>
    %140 = vector.extract_strided_slice %108 {offsets = [0, 128], sizes = [8, 128], strides = [1, 1]} : vector<8x512xf32> to vector<8x128xf32>
    %141 = arith.negf %140 : vector<8x128xf32>
    %142 = math.exp %141 : vector<8x128xf32>
    %cst_50 = arith.constant 1.000000e+00 : f32
    %143 = vector.broadcast %cst_50 : f32 to vector<8x128xf32>
    %144 = arith.addf %143, %142 : vector<8x128xf32>
    %145 = arith.divf %143, %144 : vector<8x128xf32>
    %146 = vector.extract_strided_slice %108 {offsets = [0, 256], sizes = [8, 128], strides = [1, 1]} : vector<8x512xf32> to vector<8x128xf32>
    %147 = math.tanh %146 : vector<8x128xf32>
    %148 = vector.extract_strided_slice %108 {offsets = [0, 384], sizes = [8, 128], strides = [1, 1]} : vector<8x512xf32> to vector<8x128xf32>
    %149 = arith.negf %148 : vector<8x128xf32>
    %150 = math.exp %149 : vector<8x128xf32>
    %cst_51 = arith.constant 1.000000e+00 : f32
    %151 = vector.broadcast %cst_51 : f32 to vector<8x128xf32>
    %152 = arith.addf %151, %150 : vector<8x128xf32>
    %153 = arith.divf %151, %152 : vector<8x128xf32>
    %154 = arith.mulf %145, %83 : vector<8x128xf32>
    %155 = arith.mulf %139, %147 : vector<8x128xf32>
    %156 = arith.addf %154, %155 : vector<8x128xf32>
    %157 = math.tanh %156 : vector<8x128xf32>
    %158 = arith.mulf %153, %157 : vector<8x128xf32>
    %159 = arith.index_cast %c1_i32 : i32 to index
    %c0_52 = arith.constant 0 : index
    %c0_53 = arith.constant 0 : index
    %160 = vector.load %arg8[%159, %c0_52, %c0_53] : memref<8x8x256xf32, #tpu.memory_space<vmem>>, vector<1x8x128xf32>
    %161 = vector.shape_cast %160 : vector<1x8x128xf32> to vector<8x128xf32>
    %162 = vector.shape_cast %133 : vector<8x128xf32> to vector<1x8x128xf32>
    tpu.vector_store %arg8[%159, %c0_52, %c0_53], %162 {strides = array<i32>} : memref<8x8x256xf32, #tpu.memory_space<vmem>>, vector<1x8x128xf32>,
    %163 = arith.index_cast %94 : i32 to index
    %c0_54 = arith.constant 0 : index
    %c128_55 = arith.constant 128 : index
    %164 = vector.load %arg8[%163, %c0_54, %c128_55] : memref<8x8x256xf32, #tpu.memory_space<vmem>>, vector<1x8x128xf32>
    %165 = vector.shape_cast %164 : vector<1x8x128xf32> to vector<8x128xf32>
    %166 = vector.shape_cast %158 : vector<8x128xf32> to vector<1x8x128xf32>
    tpu.vector_store %arg8[%163, %c0_54, %c128_55], %166 {strides = array<i32>} : memref<8x8x256xf32, #tpu.memory_space<vmem>>, vector<1x8x128xf32>,
    %c2_i32 = arith.constant 2 : i32
    %c7_i32_56 = arith.constant 7 : i32
    %167 = arith.subi %c7_i32_56, %c2_i32 : i32
    %168 = arith.index_cast %c2_i32 : i32 to index
    %c0_57 = arith.constant 0 : index
    %c0_58 = arith.constant 0 : index
    %169 = vector.load %arg9[%168, %c0_57, %c0_58] : memref<8x8x1024xf32, #tpu.memory_space<vmem>>, vector<1x8x1024xf32>
    %170 = vector.shape_cast %169 : vector<1x8x1024xf32> to vector<8x1024xf32>
    %171 = arith.index_cast %167 : i32 to index
    %c0_59 = arith.constant 0 : index
    %c0_60 = arith.constant 0 : index
    %172 = vector.load %arg9[%171, %c0_59, %c0_60] : memref<8x8x1024xf32, #tpu.memory_space<vmem>>, vector<1x8x1024xf32>
    %173 = vector.shape_cast %172 : vector<1x8x1024xf32> to vector<8x1024xf32>
    %174 = vector.extract_strided_slice %170 {offsets = [0, 0], sizes = [8, 512], strides = [1, 1]} : vector<8x1024xf32> to vector<8x512xf32>
    %175 = arith.truncf %133 : vector<8x128xf32> to vector<8x128xbf16>
    %cst_61 = arith.constant dense<0.000000e+00> : vector<8x512xf32>
    %176 = tpu.matmul %175, %11, %cst_61 {dimension_numbers = #tpu.dot_dimension_numbers<[1], [0], [0], [1], [0, 0, 1, 1], [], []>} : vector<8x128xbf16>, vector<128x512xbf16>, vector<8x512xf32> -> vector<8x512xf32>
    %177 = arith.addf %174, %176 : vector<8x512xf32>
    %178 = vector.extract_strided_slice %173 {offsets = [0, 512], sizes = [8, 512], strides = [1, 1]} : vector<8x1024xf32> to vector<8x512xf32>
    %179 = arith.truncf %158 : vector<8x128xf32> to vector<8x128xbf16>
    %cst_62 = arith.constant dense<0.000000e+00> : vector<8x512xf32>
    %180 = tpu.matmul %179, %12, %cst_62 {dimension_numbers = #tpu.dot_dimension_numbers<[1], [0], [0], [1], [0, 0, 1, 1], [], []>} : vector<8x128xbf16>, vector<128x512xbf16>, vector<8x512xf32> -> vector<8x512xf32>
    %181 = arith.addf %178, %180 : vector<8x512xf32>
    %182 = vector.extract_strided_slice %177 {offsets = [0, 0], sizes = [8, 128], strides = [1, 1]} : vector<8x512xf32> to vector<8x128xf32>
    %183 = arith.negf %182 : vector<8x128xf32>
    %184 = math.exp %183 : vector<8x128xf32>
    %cst_63 = arith.constant 1.000000e+00 : f32
    %185 = vector.broadcast %cst_63 : f32 to vector<8x128xf32>
    %186 = arith.addf %185, %184 : vector<8x128xf32>
    %187 = arith.divf %185, %186 : vector<8x128xf32>
    %188 = vector.extract_strided_slice %177 {offsets = [0, 128], sizes = [8, 128], strides = [1, 1]} : vector<8x512xf32> to vector<8x128xf32>
    %189 = arith.negf %188 : vector<8x128xf32>
    %190 = math.exp %189 : vector<8x128xf32>
    %cst_64 = arith.constant 1.000000e+00 : f32
    %191 = vector.broadcast %cst_64 : f32 to vector<8x128xf32>
    %192 = arith.addf %191, %190 : vector<8x128xf32>
    %193 = arith.divf %191, %192 : vector<8x128xf32>
    %194 = vector.extract_strided_slice %177 {offsets = [0, 256], sizes = [8, 128], strides = [1, 1]} : vector<8x512xf32> to vector<8x128xf32>
    %195 = math.tanh %194 : vector<8x128xf32>
    %196 = vector.extract_strided_slice %177 {offsets = [0, 384], sizes = [8, 128], strides = [1, 1]} : vector<8x512xf32> to vector<8x128xf32>
    %197 = arith.negf %196 : vector<8x128xf32>
    %198 = math.exp %197 : vector<8x128xf32>
    %cst_65 = arith.constant 1.000000e+00 : f32
    %199 = vector.broadcast %cst_65 : f32 to vector<8x128xf32>
    %200 = arith.addf %199, %198 : vector<8x128xf32>
    %201 = arith.divf %199, %200 : vector<8x128xf32>
    %202 = arith.mulf %193, %131 : vector<8x128xf32>
    %203 = arith.mulf %187, %195 : vector<8x128xf32>
    %204 = arith.addf %202, %203 : vector<8x128xf32>
    %205 = math.tanh %204 : vector<8x128xf32>
    %206 = arith.mulf %201, %205 : vector<8x128xf32>
    %207 = vector.extract_strided_slice %181 {offsets = [0, 0], sizes = [8, 128], strides = [1, 1]} : vector<8x512xf32> to vector<8x128xf32>
    %208 = arith.negf %207 : vector<8x128xf32>
    %209 = math.exp %208 : vector<8x128xf32>
    %cst_66 = arith.constant 1.000000e+00 : f32
    %210 = vector.broadcast %cst_66 : f32 to vector<8x128xf32>
    %211 = arith.addf %210, %209 : vector<8x128xf32>
    %212 = arith.divf %210, %211 : vector<8x128xf32>
    %213 = vector.extract_strided_slice %181 {offsets = [0, 128], sizes = [8, 128], strides = [1, 1]} : vector<8x512xf32> to vector<8x128xf32>
    %214 = arith.negf %213 : vector<8x128xf32>
    %215 = math.exp %214 : vector<8x128xf32>
    %cst_67 = arith.constant 1.000000e+00 : f32
    %216 = vector.broadcast %cst_67 : f32 to vector<8x128xf32>
    %217 = arith.addf %216, %215 : vector<8x128xf32>
    %218 = arith.divf %216, %217 : vector<8x128xf32>
    %219 = vector.extract_strided_slice %181 {offsets = [0, 256], sizes = [8, 128], strides = [1, 1]} : vector<8x512xf32> to vector<8x128xf32>
    %220 = math.tanh %219 : vector<8x128xf32>
    %221 = vector.extract_strided_slice %181 {offsets = [0, 384], sizes = [8, 128], strides = [1, 1]} : vector<8x512xf32> to vector<8x128xf32>
    %222 = arith.negf %221 : vector<8x128xf32>
    %223 = math.exp %222 : vector<8x128xf32>
    %cst_68 = arith.constant 1.000000e+00 : f32
    %224 = vector.broadcast %cst_68 : f32 to vector<8x128xf32>
    %225 = arith.addf %224, %223 : vector<8x128xf32>
    %226 = arith.divf %224, %225 : vector<8x128xf32>
    %227 = arith.mulf %218, %156 : vector<8x128xf32>
    %228 = arith.mulf %212, %220 : vector<8x128xf32>
    %229 = arith.addf %227, %228 : vector<8x128xf32>
    %230 = math.tanh %229 : vector<8x128xf32>
    %231 = arith.mulf %226, %230 : vector<8x128xf32>
    %232 = arith.index_cast %c2_i32 : i32 to index
    %c0_69 = arith.constant 0 : index
    %c0_70 = arith.constant 0 : index
    %233 = vector.load %arg8[%232, %c0_69, %c0_70] : memref<8x8x256xf32, #tpu.memory_space<vmem>>, vector<1x8x128xf32>
    %234 = vector.shape_cast %233 : vector<1x8x128xf32> to vector<8x128xf32>
    %235 = vector.shape_cast %206 : vector<8x128xf32> to vector<1x8x128xf32>
    tpu.vector_store %arg8[%232, %c0_69, %c0_70], %235 {strides = array<i32>} : memref<8x8x256xf32, #tpu.memory_space<vmem>>, vector<1x8x128xf32>,
    %236 = arith.index_cast %167 : i32 to index
    %c0_71 = arith.constant 0 : index
    %c128_72 = arith.constant 128 : index
    %237 = vector.load %arg8[%236, %c0_71, %c128_72] : memref<8x8x256xf32, #tpu.memory_space<vmem>>, vector<1x8x128xf32>
    %238 = vector.shape_cast %237 : vector<1x8x128xf32> to vector<8x128xf32>
    %239 = vector.shape_cast %231 : vector<8x128xf32> to vector<1x8x128xf32>
    tpu.vector_store %arg8[%236, %c0_71, %c128_72], %239 {strides = array<i32>} : memref<8x8x256xf32, #tpu.memory_space<vmem>>, vector<1x8x128xf32>,
    %c3_i32 = arith.constant 3 : i32
    %c7_i32_73 = arith.constant 7 : i32
    %240 = arith.subi %c7_i32_73, %c3_i32 : i32
    %241 = arith.index_cast %c3_i32 : i32 to index
    %c0_74 = arith.constant 0 : index
    %c0_75 = arith.constant 0 : index
    %242 = vector.load %arg9[%241, %c0_74, %c0_75] : memref<8x8x1024xf32, #tpu.memory_space<vmem>>, vector<1x8x1024xf32>
    %243 = vector.shape_cast %242 : vector<1x8x1024xf32> to vector<8x1024xf32>
    %244 = arith.index_cast %240 : i32 to index
    %c0_76 = arith.constant 0 : index
    %c0_77 = arith.constant 0 : index
    %245 = vector.load %arg9[%244, %c0_76, %c0_77] : memref<8x8x1024xf32, #tpu.memory_space<vmem>>, vector<1x8x1024xf32>
    %246 = vector.shape_cast %245 : vector<1x8x1024xf32> to vector<8x1024xf32>
    %247 = vector.extract_strided_slice %243 {offsets = [0, 0], sizes = [8, 512], strides = [1, 1]} : vector<8x1024xf32> to vector<8x512xf32>
    %248 = arith.truncf %206 : vector<8x128xf32> to vector<8x128xbf16>
    %cst_78 = arith.constant dense<0.000000e+00> : vector<8x512xf32>
    %249 = tpu.matmul %248, %11, %cst_78 {dimension_numbers = #tpu.dot_dimension_numbers<[1], [0], [0], [1], [0, 0, 1, 1], [], []>} : vector<8x128xbf16>, vector<128x512xbf16>, vector<8x512xf32> -> vector<8x512xf32>
    %250 = arith.addf %247, %249 : vector<8x512xf32>
    %251 = vector.extract_strided_slice %246 {offsets = [0, 512], sizes = [8, 512], strides = [1, 1]} : vector<8x1024xf32> to vector<8x512xf32>
    %252 = arith.truncf %231 : vector<8x128xf32> to vector<8x128xbf16>
    %cst_79 = arith.constant dense<0.000000e+00> : vector<8x512xf32>
    %253 = tpu.matmul %252, %12, %cst_79 {dimension_numbers = #tpu.dot_dimension_numbers<[1], [0], [0], [1], [0, 0, 1, 1], [], []>} : vector<8x128xbf16>, vector<128x512xbf16>, vector<8x512xf32> -> vector<8x512xf32>
    %254 = arith.addf %251, %253 : vector<8x512xf32>
    %255 = vector.extract_strided_slice %250 {offsets = [0, 0], sizes = [8, 128], strides = [1, 1]} : vector<8x512xf32> to vector<8x128xf32>
    %256 = arith.negf %255 : vector<8x128xf32>
    %257 = math.exp %256 : vector<8x128xf32>
    %cst_80 = arith.constant 1.000000e+00 : f32
    %258 = vector.broadcast %cst_80 : f32 to vector<8x128xf32>
    %259 = arith.addf %258, %257 : vector<8x128xf32>
    %260 = arith.divf %258, %259 : vector<8x128xf32>
    %261 = vector.extract_strided_slice %250 {offsets = [0, 128], sizes = [8, 128], strides = [1, 1]} : vector<8x512xf32> to vector<8x128xf32>
    %262 = arith.negf %261 : vector<8x128xf32>
    %263 = math.exp %262 : vector<8x128xf32>
    %cst_81 = arith.constant 1.000000e+00 : f32
    %264 = vector.broadcast %cst_81 : f32 to vector<8x128xf32>
    %265 = arith.addf %264, %263 : vector<8x128xf32>
    %266 = arith.divf %264, %265 : vector<8x128xf32>
    %267 = vector.extract_strided_slice %250 {offsets = [0, 256], sizes = [8, 128], strides = [1, 1]} : vector<8x512xf32> to vector<8x128xf32>
    %268 = math.tanh %267 : vector<8x128xf32>
    %269 = vector.extract_strided_slice %250 {offsets = [0, 384], sizes = [8, 128], strides = [1, 1]} : vector<8x512xf32> to vector<8x128xf32>
    %270 = arith.negf %269 : vector<8x128xf32>
    %271 = math.exp %270 : vector<8x128xf32>
    %cst_82 = arith.constant 1.000000e+00 : f32
    %272 = vector.broadcast %cst_82 : f32 to vector<8x128xf32>
    %273 = arith.addf %272, %271 : vector<8x128xf32>
    %274 = arith.divf %272, %273 : vector<8x128xf32>
    %275 = arith.mulf %266, %204 : vector<8x128xf32>
    %276 = arith.mulf %260, %268 : vector<8x128xf32>
    %277 = arith.addf %275, %276 : vector<8x128xf32>
    %278 = math.tanh %277 : vector<8x128xf32>
    %279 = arith.mulf %274, %278 : vector<8x128xf32>
    %280 = vector.extract_strided_slice %254 {offsets = [0, 0], sizes = [8, 128], strides = [1, 1]} : vector<8x512xf32> to vector<8x128xf32>
    %281 = arith.negf %280 : vector<8x128xf32>
    %282 = math.exp %281 : vector<8x128xf32>
    %cst_83 = arith.constant 1.000000e+00 : f32
    %283 = vector.broadcast %cst_83 : f32 to vector<8x128xf32>
    %284 = arith.addf %283, %282 : vector<8x128xf32>
    %285 = arith.divf %283, %284 : vector<8x128xf32>
    %286 = vector.extract_strided_slice %254 {offsets = [0, 128], sizes = [8, 128], strides = [1, 1]} : vector<8x512xf32> to vector<8x128xf32>
    %287 = arith.negf %286 : vector<8x128xf32>
    %288 = math.exp %287 : vector<8x128xf32>
    %cst_84 = arith.constant 1.000000e+00 : f32
    %289 = vector.broadcast %cst_84 : f32 to vector<8x128xf32>
    %290 = arith.addf %289, %288 : vector<8x128xf32>
    %291 = arith.divf %289, %290 : vector<8x128xf32>
    %292 = vector.extract_strided_slice %254 {offsets = [0, 256], sizes = [8, 128], strides = [1, 1]} : vector<8x512xf32> to vector<8x128xf32>
    %293 = math.tanh %292 : vector<8x128xf32>
    %294 = vector.extract_strided_slice %254 {offsets = [0, 384], sizes = [8, 128], strides = [1, 1]} : vector<8x512xf32> to vector<8x128xf32>
    %295 = arith.negf %294 : vector<8x128xf32>
    %296 = math.exp %295 : vector<8x128xf32>
    %cst_85 = arith.constant 1.000000e+00 : f32
    %297 = vector.broadcast %cst_85 : f32 to vector<8x128xf32>
    %298 = arith.addf %297, %296 : vector<8x128xf32>
    %299 = arith.divf %297, %298 : vector<8x128xf32>
    %300 = arith.mulf %291, %229 : vector<8x128xf32>
    %301 = arith.mulf %285, %293 : vector<8x128xf32>
    %302 = arith.addf %300, %301 : vector<8x128xf32>
    %303 = math.tanh %302 : vector<8x128xf32>
    %304 = arith.mulf %299, %303 : vector<8x128xf32>
    %305 = arith.index_cast %c3_i32 : i32 to index
    %c0_86 = arith.constant 0 : index
    %c0_87 = arith.constant 0 : index
    %306 = vector.load %arg8[%305, %c0_86, %c0_87] : memref<8x8x256xf32, #tpu.memory_space<vmem>>, vector<1x8x128xf32>
    %307 = vector.shape_cast %306 : vector<1x8x128xf32> to vector<8x128xf32>
    %308 = vector.shape_cast %279 : vector<8x128xf32> to vector<1x8x128xf32>
    tpu.vector_store %arg8[%305, %c0_86, %c0_87], %308 {strides = array<i32>} : memref<8x8x256xf32, #tpu.memory_space<vmem>>, vector<1x8x128xf32>,
    %309 = arith.index_cast %240 : i32 to index
    %c0_88 = arith.constant 0 : index
    %c128_89 = arith.constant 128 : index
    %310 = vector.load %arg8[%309, %c0_88, %c128_89] : memref<8x8x256xf32, #tpu.memory_space<vmem>>, vector<1x8x128xf32>
    %311 = vector.shape_cast %310 : vector<1x8x128xf32> to vector<8x128xf32>
    %312 = vector.shape_cast %304 : vector<8x128xf32> to vector<1x8x128xf32>
    tpu.vector_store %arg8[%309, %c0_88, %c128_89], %312 {strides = array<i32>} : memref<8x8x256xf32, #tpu.memory_space<vmem>>, vector<1x8x128xf32>,
    %c4_i32 = arith.constant 4 : i32
    %c7_i32_90 = arith.constant 7 : i32
    %313 = arith.subi %c7_i32_90, %c4_i32 : i32
    %314 = arith.index_cast %c4_i32 : i32 to index
    %c0_91 = arith.constant 0 : index
    %c0_92 = arith.constant 0 : index
    %315 = vector.load %arg9[%314, %c0_91, %c0_92] : memref<8x8x1024xf32, #tpu.memory_space<vmem>>, vector<1x8x1024xf32>
    %316 = vector.shape_cast %315 : vector<1x8x1024xf32> to vector<8x1024xf32>
    %317 = arith.index_cast %313 : i32 to index
    %c0_93 = arith.constant 0 : index
    %c0_94 = arith.constant 0 : index
    %318 = vector.load %arg9[%317, %c0_93, %c0_94] : memref<8x8x1024xf32, #tpu.memory_space<vmem>>, vector<1x8x1024xf32>
    %319 = vector.shape_cast %318 : vector<1x8x1024xf32> to vector<8x1024xf32>
    %320 = vector.extract_strided_slice %316 {offsets = [0, 0], sizes = [8, 512], strides = [1, 1]} : vector<8x1024xf32> to vector<8x512xf32>
    %321 = arith.truncf %279 : vector<8x128xf32> to vector<8x128xbf16>
    %cst_95 = arith.constant dense<0.000000e+00> : vector<8x512xf32>
    %322 = tpu.matmul %321, %11, %cst_95 {dimension_numbers = #tpu.dot_dimension_numbers<[1], [0], [0], [1], [0, 0, 1, 1], [], []>} : vector<8x128xbf16>, vector<128x512xbf16>, vector<8x512xf32> -> vector<8x512xf32>
    %323 = arith.addf %320, %322 : vector<8x512xf32>
    %324 = vector.extract_strided_slice %319 {offsets = [0, 512], sizes = [8, 512], strides = [1, 1]} : vector<8x1024xf32> to vector<8x512xf32>
    %325 = arith.truncf %304 : vector<8x128xf32> to vector<8x128xbf16>
    %cst_96 = arith.constant dense<0.000000e+00> : vector<8x512xf32>
    %326 = tpu.matmul %325, %12, %cst_96 {dimension_numbers = #tpu.dot_dimension_numbers<[1], [0], [0], [1], [0, 0, 1, 1], [], []>} : vector<8x128xbf16>, vector<128x512xbf16>, vector<8x512xf32> -> vector<8x512xf32>
    %327 = arith.addf %324, %326 : vector<8x512xf32>
    %328 = vector.extract_strided_slice %323 {offsets = [0, 0], sizes = [8, 128], strides = [1, 1]} : vector<8x512xf32> to vector<8x128xf32>
    %329 = arith.negf %328 : vector<8x128xf32>
    %330 = math.exp %329 : vector<8x128xf32>
    %cst_97 = arith.constant 1.000000e+00 : f32
    %331 = vector.broadcast %cst_97 : f32 to vector<8x128xf32>
    %332 = arith.addf %331, %330 : vector<8x128xf32>
    %333 = arith.divf %331, %332 : vector<8x128xf32>
    %334 = vector.extract_strided_slice %323 {offsets = [0, 128], sizes = [8, 128], strides = [1, 1]} : vector<8x512xf32> to vector<8x128xf32>
    %335 = arith.negf %334 : vector<8x128xf32>
    %336 = math.exp %335 : vector<8x128xf32>
    %cst_98 = arith.constant 1.000000e+00 : f32
    %337 = vector.broadcast %cst_98 : f32 to vector<8x128xf32>
    %338 = arith.addf %337, %336 : vector<8x128xf32>
    %339 = arith.divf %337, %338 : vector<8x128xf32>
    %340 = vector.extract_strided_slice %323 {offsets = [0, 256], sizes = [8, 128], strides = [1, 1]} : vector<8x512xf32> to vector<8x128xf32>
    %341 = math.tanh %340 : vector<8x128xf32>
    %342 = vector.extract_strided_slice %323 {offsets = [0, 384], sizes = [8, 128], strides = [1, 1]} : vector<8x512xf32> to vector<8x128xf32>
    %343 = arith.negf %342 : vector<8x128xf32>
    %344 = math.exp %343 : vector<8x128xf32>
    %cst_99 = arith.constant 1.000000e+00 : f32
    %345 = vector.broadcast %cst_99 : f32 to vector<8x128xf32>
    %346 = arith.addf %345, %344 : vector<8x128xf32>
    %347 = arith.divf %345, %346 : vector<8x128xf32>
    %348 = arith.mulf %339, %277 : vector<8x128xf32>
    %349 = arith.mulf %333, %341 : vector<8x128xf32>
    %350 = arith.addf %348, %349 : vector<8x128xf32>
    %351 = math.tanh %350 : vector<8x128xf32>
    %352 = arith.mulf %347, %351 : vector<8x128xf32>
    %353 = vector.extract_strided_slice %327 {offsets = [0, 0], sizes = [8, 128], strides = [1, 1]} : vector<8x512xf32> to vector<8x128xf32>
    %354 = arith.negf %353 : vector<8x128xf32>
    %355 = math.exp %354 : vector<8x128xf32>
    %cst_100 = arith.constant 1.000000e+00 : f32
    %356 = vector.broadcast %cst_100 : f32 to vector<8x128xf32>
    %357 = arith.addf %356, %355 : vector<8x128xf32>
    %358 = arith.divf %356, %357 : vector<8x128xf32>
    %359 = vector.extract_strided_slice %327 {offsets = [0, 128], sizes = [8, 128], strides = [1, 1]} : vector<8x512xf32> to vector<8x128xf32>
    %360 = arith.negf %359 : vector<8x128xf32>
    %361 = math.exp %360 : vector<8x128xf32>
    %cst_101 = arith.constant 1.000000e+00 : f32
    %362 = vector.broadcast %cst_101 : f32 to vector<8x128xf32>
    %363 = arith.addf %362, %361 : vector<8x128xf32>
    %364 = arith.divf %362, %363 : vector<8x128xf32>
    %365 = vector.extract_strided_slice %327 {offsets = [0, 256], sizes = [8, 128], strides = [1, 1]} : vector<8x512xf32> to vector<8x128xf32>
    %366 = math.tanh %365 : vector<8x128xf32>
    %367 = vector.extract_strided_slice %327 {offsets = [0, 384], sizes = [8, 128], strides = [1, 1]} : vector<8x512xf32> to vector<8x128xf32>
    %368 = arith.negf %367 : vector<8x128xf32>
    %369 = math.exp %368 : vector<8x128xf32>
    %cst_102 = arith.constant 1.000000e+00 : f32
    %370 = vector.broadcast %cst_102 : f32 to vector<8x128xf32>
    %371 = arith.addf %370, %369 : vector<8x128xf32>
    %372 = arith.divf %370, %371 : vector<8x128xf32>
    %373 = arith.mulf %364, %302 : vector<8x128xf32>
    %374 = arith.mulf %358, %366 : vector<8x128xf32>
    %375 = arith.addf %373, %374 : vector<8x128xf32>
    %376 = math.tanh %375 : vector<8x128xf32>
    %377 = arith.mulf %372, %376 : vector<8x128xf32>
    %378 = arith.index_cast %c4_i32 : i32 to index
    %c0_103 = arith.constant 0 : index
    %c0_104 = arith.constant 0 : index
    %379 = vector.load %arg8[%378, %c0_103, %c0_104] : memref<8x8x256xf32, #tpu.memory_space<vmem>>, vector<1x8x128xf32>
    %380 = vector.shape_cast %379 : vector<1x8x128xf32> to vector<8x128xf32>
    %381 = vector.shape_cast %352 : vector<8x128xf32> to vector<1x8x128xf32>
    tpu.vector_store %arg8[%378, %c0_103, %c0_104], %381 {strides = array<i32>} : memref<8x8x256xf32, #tpu.memory_space<vmem>>, vector<1x8x128xf32>,
    %382 = arith.index_cast %313 : i32 to index
    %c0_105 = arith.constant 0 : index
    %c128_106 = arith.constant 128 : index
    %383 = vector.load %arg8[%382, %c0_105, %c128_106] : memref<8x8x256xf32, #tpu.memory_space<vmem>>, vector<1x8x128xf32>
    %384 = vector.shape_cast %383 : vector<1x8x128xf32> to vector<8x128xf32>
    %385 = vector.shape_cast %377 : vector<8x128xf32> to vector<1x8x128xf32>
    tpu.vector_store %arg8[%382, %c0_105, %c128_106], %385 {strides = array<i32>} : memref<8x8x256xf32, #tpu.memory_space<vmem>>, vector<1x8x128xf32>,
    %c5_i32 = arith.constant 5 : i32
    %c7_i32_107 = arith.constant 7 : i32
    %386 = arith.subi %c7_i32_107, %c5_i32 : i32
    %387 = arith.index_cast %c5_i32 : i32 to index
    %c0_108 = arith.constant 0 : index
    %c0_109 = arith.constant 0 : index
    %388 = vector.load %arg9[%387, %c0_108, %c0_109] : memref<8x8x1024xf32, #tpu.memory_space<vmem>>, vector<1x8x1024xf32>
    %389 = vector.shape_cast %388 : vector<1x8x1024xf32> to vector<8x1024xf32>
    %390 = arith.index_cast %386 : i32 to index
    %c0_110 = arith.constant 0 : index
    %c0_111 = arith.constant 0 : index
    %391 = vector.load %arg9[%390, %c0_110, %c0_111] : memref<8x8x1024xf32, #tpu.memory_space<vmem>>, vector<1x8x1024xf32>
    %392 = vector.shape_cast %391 : vector<1x8x1024xf32> to vector<8x1024xf32>
    %393 = vector.extract_strided_slice %389 {offsets = [0, 0], sizes = [8, 512], strides = [1, 1]} : vector<8x1024xf32> to vector<8x512xf32>
    %394 = arith.truncf %352 : vector<8x128xf32> to vector<8x128xbf16>
    %cst_112 = arith.constant dense<0.000000e+00> : vector<8x512xf32>
    %395 = tpu.matmul %394, %11, %cst_112 {dimension_numbers = #tpu.dot_dimension_numbers<[1], [0], [0], [1], [0, 0, 1, 1], [], []>} : vector<8x128xbf16>, vector<128x512xbf16>, vector<8x512xf32> -> vector<8x512xf32>
    %396 = arith.addf %393, %395 : vector<8x512xf32>
    %397 = vector.extract_strided_slice %392 {offsets = [0, 512], sizes = [8, 512], strides = [1, 1]} : vector<8x1024xf32> to vector<8x512xf32>
    %398 = arith.truncf %377 : vector<8x128xf32> to vector<8x128xbf16>
    %cst_113 = arith.constant dense<0.000000e+00> : vector<8x512xf32>
    %399 = tpu.matmul %398, %12, %cst_113 {dimension_numbers = #tpu.dot_dimension_numbers<[1], [0], [0], [1], [0, 0, 1, 1], [], []>} : vector<8x128xbf16>, vector<128x512xbf16>, vector<8x512xf32> -> vector<8x512xf32>
    %400 = arith.addf %397, %399 : vector<8x512xf32>
    %401 = vector.extract_strided_slice %396 {offsets = [0, 0], sizes = [8, 128], strides = [1, 1]} : vector<8x512xf32> to vector<8x128xf32>
    %402 = arith.negf %401 : vector<8x128xf32>
    %403 = math.exp %402 : vector<8x128xf32>
    %cst_114 = arith.constant 1.000000e+00 : f32
    %404 = vector.broadcast %cst_114 : f32 to vector<8x128xf32>
    %405 = arith.addf %404, %403 : vector<8x128xf32>
    %406 = arith.divf %404, %405 : vector<8x128xf32>
    %407 = vector.extract_strided_slice %396 {offsets = [0, 128], sizes = [8, 128], strides = [1, 1]} : vector<8x512xf32> to vector<8x128xf32>
    %408 = arith.negf %407 : vector<8x128xf32>
    %409 = math.exp %408 : vector<8x128xf32>
    %cst_115 = arith.constant 1.000000e+00 : f32
    %410 = vector.broadcast %cst_115 : f32 to vector<8x128xf32>
    %411 = arith.addf %410, %409 : vector<8x128xf32>
    %412 = arith.divf %410, %411 : vector<8x128xf32>
    %413 = vector.extract_strided_slice %396 {offsets = [0, 256], sizes = [8, 128], strides = [1, 1]} : vector<8x512xf32> to vector<8x128xf32>
    %414 = math.tanh %413 : vector<8x128xf32>
    %415 = vector.extract_strided_slice %396 {offsets = [0, 384], sizes = [8, 128], strides = [1, 1]} : vector<8x512xf32> to vector<8x128xf32>
    %416 = arith.negf %415 : vector<8x128xf32>
    %417 = math.exp %416 : vector<8x128xf32>
    %cst_116 = arith.constant 1.000000e+00 : f32
    %418 = vector.broadcast %cst_116 : f32 to vector<8x128xf32>
    %419 = arith.addf %418, %417 : vector<8x128xf32>
    %420 = arith.divf %418, %419 : vector<8x128xf32>
    %421 = arith.mulf %412, %350 : vector<8x128xf32>
    %422 = arith.mulf %406, %414 : vector<8x128xf32>
    %423 = arith.addf %421, %422 : vector<8x128xf32>
    %424 = math.tanh %423 : vector<8x128xf32>
    %425 = arith.mulf %420, %424 : vector<8x128xf32>
    %426 = vector.extract_strided_slice %400 {offsets = [0, 0], sizes = [8, 128], strides = [1, 1]} : vector<8x512xf32> to vector<8x128xf32>
    %427 = arith.negf %426 : vector<8x128xf32>
    %428 = math.exp %427 : vector<8x128xf32>
    %cst_117 = arith.constant 1.000000e+00 : f32
    %429 = vector.broadcast %cst_117 : f32 to vector<8x128xf32>
    %430 = arith.addf %429, %428 : vector<8x128xf32>
    %431 = arith.divf %429, %430 : vector<8x128xf32>
    %432 = vector.extract_strided_slice %400 {offsets = [0, 128], sizes = [8, 128], strides = [1, 1]} : vector<8x512xf32> to vector<8x128xf32>
    %433 = arith.negf %432 : vector<8x128xf32>
    %434 = math.exp %433 : vector<8x128xf32>
    %cst_118 = arith.constant 1.000000e+00 : f32
    %435 = vector.broadcast %cst_118 : f32 to vector<8x128xf32>
    %436 = arith.addf %435, %434 : vector<8x128xf32>
    %437 = arith.divf %435, %436 : vector<8x128xf32>
    %438 = vector.extract_strided_slice %400 {offsets = [0, 256], sizes = [8, 128], strides = [1, 1]} : vector<8x512xf32> to vector<8x128xf32>
    %439 = math.tanh %438 : vector<8x128xf32>
    %440 = vector.extract_strided_slice %400 {offsets = [0, 384], sizes = [8, 128], strides = [1, 1]} : vector<8x512xf32> to vector<8x128xf32>
    %441 = arith.negf %440 : vector<8x128xf32>
    %442 = math.exp %441 : vector<8x128xf32>
    %cst_119 = arith.constant 1.000000e+00 : f32
    %443 = vector.broadcast %cst_119 : f32 to vector<8x128xf32>
    %444 = arith.addf %443, %442 : vector<8x128xf32>
    %445 = arith.divf %443, %444 : vector<8x128xf32>
    %446 = arith.mulf %437, %375 : vector<8x128xf32>
    %447 = arith.mulf %431, %439 : vector<8x128xf32>
    %448 = arith.addf %446, %447 : vector<8x128xf32>
    %449 = math.tanh %448 : vector<8x128xf32>
    %450 = arith.mulf %445, %449 : vector<8x128xf32>
    %451 = arith.index_cast %c5_i32 : i32 to index
    %c0_120 = arith.constant 0 : index
    %c0_121 = arith.constant 0 : index
    %452 = vector.load %arg8[%451, %c0_120, %c0_121] : memref<8x8x256xf32, #tpu.memory_space<vmem>>, vector<1x8x128xf32>
    %453 = vector.shape_cast %452 : vector<1x8x128xf32> to vector<8x128xf32>
    %454 = vector.shape_cast %425 : vector<8x128xf32> to vector<1x8x128xf32>
    tpu.vector_store %arg8[%451, %c0_120, %c0_121], %454 {strides = array<i32>} : memref<8x8x256xf32, #tpu.memory_space<vmem>>, vector<1x8x128xf32>,
    %455 = arith.index_cast %386 : i32 to index
    %c0_122 = arith.constant 0 : index
    %c128_123 = arith.constant 128 : index
    %456 = vector.load %arg8[%455, %c0_122, %c128_123] : memref<8x8x256xf32, #tpu.memory_space<vmem>>, vector<1x8x128xf32>
    %457 = vector.shape_cast %456 : vector<1x8x128xf32> to vector<8x128xf32>
    %458 = vector.shape_cast %450 : vector<8x128xf32> to vector<1x8x128xf32>
    tpu.vector_store %arg8[%455, %c0_122, %c128_123], %458 {strides = array<i32>} : memref<8x8x256xf32, #tpu.memory_space<vmem>>, vector<1x8x128xf32>,
    %c6_i32 = arith.constant 6 : i32
    %c7_i32_124 = arith.constant 7 : i32
    %459 = arith.subi %c7_i32_124, %c6_i32 : i32
    %460 = arith.index_cast %c6_i32 : i32 to index
    %c0_125 = arith.constant 0 : index
    %c0_126 = arith.constant 0 : index
    %461 = vector.load %arg9[%460, %c0_125, %c0_126] : memref<8x8x1024xf32, #tpu.memory_space<vmem>>, vector<1x8x1024xf32>
    %462 = vector.shape_cast %461 : vector<1x8x1024xf32> to vector<8x1024xf32>
    %463 = arith.index_cast %459 : i32 to index
    %c0_127 = arith.constant 0 : index
    %c0_128 = arith.constant 0 : index
    %464 = vector.load %arg9[%463, %c0_127, %c0_128] : memref<8x8x1024xf32, #tpu.memory_space<vmem>>, vector<1x8x1024xf32>
    %465 = vector.shape_cast %464 : vector<1x8x1024xf32> to vector<8x1024xf32>
    %466 = vector.extract_strided_slice %462 {offsets = [0, 0], sizes = [8, 512], strides = [1, 1]} : vector<8x1024xf32> to vector<8x512xf32>
    %467 = arith.truncf %425 : vector<8x128xf32> to vector<8x128xbf16>
    %cst_129 = arith.constant dense<0.000000e+00> : vector<8x512xf32>
    %468 = tpu.matmul %467, %11, %cst_129 {dimension_numbers = #tpu.dot_dimension_numbers<[1], [0], [0], [1], [0, 0, 1, 1], [], []>} : vector<8x128xbf16>, vector<128x512xbf16>, vector<8x512xf32> -> vector<8x512xf32>
    %469 = arith.addf %466, %468 : vector<8x512xf32>
    %470 = vector.extract_strided_slice %465 {offsets = [0, 512], sizes = [8, 512], strides = [1, 1]} : vector<8x1024xf32> to vector<8x512xf32>
    %471 = arith.truncf %450 : vector<8x128xf32> to vector<8x128xbf16>
    %cst_130 = arith.constant dense<0.000000e+00> : vector<8x512xf32>
    %472 = tpu.matmul %471, %12, %cst_130 {dimension_numbers = #tpu.dot_dimension_numbers<[1], [0], [0], [1], [0, 0, 1, 1], [], []>} : vector<8x128xbf16>, vector<128x512xbf16>, vector<8x512xf32> -> vector<8x512xf32>
    %473 = arith.addf %470, %472 : vector<8x512xf32>
    %474 = vector.extract_strided_slice %469 {offsets = [0, 0], sizes = [8, 128], strides = [1, 1]} : vector<8x512xf32> to vector<8x128xf32>
    %475 = arith.negf %474 : vector<8x128xf32>
    %476 = math.exp %475 : vector<8x128xf32>
    %cst_131 = arith.constant 1.000000e+00 : f32
    %477 = vector.broadcast %cst_131 : f32 to vector<8x128xf32>
    %478 = arith.addf %477, %476 : vector<8x128xf32>
    %479 = arith.divf %477, %478 : vector<8x128xf32>
    %480 = vector.extract_strided_slice %469 {offsets = [0, 128], sizes = [8, 128], strides = [1, 1]} : vector<8x512xf32> to vector<8x128xf32>
    %481 = arith.negf %480 : vector<8x128xf32>
    %482 = math.exp %481 : vector<8x128xf32>
    %cst_132 = arith.constant 1.000000e+00 : f32
    %483 = vector.broadcast %cst_132 : f32 to vector<8x128xf32>
    %484 = arith.addf %483, %482 : vector<8x128xf32>
    %485 = arith.divf %483, %484 : vector<8x128xf32>
    %486 = vector.extract_strided_slice %469 {offsets = [0, 256], sizes = [8, 128], strides = [1, 1]} : vector<8x512xf32> to vector<8x128xf32>
    %487 = math.tanh %486 : vector<8x128xf32>
    %488 = vector.extract_strided_slice %469 {offsets = [0, 384], sizes = [8, 128], strides = [1, 1]} : vector<8x512xf32> to vector<8x128xf32>
    %489 = arith.negf %488 : vector<8x128xf32>
    %490 = math.exp %489 : vector<8x128xf32>
    %cst_133 = arith.constant 1.000000e+00 : f32
    %491 = vector.broadcast %cst_133 : f32 to vector<8x128xf32>
    %492 = arith.addf %491, %490 : vector<8x128xf32>
    %493 = arith.divf %491, %492 : vector<8x128xf32>
    %494 = arith.mulf %485, %423 : vector<8x128xf32>
    %495 = arith.mulf %479, %487 : vector<8x128xf32>
    %496 = arith.addf %494, %495 : vector<8x128xf32>
    %497 = math.tanh %496 : vector<8x128xf32>
    %498 = arith.mulf %493, %497 : vector<8x128xf32>
    %499 = vector.extract_strided_slice %473 {offsets = [0, 0], sizes = [8, 128], strides = [1, 1]} : vector<8x512xf32> to vector<8x128xf32>
    %500 = arith.negf %499 : vector<8x128xf32>
    %501 = math.exp %500 : vector<8x128xf32>
    %cst_134 = arith.constant 1.000000e+00 : f32
    %502 = vector.broadcast %cst_134 : f32 to vector<8x128xf32>
    %503 = arith.addf %502, %501 : vector<8x128xf32>
    %504 = arith.divf %502, %503 : vector<8x128xf32>
    %505 = vector.extract_strided_slice %473 {offsets = [0, 128], sizes = [8, 128], strides = [1, 1]} : vector<8x512xf32> to vector<8x128xf32>
    %506 = arith.negf %505 : vector<8x128xf32>
    %507 = math.exp %506 : vector<8x128xf32>
    %cst_135 = arith.constant 1.000000e+00 : f32
    %508 = vector.broadcast %cst_135 : f32 to vector<8x128xf32>
    %509 = arith.addf %508, %507 : vector<8x128xf32>
    %510 = arith.divf %508, %509 : vector<8x128xf32>
    %511 = vector.extract_strided_slice %473 {offsets = [0, 256], sizes = [8, 128], strides = [1, 1]} : vector<8x512xf32> to vector<8x128xf32>
    %512 = math.tanh %511 : vector<8x128xf32>
    %513 = vector.extract_strided_slice %473 {offsets = [0, 384], sizes = [8, 128], strides = [1, 1]} : vector<8x512xf32> to vector<8x128xf32>
    %514 = arith.negf %513 : vector<8x128xf32>
    %515 = math.exp %514 : vector<8x128xf32>
    %cst_136 = arith.constant 1.000000e+00 : f32
    %516 = vector.broadcast %cst_136 : f32 to vector<8x128xf32>
    %517 = arith.addf %516, %515 : vector<8x128xf32>
    %518 = arith.divf %516, %517 : vector<8x128xf32>
    %519 = arith.mulf %510, %448 : vector<8x128xf32>
    %520 = arith.mulf %504, %512 : vector<8x128xf32>
    %521 = arith.addf %519, %520 : vector<8x128xf32>
    %522 = math.tanh %521 : vector<8x128xf32>
    %523 = arith.mulf %518, %522 : vector<8x128xf32>
    %524 = arith.index_cast %c6_i32 : i32 to index
    %c0_137 = arith.constant 0 : index
    %c0_138 = arith.constant 0 : index
    %525 = vector.load %arg8[%524, %c0_137, %c0_138] : memref<8x8x256xf32, #tpu.memory_space<vmem>>, vector<1x8x128xf32>
    %526 = vector.shape_cast %525 : vector<1x8x128xf32> to vector<8x128xf32>
    %527 = vector.shape_cast %498 : vector<8x128xf32> to vector<1x8x128xf32>
    tpu.vector_store %arg8[%524, %c0_137, %c0_138], %527 {strides = array<i32>} : memref<8x8x256xf32, #tpu.memory_space<vmem>>, vector<1x8x128xf32>,
    %528 = arith.index_cast %459 : i32 to index
    %c0_139 = arith.constant 0 : index
    %c128_140 = arith.constant 128 : index
    %529 = vector.load %arg8[%528, %c0_139, %c128_140] : memref<8x8x256xf32, #tpu.memory_space<vmem>>, vector<1x8x128xf32>
    %530 = vector.shape_cast %529 : vector<1x8x128xf32> to vector<8x128xf32>
    %531 = vector.shape_cast %523 : vector<8x128xf32> to vector<1x8x128xf32>
    tpu.vector_store %arg8[%528, %c0_139, %c128_140], %531 {strides = array<i32>} : memref<8x8x256xf32, #tpu.memory_space<vmem>>, vector<1x8x128xf32>,
    %c7_i32_141 = arith.constant 7 : i32
    %c7_i32_142 = arith.constant 7 : i32
    %532 = arith.subi %c7_i32_142, %c7_i32_141 : i32
    %533 = arith.index_cast %c7_i32_141 : i32 to index
    %c0_143 = arith.constant 0 : index
    %c0_144 = arith.constant 0 : index
    %534 = vector.load %arg9[%533, %c0_143, %c0_144] : memref<8x8x1024xf32, #tpu.memory_space<vmem>>, vector<1x8x1024xf32>
    %535 = vector.shape_cast %534 : vector<1x8x1024xf32> to vector<8x1024xf32>
    %536 = arith.index_cast %532 : i32 to index
    %c0_145 = arith.constant 0 : index
    %c0_146 = arith.constant 0 : index
    %537 = vector.load %arg9[%536, %c0_145, %c0_146] : memref<8x8x1024xf32, #tpu.memory_space<vmem>>, vector<1x8x1024xf32>
    %538 = vector.shape_cast %537 : vector<1x8x1024xf32> to vector<8x1024xf32>
    %539 = vector.extract_strided_slice %535 {offsets = [0, 0], sizes = [8, 512], strides = [1, 1]} : vector<8x1024xf32> to vector<8x512xf32>
    %540 = arith.truncf %498 : vector<8x128xf32> to vector<8x128xbf16>
    %cst_147 = arith.constant dense<0.000000e+00> : vector<8x512xf32>
    %541 = tpu.matmul %540, %11, %cst_147 {dimension_numbers = #tpu.dot_dimension_numbers<[1], [0], [0], [1], [0, 0, 1, 1], [], []>} : vector<8x128xbf16>, vector<128x512xbf16>, vector<8x512xf32> -> vector<8x512xf32>
    %542 = arith.addf %539, %541 : vector<8x512xf32>
    %543 = vector.extract_strided_slice %538 {offsets = [0, 512], sizes = [8, 512], strides = [1, 1]} : vector<8x1024xf32> to vector<8x512xf32>
    %544 = arith.truncf %523 : vector<8x128xf32> to vector<8x128xbf16>
    %cst_148 = arith.constant dense<0.000000e+00> : vector<8x512xf32>
    %545 = tpu.matmul %544, %12, %cst_148 {dimension_numbers = #tpu.dot_dimension_numbers<[1], [0], [0], [1], [0, 0, 1, 1], [], []>} : vector<8x128xbf16>, vector<128x512xbf16>, vector<8x512xf32> -> vector<8x512xf32>
    %546 = arith.addf %543, %545 : vector<8x512xf32>
    %547 = vector.extract_strided_slice %542 {offsets = [0, 0], sizes = [8, 128], strides = [1, 1]} : vector<8x512xf32> to vector<8x128xf32>
    %548 = arith.negf %547 : vector<8x128xf32>
    %549 = math.exp %548 : vector<8x128xf32>
    %cst_149 = arith.constant 1.000000e+00 : f32
    %550 = vector.broadcast %cst_149 : f32 to vector<8x128xf32>
    %551 = arith.addf %550, %549 : vector<8x128xf32>
    %552 = arith.divf %550, %551 : vector<8x128xf32>
    %553 = vector.extract_strided_slice %542 {offsets = [0, 128], sizes = [8, 128], strides = [1, 1]} : vector<8x512xf32> to vector<8x128xf32>
    %554 = arith.negf %553 : vector<8x128xf32>
    %555 = math.exp %554 : vector<8x128xf32>
    %cst_150 = arith.constant 1.000000e+00 : f32
    %556 = vector.broadcast %cst_150 : f32 to vector<8x128xf32>
    %557 = arith.addf %556, %555 : vector<8x128xf32>
    %558 = arith.divf %556, %557 : vector<8x128xf32>
    %559 = vector.extract_strided_slice %542 {offsets = [0, 256], sizes = [8, 128], strides = [1, 1]} : vector<8x512xf32> to vector<8x128xf32>
    %560 = math.tanh %559 : vector<8x128xf32>
    %561 = vector.extract_strided_slice %542 {offsets = [0, 384], sizes = [8, 128], strides = [1, 1]} : vector<8x512xf32> to vector<8x128xf32>
    %562 = arith.negf %561 : vector<8x128xf32>
    %563 = math.exp %562 : vector<8x128xf32>
    %cst_151 = arith.constant 1.000000e+00 : f32
    %564 = vector.broadcast %cst_151 : f32 to vector<8x128xf32>
    %565 = arith.addf %564, %563 : vector<8x128xf32>
    %566 = arith.divf %564, %565 : vector<8x128xf32>
    %567 = arith.mulf %558, %496 : vector<8x128xf32>
    %568 = arith.mulf %552, %560 : vector<8x128xf32>
    %569 = arith.addf %567, %568 : vector<8x128xf32>
    %570 = math.tanh %569 : vector<8x128xf32>
    %571 = arith.mulf %566, %570 : vector<8x128xf32>
    %572 = vector.extract_strided_slice %546 {offsets = [0, 0], sizes = [8, 128], strides = [1, 1]} : vector<8x512xf32> to vector<8x128xf32>
    %573 = arith.negf %572 : vector<8x128xf32>
    %574 = math.exp %573 : vector<8x128xf32>
    %cst_152 = arith.constant 1.000000e+00 : f32
    %575 = vector.broadcast %cst_152 : f32 to vector<8x128xf32>
    %576 = arith.addf %575, %574 : vector<8x128xf32>
    %577 = arith.divf %575, %576 : vector<8x128xf32>
    %578 = vector.extract_strided_slice %546 {offsets = [0, 128], sizes = [8, 128], strides = [1, 1]} : vector<8x512xf32> to vector<8x128xf32>
    %579 = arith.negf %578 : vector<8x128xf32>
    %580 = math.exp %579 : vector<8x128xf32>
    %cst_153 = arith.constant 1.000000e+00 : f32
    %581 = vector.broadcast %cst_153 : f32 to vector<8x128xf32>
    %582 = arith.addf %581, %580 : vector<8x128xf32>
    %583 = arith.divf %581, %582 : vector<8x128xf32>
    %584 = vector.extract_strided_slice %546 {offsets = [0, 256], sizes = [8, 128], strides = [1, 1]} : vector<8x512xf32> to vector<8x128xf32>
    %585 = math.tanh %584 : vector<8x128xf32>
    %586 = vector.extract_strided_slice %546 {offsets = [0, 384], sizes = [8, 128], strides = [1, 1]} : vector<8x512xf32> to vector<8x128xf32>
    %587 = arith.negf %586 : vector<8x128xf32>
    %588 = math.exp %587 : vector<8x128xf32>
    %cst_154 = arith.constant 1.000000e+00 : f32
    %589 = vector.broadcast %cst_154 : f32 to vector<8x128xf32>
    %590 = arith.addf %589, %588 : vector<8x128xf32>
    %591 = arith.divf %589, %590 : vector<8x128xf32>
    %592 = arith.mulf %583, %521 : vector<8x128xf32>
    %593 = arith.mulf %577, %585 : vector<8x128xf32>
    %594 = arith.addf %592, %593 : vector<8x128xf32>
    %595 = math.tanh %594 : vector<8x128xf32>
    %596 = arith.mulf %591, %595 : vector<8x128xf32>
    %597 = arith.index_cast %c7_i32_141 : i32 to index
    %c0_155 = arith.constant 0 : index
    %c0_156 = arith.constant 0 : index
    %598 = vector.load %arg8[%597, %c0_155, %c0_156] : memref<8x8x256xf32, #tpu.memory_space<vmem>>, vector<1x8x128xf32>
    %599 = vector.shape_cast %598 : vector<1x8x128xf32> to vector<8x128xf32>
    %600 = vector.shape_cast %571 : vector<8x128xf32> to vector<1x8x128xf32>
    tpu.vector_store %arg8[%597, %c0_155, %c0_156], %600 {strides = array<i32>} : memref<8x8x256xf32, #tpu.memory_space<vmem>>, vector<1x8x128xf32>,
    %601 = arith.index_cast %532 : i32 to index
    %c0_157 = arith.constant 0 : index
    %c128_158 = arith.constant 128 : index
    %602 = vector.load %arg8[%601, %c0_157, %c128_158] : memref<8x8x256xf32, #tpu.memory_space<vmem>>, vector<1x8x128xf32>
    %603 = vector.shape_cast %602 : vector<1x8x128xf32> to vector<8x128xf32>
    %604 = vector.shape_cast %596 : vector<8x128xf32> to vector<1x8x128xf32>
    tpu.vector_store %arg8[%601, %c0_157, %c128_158], %604 {strides = array<i32>} : memref<8x8x256xf32, #tpu.memory_space<vmem>>, vector<1x8x128xf32>,
    %c8_i32 = arith.constant 8 : i32
    return
  }
  func.func @transform_0(%arg0: i32) -> (i32, i32, i32) {
    %c0_i32 = arith.constant 0 : i32
    %c0_i32_0 = arith.constant 0 : i32
    %c0_i32_1 = arith.constant 0 : i32
    return %c0_i32, %arg0, %c0_i32_0 : i32, i32, i32
  }
  func.func @transform_1(%arg0: i32) -> (i32, i32) {
    %c0_i32 = arith.constant 0 : i32
    %c0_i32_0 = arith.constant 0 : i32
    %c0_i32_1 = arith.constant 0 : i32
    return %c0_i32, %c0_i32_0 : i32, i32
  }
  func.func @transform_2(%arg0: i32) -> (i32, i32) {
    %c0_i32 = arith.constant 0 : i32
    %c0_i32_0 = arith.constant 0 : i32
    %c0_i32_1 = arith.constant 0 : i32
    return %c0_i32, %c0_i32_0 : i32, i32
  }
  func.func @transform_3(%arg0: i32) -> (i32, i32) {
    %c0_i32 = arith.constant 0 : i32
    %c0_i32_0 = arith.constant 0 : i32
    %c0_i32_1 = arith.constant 0 : i32
    return %c0_i32, %c0_i32_0 : i32, i32
  }
  func.func @transform_4(%arg0: i32) -> (i32, i32) {
    %c0_i32 = arith.constant 0 : i32
    %c0_i32_0 = arith.constant 0 : i32
    %c0_i32_1 = arith.constant 0 : i32
    return %c0_i32, %c0_i32_0 : i32, i32
  }
  func.func @transform_5(%arg0: i32) -> (i32, i32, i32) {
    %c0_i32 = arith.constant 0 : i32
    %c0_i32_0 = arith.constant 0 : i32
    %c0_i32_1 = arith.constant 0 : i32
    return %c0_i32, %arg0, %c0_i32_0 : i32, i32, i32
  }
  func.func @transform_6(%arg0: i32) -> (i32, i32, i32) {
    %c0_i32 = arith.constant 0 : i32
    %c0_i32_0 = arith.constant 0 : i32
    %c0_i32_1 = arith.constant 0 : i32
    return %c0_i32, %arg0, %c0_i32_0 : i32, i32, i32
  }
  func.func @transform_7(%arg0: i32) -> (i32, i32, i32) {
    %c0_i32 = arith.constant 0 : i32
    %c0_i32_0 = arith.constant 0 : i32
    %c0_i32_1 = arith.constant 0 : i32
    return %c0_i32, %arg0, %c0_i32_0 : i32, i32, i32
  }
}

</mosaic_0001>

<bundles_post_ra>
// kernel: bilstm_forward.3
= control target key start
LH: loop header
LB: loop body
LE: loop exit
PB: predicated region body
PF: predicated region fallthrough
CT: control target
= control target key end

     0   :  { %14 = vsyncpa [#allocation4], 0  ;;  %s4876_s0 = inlined_call_operand.vmem [shape: f32[8,8,256], index: 0, kind: input, shape index: {}]   ;;  %s4877_s1 = inlined_call_operand.vmem [shape: bf16[256,1024], index: 1, kind: input, shape index: {}]   ;;  %s4878_s2 = inlined_call_operand.vmem [shape: bf16[128,512], index: 2, kind: input, shape index: {}]   ;;  %s4879_s3 = inlined_call_operand.hbm [shape: bf16[128,512], index: 3, kind: input, shape index: {}]   ;;  %s4880_s4 = inlined_call_operand.vmem [shape: f32[1,1024], index: 4, kind: input, shape index: {}]   ;;  %s4881_s5 = inlined_call_operand.vmem [shape: f32[2,8,128], index: 5, kind: input, shape index: {}]   ;;  %s4882_s6 = inlined_call_operand.vmem [shape: f32[2,8,128], index: 6, kind: input, shape index: {}]   ;;  %s4883_s7 = inlined_call_operand.hbm [shape: bf16[256,128], index: 7, kind: input, shape index: {}]   ;;  %s4884_s8 = inlined_call_operand.vmem [shape: f32[1,128], index: 8, kind: input, shape index: {}]   ;;  %s4885_s9 = inlined_call_operand.vmem [shape: f32[8,128], index: 9, kind: output, shape index: {}]  }
   0x1   :  { %15 = vsyncpa [#allocation6], 0  ;;  %s3530_s30 = smov [#allocation3]  }
   0x2   :  { %s27_s10 = sshll.u32 %s3530_s30, 4  ;;  %s28_s10 = int_to_ptr.vmem [resolvable:$true] %s27_s10 }
   0x3   :  { %s3494_s11 = scalar_lea.vmem %s28_s10, 4096  ;;  %p3499_p1 = scmp.lt.s32.totalorder %s28_s10, %s28_s10 }
   0x4   :  { %p3495_p0 = scmp.ne.s32.totalorder %s28_s10, %s3494_s11  ;;  %p3500_p2 = scmp.lt.s32.totalorder %s3494_s11, %s3494_s11 }
   0x6   :  { %p3501_p3 = por %p3500_p2, %p3499_p1 }
   0x8   :  { %p3502_p4 = pnand %p3501_p3, %p3495_p0 }
   0xa   :  { %3505 = shalt.err (!%p3502_p4)
}
   0xb   :  { %s3531_s12 = smov 256   ;;  %s3532_s13 = smov 16  }
   0xc   :  { %33 = dma.hbm_to_vmem [thread:$0]  %s4879_s3, 4096, %s28_s10, [#allocation4], %s3531_s12, %s3531_s12, %s3532_s13  }
   0xd   :  { %s3533_s16 = smov [#allocation5]  }
   0xe   :  { %s45_s17 = sshll.u32 %s3533_s16, 4  ;;  %s46_s17 = int_to_ptr.vmem [resolvable:$true] %s45_s17 }
   0xf   :  { %s3514_s18 = scalar_lea.vmem %s46_s17, 2048  ;;  %p3519_p6 = scmp.lt.s32.totalorder %s46_s17, %s46_s17 }
  0x10   :  { %p3515_p5 = scmp.ne.s32.totalorder %s46_s17, %s3514_s18  ;;  %p3520_p7 = scmp.lt.s32.totalorder %s3514_s18, %s3514_s18 }
  0x12   :  { %p3521_p8 = por %p3520_p7, %p3519_p6 }
  0x14   :  { %p3522_p9 = pnand %p3521_p8, %p3515_p5 }
  0x16   :  { %3525 = shalt.err (!%p3522_p9)
}
  0x17   :  { %s3534_s19 = smov 64   ;;  %s3535_s20 = smov 4  }
  0x18   :  { %51 = dma.hbm_to_vmem [thread:$0]  %s4883_s7, 2048, %s46_s17, [#allocation6], %s3534_s19, %s3534_s19, %s3535_s20  }
  0x19   :  { %3526 = dma.done.wait [#allocation4], 4096  }
  0x1a   :  { %3527 = vsyncadd [#allocation4], 4294963200 }
  0x1b   :  { %3528 = dma.done.wait [#allocation6], 2048  }
  0x1c   :  { %3529 = vsyncadd [#allocation6], 4294965248  ;;  %v141_v0 = vld [vmem:[%s4877_s1 + $0x1c0] sm:$0xff]  ;;  %v142_v2 = vld [vmem:[%s4877_s1 + $0x1c8] sm:$0xff] }
  0x1d   :  { %v145_v1 = vld [vmem:[%s4877_s1 + $0x1e0] sm:$0xff]  ;;  %v146_v4 = vld [vmem:[%s4877_s1 + $0x1e8] sm:$0xff]  ;;  %v64_v54 = vld [vmem:[%s4876_s0 + $0x18] sm:$0xff] }
  0x1e   :  { %v2988_v3 = vcombine.high %v141_v0, %v145_v1  ;;  %v2987_v5 = vcombine.low %v141_v0, %v145_v1  ;;  %v133_v6 = vld [vmem:[%s4877_s1 + $0x180] sm:$0xff]  ;;  %v2990_v8 = vcombine.high %v142_v2, %v146_v4  ;;  %v2989_v9 = vcombine.low %v142_v2, %v146_v4  ;;  %v134_v11 = vld [vmem:[%s4877_s1 + $0x188] sm:$0xff] }
  0x1f   :  { %v137_v7 = vld [vmem:[%s4877_s1 + $0x1a0] sm:$0xff]  ;;  %v138_v12 = vld [vmem:[%s4877_s1 + $0x1a8] sm:$0xff] }
  0x20   :  { %v2980_v10 = vcombine.high %v133_v6, %v137_v7  ;;  %v125_v13 = vld [vmem:[%s4877_s1 + $0x140] sm:$0xff]  ;;  %853 = vmatprep.subr.bf16.mxu0 %v2988_v3  ;;  %v2982_v14 = vcombine.high %v134_v11, %v138_v12  ;;  %v126_v16 = vld [vmem:[%s4877_s1 + $0x148] sm:$0xff]  ;;  %926 = vmatprep.subr.bf16.mxu1 %v2990_v8  ;;  %v2979_v18 = vcombine.low %v133_v6, %v137_v7 }
  0x21   :  { %v129_v15 = vld [vmem:[%s4877_s1 + $0x160] sm:$0xff]  ;;  %v130_v17 = vld [vmem:[%s4877_s1 + $0x168] sm:$0xff]  ;;  %854 = vmatpush1.bf16.msra.mxu0 %v2987_v5  ;;  %927 = vmatpush1.bf16.msra.mxu1 %v2989_v9  ;;  %v2981_v19 = vcombine.low %v134_v11, %v138_v12 }
  0x22   :  { %855 = vmatprep.subr.bf16.mxu0 %v2980_v10  ;;  %v2972_v20 = vcombine.high %v125_v13, %v129_v15  ;;  %928 = vmatprep.subr.bf16.mxu1 %v2982_v14  ;;  %v2974_v21 = vcombine.high %v126_v16, %v130_v17  ;;  %v117_v22 = vld [vmem:[%s4877_s1 + $0x100] sm:$0xff]  ;;  %v118_v24 = vld [vmem:[%s4877_s1 + $0x108] sm:$0xff]  ;;  %v2971_v26 = vcombine.low %v125_v13, %v129_v15 }
  0x23   :  { %v121_v23 = vld [vmem:[%s4877_s1 + $0x120] sm:$0xff]  ;;  %v122_v25 = vld [vmem:[%s4877_s1 + $0x128] sm:$0xff]  ;;  %v2973_v27 = vcombine.low %v126_v16, %v130_v17 }
  0x24   :  { %v2964_v28 = vcombine.high %v117_v22, %v121_v23  ;;  %v2966_v29 = vcombine.high %v118_v24, %v122_v25  ;;  %v109_v30 = vld [vmem:[%s4877_s1 + $0xc0] sm:$0xff]  ;;  %v110_v32 = vld [vmem:[%s4877_s1 + $0xc8] sm:$0xff]  ;;  %v2963_v34 = vcombine.low %v117_v22, %v121_v23  ;;  %v2965_v35 = vcombine.low %v118_v24, %v122_v25 }
  0x25   :  { %856 = vmatpush1.bf16.msra.mxu0 %v2979_v18  ;;  %929 = vmatpush1.bf16.msra.mxu1 %v2981_v19  ;;  %v113_v31 = vld [vmem:[%s4877_s1 + $0xe0] sm:$0xff]  ;;  %v114_v33 = vld [vmem:[%s4877_s1 + $0xe8] sm:$0xff] }
  0x26   :  { %857 = vmatprep.subr.bf16.mxu0 %v2972_v20  ;;  %930 = vmatprep.subr.bf16.mxu1 %v2974_v21  ;;  %v2956_v36 = vcombine.high %v109_v30, %v113_v31  ;;  %v2958_v37 = vcombine.high %v110_v32, %v114_v33  ;;  %v101_v38 = vld [vmem:[%s4877_s1 + $0x80] sm:$0xff]  ;;  %v102_v40 = vld [vmem:[%s4877_s1 + $0x88] sm:$0xff]  ;;  %v2955_v42 = vcombine.low %v109_v30, %v113_v31 }
  0x27   :  { %v105_v39 = vld [vmem:[%s4877_s1 + $0xa0] sm:$0xff]  ;;  %v106_v41 = vld [vmem:[%s4877_s1 + $0xa8] sm:$0xff]  ;;  %v2957_v43 = vcombine.low %v110_v32, %v114_v33 }
  0x28   :  { %v2948_v44 = vcombine.high %v101_v38, %v105_v39  ;;  %v2950_v45 = vcombine.high %v102_v40, %v106_v41  ;;  %v93_v46 = vld [vmem:[%s4877_s1 + $0x40] sm:$0xff]  ;;  %v94_v48 = vld [vmem:[%s4877_s1 + $0x48] sm:$0xff]  ;;  %v2947_v50 = vcombine.low %v101_v38, %v105_v39  ;;  %v2949_v51 = vcombine.low %v102_v40, %v106_v41 }
  0x29   :  { %858 = vmatpush1.bf16.msra.mxu0 %v2971_v26  ;;  %931 = vmatpush1.bf16.msra.mxu1 %v2973_v27  ;;  %v97_v47 = vld [vmem:[%s4877_s1 + $0x60] sm:$0xff]  ;;  %v98_v49 = vld [vmem:[%s4877_s1 + $0x68] sm:$0xff] }
  0x2a   :  { %859 = vmatprep.subr.bf16.mxu0 %v2964_v28  ;;  %932 = vmatprep.subr.bf16.mxu1 %v2966_v29  ;;  %v2940_v52 = vcombine.high %v93_v46, %v97_v47  ;;  %v62_v53 = vld [vmem:[%s4876_s0 + $0x8] sm:$0xff]  ;;  %v2942_v55 = vcombine.high %v94_v48, %v98_v49  ;;  %v85_v56 = vld [vmem:[%s4877_s1] sm:$0xff]  ;;  %v2939_v61 = vcombine.low %v93_v46, %v97_v47 }
  0x2b   :  { %v89_v57 = vld [vmem:[%s4877_s1 + $0x20] sm:$0xff]  ;;  %v3689_v58 = vpack.c.bf16 %v64_v54, %v62_v53  ;;  %v86_v59 = vld [vmem:[%s4877_s1 + $0x8] sm:$0xff]  ;;  %v2941_v62 = vcombine.low %v94_v48, %v98_v49 }
  0x2c   :  { %v90_v60 = vld [vmem:[%s4877_s1 + $0x28] sm:$0xff]  ;;  %v2932_v63 = vcombine.high %v85_v56, %v89_v57  ;;  %v205_v1 = vld [vmem:[%s4877_s1 + $0x3c0] sm:$0xff]  ;;  %v2931_v5 = vcombine.low %v85_v56, %v89_v57 }
  0x2d   :  { %860 = vmatpush1.bf16.msra.mxu0 %v2963_v34  ;;  %933 = vmatpush1.bf16.msra.mxu1 %v2965_v35  ;;  %v2934_v0 = vcombine.high %v86_v59, %v90_v60  ;;  %v209_v2 = vld [vmem:[%s4877_s1 + $0x3e0] sm:$0xff]  ;;  %v206_v3 = vld [vmem:[%s4877_s1 + $0x3c8] sm:$0xff]  ;;  %v2933_v6 = vcombine.low %v86_v59, %v90_v60 }
  0x2e   :  { %861 = vmatprep.subr.bf16.mxu0 %v2956_v36  ;;  %934 = vmatprep.subr.bf16.mxu1 %v2958_v37  ;;  %v210_v4 = vld [vmem:[%s4877_s1 + $0x3e8] sm:$0xff]  ;;  %v3052_v7 = vcombine.high %v205_v1, %v209_v2  ;;  %v197_v9 = vld [vmem:[%s4877_s1 + $0x380] sm:$0xff]  ;;  %v3051_v13 = vcombine.low %v205_v1, %v209_v2 }
  0x2f   :  { %885 = vmatprep.mubr.bf16.mxu0 %v3689_v58  ;;  %958 = vmatprep.mubr.bf16.mxu1 %v3689_v58  ;;  %v3054_v8 = vcombine.high %v206_v3, %v210_v4  ;;  %v201_v10 = vld [vmem:[%s4877_s1 + $0x3a0] sm:$0xff]  ;;  %v198_v11 = vld [vmem:[%s4877_s1 + $0x388] sm:$0xff]  ;;  %v3053_v14 = vcombine.low %v206_v3, %v210_v4  ;;  %v63_v3 = vld [vmem:[%s4876_s0 + $0x10] sm:$0xff] }
  0x30   :  { %v202_v12 = vld [vmem:[%s4877_s1 + $0x3a8] sm:$0xff]  ;;  %v3044_v15 = vcombine.high %v197_v9, %v201_v10  ;;  %v189_v17 = vld [vmem:[%s4877_s1 + $0x340] sm:$0xff]  ;;  %v3043_v21 = vcombine.low %v197_v9, %v201_v10  ;;  %v143_v4 = vld [vmem:[%s4877_s1 + $0x1d0] sm:$0xff] }
  0x31   :  { %862 = vmatpush1.bf16.msra.mxu0 %v2955_v42  ;;  %935 = vmatpush1.bf16.msra.mxu1 %v2957_v43  ;;  %v3046_v16 = vcombine.high %v198_v11, %v202_v12  ;;  %v193_v18 = vld [vmem:[%s4877_s1 + $0x360] sm:$0xff]  ;;  %v190_v19 = vld [vmem:[%s4877_s1 + $0x348] sm:$0xff]  ;;  %v3045_v22 = vcombine.low %v198_v11, %v202_v12  ;;  %v135_v9 = vld [vmem:[%s4877_s1 + $0x190] sm:$0xff] }
  0x32   :  { %863 = vmatprep.subr.bf16.mxu0 %v2948_v44  ;;  %936 = vmatprep.subr.bf16.mxu1 %v2950_v45  ;;  %v194_v20 = vld [vmem:[%s4877_s1 + $0x368] sm:$0xff]  ;;  %v3036_v23 = vcombine.high %v189_v17, %v193_v18  ;;  %v181_v25 = vld [vmem:[%s4877_s1 + $0x300] sm:$0xff]  ;;  %v3035_v29 = vcombine.low %v189_v17, %v193_v18  ;;  %v139_v12 = vld [vmem:[%s4877_s1 + $0x1b0] sm:$0xff] }
  0x33   :  { %v3038_v24 = vcombine.high %v190_v19, %v194_v20  ;;  %v185_v26 = vld [vmem:[%s4877_s1 + $0x320] sm:$0xff]  ;;  %v182_v27 = vld [vmem:[%s4877_s1 + $0x308] sm:$0xff]  ;;  %v3037_v30 = vcombine.low %v190_v19, %v194_v20  ;;  %v68_v18 = vld [vmem:[%s4876_s0 + $0x38] sm:$0xff] }
  0x34   :  { %v186_v28 = vld [vmem:[%s4877_s1 + $0x328] sm:$0xff]  ;;  %v3028_v31 = vcombine.high %v181_v25, %v185_v26  ;;  %v173_v33 = vld [vmem:[%s4877_s1 + $0x2c0] sm:$0xff]  ;;  %v3027_v37 = vcombine.low %v181_v25, %v185_v26  ;;  %v128_v25 = vld [vmem:[%s4877_s1 + $0x158] sm:$0xff] }
  0x35   :  { %864 = vmatpush1.bf16.msra.mxu0 %v2947_v50  ;;  %937 = vmatpush1.bf16.msra.mxu1 %v2949_v51  ;;  %v3030_v32 = vcombine.high %v182_v27, %v186_v28  ;;  %v177_v34 = vld [vmem:[%s4877_s1 + $0x2e0] sm:$0xff]  ;;  %v174_v35 = vld [vmem:[%s4877_s1 + $0x2c8] sm:$0xff]  ;;  %v3029_v38 = vcombine.low %v182_v27, %v186_v28  ;;  %v132_v27 = vld [vmem:[%s4877_s1 + $0x178] sm:$0xff] }
  0x36   :  { %865 = vmatprep.subr.bf16.mxu0 %v2940_v52  ;;  %938 = vmatprep.subr.bf16.mxu1 %v2942_v55  ;;  %v178_v36 = vld [vmem:[%s4877_s1 + $0x2e8] sm:$0xff]  ;;  %v3020_v39 = vcombine.high %v173_v33, %v177_v34  ;;  %v165_v41 = vld [vmem:[%s4877_s1 + $0x280] sm:$0xff]  ;;  %v3019_v45 = vcombine.low %v173_v33, %v177_v34  ;;  %v123_v34 = vld [vmem:[%s4877_s1 + $0x130] sm:$0xff] }
  0x37   :  { %v3022_v40 = vcombine.high %v174_v35, %v178_v36  ;;  %v169_v42 = vld [vmem:[%s4877_s1 + $0x2a0] sm:$0xff]  ;;  %v166_v43 = vld [vmem:[%s4877_s1 + $0x288] sm:$0xff]  ;;  %v3021_v46 = vcombine.low %v174_v35, %v178_v36  ;;  %v120_v35 = vld [vmem:[%s4877_s1 + $0x118] sm:$0xff]  ;;  %v2978_v36 = vcombine.high %v128_v25, %v132_v27 }
  0x38   :  { %v170_v44 = vld [vmem:[%s4877_s1 + $0x2a8] sm:$0xff]  ;;  %v3012_v47 = vcombine.high %v165_v41, %v169_v42  ;;  %v157_v49 = vld [vmem:[%s4877_s1 + $0x240] sm:$0xff]  ;;  %v3011_v53 = vcombine.low %v165_v41, %v169_v42  ;;  %v2977_v42 = vcombine.low %v128_v25, %v132_v27  ;;  %v207_v25 = vld [vmem:[%s4877_s1 + $0x3d0] sm:$0xff] }
  0x39   :  { %866 = vmatpush1.bf16.msra.mxu0 %v2939_v61  ;;  %939 = vmatpush1.bf16.msra.mxu1 %v2941_v62  ;;  %v3014_v48 = vcombine.high %v166_v43, %v170_v44  ;;  %v161_v50 = vld [vmem:[%s4877_s1 + $0x260] sm:$0xff]  ;;  %v158_v51 = vld [vmem:[%s4877_s1 + $0x248] sm:$0xff]  ;;  %v3013_v54 = vcombine.low %v166_v43, %v170_v44  ;;  %v111_v44 = vld [vmem:[%s4877_s1 + $0xd0] sm:$0xff] }
  0x3a   :  { %867 = vmatprep.subr.bf16.mxu0 %v2932_v63  ;;  %940 = vmatprep.subr.bf16.mxu1 %v2934_v0  ;;  %v162_v52 = vld [vmem:[%s4877_s1 + $0x268] sm:$0xff]  ;;  %v3004_v55 = vcombine.high %v157_v49, %v161_v50  ;;  %v149_v57 = vld [vmem:[%s4877_s1 + $0x200] sm:$0xff]  ;;  %v3003_v62 = vcombine.low %v157_v49, %v161_v50  ;;  %v211_v27 = vld [vmem:[%s4877_s1 + $0x3f0] sm:$0xff] }
  0x3b   :  { %v3006_v56 = vcombine.high %v158_v51, %v162_v52  ;;  %v153_v59 = vld [vmem:[%s4877_s1 + $0x220] sm:$0xff]  ;;  %v150_v60 = vld [vmem:[%s4877_s1 + $0x208] sm:$0xff]  ;;  %v3005_v63 = vcombine.low %v158_v51, %v162_v52  ;;  %v103_v52 = vld [vmem:[%s4877_s1 + $0x90] sm:$0xff] }
  0x3c   :  { %v154_v61 = vld [vmem:[%s4877_s1 + $0x228] sm:$0xff]  ;;  %v2996_v0 = vcombine.high %v149_v57, %v153_v59  ;;  %v61_v2 = vld [vmem:[%s4876_s0] sm:$0xff] }
  0x3d   :  { %868 = vmatpush1.bf16.msra.mxu0 %v2931_v5  ;;  %941 = vmatpush1.bf16.msra.mxu1 %v2933_v6  ;;  %v2998_v1 = vcombine.high %v150_v60, %v154_v61  ;;  %v147_v5 = vld [vmem:[%s4877_s1 + $0x1f0] sm:$0xff]  ;;  %v144_v6 = vld [vmem:[%s4877_s1 + $0x1d8] sm:$0xff]  ;;  %v2997_v10 = vcombine.low %v150_v60, %v154_v61  ;;  %v66_v17 = vld [vmem:[%s4876_s0 + $0x28] sm:$0xff] }
  0x3e   :  { %869 = vmatprep.subr.bf16.mxu0 %v3052_v7  ;;  %942 = vmatprep.subr.bf16.mxu1 %v3054_v8  ;;  %v148_v7 = vld [vmem:[%s4877_s1 + $0x1f8] sm:$0xff]  ;;  %v2995_v8 = vcombine.low %v149_v57, %v153_v59  ;;  %v2992_v11 = vcombine.high %v143_v4, %v147_v5  ;;  %v2991_v19 = vcombine.low %v143_v4, %v147_v5  ;;  %v65_v28 = vld [vmem:[%s4876_s0 + $0x20] sm:$0xff]  ;;  %v99_v5 = vld [vmem:[%s4877_s1 + $0x70] sm:$0xff] }
  0x3f   :  { %v2993_v20 = vcombine.low %v144_v6, %v148_v7  ;;  %v3842_v26 = vpack.c.bf16 %v68_v18, %v66_v17  ;;  %v69_v50 = vld [vmem:[%s4876_s0 + $0x40] sm:$0xff]  ;;  %v104_v57 = vld [vmem:[%s4877_s1 + $0x98] sm:$0xff]  ;;  %v91_v17 = vld [vmem:[%s4877_s1 + $0x30] sm:$0xff] }
  0x40   :  { %v108_v60 = vld [vmem:[%s4877_s1 + $0xb8] sm:$0xff] }
  0x41   :  { %870 = vmatpush2.bf16.msra.mxu0 %v3051_v13  ;;  %943 = vmatpush2.bf16.msra.mxu1 %v3053_v14  ;;  %v2994_v13 = vcombine.high %v144_v6, %v148_v7  ;;  %v136_v14 = vld [vmem:[%s4877_s1 + $0x198] sm:$0xff]  ;;  %v2954_v4 = vcombine.high %v104_v57, %v108_v60 }
  0x42   :  { %871 = vmatprep.subr.bf16.mxu0 %v3044_v15  ;;  %944 = vmatprep.subr.bf16.mxu1 %v3046_v16  ;;  %v140_v15 = vld [vmem:[%s4877_s1 + $0x1b8] sm:$0xff]  ;;  %v3825_v16 = vpack.c.bf16 %v63_v3, %v61_v2  ;;  %v95_v3 = vld [vmem:[%s4877_s1 + $0x50] sm:$0xff] }
  0x43   :  { %v96_v6 = vld [vmem:[%s4877_s1 + $0x58] sm:$0xff] }
  0x44   :  { %v100_v7 = vld [vmem:[%s4877_s1 + $0x78] sm:$0xff] }
  0x45   :  { %872 = vmatpush2.bf16.msra.mxu0 %v3043_v21  ;;  %945 = vmatpush2.bf16.msra.mxu1 %v3045_v22  ;;  %v2984_v21 = vcombine.high %v135_v9, %v139_v12  ;;  %v127_v22 = vld [vmem:[%s4877_s1 + $0x150] sm:$0xff]  ;;  %v88_v18 = vld [vmem:[%s4877_s1 + $0x18] sm:$0xff] }
  0x46   :  { %873 = vmatprep.subr.bf16.mxu0 %v3036_v23  ;;  %946 = vmatprep.subr.bf16.mxu1 %v3038_v24  ;;  %v2986_v23 = vcombine.high %v136_v14, %v140_v15  ;;  %v131_v24 = vld [vmem:[%s4877_s1 + $0x170] sm:$0xff] }
  0x47   :  { %v2976_v33 = vcombine.high %v127_v22, %v131_v24  ;;  %v2975_v41 = vcombine.low %v127_v22, %v131_v24  ;;  %v2945_v22 = vcombine.low %v96_v6, %v100_v7 }
  0x49   :  { %874 = vmatpush2.bf16.msra.mxu0 %v3035_v29  ;;  %947 = vmatpush2.bf16.msra.mxu1 %v3037_v30  ;;  %v2983_v29 = vcombine.low %v135_v9, %v139_v12  ;;  %v119_v30 = vld [vmem:[%s4877_s1 + $0x110] sm:$0xff]  ;;  %v73_v9 = vld [vmem:[%s4876_s0 + $0x60] sm:$0xff]  ;;  %v2953_v12 = vcombine.low %v104_v57, %v108_v60 }
  0x4a   :  { %875 = vmatprep.subr.bf16.mxu0 %v3028_v31  ;;  %948 = vmatprep.subr.bf16.mxu1 %v3030_v32  ;;  %v67_v31 = vld [vmem:[%s4876_s0 + $0x30] sm:$0xff]  ;;  %v2985_v32 = vcombine.low %v136_v14, %v140_v15  ;;  %v2968_v43 = vcombine.high %v119_v30, %v123_v34  ;;  %v2967_v51 = vcombine.low %v119_v30, %v123_v34 }
  0x4b   :  { %v87_v14 = vld [vmem:[%s4877_s1 + $0x10] sm:$0xff]  ;;  %v2946_v15 = vcombine.high %v96_v6, %v100_v7  ;;  %v3056_v34 = vcombine.high %v207_v25, %v211_v27  ;;  %v168_v7 = vld [vmem:[%s4877_s1 + $0x298] sm:$0xff] }
  0x4c   :  { %v2935_v30 = vcombine.low %v87_v14, %v91_v17  ;;  %v175_v60 = vld [vmem:[%s4877_s1 + $0x2d0] sm:$0xff] }
  0x4d   :  { %876 = vmatpush2.bf16.msra.mxu0 %v3027_v37  ;;  %949 = vmatpush2.bf16.msra.mxu1 %v3029_v38  ;;  %v124_v37 = vld [vmem:[%s4877_s1 + $0x138] sm:$0xff]  ;;  %v3868_v38 = vpack.c.bf16 %v67_v31, %v65_v28  ;;  %v199_v31 = vld [vmem:[%s4877_s1 + $0x390] sm:$0xff] }
  0x4e   :  { %877 = vmatprep.subr.bf16.mxu0 %v3020_v39  ;;  %950 = vmatprep.subr.bf16.mxu1 %v3022_v40  ;;  %v70_v39 = vld [vmem:[%s4876_s0 + $0x48] sm:$0xff]  ;;  %v72_v40 = vld [vmem:[%s4876_s0 + $0x58] sm:$0xff]  ;;  %v171_v6 = vld [vmem:[%s4877_s1 + $0x2b0] sm:$0xff] }
  0x4f   :  { %v3889_v49 = vpack.c.bf16 %v72_v40, %v70_v39  ;;  %v208_v28 = vld [vmem:[%s4877_s1 + $0x3d8] sm:$0xff]  ;;  %v3055_v39 = vcombine.low %v207_v25, %v211_v27  ;;  %v191_v40 = vld [vmem:[%s4877_s1 + $0x350] sm:$0xff] }
  0x50   :  { %v155_v25 = vld [vmem:[%s4877_s1 + $0x230] sm:$0xff]  ;;  %v152_v27 = vld [vmem:[%s4877_s1 + $0x218] sm:$0xff] }
  0x51   :  { %878 = vmatpush2.bf16.msra.mxu0 %v3019_v45  ;;  %951 = vmatpush2.bf16.msra.mxu1 %v3021_v46  ;;  %v2970_v45 = vcombine.high %v120_v35, %v124_v37  ;;  %v115_v46 = vld [vmem:[%s4877_s1 + $0xf0] sm:$0xff] }
  0x52   :  { %879 = vmatprep.subr.bf16.mxu0 %v3012_v47  ;;  %952 = vmatprep.subr.bf16.mxu1 %v3014_v48  ;;  %v112_v47 = vld [vmem:[%s4877_s1 + $0xd8] sm:$0xff] }
  0x53   :  { %v116_v48 = vld [vmem:[%s4877_s1 + $0xf8] sm:$0xff] }
  0x54   :  { %v2962_v59 = vcombine.high %v112_v47, %v116_v48 }
  0x55   :  { %880 = vmatpush2.bf16.msra.mxu0 %v3011_v53  ;;  %953 = vmatpush2.bf16.msra.mxu1 %v3013_v54  ;;  %v71_v53 = vld [vmem:[%s4876_s0 + $0x50] sm:$0xff]  ;;  %v2969_v54 = vcombine.low %v120_v35, %v124_v37  ;;  %v200_v35 = vld [vmem:[%s4877_s1 + $0x398] sm:$0xff] }
  0x56   :  { %881 = vmatprep.subr.bf16.mxu0 %v3004_v55  ;;  %954 = vmatprep.subr.bf16.mxu1 %v3006_v56  ;;  %v2960_v55 = vcombine.high %v111_v44, %v115_v46  ;;  %v107_v56 = vld [vmem:[%s4877_s1 + $0xb0] sm:$0xff]  ;;  %v3912_v61 = vpack.c.bf16 %v71_v53, %v69_v50  ;;  %v184_v53 = vld [vmem:[%s4877_s1 + $0x318] sm:$0xff] }
  0x57   :  { %v2952_v2 = vcombine.high %v103_v52, %v107_v56 }
  0x59   :  { %882 = vmatpush2.bf16.msra.mxu0 %v3003_v62  ;;  %955 = vmatpush2.bf16.msra.mxu1 %v3005_v63  ;;  %v74_v62 = vld [vmem:[%s4876_s0 + $0x68] sm:$0xff]  ;;  %v76_v63 = vld [vmem:[%s4876_s0 + $0x78] sm:$0xff] }
  0x5a   :  { %883 = vmatprep.subr.bf16.mxu0 %v2996_v0  ;;  %956 = vmatprep.subr.bf16.mxu1 %v2998_v1  ;;  %v2959_v0 = vcombine.low %v111_v44, %v115_v46  ;;  %v2961_v1 = vcombine.low %v112_v47, %v116_v48  ;;  %v192_v44 = vld [vmem:[%s4877_s1 + $0x358] sm:$0xff] }
  0x5d   :  { %884 = vmatpush2.bf16.msra.mxu0 %v2995_v8  ;;  %957 = vmatpush2.bf16.msra.mxu1 %v2997_v10  ;;  %v3933_v8 = vpack.c.bf16 %v76_v63, %v74_v62  ;;  %v2951_v10 = vcombine.low %v103_v52, %v107_v56  ;;  %v187_v52 = vld [vmem:[%s4877_s1 + $0x330] sm:$0xff]  ;;  %v176_v63 = vld [vmem:[%s4877_s1 + $0x2d8] sm:$0xff] }
  0x5e   :  { %999 = vmatprep.subr.bf16.mxu0 %v2992_v11  ;;  %1072 = vmatprep.subr.bf16.mxu1 %v2994_v13  ;;  %v75_v11 = vld [vmem:[%s4876_s0 + $0x70] sm:$0xff]  ;;  %v2944_v13 = vcombine.high %v95_v3, %v99_v5 }
  0x5f   :  { %v179_v62 = vld [vmem:[%s4877_s1 + $0x2f0] sm:$0xff] }
  0x60   :  { %886 = vmatmul.mubr.bf16.vlgmr.msra.gmra.mxu0 %v3825_v16  ;;  %959 = vmatmul.mubr.bf16.vlgmr.msra.gmra.mxu1 %v3825_v16 }
  0x61   :  { %1000 = vmatpush1.bf16.msra.mxu0 %v2991_v19  ;;  %1073 = vmatpush1.bf16.msra.mxu1 %v2993_v20  ;;  %v92_v19 = vld [vmem:[%s4877_s1 + $0x38] sm:$0xff]  ;;  %v3956_v20 = vpack.c.bf16 %v75_v11, %v73_v9 }
  0x62   :  { %1001 = vmatprep.subr.bf16.mxu0 %v2984_v21  ;;  %1074 = vmatprep.subr.bf16.mxu1 %v2986_v23  ;;  %v2943_v21 = vcombine.low %v95_v3, %v99_v5  ;;  %v2936_v23 = vcombine.high %v87_v14, %v91_v17  ;;  %v2938_v24 = vcombine.high %v88_v18, %v92_v19  ;;  %v167_v5 = vld [vmem:[%s4877_s1 + $0x290] sm:$0xff]  ;;  %v172_v9 = vld [vmem:[%s4877_s1 + $0x2b8] sm:$0xff] }
  0x63   :  { %895 = vmatprep.mubr.bf16.mxu0 %v3842_v26  ;;  %968 = vmatprep.mubr.bf16.mxu1 %v3842_v26  ;;  %v3024_v3 = vcombine.high %v175_v60, %v179_v62  ;;  %v159_v14 = vld [vmem:[%s4877_s1 + $0x250] sm:$0xff]  ;;  %v160_v17 = vld [vmem:[%s4877_s1 + $0x258] sm:$0xff] }
  0x65   :  { %1002 = vmatpush1.bf16.msra.mxu0 %v2983_v29  ;;  %1075 = vmatpush1.bf16.msra.mxu1 %v2985_v32  ;;  %v212_v29 = vld [vmem:[%s4877_s1 + $0x3f8] sm:$0xff]  ;;  %v203_v32 = vld [vmem:[%s4877_s1 + $0x3b0] sm:$0xff] }
  0x66   :  { %1003 = vmatprep.subr.bf16.mxu0 %v2976_v33  ;;  %1076 = vmatprep.subr.bf16.mxu1 %v2978_v36  ;;  %v2937_v33 = vcombine.low %v88_v18, %v92_v19  ;;  %v204_v36 = vld [vmem:[%s4877_s1 + $0x3b8] sm:$0xff]  ;;  %v3058_v37 = vcombine.high %v208_v28, %v212_v29  ;;  %v3047_v46 = vcombine.low %v199_v31, %v203_v32 }
  0x67   :  { %v3049_v47 = vcombine.low %v200_v35, %v204_v36  ;;  %v164_v18 = vld [vmem:[%s4877_s1 + $0x278] sm:$0xff]  ;;  %v3015_v19 = vcombine.low %v167_v5, %v171_v6 }
  0x68   :  { %896 = vmatmul.mubr.bf16.gmra.mxu0 %v3868_v38  ;;  %969 = vmatmul.mubr.bf16.gmra.mxu1 %v3868_v38 }
  0x69   :  { %1004 = vmatpush1.bf16.msra.mxu0 %v2975_v41  ;;  %1077 = vmatpush1.bf16.msra.mxu1 %v2977_v42  ;;  %v195_v41 = vld [vmem:[%s4877_s1 + $0x370] sm:$0xff]  ;;  %v3057_v42 = vcombine.low %v208_v28, %v212_v29  ;;  %v156_v28 = vld [vmem:[%s4877_s1 + $0x238] sm:$0xff] }
  0x6a   :  { %1005 = vmatprep.subr.bf16.mxu0 %v2968_v43  ;;  %1078 = vmatprep.subr.bf16.mxu1 %v2970_v45  ;;  %v3048_v43 = vcombine.high %v199_v31, %v203_v32  ;;  %v3050_v45 = vcombine.high %v200_v35, %v204_v36  ;;  %v3040_v48 = vcombine.high %v191_v40, %v195_v41  ;;  %v3200_v35 = vld [vmem:[#allocation3 + $0xe4] ss:$16 sps:$4 sm:$0xff]   ;;  %v3203_v36 = vld [vmem:[#allocation3 + $0xec] ss:$16 sps:$4 sm:$0xff]  }
  0x6b   :  { %905 = vmatprep.mubr.bf16.mxu0 %v3889_v49  ;;  %978 = vmatprep.mubr.bf16.mxu1 %v3889_v49  ;;  %v3002_v32 = vcombine.high %v152_v27, %v156_v28 }
  0x6d   :  { %1006 = vmatpush1.bf16.msra.mxu0 %v2967_v51  ;;  %1079 = vmatpush1.bf16.msra.mxu1 %v2969_v54  ;;  %v183_v51 = vld [vmem:[%s4877_s1 + $0x310] sm:$0xff]  ;;  %v188_v54 = vld [vmem:[%s4877_s1 + $0x338] sm:$0xff] }
  0x6e   :  { %1007 = vmatprep.subr.bf16.mxu0 %v2960_v55  ;;  %1080 = vmatprep.subr.bf16.mxu1 %v2962_v59  ;;  %v3039_v55 = vcombine.low %v191_v40, %v195_v41  ;;  %v3032_v57 = vcombine.high %v183_v51, %v187_v52  ;;  %v3034_v59 = vcombine.high %v184_v53, %v188_v54  ;;  %v3206_v40 = vld [vmem:[#allocation3 + $0xc4] ss:$16 sps:$4 sm:$0xff]   ;;  %v3209_v41 = vld [vmem:[#allocation3 + $0xcc] ss:$16 sps:$4 sm:$0xff]  }
  0x70   :  { %906 = vmatmul.mubr.bf16.gmra.mxu0 %v3912_v61  ;;  %979 = vmatmul.mubr.bf16.gmra.mxu1 %v3912_v61 }
  0x71   :  { %1008 = vmatpush1.bf16.msra.mxu0 %v2959_v0  ;;  %1081 = vmatpush1.bf16.msra.mxu1 %v2961_v1  ;;  %v180_v0 = vld [vmem:[%s4877_s1 + $0x2f8] sm:$0xff]  ;;  %v3031_v1 = vcombine.low %v183_v51, %v187_v52  ;;  %v3224_v51 = vld [vmem:[#allocation3 + $0x64] ss:$16 sps:$4 sm:$0xff]   ;;  %v3222_v52 = vld [vmem:[#allocation3 + $0x60] ss:$16 sps:$4 sm:$0xff]  }
  0x72   :  { %1009 = vmatprep.subr.bf16.mxu0 %v2952_v2  ;;  %1082 = vmatprep.subr.bf16.mxu1 %v2954_v4  ;;  %v3033_v2 = vcombine.low %v184_v53, %v188_v54  ;;  %v3026_v4 = vcombine.high %v176_v63, %v180_v0  ;;  %v3025_v11 = vcombine.low %v176_v63, %v180_v0  ;;  %v3225_v53 = vld [vmem:[#allocation3 + $0x68] ss:$16 sps:$4 sm:$0xff]   ;;  %v3230_v54 = vld [vmem:[#allocation3 + $0x44] ss:$16 sps:$4 sm:$0xff]   ;;  %v3240_v63 = vld [vmem:[#allocation3] ss:$16 sps:$4 sm:$0xff]  }
  0x73   :  { %915 = vmatprep.mubr.bf16.mxu0 %v3933_v8  ;;  %988 = vmatprep.mubr.bf16.mxu1 %v3933_v8  ;;  %v3059_v0 = vld [vmem:[%s4881_s5 + $0x8] sm:$0xff] }
  0x75   :  { %1010 = vmatpush1.bf16.msra.mxu0 %v2951_v10  ;;  %1083 = vmatpush1.bf16.msra.mxu1 %v2953_v12  ;;  %v3023_v10 = vcombine.low %v175_v60, %v179_v62  ;;  %v3016_v12 = vcombine.high %v167_v5, %v171_v6  ;;  %v3237_v60 = vld [vmem:[#allocation3 + $0x28] ss:$16 sps:$4 sm:$0xff]   ;;  %v3242_v62 = vld [vmem:[#allocation3 + $0x4] ss:$16 sps:$4 sm:$0xff]  }
  0x76   :  { %1011 = vmatprep.subr.bf16.mxu0 %v2944_v13  ;;  %1084 = vmatprep.subr.bf16.mxu1 %v2946_v15  ;;  %v3018_v13 = vcombine.high %v168_v7, %v172_v9  ;;  %v163_v15 = vld [vmem:[%s4877_s1 + $0x270] sm:$0xff]  ;;  %v4097_v5 = vld [vmem:[%s4878_s2 + $0xe8] ss:$16 sps:$4 sm:$0xff]  }
  0x77   :  { %v3007_v29 = vcombine.low %v159_v14, %v163_v15  ;;  %v4102_v6 = vld [vmem:[%s4878_s2 + $0xc4] ss:$16 sps:$4 sm:$0xff]  }
  0x78   :  { %916 = vmatmul.mubr.bf16.gmra.mxu0 %v3956_v20  ;;  %989 = vmatmul.mubr.bf16.gmra.mxu1 %v3956_v20 }
  0x79   :  { %1012 = vmatpush1.bf16.msra.mxu0 %v2943_v21  ;;  %1085 = vmatpush1.bf16.msra.mxu1 %v2945_v22  ;;  %v3017_v21 = vcombine.low %v168_v7, %v172_v9  ;;  %v3008_v22 = vcombine.high %v159_v14, %v163_v15  ;;  %v4108_v7 = vld [vmem:[%s4878_s2 + $0xcc] ss:$16 sps:$4 sm:$0xff]   ;;  %v4114_v9 = vld [vmem:[%s4878_s2 + $0xc0] ss:$16 sps:$4 sm:$0xff]   ;;  %v4147_v14 = vld [vmem:[%s4878_s2 + $0xa8] ss:$16 sps:$4 sm:$0xff]  }
  0x7a   :  { %1013 = vmatprep.subr.bf16.mxu0 %v2936_v23  ;;  %1086 = vmatprep.subr.bf16.mxu1 %v2938_v24  ;;  %v3010_v23 = vcombine.high %v160_v17, %v164_v18  ;;  %v151_v24 = vld [vmem:[%s4877_s1 + $0x210] sm:$0xff] }
  0x7b   :  { %1031 = vmatprep.mubr.bf16.mxu0 %v3689_v58  ;;  %1104 = vmatprep.mubr.bf16.mxu1 %v3689_v58  ;;  %v196_v58 = vld [vmem:[%s4877_s1 + $0x378] sm:$0xff]  ;;  %v3000_v31 = vcombine.high %v151_v24, %v155_v25  ;;  %v4152_v15 = vld [vmem:[%s4878_s2 + $0x84] ss:$16 sps:$4 sm:$0xff]  }
  0x7c   :  { %v3042_v50 = vcombine.high %v192_v44, %v196_v58  ;;  %v3041_v56 = vcombine.low %v192_v44, %v196_v58  ;;  %v3212_v44 = vld [vmem:[#allocation3 + $0xa4] ss:$16 sps:$4 sm:$0xff]   ;;  %v3215_v58 = vld [vmem:[#allocation3 + $0xac] ss:$16 sps:$4 sm:$0xff]  }
  0x7d   :  { %1014 = vmatpush1.bf16.msra.mxu0 %v2935_v30  ;;  %1087 = vmatpush1.bf16.msra.mxu1 %v2937_v33  ;;  %v3009_v30 = vcombine.low %v160_v17, %v164_v18  ;;  %v2999_v33 = vcombine.low %v151_v24, %v155_v25  ;;  %v4158_v17 = vld [vmem:[%s4878_s2 + $0x8c] ss:$16 sps:$4 sm:$0xff]   ;;  %v4164_v18 = vld [vmem:[%s4878_s2 + $0x80] ss:$16 sps:$4 sm:$0xff]   ;;  %v4195_v24 = vld [vmem:[%s4878_s2 + $0x68] ss:$16 sps:$4 sm:$0xff]  }
  0x7e   :  { %1015 = vmatprep.subr.bf16.mxu0 %v3056_v34  ;;  %1088 = vmatprep.subr.bf16.mxu1 %v3058_v37  ;;  %v3001_v34 = vcombine.low %v152_v27, %v156_v28  ;;  %v3198_v37 = vld [vmem:[#allocation3 + $0xe0] ss:$16 sps:$4 sm:$0xff]   ;;  %v4200_v25 = vld [vmem:[%s4878_s2 + $0x44] ss:$16 sps:$4 sm:$0xff]   ;;  %v4206_v27 = vld [vmem:[%s4878_s2 + $0x4c] ss:$16 sps:$4 sm:$0xff]  }
  0x7f   :  { %v4212_v28 = vld [vmem:[%s4878_s2 + $0x40] ss:$16 sps:$4 sm:$0xff]  }
  0x81   :  { %1016 = vmatpush2.bf16.msra.mxu0 %v3055_v39  ;;  %1089 = vmatpush2.bf16.msra.mxu1 %v3057_v42  ;;  %v3201_v39 = vld [vmem:[#allocation3 + $0xe8] ss:$16 sps:$4 sm:$0xff]   ;;  %v3204_v42 = vld [vmem:[#allocation3 + $0xc0] ss:$16 sps:$4 sm:$0xff]  }
  0x82   :  { %1017 = vmatprep.subr.bf16.mxu0 %v3048_v43  ;;  %1090 = vmatprep.subr.bf16.mxu1 %v3050_v45  ;;  %v3207_v43 = vld [vmem:[#allocation3 + $0xc8] ss:$16 sps:$4 sm:$0xff]   ;;  %v3210_v45 = vld [vmem:[#allocation3 + $0xa0] ss:$16 sps:$4 sm:$0xff]  }
  0x85   :  { %1018 = vmatpush2.bf16.msra.mxu0 %v3047_v46  ;;  %1091 = vmatpush2.bf16.msra.mxu1 %v3049_v47  ;;  %v3213_v46 = vld [vmem:[#allocation3 + $0xa8] ss:$16 sps:$4 sm:$0xff]   ;;  %v3218_v47 = vld [vmem:[#allocation3 + $0x84] ss:$16 sps:$4 sm:$0xff]  }
  0x86   :  { %1019 = vmatprep.subr.bf16.mxu0 %v3040_v48  ;;  %1092 = vmatprep.subr.bf16.mxu1 %v3042_v50  ;;  %v3216_v48 = vld [vmem:[#allocation3 + $0x80] ss:$16 sps:$4 sm:$0xff]   ;;  %v3219_v50 = vld [vmem:[#allocation3 + $0x88] ss:$16 sps:$4 sm:$0xff]  }
  0x89   :  { %1020 = vmatpush2.bf16.msra.mxu0 %v3039_v55  ;;  %1093 = vmatpush2.bf16.msra.mxu1 %v3041_v56  ;;  %v3228_v55 = vld [vmem:[#allocation3 + $0x40] ss:$16 sps:$4 sm:$0xff]   ;;  %v3231_v56 = vld [vmem:[#allocation3 + $0x48] ss:$16 sps:$4 sm:$0xff]  }
  0x8a   :  { %1021 = vmatprep.subr.bf16.mxu0 %v3032_v57  ;;  %1094 = vmatprep.subr.bf16.mxu1 %v3034_v59  ;;  %v3236_v57 = vld [vmem:[#allocation3 + $0x24] ss:$16 sps:$4 sm:$0xff]   ;;  %v3234_v59 = vld [vmem:[#allocation3 + $0x20] ss:$16 sps:$4 sm:$0xff]  }
  0x8d   :  { %1022 = vmatpush2.bf16.msra.mxu0 %v3031_v1  ;;  %1095 = vmatpush2.bf16.msra.mxu1 %v3033_v2  ;;  %v4079_v1 = vld [vmem:[%s4878_s2 + $0xe4] ss:$16 sps:$4 sm:$0xff]   ;;  %v4886_v2 = vmov 0  }
  0x8e   :  { %1023 = vmatprep.subr.bf16.mxu0 %v3024_v3  ;;  %1096 = vmatprep.subr.bf16.mxu1 %v3026_v4  ;;  %v1358_v3 = vpack.c.bf16 %v3059_v0, %v3059_v0  ;;  %v4091_v4 = vld [vmem:[%s4878_s2 + $0xe0] ss:$16 sps:$4 sm:$0xff]  }
  0x91   :  { %1024 = vmatpush2.bf16.msra.mxu0 %v3023_v10  ;;  %1097 = vmatpush2.bf16.msra.mxu1 %v3025_v11  ;;  %v4121_v10 = vld [vmem:[%s4878_s2 + $0xc8] ss:$16 sps:$4 sm:$0xff]   ;;  %v4126_v11 = vld [vmem:[%s4878_s2 + $0xa4] ss:$16 sps:$4 sm:$0xff]  }
  0x92   :  { %1025 = vmatprep.subr.bf16.mxu0 %v3016_v12  ;;  %1098 = vmatprep.subr.bf16.mxu1 %v3018_v13  ;;  %v4132_v12 = vld [vmem:[%s4878_s2 + $0xac] ss:$16 sps:$4 sm:$0xff]   ;;  %v4140_v13 = vld [vmem:[%s4878_s2 + $0xa0] ss:$16 sps:$4 sm:$0xff]  }
  0x95   :  { %1026 = vmatpush2.bf16.msra.mxu0 %v3015_v19  ;;  %1099 = vmatpush2.bf16.msra.mxu1 %v3017_v21  ;;  %v4171_v19 = vld [vmem:[%s4878_s2 + $0x88] ss:$16 sps:$4 sm:$0xff]   ;;  %v4176_v21 = vld [vmem:[%s4878_s2 + $0x64] ss:$16 sps:$4 sm:$0xff]  }
  0x96   :  { %1027 = vmatprep.subr.bf16.mxu0 %v3008_v22  ;;  %1100 = vmatprep.subr.bf16.mxu1 %v3010_v23  ;;  %v4182_v22 = vld [vmem:[%s4878_s2 + $0x6c] ss:$16 sps:$4 sm:$0xff]   ;;  %v4188_v23 = vld [vmem:[%s4878_s2 + $0x60] ss:$16 sps:$4 sm:$0xff]  }
  0x99   :  { %1028 = vmatpush2.bf16.msra.mxu0 %v3007_v29  ;;  %1101 = vmatpush2.bf16.msra.mxu1 %v3009_v30  ;;  %v4219_v29 = vld [vmem:[%s4878_s2 + $0x48] ss:$16 sps:$4 sm:$0xff]   ;;  %v4224_v30 = vld [vmem:[%s4878_s2 + $0x24] ss:$16 sps:$4 sm:$0xff]  }
  0x9a   :  { %1029 = vmatprep.subr.bf16.mxu0 %v3000_v31  ;;  %1102 = vmatprep.subr.bf16.mxu1 %v3002_v32  ;;  %v4230_v31 = vld [vmem:[%s4878_s2 + $0x2c] ss:$16 sps:$4 sm:$0xff]   ;;  %v4236_v32 = vld [vmem:[%s4878_s2 + $0x20] ss:$16 sps:$4 sm:$0xff]  }
  0x9d   :  { %1030 = vmatpush2.bf16.msra.mxu0 %v2999_v33  ;;  %1103 = vmatpush2.bf16.msra.mxu1 %v3001_v34  ;;  %v4243_v33 = vld [vmem:[%s4878_s2 + $0x28] ss:$16 sps:$4 sm:$0xff]   ;;  %v4248_v34 = vld [vmem:[%s4878_s2 + $0x4] ss:$16 sps:$4 sm:$0xff]  }
  0x9e   :  { %1551 = vmatprep.subr.bf16.mxu0 %v3200_v35  ;;  %1592 = vmatprep.subr.bf16.mxu1 %v3203_v36  ;;  %v4254_v35 = vld [vmem:[%s4878_s2 + $0xc] ss:$16 sps:$4 sm:$0xff]   ;;  %v4260_v36 = vld [vmem:[%s4878_s2] ss:$16 sps:$4 sm:$0xff]  }
  0xa0   :  { %1032 = vmatmul.mubr.bf16.vlgmr.msra.gmra.mxu0 %v3825_v16  ;;  %1105 = vmatmul.mubr.bf16.vlgmr.msra.gmra.mxu1 %v3825_v16  ;;  %v3221_v16 = vld [vmem:[#allocation3 + $0x8c] ss:$16 sps:$4 sm:$0xff]  }
  0xa1   :  { %1552 = vmatpush1.bf16.msra.mxu0 %v3198_v37  ;;  %1593 = vmatpush1.bf16.msra.mxu1 %v3201_v39  ;;  %v1663_v37 = vld [vmem:[%s4881_s5] sm:$0xff]  ;;  %v4270_v39 = vld [vmem:[%s4878_s2 + $0x8] ss:$16 sps:$4 sm:$0xff]  }
  0xa2   :  { %1553 = vmatprep.subr.bf16.mxu0 %v3206_v40  ;;  %1594 = vmatprep.subr.bf16.mxu1 %v3209_v41  ;;  %v1669_v40 = vpack.c.bf16 %v1663_v37, %v1663_v37  ;;  %v1147_v41 = vlaneseq }
  0xa3   :  { %1041 = vmatprep.mubr.bf16.mxu0 %v3842_v26  ;;  %1114 = vmatprep.mubr.bf16.mxu1 %v3842_v26  ;;  %v3227_v26 = vld [vmem:[#allocation3 + $0x6c] ss:$16 sps:$4 sm:$0xff]  }
  0xa5   :  { %1554 = vmatpush1.bf16.msra.mxu0 %v3204_v42  ;;  %1595 = vmatpush1.bf16.msra.mxu1 %v3207_v43  ;;  %v4311_v42 = vshrl.u32 %v1147_v41, 7 }
  0xa6   :  { %1555 = vmatprep.subr.bf16.mxu0 %v3212_v44  ;;  %1596 = vmatprep.subr.bf16.mxu1 %v3215_v58 }
  0xa7   :  { %v1157_v43 = vsub.s32 2, %v4311_v42  ;;  %v1149_v44 = vsub.s32 0, %v4311_v42 }
  0xa8   :  { %1042 = vmatmul.mubr.bf16.gmra.mxu0 %v3868_v38  ;;  %1115 = vmatmul.mubr.bf16.gmra.mxu1 %v3868_v38  ;;  %v3233_v38 = vld [vmem:[#allocation3 + $0x4c] ss:$16 sps:$4 sm:$0xff]  }
  0xa9   :  { %1556 = vmatpush1.bf16.msra.mxu0 %v3210_v45  ;;  %1597 = vmatpush1.bf16.msra.mxu1 %v3213_v46  ;;  %v4320_v45 = vld [vmem:[%s4880_s4] sm:$0xff]  ;;  %v1161_v46 = vsub.s32 3, %v4311_v42 }
  0xaa   :  { %1557 = vmatprep.subr.bf16.mxu0 %v3218_v47  ;;  %1598 = vmatprep.subr.bf16.mxu1 %v3221_v16  ;;  %v1153_v47 = vsub.s32 1, %v4311_v42 }
  0xab   :  { %1051 = vmatprep.mubr.bf16.mxu0 %v3889_v49  ;;  %1124 = vmatprep.mubr.bf16.mxu1 %v3889_v49  ;;  %v3239_v49 = vld [vmem:[#allocation3 + $0x2c] ss:$16 sps:$4 sm:$0xff]  }
  0xad   :  { %1558 = vmatpush1.bf16.msra.mxu0 %v3216_v48  ;;  %1599 = vmatpush1.bf16.msra.mxu1 %v3219_v50  ;;  %v4329_v50 = vrot.slane %v4320_v45, %v1157_v43 }
  0xae   :  { %1559 = vmatprep.subr.bf16.mxu0 %v3224_v51  ;;  %1600 = vmatprep.subr.bf16.mxu1 %v3227_v26  ;;  %v4332_v51 = vrot.slane %v4320_v45, %v1149_v44 }
  0xb0   :  { %1052 = vmatmul.mubr.bf16.gmra.mxu0 %v3912_v61  ;;  %1125 = vmatmul.mubr.bf16.gmra.mxu1 %v3912_v61  ;;  %v3245_v61 = vld [vmem:[#allocation3 + $0xc] ss:$16 sps:$4 sm:$0xff]  }
  0xb1   :  { %1560 = vmatpush1.bf16.msra.mxu0 %v3222_v52  ;;  %1601 = vmatpush1.bf16.msra.mxu1 %v3225_v53  ;;  %v4337_v53 = vrot.slane %v4320_v45, %v1161_v46 }
  0xb2   :  { %1561 = vmatprep.subr.bf16.mxu0 %v3230_v54  ;;  %1602 = vmatprep.subr.bf16.mxu1 %v3233_v38  ;;  %v4340_v54 = vrot.slane %v4320_v45, %v1153_v47 }
  0xb3   :  { %1061 = vmatprep.mubr.bf16.mxu0 %v3933_v8  ;;  %1134 = vmatprep.mubr.bf16.mxu1 %v3933_v8  ;;  %v3243_v8 = vld [vmem:[#allocation3 + $0x8] ss:$16 sps:$4 sm:$0xff]  }
  0xb5   :  { %1562 = vmatpush1.bf16.msra.mxu0 %v3228_v55  ;;  %1603 = vmatpush1.bf16.msra.mxu1 %v3231_v56 }
  0xb6   :  { %1563 = vmatprep.subr.bf16.mxu0 %v3236_v57  ;;  %1604 = vmatprep.subr.bf16.mxu1 %v3239_v49 }
  0xb8   :  { %1062 = vmatmul.mubr.bf16.gmra.mxu0 %v3956_v20  ;;  %1135 = vmatmul.mubr.bf16.gmra.mxu1 %v3956_v20  ;;  %v4085_v20 = vld [vmem:[%s4878_s2 + $0xec] ss:$16 sps:$4 sm:$0xff]  }
  0xb9   :  { %1564 = vmatpush1.bf16.msra.mxu0 %v3234_v59  ;;  %1605 = vmatpush1.bf16.msra.mxu1 %v3237_v60  ;;  %4890 = vst [vmem:[#allocation9_spill] sm:$0xff] %v4085_v20 }
  0xba   :  { %1565 = vmatprep.subr.bf16.mxu0 %v3242_v62  ;;  %1606 = vmatprep.subr.bf16.mxu1 %v3245_v61 }
  0xbb   :  { %1583 = vmatprep.mubr.bf16.mxu0 %v4886_v2  ;;  %1624 = vmatprep.mubr.bf16.mxu1 %v4886_v2 }
  0xbd   :  { %1566 = vmatpush1.bf16.msra.mxu0 %v3240_v63  ;;  %1607 = vmatpush1.bf16.msra.mxu1 %v3243_v8 }
  0xbe   :  { %1830 = vmatprep.subr.bf16.mxu0 %v4079_v1  ;;  %1871 = vmatprep.subr.bf16.mxu1 %v4085_v20 }
  0xc0   :  { %1584 = vmatmul.mubr.bf16.vlgmr.msra.gmra.mxu0 %v1358_v3  ;;  %1625 = vmatmul.mubr.bf16.vlgmr.msra.gmra.mxu1 %v1358_v3 }
  0xc1   :  { %1831 = vmatpush1.bf16.msra.mxu0 %v4091_v4  ;;  %1872 = vmatpush1.bf16.msra.mxu1 %v4097_v5 }
  0xc2   :  { %1832 = vmatprep.subr.bf16.mxu0 %v4102_v6  ;;  %1873 = vmatprep.subr.bf16.mxu1 %v4108_v7 }
  0xc3   :  { %1862 = vmatprep.mubr.bf16.mxu0 %v4886_v2  ;;  %1903 = vmatprep.mubr.bf16.mxu1 %v4886_v2 }
  0xc5   :  { %1833 = vmatpush1.bf16.msra.mxu0 %v4114_v9  ;;  %1874 = vmatpush1.bf16.msra.mxu1 %v4121_v10 }
  0xc6   :  { %1834 = vmatprep.subr.bf16.mxu0 %v4126_v11  ;;  %1875 = vmatprep.subr.bf16.mxu1 %v4132_v12 }
  0xc9   :  { %1835 = vmatpush1.bf16.msra.mxu0 %v4140_v13  ;;  %1876 = vmatpush1.bf16.msra.mxu1 %v4147_v14 }
  0xca   :  { %1836 = vmatprep.subr.bf16.mxu0 %v4152_v15  ;;  %1877 = vmatprep.subr.bf16.mxu1 %v4158_v17 }
  0xcd   :  { %1837 = vmatpush1.bf16.msra.mxu0 %v4164_v18  ;;  %1878 = vmatpush1.bf16.msra.mxu1 %v4171_v19 }
  0xce   :  { %1838 = vmatprep.subr.bf16.mxu0 %v4176_v21  ;;  %1879 = vmatprep.subr.bf16.mxu1 %v4182_v22 }
  0xd1   :  { %1839 = vmatpush1.bf16.msra.mxu0 %v4188_v23  ;;  %1880 = vmatpush1.bf16.msra.mxu1 %v4195_v24 }
  0xd2   :  { %1840 = vmatprep.subr.bf16.mxu0 %v4200_v25  ;;  %1881 = vmatprep.subr.bf16.mxu1 %v4206_v27 }
  0xd5   :  { %1841 = vmatpush1.bf16.msra.mxu0 %v4212_v28  ;;  %1882 = vmatpush1.bf16.msra.mxu1 %v4219_v29 }
  0xd6   :  { %1842 = vmatprep.subr.bf16.mxu0 %v4224_v30  ;;  %1883 = vmatprep.subr.bf16.mxu1 %v4230_v31 }
  0xd9   :  { %1843 = vmatpush1.bf16.msra.mxu0 %v4236_v32  ;;  %1884 = vmatpush1.bf16.msra.mxu1 %v4243_v33 }
  0xda   :  { %1844 = vmatprep.subr.bf16.mxu0 %v4248_v34  ;;  %1885 = vmatprep.subr.bf16.mxu1 %v4254_v35 }
  0xdd   :  { %1845 = vmatpush1.bf16.msra.mxu0 %v4260_v36  ;;  %1886 = vmatpush1.bf16.msra.mxu1 %v4270_v39 }
  0xde   :  { %1946 = vmatprep.subr.bf16.mxu0 %v4079_v1  ;;  %1987 = vmatprep.subr.bf16.mxu1 %v4085_v20 }
  0xe0   :  { %1863 = vmatmul.mubr.bf16.vlgmr.msra.gmra.mxu0 %v1669_v40  ;;  %1904 = vmatmul.mubr.bf16.vlgmr.msra.gmra.mxu1 %v1669_v40 }
  0xe1   :  { %1947 = vmatpush1.bf16.msra.mxu0 %v4091_v4  ;;  %1988 = vmatpush1.bf16.msra.mxu1 %v4097_v5 }
  0xe2   :  { %1948 = vmatprep.subr.bf16.mxu0 %v4102_v6  ;;  %1989 = vmatprep.subr.bf16.mxu1 %v4108_v7 }
  0xe3   :  { %1978 = vmatprep.mubr.bf16.mxu0 %v4886_v2  ;;  %2019 = vmatprep.mubr.bf16.mxu1 %v4886_v2 }
  0xe5   :  { %1949 = vmatpush1.bf16.msra.mxu0 %v4114_v9  ;;  %1990 = vmatpush1.bf16.msra.mxu1 %v4121_v10 }
  0xe6   :  { %1950 = vmatprep.subr.bf16.mxu0 %v4126_v11  ;;  %1991 = vmatprep.subr.bf16.mxu1 %v4132_v12 }
  0xe9   :  { %1951 = vmatpush1.bf16.msra.mxu0 %v4140_v13  ;;  %1992 = vmatpush1.bf16.msra.mxu1 %v4147_v14 }
  0xea   :  { %1952 = vmatprep.subr.bf16.mxu0 %v4152_v15  ;;  %1993 = vmatprep.subr.bf16.mxu1 %v4158_v17 }
  0xed   :  { %1953 = vmatpush1.bf16.msra.mxu0 %v4164_v18  ;;  %1994 = vmatpush1.bf16.msra.mxu1 %v4171_v19 }
  0xee   :  { %1954 = vmatprep.subr.bf16.mxu0 %v4176_v21  ;;  %1995 = vmatprep.subr.bf16.mxu1 %v4182_v22 }
  0xf1   :  { %1955 = vmatpush1.bf16.msra.mxu0 %v4188_v23  ;;  %1996 = vmatpush1.bf16.msra.mxu1 %v4195_v24 }
  0xf2   :  { %1956 = vmatprep.subr.bf16.mxu0 %v4200_v25  ;;  %1997 = vmatprep.subr.bf16.mxu1 %v4206_v27 }
  0xf5   :  { %1957 = vmatpush1.bf16.msra.mxu0 %v4212_v28  ;;  %1998 = vmatpush1.bf16.msra.mxu1 %v4219_v29 }
  0xf6   :  { %1958 = vmatprep.subr.bf16.mxu0 %v4224_v30  ;;  %1999 = vmatprep.subr.bf16.mxu1 %v4230_v31 }
  0xf9   :  { %1959 = vmatpush1.bf16.msra.mxu0 %v4236_v32  ;;  %2000 = vmatpush1.bf16.msra.mxu1 %v4243_v33 }
  0xfa   :  { %1960 = vmatprep.subr.bf16.mxu0 %v4248_v34  ;;  %2001 = vmatprep.subr.bf16.mxu1 %v4254_v35 }
  0xfd   :  { %1961 = vmatpush1.bf16.msra.mxu0 %v4260_v36  ;;  %2002 = vmatpush1.bf16.msra.mxu1 %v4270_v39 }
  0xfe   :  { %2062 = vmatprep.subr.bf16.mxu0 %v4079_v1  ;;  %2103 = vmatprep.subr.bf16.mxu1 %v4085_v20 }
 0x120   :  { %v4315_v58 = vpop.f32.mrf.mxu0  ;;  %v4324_v16 = vpop.f32.mrf.mxu1 }
 0x122   :  { %v4326_v48 = vpop.f32.mrf.mxu0  ;;  %v4334_v26 = vpop.f32.mrf.mxu1 }
 0x124   :  { %v891_v52 = vpop.f32.mrf.mxu0  ;;  %v964_v55 = vpop.f32.mrf.mxu1 }
 0x125   :  { %v4343_v38 = vadd.f32 %v4332_v51, %v891_v52  ;;  %v4346_v57 = vadd.f32 %v4329_v50, %v964_v55 }
 0x126   :  { %v893_v56 = vpop.f32.mrf.mxu0  ;;  %v966_v59 = vpop.f32.mrf.mxu1 }
 0x127   :  { %4891 = vst [vmem:[#allocation10_spill] sm:$0xff] %v4343_v38  ;;  %4892 = vst [vmem:[#allocation11_spill] sm:$0xff] %v4346_v57  ;;  %v4349_v49 = vadd.f32 %v4340_v54, %v893_v56  ;;  %v4352_v60 = vadd.f32 %v4337_v53, %v966_v59 }
 0x128   :  { %v897_v62 = vpop.f32.mrf.mxu0  ;;  %v970_v63 = vpop.f32.mrf.mxu1 }
 0x129   :  { %4893 = vst [vmem:[#allocation12_spill] sm:$0xff] %v4349_v49  ;;  %4894 = vst [vmem:[#allocation13_spill] sm:$0xff] %v4352_v60  ;;  %v4355_v61 = vadd.f32 %v4332_v51, %v897_v62  ;;  %v4358_v8 = vadd.f32 %v4329_v50, %v970_v63 }
 0x12a   :  { %v899_v0 = vpop.f32.mrf.mxu0  ;;  %v972_v37 = vpop.f32.mrf.mxu1 }
 0x12b   :  { %4895 = vst [vmem:[#allocation14_spill] sm:$0xff] %v4355_v61  ;;  %4896 = vst [vmem:[#allocation15_spill] sm:$0xff] %v4358_v8  ;;  %v4361_v3 = vadd.f32 %v4340_v54, %v899_v0  ;;  %v4364_v41 = vadd.f32 %v4337_v53, %v972_v37 }
 0x12c   :  { %v901_v40 = vpop.f32.mrf.mxu0  ;;  %v974_v44 = vpop.f32.mrf.mxu1 }
 0x12d   :  { %4897 = vst [vmem:[#allocation16_spill] sm:$0xff] %v4361_v3  ;;  %4898 = vst [vmem:[#allocation17_spill] sm:$0xff] %v4364_v41  ;;  %v4367_v43 = vadd.f32 %v4332_v51, %v901_v40  ;;  %v4370_v47 = vadd.f32 %v4329_v50, %v974_v44 }
 0x12e   :  { %v903_v46 = vpop.f32.mrf.mxu0  ;;  %v976_v55 = vpop.f32.mrf.mxu1 }
 0x12f   :  { %4899 = vst [vmem:[#allocation18_spill] sm:$0xff] %v4367_v43  ;;  %4900 = vst [vmem:[#allocation19_spill] sm:$0xff] %v4370_v47  ;;  %v4373_v52 = vadd.f32 %v4340_v54, %v903_v46  ;;  %v4376_v59 = vadd.f32 %v4337_v53, %v976_v55 }
 0x130   :  { %v907_v56 = vpop.f32.mrf.mxu0  ;;  %v980_v63 = vpop.f32.mrf.mxu1 }
 0x131   :  { %4901 = vst [vmem:[#allocation20_spill] sm:$0xff] %v4373_v52  ;;  %4902 = vst [vmem:[#allocation21_spill] sm:$0xff] %v4376_v59  ;;  %v4379_v62 = vadd.f32 %v4332_v51, %v907_v56  ;;  %v4382_v37 = vadd.f32 %v4329_v50, %v980_v63 }
 0x132   :  { %v909_v0 = vpop.f32.mrf.mxu0  ;;  %v982_v44 = vpop.f32.mrf.mxu1 }
 0x133   :  { %4903 = vst [vmem:[#allocation22_spill] sm:$0xff] %v4379_v62  ;;  %4904 = vst [vmem:[#allocation23_spill] sm:$0xff] %v4382_v37  ;;  %v4385_v40 = vadd.f32 %v4340_v54, %v909_v0  ;;  %v4388_v46 = vadd.f32 %v4337_v53, %v982_v44 }
 0x134   :  { %v911_v2 = vpop.f32.mrf.mxu0  ;;  %v984_v55 = vpop.f32.mrf.mxu1 }
 0x135   :  { %4905 = vst [vmem:[#allocation24_spill] sm:$0xff] %v4385_v40  ;;  %4906 = vst [vmem:[#allocation25_spill] sm:$0xff] %v4388_v46  ;;  %v4391_v47 = vadd.f32 %v4332_v51, %v911_v2  ;;  %v4394_v56 = vadd.f32 %v4329_v50, %v984_v55 }
 0x136   :  { %v913_v59 = vpop.f32.mrf.mxu0  ;;  %v986_v63 = vpop.f32.mrf.mxu1 }
 0x137   :  { %4907 = vst [vmem:[#allocation26_spill] sm:$0xff] %v4391_v47  ;;  %4908 = vst [vmem:[#allocation27_spill] sm:$0xff] %v4394_v56  ;;  %v4397_v62 = vadd.f32 %v4340_v54, %v913_v59  ;;  %v4400_v0 = vadd.f32 %v4337_v53, %v986_v63 }
 0x138   :  { %v917_v37 = vpop.f32.mrf.mxu0  ;;  %v990_v44 = vpop.f32.mrf.mxu1 }
 0x139   :  { %4909 = vst [vmem:[#allocation28_spill] sm:$0xff] %v4397_v62  ;;  %4910 = vst [vmem:[#allocation29_spill] sm:$0xff] %v4400_v0  ;;  %v4403_v40 = vadd.f32 %v4332_v51, %v917_v37  ;;  %v4406_v2 = vadd.f32 %v4329_v50, %v990_v44 }
 0x13a   :  { %v919_v46 = vpop.f32.mrf.mxu0  ;;  %v992_v55 = vpop.f32.mrf.mxu1 }
 0x13b   :  { %4911 = vst [vmem:[#allocation30_spill] sm:$0xff] %v4403_v40  ;;  %4912 = vst [vmem:[#allocation31_spill] sm:$0xff] %v4406_v2  ;;  %v4409_v47 = vadd.f32 %v4340_v54, %v919_v46  ;;  %v4412_v59 = vadd.f32 %v4337_v53, %v992_v55 }
 0x13c   :  { %v921_v56 = vpop.f32.mrf.mxu0  ;;  %v994_v63 = vpop.f32.mrf.mxu1 }
 0x13d   :  { %4913 = vst [vmem:[#allocation32_spill] sm:$0xff] %v4409_v47  ;;  %4914 = vst [vmem:[#allocation33_spill] sm:$0xff] %v4412_v59  ;;  %v4415_v62 = vadd.f32 %v4332_v51, %v921_v56  ;;  %v4418_v37 = vadd.f32 %v4329_v50, %v994_v63 }
 0x13e   :  { %v923_v0 = vpop.f32.mrf.mxu0  ;;  %v996_v44 = vpop.f32.mrf.mxu1 }
 0x13f   :  { %4915 = vst [vmem:[#allocation34_spill] sm:$0xff] %v4415_v62  ;;  %4916 = vst [vmem:[#allocation35_spill] sm:$0xff] %v4418_v37  ;;  %v4421_v40 = vadd.f32 %v4340_v54, %v923_v0  ;;  %v4424_v46 = vadd.f32 %v4337_v53, %v996_v44 }
 0x141   :  { %4917 = vst [vmem:[#allocation36_spill] sm:$0xff] %v4421_v40  ;;  %4918 = vst [vmem:[#allocation37_spill] sm:$0xff] %v4424_v46 }
 0x160   :  { %v1033_v2 = vpop.f32.mrf.mxu0  ;;  %v1106_v47 = vpop.f32.mrf.mxu1 }
 0x162   :  { %v1035_v52 = vpop.f32.mrf.mxu0  ;;  %v1108_v55 = vpop.f32.mrf.mxu1 }
 0x164   :  { %v1037_v59 = vpop.f32.mrf.mxu0  ;;  %v1110_v43 = vpop.f32.mrf.mxu1 }
 0x165   :  { %v1173_v59 = vsub.s32 6, %v4311_v42  ;;  %v1165_v43 = vsub.s32 4, %v4311_v42 }
 0x166   :  { %v1039_v56 = vpop.f32.mrf.mxu0  ;;  %v1112_v62 = vpop.f32.mrf.mxu1 }
 0x168   :  { %v1043_v8 = vpop.f32.mrf.mxu0  ;;  %v1116_v41 = vpop.f32.mrf.mxu1 }
 0x169   :  { %v1169_v41 = vsub.s32 5, %v4311_v42 }
 0x16a   :  { %v1045_v3 = vpop.f32.mrf.mxu0  ;;  %v1118_v63 = vpop.f32.mrf.mxu1 }
 0x16b   :  { %v1177_v3 = vsub.s32 7, %v4311_v42  ;;  %v1170_v56 = vrot.slane %v4320_v45, %v1169_v41 }
 0x16c   :  { %v1047_v37 = vpop.f32.mrf.mxu0  ;;  %v1120_v61 = vpop.f32.mrf.mxu1 }
 0x16d   :  { %v1178_v55 = vrot.slane %v4320_v45, %v1177_v3 }
 0x16e   :  { %v1049_v0 = vpop.f32.mrf.mxu0  ;;  %v1122_v40 = vpop.f32.mrf.mxu1 }
 0x170   :  { %v1053_v57 = vpop.f32.mrf.mxu0  ;;  %v1126_v60 = vpop.f32.mrf.mxu1 }
 0x171   :  { %v1174_v57 = vrot.slane %v4320_v45, %v1173_v59  ;;  %v1166_v60 = vrot.slane %v4320_v45, %v1165_v43 }
 0x172   :  { %v1055_v44 = vpop.f32.mrf.mxu0  ;;  %v1128_v46 = vpop.f32.mrf.mxu1 }
 0x174   :  { %v1057_v2 = vpop.f32.mrf.mxu0  ;;  %v1130_v47 = vpop.f32.mrf.mxu1 }
 0x176   :  { %v1059_v52 = vpop.f32.mrf.mxu0  ;;  %v1132_v62 = vpop.f32.mrf.mxu1 }
 0x178   :  { %v1063_v8 = vpop.f32.mrf.mxu0  ;;  %v1136_v61 = vpop.f32.mrf.mxu1 }
 0x17a   :  { %v1065_v37 = vpop.f32.mrf.mxu0  ;;  %v1138_v40 = vpop.f32.mrf.mxu1 }
 0x17c   :  { %v1067_v46 = vpop.f32.mrf.mxu0  ;;  %v1140_v63 = vpop.f32.mrf.mxu1 }
 0x17d   :  { %v1249_v44 = vadd.f32 %v1174_v57, %v1140_v63  ;;  %v1247_v2 = vadd.f32 %v1166_v60, %v1067_v46 }
 0x17e   :  { %v1069_v0 = vpop.f32.mrf.mxu0  ;;  %v1142_v47 = vpop.f32.mrf.mxu1 }
 0x17f   :  { %v1250_v62 = vadd.f32 %v1178_v55, %v1142_v47  ;;  %v1248_v42 = vadd.f32 %v1170_v56, %v1069_v0  ;;  %v1187_v0 = vadd.f32 %v4332_v51, %v4315_v58 }
 0x180   :  { %v1585_v52 = vpop.f32.mrf.mxu0  ;;  %v1626_v61 = vpop.f32.mrf.mxu1 }
 0x181   :  { %v1633_v8 = vadd.f32 %v1585_v52, %v1247_v2  ;;  %v1635_v59 = vadd.f32 %v1626_v61, %v1249_v44  ;;  %v1188_v2 = vadd.f32 %v4340_v54, %v4326_v48 }
 0x182   :  { %v1587_v37 = vpop.f32.mrf.mxu0  ;;  %v1628_v40 = vpop.f32.mrf.mxu1 }
 0x183   :  { %v3093_v49 = vmul.f32 -1.442695, %v1633_v8  ;;  %v1634_v43 = vadd.f32 %v1587_v37, %v1248_v42  ;;  %v1636_v20 = vadd.f32 %v1628_v40, %v1250_v62  ;;  %v3092_v62 = vld [vmem:[%s4882_s6 + $0x8] sm:$0xff] }
 0x184   :  { %v1589_v38 = vpop.f32.mrf.mxu0  ;;  %v1630_v45 = vpop.f32.mrf.mxu1 }
 0x185   :  { %3310 = vpow2.f32 %v3093_v49  ;;  %v3094_v3 = vmul.f32 -1.442695, %v1634_v43  ;;  %v3095_v60 = vmul.f32 -1.442695, %v1636_v20 }
 0x186   :  { %v1590_v41 = vpop.f32.mrf.mxu0  ;;  %v1631_v57 = vpop.f32.mrf.mxu1 }
 0x187   :  { %3312 = vpow2.f32 %v3094_v3  ;;  %v1190_v57 = vadd.f32 %v4337_v53, %v4334_v26 }
 0x188   :  { %3314 = vtanh.f32 %v1635_v59 }
 0x189   :  { %3316 = vpow2.f32 %v3095_v60 }
 0x192   :  { %v3311_v46 = vpop.eup %3310 }
 0x193   :  { %v1642_v63 = vadd.f32 1.0, %v3311_v46  ;;  %v1189_v46 = vadd.f32 %v4329_v50, %v4324_v16  ;;  %v1664_v16 = vld [vmem:[%s4882_s6] sm:$0xff] }
 0x194   :  { %v3313_v55 = vpop.eup %3312 }
 0x195   :  { %3318 = vrcp.f32 %v1642_v63  ;;  %v1648_v56 = vadd.f32 1.0, %v3313_v55  ;;  %v3315_v38 = vpop.eup %3314 }
 0x196   :  { %v3317_v49 = vpop.eup %3316 }
 0x197   :  { %3320 = vrcp.f32 %v1648_v56  ;;  %v1655_v58 = vadd.f32 1.0, %v3317_v49 }
 0x1a0   :  { %v1864_v44 = vpop.f32.mrf.mxu0  ;;  %v1905_v52 = vpop.f32.mrf.mxu1 }
 0x1a1   :  { %v1912_v47 = vadd.f32 %v1864_v44, %v1187_v0  ;;  %v1914_v63 = vadd.f32 %v1905_v52, %v1189_v46 }
 0x1a2   :  { %v3319_v20 = vpop.eup %3318  ;;  %v1866_v42 = vpop.f32.mrf.mxu0 }
 0x1a3   :  { %v1659_v8 = vmul.f32 %v3319_v20, %v3315_v38  ;;  %v3128_v61 = vmul.f32 -1.442695, %v1912_v47  ;;  %v1913_v37 = vadd.f32 %v1866_v42, %v1188_v2  ;;  %v1907_v59 = vpop.f32.mrf.mxu1 }
 0x1a4   :  { %v3321_v43 = vpop.eup %3320  ;;  %v1868_v51 = vpop.f32.mrf.mxu0  ;;  %v1915_v60 = vadd.f32 %v1907_v59, %v1190_v57 }
 0x1a5   :  { %v1658_v40 = vmul.f32 %v3321_v43, %v3092_v62  ;;  %3322 = vpow2.f32 %v3128_v61  ;;  %v3129_v3 = vmul.f32 -1.442695, %v1913_v37  ;;  %v1909_v45 = vpop.f32.mrf.mxu1  ;;  %v4920_v51 = vld [vmem:[#allocation9_spill] sm:$0xff] }
 0x1a6   :  { %v1869_v48 = vpop.f32.mrf.mxu0  ;;  %v3130_v55 = vmul.f32 -1.442695, %v1915_v60  ;;  %v4921_v45 = vld [vmem:[#allocation10_spill] sm:$0xff]  ;;  %v4922_v60 = vld [vmem:[#allocation12_spill] sm:$0xff] }
 0x1a7   :  { %v1660_v54 = vadd.f32 %v1659_v8, %v1658_v40  ;;  %3324 = vpow2.f32 %v3129_v3  ;;  %v1910_v41 = vpop.f32.mrf.mxu1 }
 0x1a8   :  { %3326 = vrcp.f32 %v1655_v58  ;;  %v4919_v58 = vmov 0  }
 0x1a9   :  { %3328 = vtanh.f32 %v1660_v54 }
 0x1aa   :  { %3330 = vtanh.f32 %v1914_v63 }
 0x1ab   :  { %3332 = vpow2.f32 %v3130_v55 }
 0x1b2   :  { %v3323_v56 = vpop.eup %3322 }
 0x1b3   :  { %v1919_v0 = vadd.f32 1.0, %v3323_v56 }
 0x1b4   :  { %v3325_v38 = vpop.eup %3324 }
 0x1b5   :  { %v3327_v44 = vpop.eup %3326  ;;  %3334 = vrcp.f32 %v1919_v0  ;;  %v1925_v49 = vadd.f32 1.0, %v3325_v38 }
 0x1b6   :  { %v3329_v2 = vpop.eup %3328 }
 0x1b7   :  { %3336 = vrcp.f32 %v1925_v49  ;;  %v4445_v47 = vmul.f32 %v3329_v2, %v3327_v44  ;;  %v3331_v20 = vpop.eup %3330  ;;  %v4923_v44 = vld [vmem:[#allocation13_spill] sm:$0xff]  ;;  %v4924_v2 = vld [vmem:[#allocation11_spill] sm:$0xff] }
 0x1b8   :  { %v3333_v26 = vpop.eup %3332 }
 0x1b9   :  { %v1932_v62 = vadd.f32 1.0, %v3333_v26 }
 0x1bb   :  { %3338 = vrcp.f32 %v1932_v62 }
 0x1c2   :  { %v3335_v53 = vpop.eup %3334 }
 0x1c3   :  { %v1936_v50 = vmul.f32 %v3335_v53, %v3331_v20 }
 0x1c4   :  { %v3337_v52 = vpop.eup %3336 }
 0x1c5   :  { %v1935_v42 = vmul.f32 %v3337_v52, %v1664_v16 }
 0x1c7   :  { %v4450_v8 = vadd.f32 %v1936_v50, %v1935_v42 }
 0x1c8   :  { %v3339_v61 = vpop.eup %3338 }
 0x1c9   :  { %3340 = vtanh.f32 %v4450_v8 }
 0x1d6   :  { %v3341_v37 = vpop.eup %3340 }
 0x1d7   :  { %v1939_v59 = vmul.f32 %v3341_v37, %v3339_v61 }
 0x1d9   :  { %v1945_v43 = vpack.c.bf16 %v1939_v59, %v1939_v59 }
 0x1db   :  { %1979 = vmatmul.mubr.bf16.vlgmr.msra.gmra.mxu0 %v1945_v43  ;;  %2020 = vmatmul.mubr.bf16.vlgmr.msra.gmra.mxu1 %v1945_v43 }
 0x1dc   :  { %2063 = vmatpush1.bf16.msra.mxu0 %v4091_v4  ;;  %2104 = vmatpush1.bf16.msra.mxu1 %v4097_v5 }
 0x1dd   :  { %2064 = vmatprep.subr.bf16.mxu0 %v4102_v6  ;;  %2105 = vmatprep.subr.bf16.mxu1 %v4108_v7 }
 0x1de   :  { %2094 = vmatprep.mubr.bf16.mxu0 %v4919_v58  ;;  %2135 = vmatprep.mubr.bf16.mxu1 %v4919_v58 }
 0x1e0   :  { %2065 = vmatpush1.bf16.msra.mxu0 %v4114_v9  ;;  %2106 = vmatpush1.bf16.msra.mxu1 %v4121_v10 }
 0x1e1   :  { %2066 = vmatprep.subr.bf16.mxu0 %v4126_v11  ;;  %2107 = vmatprep.subr.bf16.mxu1 %v4132_v12 }
 0x1e4   :  { %2067 = vmatpush1.bf16.msra.mxu0 %v4140_v13  ;;  %2108 = vmatpush1.bf16.msra.mxu1 %v4147_v14 }
 0x1e5   :  { %2068 = vmatprep.subr.bf16.mxu0 %v4152_v15  ;;  %2109 = vmatprep.subr.bf16.mxu1 %v4158_v17 }
 0x1e8   :  { %2069 = vmatpush1.bf16.msra.mxu0 %v4164_v18  ;;  %2110 = vmatpush1.bf16.msra.mxu1 %v4171_v19 }
 0x1e9   :  { %2070 = vmatprep.subr.bf16.mxu0 %v4176_v21  ;;  %2111 = vmatprep.subr.bf16.mxu1 %v4182_v22 }
 0x1ec   :  { %2071 = vmatpush1.bf16.msra.mxu0 %v4188_v23  ;;  %2112 = vmatpush1.bf16.msra.mxu1 %v4195_v24 }
 0x1ed   :  { %2072 = vmatprep.subr.bf16.mxu0 %v4200_v25  ;;  %2113 = vmatprep.subr.bf16.mxu1 %v4206_v27 }
 0x1f0   :  { %2073 = vmatpush1.bf16.msra.mxu0 %v4212_v28  ;;  %2114 = vmatpush1.bf16.msra.mxu1 %v4219_v29 }
 0x1f1   :  { %2074 = vmatprep.subr.bf16.mxu0 %v4224_v30  ;;  %2115 = vmatprep.subr.bf16.mxu1 %v4230_v31 }
 0x1f4   :  { %2075 = vmatpush1.bf16.msra.mxu0 %v4236_v32  ;;  %2116 = vmatpush1.bf16.msra.mxu1 %v4243_v33 }
 0x1f5   :  { %2076 = vmatprep.subr.bf16.mxu0 %v4248_v34  ;;  %2117 = vmatprep.subr.bf16.mxu1 %v4254_v35 }
 0x1f8   :  { %2077 = vmatpush1.bf16.msra.mxu0 %v4260_v36  ;;  %2118 = vmatpush1.bf16.msra.mxu1 %v4270_v39 }
 0x1f9   :  { %2178 = vmatprep.subr.bf16.mxu0 %v4079_v1  ;;  %2219 = vmatprep.subr.bf16.mxu1 %v4920_v51 }
 0x29b   :  { %v1980_v40 = vpop.f32.mrf.mxu0  ;;  %v2021_v3 = vpop.f32.mrf.mxu1 }
 0x29c   :  { %v2028_v48 = vadd.f32 %v1980_v40, %v4921_v45  ;;  %v2030_v20 = vadd.f32 %v2021_v3, %v4924_v2 }
 0x29d   :  { %v1982_v54 = vpop.f32.mrf.mxu0  ;;  %v2023_v41 = vpop.f32.mrf.mxu1 }
 0x29e   :  { %v3131_v57 = vmul.f32 -1.442695, %v2028_v48  ;;  %v2029_v46 = vadd.f32 %v1982_v54, %v4922_v60  ;;  %v2031_v49 = vadd.f32 %v2023_v41, %v4923_v44  ;;  %v4925_v60 = vld [vmem:[#allocation14_spill] sm:$0xff] }
 0x29f   :  { %v1984_v63 = vpop.f32.mrf.mxu0  ;;  %v2025_v55 = vpop.f32.mrf.mxu1 }
 0x2a0   :  { %3342 = vpow2.f32 %v3131_v57  ;;  %v3132_v56 = vmul.f32 -1.442695, %v2029_v46  ;;  %v3133_v26 = vmul.f32 -1.442695, %v2031_v49 }
 0x2a1   :  { %v1985_v0 = vpop.f32.mrf.mxu0  ;;  %v2026_v38 = vpop.f32.mrf.mxu1 }
 0x2a2   :  { %3344 = vpow2.f32 %v3132_v56  ;;  %v4926_v0 = vld [vmem:[#allocation16_spill] sm:$0xff] }
 0x2a3   :  { %3346 = vtanh.f32 %v2030_v20 }
 0x2a4   :  { %3348 = vpow2.f32 %v3133_v26 }
 0x2ad   :  { %v3343_v53 = vpop.eup %3342 }
 0x2ae   :  { %v2035_v16 = vadd.f32 1.0, %v3343_v53  ;;  %v4927_v53 = vld [vmem:[#allocation17_spill] sm:$0xff] }
 0x2af   :  { %v3345_v50 = vpop.eup %3344 }
 0x2b0   :  { %3350 = vrcp.f32 %v2035_v16  ;;  %v2041_v52 = vadd.f32 1.0, %v3345_v50  ;;  %v3347_v62 = vpop.eup %3346  ;;  %v4928_v50 = vld [vmem:[#allocation15_spill] sm:$0xff] }
 0x2b1   :  { %v3349_v42 = vpop.eup %3348 }
 0x2b2   :  { %3352 = vrcp.f32 %v2041_v52  ;;  %v2048_v43 = vadd.f32 1.0, %v3349_v42 }
 0x2b4   :  { %3354 = vrcp.f32 %v2048_v43 }
 0x2bd   :  { %v3351_v61 = vpop.eup %3350 }
 0x2be   :  { %v2052_v37 = vmul.f32 %v3351_v61, %v3347_v62 }
 0x2bf   :  { %v3353_v59 = vpop.eup %3352 }
 0x2c0   :  { %v2051_v40 = vmul.f32 %v3353_v59, %v4450_v8 }
 0x2c1   :  { %v3355_v3 = vpop.eup %3354 }
 0x2c2   :  { %v4492_v45 = vadd.f32 %v2052_v37, %v2051_v40 }
 0x2c4   :  { %3356 = vtanh.f32 %v4492_v45 }
 0x2d1   :  { %v3357_v48 = vpop.eup %3356 }
 0x2d2   :  { %v2055_v54 = vmul.f32 %v3357_v48, %v3355_v3 }
 0x2d4   :  { %v2061_v41 = vpack.c.bf16 %v2055_v54, %v2055_v54 }
 0x2d6   :  { %2095 = vmatmul.mubr.bf16.vlgmr.msra.gmra.mxu0 %v2061_v41  ;;  %2136 = vmatmul.mubr.bf16.vlgmr.msra.gmra.mxu1 %v2061_v41 }
 0x2d7   :  { %2179 = vmatpush1.bf16.msra.mxu0 %v4091_v4  ;;  %2220 = vmatpush1.bf16.msra.mxu1 %v4097_v5 }
 0x2d8   :  { %2180 = vmatprep.subr.bf16.mxu0 %v4102_v6  ;;  %2221 = vmatprep.subr.bf16.mxu1 %v4108_v7 }
 0x2d9   :  { %2210 = vmatprep.mubr.bf16.mxu0 %v4919_v58  ;;  %2251 = vmatprep.mubr.bf16.mxu1 %v4919_v58 }
 0x2db   :  { %2181 = vmatpush1.bf16.msra.mxu0 %v4114_v9  ;;  %2222 = vmatpush1.bf16.msra.mxu1 %v4121_v10 }
 0x2dc   :  { %2182 = vmatprep.subr.bf16.mxu0 %v4126_v11  ;;  %2223 = vmatprep.subr.bf16.mxu1 %v4132_v12 }
 0x2df   :  { %2183 = vmatpush1.bf16.msra.mxu0 %v4140_v13  ;;  %2224 = vmatpush1.bf16.msra.mxu1 %v4147_v14 }
 0x2e0   :  { %2184 = vmatprep.subr.bf16.mxu0 %v4152_v15  ;;  %2225 = vmatprep.subr.bf16.mxu1 %v4158_v17 }
 0x2e3   :  { %2185 = vmatpush1.bf16.msra.mxu0 %v4164_v18  ;;  %2226 = vmatpush1.bf16.msra.mxu1 %v4171_v19 }
 0x2e4   :  { %2186 = vmatprep.subr.bf16.mxu0 %v4176_v21  ;;  %2227 = vmatprep.subr.bf16.mxu1 %v4182_v22 }
 0x2e7   :  { %2187 = vmatpush1.bf16.msra.mxu0 %v4188_v23  ;;  %2228 = vmatpush1.bf16.msra.mxu1 %v4195_v24 }
 0x2e8   :  { %2188 = vmatprep.subr.bf16.mxu0 %v4200_v25  ;;  %2229 = vmatprep.subr.bf16.mxu1 %v4206_v27 }
 0x2eb   :  { %2189 = vmatpush1.bf16.msra.mxu0 %v4212_v28  ;;  %2230 = vmatpush1.bf16.msra.mxu1 %v4219_v29 }
 0x2ec   :  { %2190 = vmatprep.subr.bf16.mxu0 %v4224_v30  ;;  %2231 = vmatprep.subr.bf16.mxu1 %v4230_v31 }
 0x2ef   :  { %2191 = vmatpush1.bf16.msra.mxu0 %v4236_v32  ;;  %2232 = vmatpush1.bf16.msra.mxu1 %v4243_v33 }
 0x2f0   :  { %2192 = vmatprep.subr.bf16.mxu0 %v4248_v34  ;;  %2233 = vmatprep.subr.bf16.mxu1 %v4254_v35 }
 0x2f3   :  { %2193 = vmatpush1.bf16.msra.mxu0 %v4260_v36  ;;  %2234 = vmatpush1.bf16.msra.mxu1 %v4270_v39 }
 0x2f4   :  { %2294 = vmatprep.subr.bf16.mxu0 %v4079_v1  ;;  %2335 = vmatprep.subr.bf16.mxu1 %v4920_v51 }
 0x396   :  { %v2096_v8 = vpop.f32.mrf.mxu0  ;;  %v2137_v57 = vpop.f32.mrf.mxu1 }
 0x397   :  { %v2144_v46 = vadd.f32 %v2096_v8, %v4925_v60  ;;  %v2146_v52 = vadd.f32 %v2137_v57, %v4928_v50 }
 0x398   :  { %v2098_v63 = vpop.f32.mrf.mxu0  ;;  %v2139_v55 = vpop.f32.mrf.mxu1 }
 0x399   :  { %v3134_v56 = vmul.f32 -1.442695, %v2144_v46  ;;  %v2145_v38 = vadd.f32 %v2098_v63, %v4926_v0  ;;  %v2147_v16 = vadd.f32 %v2139_v55, %v4927_v53 }
 0x39a   :  { %v2100_v44 = vpop.f32.mrf.mxu0  ;;  %v2141_v49 = vpop.f32.mrf.mxu1 }
 0x39b   :  { %3358 = vpow2.f32 %v3134_v56  ;;  %v3135_v2 = vmul.f32 -1.442695, %v2145_v38  ;;  %v3136_v62 = vmul.f32 -1.442695, %v2147_v16 }
 0x39c   :  { %v2101_v20 = vpop.f32.mrf.mxu0  ;;  %v2142_v26 = vpop.f32.mrf.mxu1 }
 0x39d   :  { %3360 = vpow2.f32 %v3135_v2 }
 0x39e   :  { %3362 = vtanh.f32 %v2146_v52 }
 0x39f   :  { %3364 = vpow2.f32 %v3136_v62 }
 0x3a8   :  { %v3359_v42 = vpop.eup %3358 }
 0x3a9   :  { %v2151_v61 = vadd.f32 1.0, %v3359_v42  ;;  %v4582_v42 = vld [vmem:[%s4878_s2 + $0xe0] ss:$16 sps:$4 sm:$0xff]  }
 0x3aa   :  { %v3361_v37 = vpop.eup %3360 }
 0x3ab   :  { %3366 = vrcp.f32 %v2151_v61  ;;  %v2157_v59 = vadd.f32 1.0, %v3361_v37  ;;  %v3363_v43 = vpop.eup %3362  ;;  %v4588_v61 = vld [vmem:[%s4878_s2 + $0xe8] ss:$16 sps:$4 sm:$0xff]   ;;  %v4594_v37 = vld [vmem:[%s4878_s2 + $0xc4] ss:$16 sps:$4 sm:$0xff]  }
 0x3ac   :  { %v3365_v40 = vpop.eup %3364 }
 0x3ad   :  { %3368 = vrcp.f32 %v2157_v59  ;;  %v2164_v41 = vadd.f32 1.0, %v3365_v40  ;;  %v4600_v59 = vld [vmem:[%s4878_s2 + $0xcc] ss:$16 sps:$4 sm:$0xff]   ;;  %v4614_v40 = vld [vmem:[%s4878_s2 + $0xc8] ss:$16 sps:$4 sm:$0xff]  }
 0x3af   :  { %3370 = vrcp.f32 %v2164_v41  ;;  %v4638_v41 = vld [vmem:[%s4878_s2 + $0xa8] ss:$16 sps:$4 sm:$0xff]  }
 0x3b8   :  { %v3367_v3 = vpop.eup %3366 }
 0x3b9   :  { %v2168_v48 = vmul.f32 %v3367_v3, %v3363_v43  ;;  %v4608_v43 = vld [vmem:[%s4878_s2 + $0xc0] ss:$16 sps:$4 sm:$0xff]   ;;  %v4620_v3 = vld [vmem:[%s4878_s2 + $0xa4] ss:$16 sps:$4 sm:$0xff]  }
 0x3ba   :  { %v3369_v54 = vpop.eup %3368 }
 0x3bb   :  { %v2167_v8 = vmul.f32 %v3369_v54, %v4492_v45  ;;  %v4632_v54 = vld [vmem:[%s4878_s2 + $0xa0] ss:$16 sps:$4 sm:$0xff]  }
 0x3bc   :  { %v3371_v57 = vpop.eup %3370 }
 0x3bd   :  { %v4534_v60 = vadd.f32 %v2168_v48, %v2167_v8  ;;  %v4626_v48 = vld [vmem:[%s4878_s2 + $0xac] ss:$16 sps:$4 sm:$0xff]   ;;  %v4644_v8 = vld [vmem:[%s4878_s2 + $0x84] ss:$16 sps:$4 sm:$0xff]  }
 0x3bf   :  { %3372 = vtanh.f32 %v4534_v60 }
 0x3cc   :  { %v3373_v46 = vpop.eup %3372 }
 0x3cd   :  { %v2171_v63 = vmul.f32 %v3373_v46, %v3371_v57  ;;  %v4656_v57 = vld [vmem:[%s4878_s2 + $0x80] ss:$16 sps:$4 sm:$0xff]   ;;  %v4662_v46 = vld [vmem:[%s4878_s2 + $0x88] ss:$16 sps:$4 sm:$0xff]  }
 0x3cf   :  { %v2177_v55 = vpack.c.bf16 %v2171_v63, %v2171_v63  ;;  %v4668_v63 = vld [vmem:[%s4878_s2 + $0x64] ss:$16 sps:$4 sm:$0xff]  }
 0x3d1   :  { %2211 = vmatmul.mubr.bf16.vlgmr.msra.gmra.mxu0 %v2177_v55  ;;  %2252 = vmatmul.mubr.bf16.vlgmr.msra.gmra.mxu1 %v2177_v55  ;;  %v4674_v55 = vld [vmem:[%s4878_s2 + $0x6c] ss:$16 sps:$4 sm:$0xff]  }
 0x3d2   :  { %2295 = vmatpush1.bf16.msra.mxu0 %v4091_v4  ;;  %2336 = vmatpush1.bf16.msra.mxu1 %v4097_v5 }
 0x3d3   :  { %2296 = vmatprep.subr.bf16.mxu0 %v4102_v6  ;;  %2337 = vmatprep.subr.bf16.mxu1 %v4108_v7  ;;  %v4929_v6 = vld [vmem:[#allocation18_spill] sm:$0xff] }
 0x3d4   :  { %2326 = vmatprep.mubr.bf16.mxu0 %v4919_v58  ;;  %2367 = vmatprep.mubr.bf16.mxu1 %v4919_v58 }
 0x3d6   :  { %2297 = vmatpush1.bf16.msra.mxu0 %v4114_v9  ;;  %2338 = vmatpush1.bf16.msra.mxu1 %v4121_v10 }
 0x3d7   :  { %2298 = vmatprep.subr.bf16.mxu0 %v4126_v11  ;;  %2339 = vmatprep.subr.bf16.mxu1 %v4132_v12  ;;  %v4930_v12 = vld [vmem:[#allocation20_spill] sm:$0xff] }
 0x3da   :  { %2299 = vmatpush1.bf16.msra.mxu0 %v4140_v13  ;;  %2340 = vmatpush1.bf16.msra.mxu1 %v4147_v14 }
 0x3db   :  { %2300 = vmatprep.subr.bf16.mxu0 %v4152_v15  ;;  %2341 = vmatprep.subr.bf16.mxu1 %v4158_v17 }
 0x3de   :  { %2301 = vmatpush1.bf16.msra.mxu0 %v4164_v18  ;;  %2342 = vmatpush1.bf16.msra.mxu1 %v4171_v19 }
 0x3df   :  { %2302 = vmatprep.subr.bf16.mxu0 %v4176_v21  ;;  %2343 = vmatprep.subr.bf16.mxu1 %v4182_v22  ;;  %v4931_v21 = vld [vmem:[#allocation21_spill] sm:$0xff]  ;;  %v4932_v22 = vld [vmem:[#allocation19_spill] sm:$0xff] }
 0x3e2   :  { %2303 = vmatpush1.bf16.msra.mxu0 %v4188_v23  ;;  %2344 = vmatpush1.bf16.msra.mxu1 %v4195_v24 }
 0x3e3   :  { %2304 = vmatprep.subr.bf16.mxu0 %v4200_v25  ;;  %2345 = vmatprep.subr.bf16.mxu1 %v4206_v27 }
 0x3e6   :  { %2305 = vmatpush1.bf16.msra.mxu0 %v4212_v28  ;;  %2346 = vmatpush1.bf16.msra.mxu1 %v4219_v29 }
 0x3e7   :  { %2306 = vmatprep.subr.bf16.mxu0 %v4224_v30  ;;  %2347 = vmatprep.subr.bf16.mxu1 %v4230_v31 }
 0x3ea   :  { %2307 = vmatpush1.bf16.msra.mxu0 %v4236_v32  ;;  %2348 = vmatpush1.bf16.msra.mxu1 %v4243_v33 }
 0x3eb   :  { %2308 = vmatprep.subr.bf16.mxu0 %v4248_v34  ;;  %2349 = vmatprep.subr.bf16.mxu1 %v4254_v35 }
 0x3ee   :  { %2309 = vmatpush1.bf16.msra.mxu0 %v4260_v36  ;;  %2350 = vmatpush1.bf16.msra.mxu1 %v4270_v39 }
 0x3ef   :  { %2410 = vmatprep.subr.bf16.mxu0 %v4079_v1  ;;  %2451 = vmatprep.subr.bf16.mxu1 %v4920_v51 }
 0x491   :  { %v2212_v4 = vpop.f32.mrf.mxu0  ;;  %v2253_v5 = vpop.f32.mrf.mxu1 }
 0x492   :  { %v2260_v7 = vadd.f32 %v2212_v4, %v4929_v6  ;;  %v2262_v23 = vadd.f32 %v2253_v5, %v4932_v22  ;;  %v4680_v4 = vld [vmem:[%s4878_s2 + $0x60] ss:$16 sps:$4 sm:$0xff]   ;;  %v4686_v5 = vld [vmem:[%s4878_s2 + $0x68] ss:$16 sps:$4 sm:$0xff]   ;;  %v4692_v6 = vld [vmem:[%s4878_s2 + $0x44] ss:$16 sps:$4 sm:$0xff]  }
 0x493   :  { %v2214_v9 = vpop.f32.mrf.mxu0  ;;  %v2255_v10 = vpop.f32.mrf.mxu1 }
 0x494   :  { %v3137_v11 = vmul.f32 -1.442695, %v2260_v7  ;;  %v2261_v13 = vadd.f32 %v2214_v9, %v4930_v12  ;;  %v2263_v1 = vadd.f32 %v2255_v10, %v4931_v21 }
 0x495   :  { %v2216_v14 = vpop.f32.mrf.mxu0  ;;  %v2257_v15 = vpop.f32.mrf.mxu1 }
 0x496   :  { %3374 = vpow2.f32 %v3137_v11  ;;  %v3138_v17 = vmul.f32 -1.442695, %v2261_v13  ;;  %v3139_v24 = vmul.f32 -1.442695, %v2263_v1  ;;  %v4935_v13 = vld [vmem:[#allocation25_spill] sm:$0xff]  ;;  %v4936_v15 = vld [vmem:[#allocation23_spill] sm:$0xff] }
 0x497   :  { %v2217_v18 = vpop.f32.mrf.mxu0  ;;  %v2258_v19 = vpop.f32.mrf.mxu1 }
 0x498   :  { %3376 = vpow2.f32 %v3138_v17 }
 0x499   :  { %3378 = vtanh.f32 %v2262_v23 }
 0x49a   :  { %3380 = vpow2.f32 %v3139_v24 }
 0x4a3   :  { %v3375_v25 = vpop.eup %3374 }
 0x4a4   :  { %v2267_v51 = vadd.f32 1.0, %v3375_v25 }
 0x4a5   :  { %v3377_v45 = vpop.eup %3376 }
 0x4a6   :  { %3382 = vrcp.f32 %v2267_v51  ;;  %v2273_v56 = vadd.f32 1.0, %v3377_v45  ;;  %v3379_v0 = vpop.eup %3378 }
 0x4a7   :  { %v3381_v38 = vpop.eup %3380 }
 0x4a8   :  { %3384 = vrcp.f32 %v2273_v56  ;;  %v2280_v20 = vadd.f32 1.0, %v3381_v38 }
 0x4aa   :  { %3386 = vrcp.f32 %v2280_v20 }
 0x4b3   :  { %v3383_v44 = vpop.eup %3382 }
 0x4b4   :  { %v2284_v49 = vmul.f32 %v3383_v44, %v3379_v0 }
 0x4b5   :  { %v3385_v2 = vpop.eup %3384 }
 0x4b6   :  { %v2283_v26 = vmul.f32 %v3385_v2, %v4534_v60  ;;  %v4650_v60 = vld [vmem:[%s4878_s2 + $0x8c] ss:$16 sps:$4 sm:$0xff]  }
 0x4b7   :  { %v3387_v16 = vpop.eup %3386 }
 0x4b8   :  { %v4576_v53 = vadd.f32 %v2284_v49, %v2283_v26  ;;  %v4750_v26 = vld [vmem:[%s4878_s2 + $0x4c] ss:$16 sps:$4 sm:$0xff]  }
 0x4ba   :  { %3388 = vtanh.f32 %v4576_v53 }
 0x4c7   :  { %v3389_v50 = vpop.eup %3388 }
 0x4c8   :  { %v2287_v52 = vmul.f32 %v3389_v50, %v3387_v16  ;;  %v4762_v16 = vld [vmem:[%s4878_s2 + $0x48] ss:$16 sps:$4 sm:$0xff]   ;;  %v4768_v50 = vld [vmem:[%s4878_s2 + $0x24] ss:$16 sps:$4 sm:$0xff]  }
 0x4ca   :  { %v2293_v62 = vpack.c.bf16 %v2287_v52, %v2287_v52  ;;  %v4774_v52 = vld [vmem:[%s4878_s2 + $0x2c] ss:$16 sps:$4 sm:$0xff]  }
 0x4cc   :  { %2327 = vmatmul.mubr.bf16.vlgmr.msra.gmra.mxu0 %v2293_v62  ;;  %2368 = vmatmul.mubr.bf16.vlgmr.msra.gmra.mxu1 %v2293_v62  ;;  %v4780_v62 = vld [vmem:[%s4878_s2 + $0x20] ss:$16 sps:$4 sm:$0xff]  }
 0x4cd   :  { %2411 = vmatpush1.bf16.msra.mxu0 %v4582_v42  ;;  %2452 = vmatpush1.bf16.msra.mxu1 %v4588_v61 }
 0x4ce   :  { %2412 = vmatprep.subr.bf16.mxu0 %v4594_v37  ;;  %2453 = vmatprep.subr.bf16.mxu1 %v4600_v59 }
 0x4cf   :  { %2442 = vmatprep.mubr.bf16.mxu0 %v4919_v58  ;;  %2483 = vmatprep.mubr.bf16.mxu1 %v4919_v58 }
 0x4d1   :  { %2413 = vmatpush1.bf16.msra.mxu0 %v4608_v43  ;;  %2454 = vmatpush1.bf16.msra.mxu1 %v4614_v40 }
 0x4d2   :  { %2414 = vmatprep.subr.bf16.mxu0 %v4620_v3  ;;  %2455 = vmatprep.subr.bf16.mxu1 %v4626_v48 }
 0x4d5   :  { %2415 = vmatpush1.bf16.msra.mxu0 %v4632_v54  ;;  %2456 = vmatpush1.bf16.msra.mxu1 %v4638_v41 }
 0x4d6   :  { %2416 = vmatprep.subr.bf16.mxu0 %v4644_v8  ;;  %2457 = vmatprep.subr.bf16.mxu1 %v4650_v60 }
 0x4d9   :  { %2417 = vmatpush1.bf16.msra.mxu0 %v4656_v57  ;;  %2458 = vmatpush1.bf16.msra.mxu1 %v4662_v46 }
 0x4da   :  { %2418 = vmatprep.subr.bf16.mxu0 %v4668_v63  ;;  %2459 = vmatprep.subr.bf16.mxu1 %v4674_v55 }
 0x4dd   :  { %2419 = vmatpush1.bf16.msra.mxu0 %v4680_v4  ;;  %2460 = vmatpush1.bf16.msra.mxu1 %v4686_v5 }
 0x4de   :  { %2420 = vmatprep.subr.bf16.mxu0 %v4692_v6  ;;  %2461 = vmatprep.subr.bf16.mxu1 %v4206_v27  ;;  %v4709_v27 = vld [vmem:[%s4878_s2 + $0xe4] ss:$16 sps:$4 sm:$0xff]  }
 0x4e1   :  { %2421 = vmatpush1.bf16.msra.mxu0 %v4212_v28  ;;  %2462 = vmatpush1.bf16.msra.mxu1 %v4219_v29  ;;  %v4715_v28 = vld [vmem:[%s4878_s2 + $0xec] ss:$16 sps:$4 sm:$0xff]  }
 0x4e2   :  { %2422 = vmatprep.subr.bf16.mxu0 %v4224_v30  ;;  %2463 = vmatprep.subr.bf16.mxu1 %v4230_v31  ;;  %v4933_v31 = vld [vmem:[#allocation22_spill] sm:$0xff] }
 0x4e5   :  { %2423 = vmatpush1.bf16.msra.mxu0 %v4236_v32  ;;  %2464 = vmatpush1.bf16.msra.mxu1 %v4243_v33 }
 0x4e6   :  { %2424 = vmatprep.subr.bf16.mxu0 %v4248_v34  ;;  %2465 = vmatprep.subr.bf16.mxu1 %v4254_v35 }
 0x4e9   :  { %2425 = vmatpush1.bf16.msra.mxu0 %v4260_v36  ;;  %2466 = vmatpush1.bf16.msra.mxu1 %v4270_v39  ;;  %v4934_v36 = vld [vmem:[#allocation24_spill] sm:$0xff] }
 0x4ea   :  { %2526 = vmatprep.subr.bf16.mxu0 %v4709_v27  ;;  %2567 = vmatprep.subr.bf16.mxu1 %v4715_v28 }
 0x58c   :  { %v2328_v29 = vpop.f32.mrf.mxu0  ;;  %v2369_v30 = vpop.f32.mrf.mxu1 }
 0x58d   :  { %v2376_v32 = vadd.f32 %v2328_v29, %v4933_v31  ;;  %v2378_v17 = vadd.f32 %v2369_v30, %v4936_v15  ;;  %v4786_v29 = vld [vmem:[%s4878_s2 + $0x28] ss:$16 sps:$4 sm:$0xff]   ;;  %v4792_v30 = vld [vmem:[%s4878_s2 + $0x4] ss:$16 sps:$4 sm:$0xff]   ;;  %v4798_v31 = vld [vmem:[%s4878_s2 + $0xc] ss:$16 sps:$4 sm:$0xff]  }
 0x58e   :  { %v2330_v33 = vpop.f32.mrf.mxu0  ;;  %v2371_v34 = vpop.f32.mrf.mxu1 }
 0x58f   :  { %v3140_v35 = vmul.f32 -1.442695, %v2376_v32  ;;  %v2377_v39 = vadd.f32 %v2330_v33, %v4934_v36  ;;  %v2379_v14 = vadd.f32 %v2371_v34, %v4935_v13  ;;  %v4804_v32 = vld [vmem:[%s4878_s2] ss:$16 sps:$4 sm:$0xff]   ;;  %v4810_v33 = vld [vmem:[%s4878_s2 + $0x8] ss:$16 sps:$4 sm:$0xff]  }
 0x590   :  { %v2332_v7 = vpop.f32.mrf.mxu0  ;;  %v2373_v9 = vpop.f32.mrf.mxu1  ;;  %v4937_v36 = vld [vmem:[#allocation26_spill] sm:$0xff] }
 0x591   :  { %3390 = vpow2.f32 %v3140_v35  ;;  %v3141_v10 = vmul.f32 -1.442695, %v2377_v39  ;;  %v3142_v18 = vmul.f32 -1.442695, %v2379_v14 }
 0x592   :  { %v2333_v11 = vpop.f32.mrf.mxu0  ;;  %v2374_v12 = vpop.f32.mrf.mxu1 }
 0x593   :  { %3392 = vpow2.f32 %v3141_v10  ;;  %v4938_v11 = vld [vmem:[#allocation28_spill] sm:$0xff] }
 0x594   :  { %3394 = vtanh.f32 %v2378_v17 }
 0x595   :  { %3396 = vpow2.f32 %v3142_v18 }
 0x59e   :  { %v3391_v19 = vpop.eup %3390 }
 0x59f   :  { %v2383_v21 = vadd.f32 1.0, %v3391_v19  ;;  %v4939_v19 = vld [vmem:[#allocation29_spill] sm:$0xff] }
 0x5a0   :  { %v3393_v1 = vpop.eup %3392 }
 0x5a1   :  { %3398 = vrcp.f32 %v2383_v21  ;;  %v2389_v22 = vadd.f32 1.0, %v3393_v1  ;;  %v3395_v23 = vpop.eup %3394  ;;  %v4940_v21 = vld [vmem:[#allocation27_spill] sm:$0xff] }
 0x5a2   :  { %v3397_v24 = vpop.eup %3396 }
 0x5a3   :  { %3400 = vrcp.f32 %v2389_v22  ;;  %v2396_v56 = vadd.f32 1.0, %v3397_v24 }
 0x5a5   :  { %3402 = vrcp.f32 %v2396_v56 }
 0x5ae   :  { %v3399_v25 = vpop.eup %3398 }
 0x5af   :  { %v2400_v51 = vmul.f32 %v3399_v25, %v3395_v23 }
 0x5b0   :  { %v3401_v45 = vpop.eup %3400 }
 0x5b1   :  { %v2399_v0 = vmul.f32 %v3401_v45, %v4576_v53  ;;  %v4756_v53 = vld [vmem:[%s4878_s2 + $0x40] ss:$16 sps:$4 sm:$0xff]  }
 0x5b2   :  { %v3403_v44 = vpop.eup %3402 }
 0x5b3   :  { %v4723_v38 = vadd.f32 %v2400_v51, %v2399_v0 }
 0x5b5   :  { %3404 = vtanh.f32 %v4723_v38 }
 0x5c2   :  { %v3405_v49 = vpop.eup %3404 }
 0x5c3   :  { %v2403_v2 = vmul.f32 %v3405_v49, %v3403_v44 }
 0x5c5   :  { %v2409_v20 = vpack.c.bf16 %v2403_v2, %v2403_v2 }
 0x5c7   :  { %2443 = vmatmul.mubr.bf16.vlgmr.msra.gmra.mxu0 %v2409_v20  ;;  %2484 = vmatmul.mubr.bf16.vlgmr.msra.gmra.mxu1 %v2409_v20 }
 0x5c8   :  { %2527 = vmatpush1.bf16.msra.mxu0 %v4582_v42  ;;  %2568 = vmatpush1.bf16.msra.mxu1 %v4588_v61 }
 0x5c9   :  { %2528 = vmatprep.subr.bf16.mxu0 %v4594_v37  ;;  %2569 = vmatprep.subr.bf16.mxu1 %v4600_v59 }
 0x5ca   :  { %2558 = vmatprep.mubr.bf16.mxu0 %v4919_v58  ;;  %2599 = vmatprep.mubr.bf16.mxu1 %v4919_v58 }
 0x5cc   :  { %2529 = vmatpush1.bf16.msra.mxu0 %v4608_v43  ;;  %2570 = vmatpush1.bf16.msra.mxu1 %v4614_v40 }
 0x5cd   :  { %2530 = vmatprep.subr.bf16.mxu0 %v4620_v3  ;;  %2571 = vmatprep.subr.bf16.mxu1 %v4626_v48 }
 0x5d0   :  { %2531 = vmatpush1.bf16.msra.mxu0 %v4632_v54  ;;  %2572 = vmatpush1.bf16.msra.mxu1 %v4638_v41 }
 0x5d1   :  { %2532 = vmatprep.subr.bf16.mxu0 %v4644_v8  ;;  %2573 = vmatprep.subr.bf16.mxu1 %v4650_v60 }
 0x5d4   :  { %2533 = vmatpush1.bf16.msra.mxu0 %v4656_v57  ;;  %2574 = vmatpush1.bf16.msra.mxu1 %v4662_v46 }
 0x5d5   :  { %2534 = vmatprep.subr.bf16.mxu0 %v4668_v63  ;;  %2575 = vmatprep.subr.bf16.mxu1 %v4674_v55 }
 0x5d8   :  { %2535 = vmatpush1.bf16.msra.mxu0 %v4680_v4  ;;  %2576 = vmatpush1.bf16.msra.mxu1 %v4686_v5 }
 0x5d9   :  { %2536 = vmatprep.subr.bf16.mxu0 %v4692_v6  ;;  %2577 = vmatprep.subr.bf16.mxu1 %v4750_v26 }
 0x5dc   :  { %2537 = vmatpush1.bf16.msra.mxu0 %v4756_v53  ;;  %2578 = vmatpush1.bf16.msra.mxu1 %v4762_v16 }
 0x5dd   :  { %2538 = vmatprep.subr.bf16.mxu0 %v4768_v50  ;;  %2579 = vmatprep.subr.bf16.mxu1 %v4774_v52 }
 0x5e0   :  { %2539 = vmatpush1.bf16.msra.mxu0 %v4780_v62  ;;  %2580 = vmatpush1.bf16.msra.mxu1 %v4786_v29 }
 0x5e1   :  { %2540 = vmatprep.subr.bf16.mxu0 %v4792_v30  ;;  %2581 = vmatprep.subr.bf16.mxu1 %v4798_v31 }
 0x5e4   :  { %2541 = vmatpush1.bf16.msra.mxu0 %v4804_v32  ;;  %2582 = vmatpush1.bf16.msra.mxu1 %v4810_v33 }
 0x5e5   :  { %2637 = vmatprep.subr.bf16.mxu0 %v4709_v27  ;;  %2678 = vmatprep.subr.bf16.mxu1 %v4715_v28 }
 0x687   :  { %v2444_v34 = vpop.f32.mrf.mxu0  ;;  %v2485_v35 = vpop.f32.mrf.mxu1 }
 0x688   :  { %v2492_v39 = vadd.f32 %v2444_v34, %v4937_v36  ;;  %v2494_v28 = vadd.f32 %v2485_v35, %v4940_v21  ;;  %v3302_v21 = vld [vmem:[#allocation5 + $0x58] sm:$0xff]  }
 0x689   :  { %v2446_v7 = vpop.f32.mrf.mxu0  ;;  %v2487_v9 = vpop.f32.mrf.mxu1 }
 0x68a   :  { %v3143_v10 = vmul.f32 -1.442695, %v2492_v39  ;;  %v2493_v12 = vadd.f32 %v2446_v7, %v4938_v11  ;;  %v2495_v27 = vadd.f32 %v2487_v9, %v4939_v19  ;;  %v2748_v11 = vpack.c.bf16 %v4445_v47, %v4445_v47  ;;  %v3300_v19 = vld [vmem:[#allocation5 + $0x60] sm:$0xff]   ;;  %v3303_v47 = vld [vmem:[#allocation5 + $0x18] sm:$0xff]  }
 0x68b   :  { %v2448_v13 = vpop.f32.mrf.mxu0  ;;  %v2489_v14 = vpop.f32.mrf.mxu1 }
 0x68c   :  { %3406 = vpow2.f32 %v3143_v10  ;;  %v3144_v15 = vmul.f32 -1.442695, %v2493_v12  ;;  %v3145_v1 = vmul.f32 -1.442695, %v2495_v27  ;;  %v3294_v12 = vld [vmem:[#allocation5 + $0x78] sm:$0xff]   ;;  %v3296_v14 = vld [vmem:[#allocation5 + $0x70] sm:$0xff]  }
 0x68d   :  { %v2449_v17 = vpop.f32.mrf.mxu0  ;;  %v2490_v18 = vpop.f32.mrf.mxu1  ;;  %v3295_v13 = vld [vmem:[#allocation5 + $0x38] sm:$0xff]   ;;  %v3301_v27 = vld [vmem:[#allocation5 + $0x20] sm:$0xff]  }
 0x68e   :  { %3408 = vpow2.f32 %v3144_v15  ;;  %v3297_v15 = vld [vmem:[#allocation5 + $0x30] sm:$0xff]   ;;  %v3298_v17 = vld [vmem:[#allocation5 + $0x68] sm:$0xff]  }
 0x68f   :  { %3410 = vtanh.f32 %v2494_v28  ;;  %v3299_v18 = vld [vmem:[#allocation5 + $0x28] sm:$0xff]   ;;  %v3304_v28 = vld [vmem:[#allocation5 + $0x50] sm:$0xff]  }
 0x690   :  { %3412 = vpow2.f32 %v3145_v1  ;;  %v3305_v1 = vld [vmem:[#allocation5 + $0x10] sm:$0xff]  }
 0x699   :  { %v3407_v22 = vpop.eup %3406 }
 0x69a   :  { %v2499_v23 = vadd.f32 1.0, %v3407_v22  ;;  %v3306_v22 = vld [vmem:[#allocation5 + $0x48] sm:$0xff]  }
 0x69b   :  { %v3409_v24 = vpop.eup %3408 }
 0x69c   :  { %3414 = vrcp.f32 %v2499_v23  ;;  %v2505_v25 = vadd.f32 1.0, %v3409_v24  ;;  %v3411_v51 = vpop.eup %3410  ;;  %v3307_v23 = vld [vmem:[#allocation5 + $0x8] sm:$0xff]   ;;  %v3308_v24 = vld [vmem:[#allocation5 + $0x40] sm:$0xff]  }
 0x69d   :  { %v3413_v45 = vpop.eup %3412 }
 0x69e   :  { %3416 = vrcp.f32 %v2505_v25  ;;  %v2512_v49 = vadd.f32 1.0, %v3413_v45  ;;  %v3309_v25 = vld [vmem:[#allocation5] sm:$0xff]  }
 0x6a0   :  { %3418 = vrcp.f32 %v2512_v49 }
 0x6a9   :  { %v3415_v56 = vpop.eup %3414 }
 0x6aa   :  { %v2516_v0 = vmul.f32 %v3415_v56, %v3411_v51  ;;  %v4945_v56 = vld [vmem:[#allocation34_spill] sm:$0xff] }
 0x6ab   :  { %v3417_v44 = vpop.eup %3416 }
 0x6ac   :  { %v2515_v2 = vmul.f32 %v3417_v44, %v4723_v38 }
 0x6ad   :  { %v3419_v34 = vpop.eup %3418 }
 0x6ae   :  { %v4820_v20 = vadd.f32 %v2516_v0, %v2515_v2 }
 0x6b0   :  { %3420 = vtanh.f32 %v4820_v20 }
 0x6bd   :  { %v3421_v35 = vpop.eup %3420 }
 0x6be   :  { %v2519_v36 = vmul.f32 %v3421_v35, %v3419_v34 }
 0x6c0   :  { %v2525_v39 = vpack.c.bf16 %v2519_v36, %v2519_v36 }
 0x6c2   :  { %2559 = vmatmul.mubr.bf16.vlgmr.msra.gmra.mxu0 %v2525_v39  ;;  %2600 = vmatmul.mubr.bf16.vlgmr.msra.gmra.mxu1 %v2525_v39 }
 0x6c3   :  { %2638 = vmatpush1.bf16.msra.mxu0 %v4582_v42  ;;  %2679 = vmatpush1.bf16.msra.mxu1 %v4588_v61  ;;  %v4941_v61 = vld [vmem:[#allocation30_spill] sm:$0xff] }
 0x6c4   :  { %2639 = vmatprep.subr.bf16.mxu0 %v4594_v37  ;;  %2680 = vmatprep.subr.bf16.mxu1 %v4600_v59 }
 0x6c5   :  { %2669 = vmatprep.mubr.bf16.mxu0 %v4919_v58  ;;  %2710 = vmatprep.mubr.bf16.mxu1 %v4919_v58 }
 0x6c7   :  { %2640 = vmatpush1.bf16.msra.mxu0 %v4608_v43  ;;  %2681 = vmatpush1.bf16.msra.mxu1 %v4614_v40 }
 0x6c8   :  { %2641 = vmatprep.subr.bf16.mxu0 %v4620_v3  ;;  %2682 = vmatprep.subr.bf16.mxu1 %v4626_v48  ;;  %v4942_v3 = vld [vmem:[#allocation32_spill] sm:$0xff] }
 0x6cb   :  { %2642 = vmatpush1.bf16.msra.mxu0 %v4632_v54  ;;  %2683 = vmatpush1.bf16.msra.mxu1 %v4638_v41 }
 0x6cc   :  { %2643 = vmatprep.subr.bf16.mxu0 %v4644_v8  ;;  %2684 = vmatprep.subr.bf16.mxu1 %v4650_v60 }
 0x6cf   :  { %2644 = vmatpush1.bf16.msra.mxu0 %v4656_v57  ;;  %2685 = vmatpush1.bf16.msra.mxu1 %v4662_v46  ;;  %v4943_v46 = vld [vmem:[#allocation33_spill] sm:$0xff] }
 0x6d0   :  { %2645 = vmatprep.subr.bf16.mxu0 %v4668_v63  ;;  %2686 = vmatprep.subr.bf16.mxu1 %v4674_v55  ;;  %v4944_v55 = vld [vmem:[#allocation31_spill] sm:$0xff] }
 0x6d3   :  { %2646 = vmatpush1.bf16.msra.mxu0 %v4680_v4  ;;  %2687 = vmatpush1.bf16.msra.mxu1 %v4686_v5 }
 0x6d4   :  { %2647 = vmatprep.subr.bf16.mxu0 %v4692_v6  ;;  %2688 = vmatprep.subr.bf16.mxu1 %v4750_v26 }
 0x6d7   :  { %2648 = vmatpush1.bf16.msra.mxu0 %v4756_v53  ;;  %2689 = vmatpush1.bf16.msra.mxu1 %v4762_v16 }
 0x6d8   :  { %2649 = vmatprep.subr.bf16.mxu0 %v4768_v50  ;;  %2690 = vmatprep.subr.bf16.mxu1 %v4774_v52 }
 0x6db   :  { %2650 = vmatpush1.bf16.msra.mxu0 %v4780_v62  ;;  %2691 = vmatpush1.bf16.msra.mxu1 %v4786_v29 }
 0x6dc   :  { %2651 = vmatprep.subr.bf16.mxu0 %v4792_v30  ;;  %2692 = vmatprep.subr.bf16.mxu1 %v4798_v31 }
 0x6df   :  { %2652 = vmatpush1.bf16.msra.mxu0 %v4804_v32  ;;  %2693 = vmatpush1.bf16.msra.mxu1 %v4810_v33 }
 0x6e0   :  { %3169 = vmatprep.subr.bf16.mxu0 %v3294_v12 }
 0x782   :  { %v2560_v58 = vpop.f32.mrf.mxu0  ;;  %v2601_v42 = vpop.f32.mrf.mxu1 }
 0x783   :  { %v2608_v37 = vadd.f32 %v2560_v58, %v4941_v61  ;;  %v2610_v4 = vadd.f32 %v2601_v42, %v4944_v55  ;;  %v4947_v61 = vld [vmem:[#allocation37_spill] sm:$0xff] }
 0x784   :  { %v2562_v59 = vpop.f32.mrf.mxu0  ;;  %v2603_v43 = vpop.f32.mrf.mxu1 }
 0x785   :  { %v3146_v40 = vmul.f32 -1.442695, %v2608_v37  ;;  %v2609_v48 = vadd.f32 %v2562_v59, %v4942_v3  ;;  %v2611_v63 = vadd.f32 %v2603_v43, %v4943_v46  ;;  %v4948_v59 = vld [vmem:[#allocation35_spill] sm:$0xff] }
 0x786   :  { %v2564_v54 = vpop.f32.mrf.mxu0  ;;  %v2605_v41 = vpop.f32.mrf.mxu1 }
 0x787   :  { %3422 = vpow2.f32 %v3146_v40  ;;  %v3147_v8 = vmul.f32 -1.442695, %v2609_v48  ;;  %v3148_v5 = vmul.f32 -1.442695, %v2611_v63 }
 0x788   :  { %v2565_v60 = vpop.f32.mrf.mxu0  ;;  %v2606_v57 = vpop.f32.mrf.mxu1 }
 0x789   :  { %3424 = vpow2.f32 %v3147_v8 }
 0x78a   :  { %3426 = vtanh.f32 %v2610_v4 }
 0x78b   :  { %3428 = vpow2.f32 %v3148_v5 }
 0x794   :  { %v3423_v6 = vpop.eup %3422 }
 0x795   :  { %v2615_v38 = vadd.f32 1.0, %v3423_v6 }
 0x796   :  { %v3425_v26 = vpop.eup %3424 }
 0x797   :  { %3430 = vrcp.f32 %v2615_v38  ;;  %v2621_v53 = vadd.f32 1.0, %v3425_v26  ;;  %v3427_v16 = vpop.eup %3426 }
 0x798   :  { %v3429_v50 = vpop.eup %3428 }
 0x799   :  { %3432 = vrcp.f32 %v2621_v53  ;;  %v2628_v30 = vadd.f32 1.0, %v3429_v50  ;;  %v3152_v50 = vld [vmem:[%s4884_s8] ss:$0 sm:$0xff] }
 0x79b   :  { %3434 = vrcp.f32 %v2628_v30 }
 0x7a4   :  { %v3431_v52 = vpop.eup %3430 }
 0x7a5   :  { %v2632_v62 = vmul.f32 %v3431_v52, %v3427_v16 }
 0x7a6   :  { %v3433_v29 = vpop.eup %3432 }
 0x7a7   :  { %v2631_v31 = vmul.f32 %v3433_v29, %v4820_v20  ;;  %v4946_v20 = vld [vmem:[#allocation36_spill] sm:$0xff] }
 0x7a8   :  { %v3435_v33 = vpop.eup %3434 }
 0x7a9   :  { %v4860_v32 = vadd.f32 %v2632_v62, %v2631_v31 }
 0x7ab   :  { %3436 = vtanh.f32 %v4860_v32 }
 0x7b8   :  { %v3437_v7 = vpop.eup %3436 }
 0x7b9   :  { %v2635_v9 = vmul.f32 %v3437_v7, %v3435_v33 }
 0x7bb   :  { %v2636_v10 = vpack.c.bf16 %v2635_v9, %v2635_v9 }
 0x7bd   :  { %2670 = vmatmul.mubr.bf16.vlgmr.msra.gmra.mxu0 %v2636_v10  ;;  %2711 = vmatmul.mubr.bf16.vlgmr.msra.gmra.mxu1 %v2636_v10 }
 0x7be   :  { %2916 = vmatprep.mubr.bf16.mxu0 %v2748_v11  ;;  %3170 = vmatpush3.bf16.msra.mxu0 %v3295_v13 }
 0x7bf   :  { %3171 = vmatprep.subr.bf16.mxu0 %v3296_v14 }
 0x7c2   :  { %3172 = vmatpush3.bf16.msra.mxu0 %v3297_v15 }
 0x7c3   :  { %3173 = vmatprep.subr.bf16.mxu0 %v3298_v17 }
 0x7c6   :  { %3174 = vmatpush3.bf16.msra.mxu0 %v3299_v18 }
 0x7c7   :  { %3175 = vmatprep.subr.bf16.mxu0 %v3300_v19 }
 0x7ca   :  { %3176 = vmatpush3.bf16.msra.mxu0 %v3301_v27 }
 0x7cb   :  { %3177 = vmatprep.subr.bf16.mxu0 %v3302_v21 }
 0x7ce   :  { %3178 = vmatpush3.bf16.msra.mxu0 %v3303_v47 }
 0x7cf   :  { %3179 = vmatprep.subr.bf16.mxu0 %v3304_v28 }
 0x7d2   :  { %3180 = vmatpush3.bf16.msra.mxu0 %v3305_v1 }
 0x7d3   :  { %3181 = vmatprep.subr.bf16.mxu0 %v3306_v22 }
 0x7d6   :  { %3182 = vmatpush3.bf16.msra.mxu0 %v3307_v23 }
 0x7d7   :  { %3183 = vmatprep.subr.bf16.mxu0 %v3308_v24 }
 0x7da   :  { %3184 = vmatpush3.bf16.msra.mxu0 %v3309_v25 }
 0x87d   :  { %v2671_v51 = vpop.f32.mrf.mxu0  ;;  %v2712_v45 = vpop.f32.mrf.mxu1 }
 0x87e   :  { %v2719_v0 = vadd.f32 %v2671_v51, %v4945_v56  ;;  %v2721_v43 = vadd.f32 %v2712_v45, %v4948_v59 }
 0x87f   :  { %v2673_v44 = vpop.f32.mrf.mxu0  ;;  %v2714_v49 = vpop.f32.mrf.mxu1 }
 0x880   :  { %v3149_v2 = vmul.f32 -1.442695, %v2719_v0  ;;  %v2720_v34 = vadd.f32 %v2673_v44, %v4946_v20  ;;  %v2722_v37 = vadd.f32 %v2714_v49, %v4947_v61 }
 0x881   :  { %v2675_v35 = vpop.f32.mrf.mxu0  ;;  %v2716_v36 = vpop.f32.mrf.mxu1 }
 0x882   :  { %3438 = vpow2.f32 %v3149_v2  ;;  %v3150_v39 = vmul.f32 -1.442695, %v2720_v34  ;;  %v3151_v40 = vmul.f32 -1.442695, %v2722_v37 }
 0x883   :  { %v2676_v58 = vpop.f32.mrf.mxu0  ;;  %v2717_v42 = vpop.f32.mrf.mxu1 }
 0x884   :  { %3440 = vpow2.f32 %v3150_v39 }
 0x885   :  { %3442 = vtanh.f32 %v2721_v43 }
 0x886   :  { %3444 = vpow2.f32 %v3151_v40 }
 0x88f   :  { %v3439_v3 = vpop.eup %3438 }
 0x890   :  { %v2726_v48 = vadd.f32 1.0, %v3439_v3 }
 0x891   :  { %v3441_v54 = vpop.eup %3440 }
 0x892   :  { %3446 = vrcp.f32 %v2726_v48  ;;  %v2732_v41 = vadd.f32 1.0, %v3441_v54  ;;  %v3443_v8 = vpop.eup %3442 }
 0x893   :  { %v3445_v60 = vpop.eup %3444 }
 0x894   :  { %3448 = vrcp.f32 %v2732_v41  ;;  %v2739_v55 = vadd.f32 1.0, %v3445_v60 }
 0x896   :  { %3450 = vrcp.f32 %v2739_v55 }
 0x89f   :  { %v3447_v57 = vpop.eup %3446 }
 0x8a0   :  { %v2743_v46 = vmul.f32 %v3447_v57, %v3443_v8 }
 0x8a1   :  { %v3449_v63 = vpop.eup %3448 }
 0x8a2   :  { %v2742_v4 = vmul.f32 %v3449_v63, %v4860_v32 }
 0x8a3   :  { %v3451_v6 = vpop.eup %3450 }
 0x8a4   :  { %v2744_v5 = vadd.f32 %v2743_v46, %v2742_v4 }
 0x8a6   :  { %3452 = vtanh.f32 %v2744_v5 }
 0x8b3   :  { %v3453_v38 = vpop.eup %3452 }
 0x8b4   :  { %v2746_v26 = vmul.f32 %v3453_v38, %v3451_v6 }
 0x8b6   :  { %v2747_v53 = vpack.c.bf16 %v2746_v26, %v2746_v26 }
 0x8b8   :  { %2917 = vmatmul.mubr.bf16.vlgmr.msra.gmra.mxu0 %v2747_v53 }
 0x978   :  { %v3185_v16 = vpop.f32.mrf.mxu0 }
 0x97a   :  { %v3186_v52 = vpop.f32.mrf.mxu0 }
 0x97b   :  { %v3187_v62 = vadd.f32 %v3186_v52, %v3185_v16 }
 0x97c   :  { %v3188_v29 = vpop.f32.mrf.mxu0 }
 0x97d   :  { %v2919_v30 = vadd.f32 %v3187_v62, %v3152_v50 }
 0x97e   :  { %v3189_v31 = vpop.f32.mrf.mxu0 }
 0x97f   :  { %2924 = vst [vmem:[%s4885_s9] sm:$0xff] %v2919_v30 }
 0x980   :  { %2929 = vsyncpa [#allocation4], 1 }
 0x981   :  { %2930 = vsyncpa [#allocation6], 1 }

// kernel: bilstm_forward.2
= control target key start
LH: loop header
LB: loop body
LE: loop exit
PB: predicated region body
PF: predicated region fallthrough
CT: control target
= control target key end

     0   :  { %12 = vsyncpa [#allocation4], 0  ;;  %s3862_s24 = smov [#allocation3]   ;;  %s5588_s0 = inlined_call_operand.vmem [shape: f32[8,8,128], index: 0, kind: input, shape index: {}]   ;;  %s5589_s1 = inlined_call_operand.vmem [shape: bf16[128,1024], index: 1, kind: input, shape index: {}]   ;;  %s5590_s2 = inlined_call_operand.vmem [shape: bf16[128,512], index: 2, kind: input, shape index: {}]   ;;  %s5591_s3 = inlined_call_operand.hbm [shape: bf16[128,512], index: 3, kind: input, shape index: {}]   ;;  %s5592_s4 = inlined_call_operand.vmem [shape: f32[1,1024], index: 4, kind: input, shape index: {}]   ;;  %s5593_s5 = inlined_call_operand.vmem [shape: f32[2,8,128], index: 5, kind: input, shape index: {}]   ;;  %s5594_s6 = inlined_call_operand.vmem [shape: f32[2,8,128], index: 6, kind: input, shape index: {}]   ;;  %s5595_s7 = inlined_call_operand.vmem [shape: f32[8,8,256], index: 7, kind: output, shape index: {}]  }
   0x1   :  { %s24_s25 = sshll.u32 %s3862_s24, 4  ;;  %s25_s25 = int_to_ptr.vmem [resolvable:$true] %s24_s25 }
   0x2   :  { %s3848_s26 = scalar_lea.vmem %s25_s25, 4096  ;;  %p3853_p1 = scmp.lt.s32.totalorder %s25_s25, %s25_s25 }
   0x3   :  { %p3849_p0 = scmp.ne.s32.totalorder %s25_s25, %s3848_s26  ;;  %p3854_p2 = scmp.lt.s32.totalorder %s3848_s26, %s3848_s26 }
   0x5   :  { %p3855_p3 = por %p3854_p2, %p3853_p1 }
   0x7   :  { %p3856_p4 = pnand %p3855_p3, %p3849_p0 }
   0x9   :  { %3859 = shalt.err (!%p3856_p4)
}
   0xa   :  { %s3863_s27 = smov 256   ;;  %s3864_s28 = smov 16  }
   0xb   :  { %30 = dma.hbm_to_vmem [thread:$0]  %s5591_s3, 4096, %s25_s25, [#allocation4], %s3863_s27, %s3863_s27, %s3864_s28  }
   0xc   :  { %3860 = dma.done.wait [#allocation4], 4096  }
   0xd   :  { %3861 = vsyncadd [#allocation4], 4294963200  ;;  %v5596_v0 = vmov 0   ;;  %v109_v1 = vld [vmem:[%s5589_s1 + $0x1c0] sm:$0xff]  ;;  %v110_v3 = vld [vmem:[%s5589_s1 + $0x1c8] sm:$0xff] }
   0xe   :  { %469 = vmatprep.mubr.bf16.mxu0 %v5596_v0  ;;  %542 = vmatprep.mubr.bf16.mxu1 %v5596_v0  ;;  %v113_v2 = vld [vmem:[%s5589_s1 + $0x1e0] sm:$0xff]  ;;  %v114_v5 = vld [vmem:[%s5589_s1 + $0x1e8] sm:$0xff]  ;;  %v111_v62 = vld [vmem:[%s5589_s1 + $0x1d0] sm:$0xff] }
   0xf   :  { %v3221_v4 = vcombine.high %v109_v1, %v113_v2  ;;  %v3220_v6 = vcombine.low %v109_v1, %v113_v2  ;;  %v101_v7 = vld [vmem:[%s5589_s1 + $0x180] sm:$0xff]  ;;  %v3223_v9 = vcombine.high %v110_v3, %v114_v5  ;;  %v3222_v10 = vcombine.low %v110_v3, %v114_v5  ;;  %v102_v12 = vld [vmem:[%s5589_s1 + $0x188] sm:$0xff]  ;;  %v115_v1 = vld [vmem:[%s5589_s1 + $0x1f0] sm:$0xff] }
  0x10   :  { %v105_v8 = vld [vmem:[%s5589_s1 + $0x1a0] sm:$0xff]  ;;  %v106_v13 = vld [vmem:[%s5589_s1 + $0x1a8] sm:$0xff]  ;;  %v112_v2 = vld [vmem:[%s5589_s1 + $0x1d8] sm:$0xff] }
  0x11   :  { %v3213_v11 = vcombine.high %v101_v7, %v105_v8  ;;  %v93_v14 = vld [vmem:[%s5589_s1 + $0x140] sm:$0xff]  ;;  %437 = vmatprep.subr.bf16.mxu0 %v3221_v4  ;;  %v3215_v15 = vcombine.high %v102_v12, %v106_v13  ;;  %v94_v17 = vld [vmem:[%s5589_s1 + $0x148] sm:$0xff]  ;;  %510 = vmatprep.subr.bf16.mxu1 %v3223_v9  ;;  %v3212_v19 = vcombine.low %v101_v7, %v105_v8  ;;  %v116_v3 = vld [vmem:[%s5589_s1 + $0x1f8] sm:$0xff] }
  0x12   :  { %v97_v16 = vld [vmem:[%s5589_s1 + $0x160] sm:$0xff]  ;;  %v98_v18 = vld [vmem:[%s5589_s1 + $0x168] sm:$0xff]  ;;  %438 = vmatpush1.bf16.msra.mxu0 %v3220_v6  ;;  %511 = vmatpush1.bf16.msra.mxu1 %v3222_v10  ;;  %v3214_v20 = vcombine.low %v102_v12, %v106_v13  ;;  %v3225_v8 = vcombine.high %v111_v62, %v115_v1  ;;  %v103_v9 = vld [vmem:[%s5589_s1 + $0x190] sm:$0xff]  ;;  %v3227_v10 = vcombine.high %v112_v2, %v116_v3 }
  0x13   :  { %439 = vmatprep.subr.bf16.mxu0 %v3213_v11  ;;  %v3205_v21 = vcombine.high %v93_v14, %v97_v16  ;;  %512 = vmatprep.subr.bf16.mxu1 %v3215_v15  ;;  %v3207_v22 = vcombine.high %v94_v17, %v98_v18  ;;  %v85_v23 = vld [vmem:[%s5589_s1 + $0x100] sm:$0xff]  ;;  %v86_v25 = vld [vmem:[%s5589_s1 + $0x108] sm:$0xff]  ;;  %v3204_v27 = vcombine.low %v93_v14, %v97_v16  ;;  %v107_v11 = vld [vmem:[%s5589_s1 + $0x1b0] sm:$0xff] }
  0x14   :  { %v89_v24 = vld [vmem:[%s5589_s1 + $0x120] sm:$0xff]  ;;  %v90_v26 = vld [vmem:[%s5589_s1 + $0x128] sm:$0xff]  ;;  %v3206_v28 = vcombine.low %v94_v17, %v98_v18  ;;  %v104_v13 = vld [vmem:[%s5589_s1 + $0x198] sm:$0xff]  ;;  %v3224_v15 = vcombine.low %v111_v62, %v115_v1  ;;  %v3226_v16 = vcombine.low %v112_v2, %v116_v3  ;;  %v3217_v17 = vcombine.high %v103_v9, %v107_v11 }
  0x15   :  { %v3197_v29 = vcombine.high %v85_v23, %v89_v24  ;;  %v3199_v30 = vcombine.high %v86_v25, %v90_v26  ;;  %v77_v31 = vld [vmem:[%s5589_s1 + $0xc0] sm:$0xff]  ;;  %v78_v33 = vld [vmem:[%s5589_s1 + $0xc8] sm:$0xff]  ;;  %v3196_v35 = vcombine.low %v85_v23, %v89_v24  ;;  %v3198_v36 = vcombine.low %v86_v25, %v90_v26  ;;  %v108_v14 = vld [vmem:[%s5589_s1 + $0x1b8] sm:$0xff] }
  0x16   :  { %440 = vmatpush1.bf16.msra.mxu0 %v3212_v19  ;;  %513 = vmatpush1.bf16.msra.mxu1 %v3214_v20  ;;  %v81_v32 = vld [vmem:[%s5589_s1 + $0xe0] sm:$0xff]  ;;  %v82_v34 = vld [vmem:[%s5589_s1 + $0xe8] sm:$0xff]  ;;  %v95_v18 = vld [vmem:[%s5589_s1 + $0x150] sm:$0xff]  ;;  %v3219_v19 = vcombine.high %v104_v13, %v108_v14  ;;  %v3216_v23 = vcombine.low %v103_v9, %v107_v11  ;;  %v3218_v26 = vcombine.low %v104_v13, %v108_v14 }
  0x17   :  { %441 = vmatprep.subr.bf16.mxu0 %v3205_v21  ;;  %514 = vmatprep.subr.bf16.mxu1 %v3207_v22  ;;  %v3189_v37 = vcombine.high %v77_v31, %v81_v32  ;;  %v3191_v38 = vcombine.high %v78_v33, %v82_v34  ;;  %v69_v39 = vld [vmem:[%s5589_s1 + $0x80] sm:$0xff]  ;;  %v70_v41 = vld [vmem:[%s5589_s1 + $0x88] sm:$0xff]  ;;  %v3188_v43 = vcombine.low %v77_v31, %v81_v32  ;;  %v99_v20 = vld [vmem:[%s5589_s1 + $0x170] sm:$0xff] }
  0x18   :  { %v73_v40 = vld [vmem:[%s5589_s1 + $0xa0] sm:$0xff]  ;;  %v74_v42 = vld [vmem:[%s5589_s1 + $0xa8] sm:$0xff]  ;;  %v3190_v44 = vcombine.low %v78_v33, %v82_v34  ;;  %v96_v21 = vld [vmem:[%s5589_s1 + $0x158] sm:$0xff]  ;;  %v3208_v34 = vcombine.low %v95_v18, %v99_v20 }
  0x19   :  { %v3181_v45 = vcombine.high %v69_v39, %v73_v40  ;;  %v3183_v46 = vcombine.high %v70_v41, %v74_v42  ;;  %v61_v47 = vld [vmem:[%s5589_s1 + $0x40] sm:$0xff]  ;;  %v62_v49 = vld [vmem:[%s5589_s1 + $0x48] sm:$0xff]  ;;  %v3180_v51 = vcombine.low %v69_v39, %v73_v40  ;;  %v3182_v52 = vcombine.low %v70_v41, %v74_v42  ;;  %v100_v22 = vld [vmem:[%s5589_s1 + $0x178] sm:$0xff] }
  0x1a   :  { %442 = vmatpush1.bf16.msra.mxu0 %v3204_v27  ;;  %515 = vmatpush1.bf16.msra.mxu1 %v3206_v28  ;;  %v65_v48 = vld [vmem:[%s5589_s1 + $0x60] sm:$0xff]  ;;  %v66_v50 = vld [vmem:[%s5589_s1 + $0x68] sm:$0xff]  ;;  %v43_v24 = vld [vmem:[%s5588_s0 + $0x10] sm:$0xff]  ;;  %v3209_v27 = vcombine.high %v95_v18, %v99_v20 }
  0x1b   :  { %443 = vmatprep.subr.bf16.mxu0 %v3197_v29  ;;  %516 = vmatprep.subr.bf16.mxu1 %v3199_v30  ;;  %v3173_v53 = vcombine.high %v61_v47, %v65_v48  ;;  %v3175_v54 = vcombine.high %v62_v49, %v66_v50  ;;  %v53_v55 = vld [vmem:[%s5589_s1] sm:$0xff]  ;;  %v54_v57 = vld [vmem:[%s5589_s1 + $0x8] sm:$0xff]  ;;  %v3172_v59 = vcombine.low %v61_v47, %v65_v48  ;;  %v44_v25 = vld [vmem:[%s5588_s0 + $0x18] sm:$0xff] }
  0x1c   :  { %v57_v56 = vld [vmem:[%s5589_s1 + $0x20] sm:$0xff]  ;;  %v58_v58 = vld [vmem:[%s5589_s1 + $0x28] sm:$0xff]  ;;  %v3174_v60 = vcombine.low %v62_v49, %v66_v50  ;;  %v87_v28 = vld [vmem:[%s5589_s1 + $0x110] sm:$0xff]  ;;  %v3211_v29 = vcombine.high %v96_v21, %v100_v22  ;;  %v4067_v31 = vpack.c.bf16 %v44_v25, %v43_v24 }
  0x1d   :  { %v3165_v61 = vcombine.high %v53_v55, %v57_v56  ;;  %v3167_v63 = vcombine.high %v54_v57, %v58_v58  ;;  %v3164_v4 = vcombine.low %v53_v55, %v57_v56  ;;  %v41_v5 = vld [vmem:[%s5588_s0] sm:$0xff]  ;;  %v42_v6 = vld [vmem:[%s5588_s0 + $0x8] sm:$0xff]  ;;  %v3166_v7 = vcombine.low %v54_v57, %v58_v58  ;;  %v91_v30 = vld [vmem:[%s5589_s1 + $0x130] sm:$0xff] }
  0x1e   :  { %444 = vmatpush1.bf16.msra.mxu0 %v3196_v35  ;;  %517 = vmatpush1.bf16.msra.mxu1 %v3198_v36  ;;  %v4031_v12 = vpack.c.bf16 %v42_v6, %v41_v5  ;;  %v88_v32 = vld [vmem:[%s5589_s1 + $0x118] sm:$0xff]  ;;  %v3210_v35 = vcombine.low %v96_v21, %v100_v22  ;;  %v3201_v36 = vcombine.high %v87_v28, %v91_v30  ;;  %v83_v39 = vld [vmem:[%s5589_s1 + $0xf0] sm:$0xff] }
  0x1f   :  { %445 = vmatprep.subr.bf16.mxu0 %v3189_v37  ;;  %518 = vmatprep.subr.bf16.mxu1 %v3191_v38  ;;  %v92_v33 = vld [vmem:[%s5589_s1 + $0x138] sm:$0xff]  ;;  %v79_v37 = vld [vmem:[%s5589_s1 + $0xd0] sm:$0xff]  ;;  %v3200_v42 = vcombine.low %v87_v28, %v91_v30 }
  0x20   :  { %v3203_v38 = vcombine.high %v88_v32, %v92_v33  ;;  %v80_v40 = vld [vmem:[%s5589_s1 + $0xd8] sm:$0xff]  ;;  %v71_v47 = vld [vmem:[%s5589_s1 + $0x90] sm:$0xff] }
  0x21   :  { %v84_v41 = vld [vmem:[%s5589_s1 + $0xf8] sm:$0xff]  ;;  %v75_v49 = vld [vmem:[%s5589_s1 + $0xb0] sm:$0xff] }
  0x22   :  { %446 = vmatpush1.bf16.msra.mxu0 %v3188_v43  ;;  %519 = vmatpush1.bf16.msra.mxu1 %v3190_v44  ;;  %v45_v43 = vld [vmem:[%s5588_s0 + $0x20] sm:$0xff]  ;;  %v46_v44 = vld [vmem:[%s5588_s0 + $0x28] sm:$0xff]  ;;  %v3195_v48 = vcombine.high %v80_v40, %v84_v41  ;;  %v3185_v55 = vcombine.high %v71_v47, %v75_v49  ;;  %v47_v57 = vld [vmem:[%s5588_s0 + $0x30] sm:$0xff]  ;;  %v3184_v62 = vcombine.low %v71_v47, %v75_v49 }
  0x23   :  { %447 = vmatprep.subr.bf16.mxu0 %v3181_v45  ;;  %520 = vmatprep.subr.bf16.mxu1 %v3183_v46  ;;  %v3202_v45 = vcombine.low %v88_v32, %v92_v33  ;;  %v3193_v46 = vcombine.high %v79_v37, %v83_v39  ;;  %v4103_v50 = vpack.c.bf16 %v46_v44, %v45_v43  ;;  %v63_v58 = vld [vmem:[%s5589_s1 + $0x50] sm:$0xff]  ;;  %v4181_v21 = vld [vmem:[%s5590_s2 + $0xcc] ss:$16 sps:$4 sm:$0xff]   ;;  %v4248_v30 = vld [vmem:[%s5590_s2 + $0x88] ss:$16 sps:$4 sm:$0xff]  }
  0x24   :  { %v55_v3 = vld [vmem:[%s5589_s1 + $0x10] sm:$0xff]  ;;  %v4208_v24 = vld [vmem:[%s5590_s2 + $0xac] ss:$16 sps:$4 sm:$0xff]   ;;  %5698 = vst [vmem:[#allocation15_spill] sm:$0xff] %v4248_v30  ;;  %v4355_v47 = vld [vmem:[%s5590_s2 + $0x8] ss:$16 sps:$4 sm:$0xff]  }
  0x25   :  { %v59_v5 = vld [vmem:[%s5589_s1 + $0x30] sm:$0xff]  ;;  %5692 = vst [vmem:[#allocation9_spill] sm:$0xff] %v4208_v24  ;;  %v4233_v28 = vld [vmem:[%s5590_s2 + $0x8c] ss:$16 sps:$4 sm:$0xff]   ;;  %5714 = vst [vmem:[#allocation31_spill] sm:$0xff] %v4355_v47 }
  0x26   :  { %448 = vmatpush1.bf16.msra.mxu0 %v3180_v51  ;;  %521 = vmatpush1.bf16.msra.mxu1 %v3182_v52  ;;  %v72_v51 = vld [vmem:[%s5589_s1 + $0x98] sm:$0xff]  ;;  %v3169_v11 = vcombine.high %v55_v3, %v59_v5  ;;  %v3168_v14 = vcombine.low %v55_v3, %v59_v5  ;;  %v4164_v18 = vld [vmem:[%s5590_s2 + $0xe0] ss:$16 sps:$4 sm:$0xff]   ;;  %v4175_v20 = vld [vmem:[%s5590_s2 + $0xc4] ss:$16 sps:$4 sm:$0xff]   ;;  %5696 = vst [vmem:[#allocation13_spill] sm:$0xff] %v4233_v28 }
  0x27   :  { %449 = vmatprep.subr.bf16.mxu0 %v3173_v53  ;;  %522 = vmatprep.subr.bf16.mxu1 %v3175_v54  ;;  %v76_v52 = vld [vmem:[%s5589_s1 + $0xb8] sm:$0xff]  ;;  %v3192_v53 = vcombine.low %v79_v37, %v83_v39  ;;  %v3194_v54 = vcombine.low %v80_v40, %v84_v41  ;;  %v4189_v22 = vld [vmem:[%s5590_s2 + $0xc0] ss:$16 sps:$4 sm:$0xff]   ;;  %v4305_v39 = vld [vmem:[%s5590_s2 + $0x24] ss:$16 sps:$4 sm:$0xff]  }
  0x28   :  { %v3187_v56 = vcombine.high %v72_v51, %v76_v52  ;;  %v3186_v1 = vcombine.low %v72_v51, %v76_v52  ;;  %5689 = vst [vmem:[#allocation6_spill] sm:$0xff] %v4189_v22  ;;  %v4215_v25 = vld [vmem:[%s5590_s2 + $0xa0] ss:$16 sps:$4 sm:$0xff]   ;;  %v4260_v32 = vld [vmem:[%s5590_s2 + $0x6c] ss:$16 sps:$4 sm:$0xff]   ;;  %5707 = vst [vmem:[#allocation24_spill] sm:$0xff] %v4305_v39 }
  0x29   :  { %5693 = vst [vmem:[#allocation10_spill] sm:$0xff] %v4215_v25  ;;  %5700 = vst [vmem:[#allocation17_spill] sm:$0xff] %v4260_v32  ;;  %v4267_v33 = vld [vmem:[%s5590_s2 + $0x60] ss:$16 sps:$4 sm:$0xff]   ;;  %v4312_v40 = vld [vmem:[%s5590_s2 + $0x2c] ss:$16 sps:$4 sm:$0xff]  }
  0x2a   :  { %450 = vmatpush1.bf16.msra.mxu0 %v3172_v59  ;;  %523 = vmatpush1.bf16.msra.mxu1 %v3174_v60  ;;  %v67_v59 = vld [vmem:[%s5589_s1 + $0x70] sm:$0xff]  ;;  %v64_v60 = vld [vmem:[%s5589_s1 + $0x58] sm:$0xff]  ;;  %5701 = vst [vmem:[#allocation18_spill] sm:$0xff] %v4267_v33  ;;  %5708 = vst [vmem:[#allocation25_spill] sm:$0xff] %v4312_v40 }
  0x2b   :  { %451 = vmatprep.subr.bf16.mxu0 %v3165_v61  ;;  %524 = vmatprep.subr.bf16.mxu1 %v3167_v63  ;;  %v68_v61 = vld [vmem:[%s5589_s1 + $0x78] sm:$0xff]  ;;  %v3177_v2 = vcombine.high %v63_v58, %v67_v59  ;;  %v3176_v9 = vcombine.low %v63_v58, %v67_v59  ;;  %v4293_v37 = vld [vmem:[%s5590_s2 + $0x40] ss:$16 sps:$4 sm:$0xff]   ;;  %v4331_v43 = vld [vmem:[%s5590_s2 + $0x4] ss:$16 sps:$4 sm:$0xff]  }
  0x2c   :  { %v48_v63 = vld [vmem:[%s5588_s0 + $0x38] sm:$0xff]  ;;  %5705 = vst [vmem:[#allocation22_spill] sm:$0xff] %v4293_v37  ;;  %v4319_v41 = vld [vmem:[%s5590_s2 + $0x20] ss:$16 sps:$4 sm:$0xff]   ;;  %5711 = vst [vmem:[#allocation28_spill] sm:$0xff] %v4331_v43 }
  0x2d   :  { %v4139_v6 = vpack.c.bf16 %v48_v63, %v47_v57  ;;  %5709 = vst [vmem:[#allocation26_spill] sm:$0xff] %v4319_v41  ;;  %v4337_v44 = vld [vmem:[%s5590_s2 + $0xc] ss:$16 sps:$4 sm:$0xff]   ;;  %v4365_v51 = vld [vmem:[#allocation3 + $0xe0] ss:$16 sps:$4 sm:$0xff]  }
  0x2e   :  { %452 = vmatpush1.bf16.msra.mxu0 %v3164_v4  ;;  %525 = vmatpush1.bf16.msra.mxu1 %v3166_v7  ;;  %v3179_v4 = vcombine.high %v64_v60, %v68_v61  ;;  %v56_v7 = vld [vmem:[%s5589_s1 + $0x18] sm:$0xff]  ;;  %5712 = vst [vmem:[#allocation29_spill] sm:$0xff] %v4337_v44  ;;  %v4383_v57 = vld [vmem:[#allocation3 + $0xa4] ss:$16 sps:$4 sm:$0xff]   ;;  %v4391_v59 = vld [vmem:[#allocation3 + $0xa0] ss:$16 sps:$4 sm:$0xff]  }
  0x2f   :  { %583 = vmatprep.subr.bf16.mxu0 %v3225_v8  ;;  %656 = vmatprep.subr.bf16.mxu1 %v3227_v10  ;;  %v60_v8 = vld [vmem:[%s5589_s1 + $0x38] sm:$0xff]  ;;  %v3178_v10 = vcombine.low %v64_v60, %v68_v61  ;;  %v4397_v61 = vld [vmem:[#allocation3 + $0x84] ss:$16 sps:$4 sm:$0xff]   ;;  %v4403_v63 = vld [vmem:[#allocation3 + $0x80] ss:$16 sps:$4 sm:$0xff]  }
  0x30   :  { %v3171_v13 = vcombine.high %v56_v7, %v60_v8  ;;  %v4361_v49 = vld [vmem:[#allocation3 + $0xec] ss:$16 sps:$4 sm:$0xff]   ;;  %v4369_v52 = vld [vmem:[#allocation3 + $0xe8] ss:$16 sps:$4 sm:$0xff]  }
  0x31   :  { %470 = vmatmul.mubr.bf16.vlgmr.msra.gmra.mxu0 %v4031_v12  ;;  %543 = vmatmul.mubr.bf16.vlgmr.msra.gmra.mxu1 %v4031_v12  ;;  %5716 = vst [vmem:[#allocation33_spill] sm:$0xff] %v4361_v49  ;;  %v4386_v58 = vld [vmem:[#allocation3 + $0xac] ss:$16 sps:$4 sm:$0xff]   ;;  %v4395_v60 = vld [vmem:[#allocation3 + $0xa8] ss:$16 sps:$4 sm:$0xff]  }
  0x32   :  { %584 = vmatpush1.bf16.msra.mxu0 %v3224_v15  ;;  %657 = vmatpush1.bf16.msra.mxu1 %v3226_v16  ;;  %v3170_v15 = vcombine.low %v56_v7, %v60_v8  ;;  %v4152_v16 = vld [vmem:[%s5590_s2 + $0xe4] ss:$16 sps:$4 sm:$0xff]   ;;  %v4412_v3 = vld [vmem:[#allocation3 + $0x6c] ss:$16 sps:$4 sm:$0xff]   ;;  %v4419_v5 = vld [vmem:[#allocation3 + $0x68] ss:$16 sps:$4 sm:$0xff]  }
  0x33   :  { %585 = vmatprep.subr.bf16.mxu0 %v3217_v17  ;;  %658 = vmatprep.subr.bf16.mxu1 %v3219_v19  ;;  %v4158_v17 = vld [vmem:[%s5590_s2 + $0xec] ss:$16 sps:$4 sm:$0xff]   ;;  %v4169_v19 = vld [vmem:[%s5590_s2 + $0xe8] ss:$16 sps:$4 sm:$0xff]   ;;  %v4427_v8 = vld [vmem:[#allocation3 + $0x40] ss:$16 sps:$4 sm:$0xff]  }
  0x34   :  { %479 = vmatprep.mubr.bf16.mxu0 %v5596_v0  ;;  %552 = vmatprep.mubr.bf16.mxu1 %v5596_v0  ;;  %v4424_v7 = vld [vmem:[#allocation3 + $0x4c] ss:$16 sps:$4 sm:$0xff]  }
  0x36   :  { %586 = vmatpush1.bf16.msra.mxu0 %v3216_v23  ;;  %659 = vmatpush1.bf16.msra.mxu1 %v3218_v26  ;;  %v4196_v23 = vld [vmem:[%s5590_s2 + $0xc8] ss:$16 sps:$4 sm:$0xff]  }
  0x37   :  { %587 = vmatprep.subr.bf16.mxu0 %v3209_v27  ;;  %660 = vmatprep.subr.bf16.mxu1 %v3211_v29  ;;  %5690 = vst [vmem:[#allocation7_spill] sm:$0xff] %v4196_v23  ;;  %v4222_v26 = vld [vmem:[%s5590_s2 + $0xa8] ss:$16 sps:$4 sm:$0xff]   ;;  %v4227_v27 = vld [vmem:[%s5590_s2 + $0x84] ss:$16 sps:$4 sm:$0xff]  }
  0x38   :  { %5694 = vst [vmem:[#allocation11_spill] sm:$0xff] %v4222_v26  ;;  %5695 = vst [vmem:[#allocation12_spill] sm:$0xff] %v4227_v27  ;;  %v4241_v29 = vld [vmem:[%s5590_s2 + $0x80] ss:$16 sps:$4 sm:$0xff]  }
  0x39   :  { %480 = vmatmul.mubr.bf16.gmra.mxu0 %v4067_v31  ;;  %553 = vmatmul.mubr.bf16.gmra.mxu1 %v4067_v31  ;;  %5697 = vst [vmem:[#allocation14_spill] sm:$0xff] %v4241_v29 }
  0x3a   :  { %588 = vmatpush1.bf16.msra.mxu0 %v3208_v34  ;;  %661 = vmatpush1.bf16.msra.mxu1 %v3210_v35  ;;  %v4274_v34 = vld [vmem:[%s5590_s2 + $0x68] ss:$16 sps:$4 sm:$0xff]   ;;  %v4279_v35 = vld [vmem:[%s5590_s2 + $0x44] ss:$16 sps:$4 sm:$0xff]  }
  0x3b   :  { %589 = vmatprep.subr.bf16.mxu0 %v3201_v36  ;;  %662 = vmatprep.subr.bf16.mxu1 %v3203_v38  ;;  %5702 = vst [vmem:[#allocation19_spill] sm:$0xff] %v4274_v34  ;;  %5703 = vst [vmem:[#allocation20_spill] sm:$0xff] %v4279_v35  ;;  %v4285_v36 = vld [vmem:[%s5590_s2 + $0x4c] ss:$16 sps:$4 sm:$0xff]   ;;  %v4300_v38 = vld [vmem:[%s5590_s2 + $0x48] ss:$16 sps:$4 sm:$0xff]  }
  0x3c   :  { %489 = vmatprep.mubr.bf16.mxu0 %v5596_v0  ;;  %562 = vmatprep.mubr.bf16.mxu1 %v5596_v0  ;;  %5704 = vst [vmem:[#allocation21_spill] sm:$0xff] %v4285_v36  ;;  %5706 = vst [vmem:[#allocation23_spill] sm:$0xff] %v4300_v38 }
  0x3e   :  { %590 = vmatpush1.bf16.msra.mxu0 %v3200_v42  ;;  %663 = vmatpush1.bf16.msra.mxu1 %v3202_v45  ;;  %v4326_v42 = vld [vmem:[%s5590_s2 + $0x28] ss:$16 sps:$4 sm:$0xff]   ;;  %v4345_v45 = vld [vmem:[%s5590_s2] ss:$16 sps:$4 sm:$0xff]  }
  0x3f   :  { %591 = vmatprep.subr.bf16.mxu0 %v3193_v46  ;;  %664 = vmatprep.subr.bf16.mxu1 %v3195_v48  ;;  %5710 = vst [vmem:[#allocation27_spill] sm:$0xff] %v4326_v42  ;;  %5713 = vst [vmem:[#allocation30_spill] sm:$0xff] %v4345_v45  ;;  %v963_v46 = vld [vmem:[%s5593_s5] sm:$0xff] }
  0x40   :  { %v4357_v48 = vld [vmem:[#allocation3 + $0xe4] ss:$16 sps:$4 sm:$0xff]  }
  0x41   :  { %490 = vmatmul.mubr.bf16.gmra.mxu0 %v4103_v50  ;;  %563 = vmatmul.mubr.bf16.gmra.mxu1 %v4103_v50  ;;  %5715 = vst [vmem:[#allocation32_spill] sm:$0xff] %v4357_v48 }
  0x42   :  { %592 = vmatpush1.bf16.msra.mxu0 %v3192_v53  ;;  %665 = vmatpush1.bf16.msra.mxu1 %v3194_v54  ;;  %v4371_v53 = vld [vmem:[#allocation3 + $0xc4] ss:$16 sps:$4 sm:$0xff]   ;;  %v4374_v54 = vld [vmem:[#allocation3 + $0xcc] ss:$16 sps:$4 sm:$0xff]  }
  0x43   :  { %593 = vmatprep.subr.bf16.mxu0 %v3185_v55  ;;  %666 = vmatprep.subr.bf16.mxu1 %v3187_v56  ;;  %v4377_v55 = vld [vmem:[#allocation3 + $0xc0] ss:$16 sps:$4 sm:$0xff]   ;;  %v4381_v56 = vld [vmem:[#allocation3 + $0xc8] ss:$16 sps:$4 sm:$0xff]  }
  0x44   :  { %499 = vmatprep.mubr.bf16.mxu0 %v5596_v0  ;;  %572 = vmatprep.mubr.bf16.mxu1 %v5596_v0 }
  0x46   :  { %594 = vmatpush1.bf16.msra.mxu0 %v3184_v62  ;;  %667 = vmatpush1.bf16.msra.mxu1 %v3186_v1  ;;  %v4400_v62 = vld [vmem:[#allocation3 + $0x8c] ss:$16 sps:$4 sm:$0xff]   ;;  %v4407_v1 = vld [vmem:[#allocation3 + $0x88] ss:$16 sps:$4 sm:$0xff]  }
  0x47   :  { %595 = vmatprep.subr.bf16.mxu0 %v3177_v2  ;;  %668 = vmatprep.subr.bf16.mxu1 %v3179_v4  ;;  %v4409_v2 = vld [vmem:[#allocation3 + $0x64] ss:$16 sps:$4 sm:$0xff]   ;;  %v4415_v4 = vld [vmem:[#allocation3 + $0x60] ss:$16 sps:$4 sm:$0xff]  }
  0x49   :  { %500 = vmatmul.mubr.bf16.gmra.mxu0 %v4139_v6  ;;  %573 = vmatmul.mubr.bf16.gmra.mxu1 %v4139_v6 }
  0x4a   :  { %596 = vmatpush1.bf16.msra.mxu0 %v3176_v9  ;;  %669 = vmatpush1.bf16.msra.mxu1 %v3178_v10  ;;  %v4431_v9 = vld [vmem:[#allocation3 + $0x48] ss:$16 sps:$4 sm:$0xff]   ;;  %v4433_v10 = vld [vmem:[#allocation3 + $0x24] ss:$16 sps:$4 sm:$0xff]  }
  0x4b   :  { %597 = vmatprep.subr.bf16.mxu0 %v3169_v11  ;;  %670 = vmatprep.subr.bf16.mxu1 %v3171_v13  ;;  %5717 = vst [vmem:[#allocation34_spill] sm:$0xff] %v4431_v9  ;;  %5718 = vst [vmem:[#allocation35_spill] sm:$0xff] %v4433_v10  ;;  %v4436_v11 = vld [vmem:[#allocation3 + $0x2c] ss:$16 sps:$4 sm:$0xff]   ;;  %v4439_v13 = vld [vmem:[#allocation3 + $0x20] ss:$16 sps:$4 sm:$0xff]  }
  0x4c   :  { %615 = vmatprep.mubr.bf16.mxu0 %v5596_v0  ;;  %688 = vmatprep.mubr.bf16.mxu1 %v5596_v0 }
  0x4e   :  { %598 = vmatpush1.bf16.msra.mxu0 %v3168_v14  ;;  %671 = vmatpush1.bf16.msra.mxu1 %v3170_v15  ;;  %v4443_v14 = vld [vmem:[#allocation3 + $0x28] ss:$16 sps:$4 sm:$0xff]   ;;  %v4445_v15 = vld [vmem:[#allocation3 + $0x4] ss:$16 sps:$4 sm:$0xff]  }
  0x4f   :  { %1139 = vmatprep.subr.bf16.mxu0 %v4152_v16  ;;  %1180 = vmatprep.subr.bf16.mxu1 %v4158_v17 }
  0x51   :  { %616 = vmatmul.mubr.bf16.vlgmr.msra.gmra.mxu0 %v4031_v12  ;;  %689 = vmatmul.mubr.bf16.vlgmr.msra.gmra.mxu1 %v4031_v12  ;;  %v4201_v12 = vld [vmem:[%s5590_s2 + $0xa4] ss:$16 sps:$4 sm:$0xff]  }
  0x52   :  { %1140 = vmatpush1.bf16.msra.mxu0 %v4164_v18  ;;  %1181 = vmatpush1.bf16.msra.mxu1 %v4169_v19  ;;  %5691 = vst [vmem:[#allocation8_spill] sm:$0xff] %v4201_v12 }
  0x53   :  { %1141 = vmatprep.subr.bf16.mxu0 %v4175_v20  ;;  %1182 = vmatprep.subr.bf16.mxu1 %v4181_v21 }
  0x54   :  { %625 = vmatprep.mubr.bf16.mxu0 %v5596_v0  ;;  %698 = vmatprep.mubr.bf16.mxu1 %v5596_v0 }
  0x56   :  { %1142 = vmatpush1.bf16.msra.mxu0 %v4189_v22  ;;  %1183 = vmatpush1.bf16.msra.mxu1 %v4196_v23 }
  0x57   :  { %1143 = vmatprep.subr.bf16.mxu0 %v4201_v12  ;;  %1184 = vmatprep.subr.bf16.mxu1 %v4208_v24 }
  0x59   :  { %626 = vmatmul.mubr.bf16.gmra.mxu0 %v4067_v31  ;;  %699 = vmatmul.mubr.bf16.gmra.mxu1 %v4067_v31  ;;  %v4253_v31 = vld [vmem:[%s5590_s2 + $0x64] ss:$16 sps:$4 sm:$0xff]  }
  0x5a   :  { %1144 = vmatpush1.bf16.msra.mxu0 %v4215_v25  ;;  %1185 = vmatpush1.bf16.msra.mxu1 %v4222_v26  ;;  %5699 = vst [vmem:[#allocation16_spill] sm:$0xff] %v4253_v31 }
  0x5b   :  { %1145 = vmatprep.subr.bf16.mxu0 %v4227_v27  ;;  %1186 = vmatprep.subr.bf16.mxu1 %v4233_v28 }
  0x5c   :  { %635 = vmatprep.mubr.bf16.mxu0 %v5596_v0  ;;  %708 = vmatprep.mubr.bf16.mxu1 %v5596_v0 }
  0x5e   :  { %1146 = vmatpush1.bf16.msra.mxu0 %v4241_v29  ;;  %1187 = vmatpush1.bf16.msra.mxu1 %v4248_v30 }
  0x5f   :  { %1147 = vmatprep.subr.bf16.mxu0 %v4253_v31  ;;  %1188 = vmatprep.subr.bf16.mxu1 %v4260_v32 }
  0x61   :  { %636 = vmatmul.mubr.bf16.gmra.mxu0 %v4103_v50  ;;  %709 = vmatmul.mubr.bf16.gmra.mxu1 %v4103_v50  ;;  %v978_v50 = vpack.c.bf16 %v963_v46, %v963_v46  ;;  %v4448_v46 = vld [vmem:[#allocation3 + $0xc] ss:$16 sps:$4 sm:$0xff]  }
  0x62   :  { %1148 = vmatpush1.bf16.msra.mxu0 %v4267_v33  ;;  %1189 = vmatpush1.bf16.msra.mxu1 %v4274_v34  ;;  %5719 = vst [vmem:[#allocation36_spill] sm:$0xff] %v4448_v46 }
  0x63   :  { %1149 = vmatprep.subr.bf16.mxu0 %v4279_v35  ;;  %1190 = vmatprep.subr.bf16.mxu1 %v4285_v36 }
  0x64   :  { %645 = vmatprep.mubr.bf16.mxu0 %v5596_v0  ;;  %718 = vmatprep.mubr.bf16.mxu1 %v5596_v0 }
  0x66   :  { %1150 = vmatpush1.bf16.msra.mxu0 %v4293_v37  ;;  %1191 = vmatpush1.bf16.msra.mxu1 %v4300_v38 }
  0x67   :  { %1151 = vmatprep.subr.bf16.mxu0 %v4305_v39  ;;  %1192 = vmatprep.subr.bf16.mxu1 %v4312_v40 }
  0x69   :  { %646 = vmatmul.mubr.bf16.gmra.mxu0 %v4139_v6  ;;  %719 = vmatmul.mubr.bf16.gmra.mxu1 %v4139_v6  ;;  %v4421_v6 = vld [vmem:[#allocation3 + $0x44] ss:$16 sps:$4 sm:$0xff]  }
  0x6a   :  { %1152 = vmatpush1.bf16.msra.mxu0 %v4319_v41  ;;  %1193 = vmatpush1.bf16.msra.mxu1 %v4326_v42 }
  0x6b   :  { %1153 = vmatprep.subr.bf16.mxu0 %v4331_v43  ;;  %1194 = vmatprep.subr.bf16.mxu1 %v4337_v44 }
  0x6c   :  { %1171 = vmatprep.mubr.bf16.mxu0 %v5596_v0  ;;  %1212 = vmatprep.mubr.bf16.mxu1 %v5596_v0 }
  0x6e   :  { %1154 = vmatpush1.bf16.msra.mxu0 %v4345_v45  ;;  %1195 = vmatpush1.bf16.msra.mxu1 %v4355_v47 }
  0x6f   :  { %1386 = vmatprep.subr.bf16.mxu0 %v4357_v48  ;;  %1427 = vmatprep.subr.bf16.mxu1 %v4361_v49 }
  0x71   :  { %1172 = vmatmul.mubr.bf16.vlgmr.msra.gmra.mxu0 %v978_v50  ;;  %1213 = vmatmul.mubr.bf16.vlgmr.msra.gmra.mxu1 %v978_v50  ;;  %v4451_v50 = vld [vmem:[#allocation3] ss:$16 sps:$4 sm:$0xff]  }
  0x72   :  { %1387 = vmatpush1.bf16.msra.mxu0 %v4365_v51  ;;  %1428 = vmatpush1.bf16.msra.mxu1 %v4369_v52 }
  0x73   :  { %1388 = vmatprep.subr.bf16.mxu0 %v4371_v53  ;;  %1429 = vmatprep.subr.bf16.mxu1 %v4374_v54 }
  0x74   :  { %1418 = vmatprep.mubr.bf16.mxu0 %v5596_v0  ;;  %1459 = vmatprep.mubr.bf16.mxu1 %v5596_v0  ;;  %v3228_v0 = vld [vmem:[%s5593_s5 + $0x8] sm:$0xff] }
  0x76   :  { %1389 = vmatpush1.bf16.msra.mxu0 %v4377_v55  ;;  %1430 = vmatpush1.bf16.msra.mxu1 %v4381_v56 }
  0x77   :  { %1390 = vmatprep.subr.bf16.mxu0 %v4383_v57  ;;  %1431 = vmatprep.subr.bf16.mxu1 %v4386_v58 }
  0x7a   :  { %1391 = vmatpush1.bf16.msra.mxu0 %v4391_v59  ;;  %1432 = vmatpush1.bf16.msra.mxu1 %v4395_v60 }
  0x7b   :  { %1392 = vmatprep.subr.bf16.mxu0 %v4397_v61  ;;  %1433 = vmatprep.subr.bf16.mxu1 %v4400_v62 }
  0x7e   :  { %1393 = vmatpush1.bf16.msra.mxu0 %v4403_v63  ;;  %1434 = vmatpush1.bf16.msra.mxu1 %v4407_v1 }
  0x7f   :  { %1394 = vmatprep.subr.bf16.mxu0 %v4409_v2  ;;  %1435 = vmatprep.subr.bf16.mxu1 %v4412_v3 }
  0x82   :  { %1395 = vmatpush1.bf16.msra.mxu0 %v4415_v4  ;;  %1436 = vmatpush1.bf16.msra.mxu1 %v4419_v5 }
  0x83   :  { %1396 = vmatprep.subr.bf16.mxu0 %v4421_v6  ;;  %1437 = vmatprep.subr.bf16.mxu1 %v4424_v7 }
  0x86   :  { %1397 = vmatpush1.bf16.msra.mxu0 %v4427_v8  ;;  %1438 = vmatpush1.bf16.msra.mxu1 %v4431_v9  ;;  %v1225_v9 = vpack.c.bf16 %v3228_v0, %v3228_v0  ;;  %v731_v0 = vlaneseq }
  0x87   :  { %1398 = vmatprep.subr.bf16.mxu0 %v4433_v10  ;;  %1439 = vmatprep.subr.bf16.mxu1 %v4436_v11  ;;  %v4458_v10 = vld [vmem:[#allocation3 + $0x8] ss:$16 sps:$4 sm:$0xff]  }
  0x8a   :  { %1399 = vmatpush1.bf16.msra.mxu0 %v4439_v13  ;;  %1440 = vmatpush1.bf16.msra.mxu1 %v4443_v14 }
  0x8b   :  { %1400 = vmatprep.subr.bf16.mxu0 %v4445_v15  ;;  %1441 = vmatprep.subr.bf16.mxu1 %v4448_v46  ;;  %v5720_v46 = vmov 0  }
  0x8e   :  { %1401 = vmatpush1.bf16.msra.mxu0 %v4451_v50  ;;  %1442 = vmatpush1.bf16.msra.mxu1 %v4458_v10 }
  0x8f   :  { %1534 = vmatprep.subr.bf16.mxu0 %v4152_v16  ;;  %1575 = vmatprep.subr.bf16.mxu1 %v4158_v17 }
  0x91   :  { %1419 = vmatmul.mubr.bf16.vlgmr.msra.gmra.mxu0 %v1225_v9  ;;  %1460 = vmatmul.mubr.bf16.vlgmr.msra.gmra.mxu1 %v1225_v9  ;;  %v4499_v9 = vshrl.u32 %v731_v0, 7 }
  0x92   :  { %1535 = vmatpush1.bf16.msra.mxu0 %v4164_v18  ;;  %1576 = vmatpush1.bf16.msra.mxu1 %v4169_v19 }
  0x93   :  { %1536 = vmatprep.subr.bf16.mxu0 %v4175_v20  ;;  %1577 = vmatprep.subr.bf16.mxu1 %v4181_v21 }
  0x94   :  { %1566 = vmatprep.mubr.bf16.mxu0 %v5720_v46  ;;  %1607 = vmatprep.mubr.bf16.mxu1 %v5720_v46 }
  0x96   :  { %1537 = vmatpush1.bf16.msra.mxu0 %v4189_v22  ;;  %1578 = vmatpush1.bf16.msra.mxu1 %v4196_v23 }
  0x97   :  { %1538 = vmatprep.subr.bf16.mxu0 %v4201_v12  ;;  %1579 = vmatprep.subr.bf16.mxu1 %v4208_v24 }
  0x9a   :  { %1539 = vmatpush1.bf16.msra.mxu0 %v4215_v25  ;;  %1580 = vmatpush1.bf16.msra.mxu1 %v4222_v26 }
  0x9b   :  { %1540 = vmatprep.subr.bf16.mxu0 %v4227_v27  ;;  %1581 = vmatprep.subr.bf16.mxu1 %v4233_v28 }
  0x9e   :  { %1541 = vmatpush1.bf16.msra.mxu0 %v4241_v29  ;;  %1582 = vmatpush1.bf16.msra.mxu1 %v4248_v30 }
  0x9f   :  { %1542 = vmatprep.subr.bf16.mxu0 %v4253_v31  ;;  %1583 = vmatprep.subr.bf16.mxu1 %v4260_v32 }
  0xa2   :  { %1543 = vmatpush1.bf16.msra.mxu0 %v4267_v33  ;;  %1584 = vmatpush1.bf16.msra.mxu1 %v4274_v34 }
  0xa3   :  { %1544 = vmatprep.subr.bf16.mxu0 %v4279_v35  ;;  %1585 = vmatprep.subr.bf16.mxu1 %v4285_v36 }
  0xa6   :  { %1545 = vmatpush1.bf16.msra.mxu0 %v4293_v37  ;;  %1586 = vmatpush1.bf16.msra.mxu1 %v4300_v38 }
  0xa7   :  { %1546 = vmatprep.subr.bf16.mxu0 %v4305_v39  ;;  %1587 = vmatprep.subr.bf16.mxu1 %v4312_v40  ;;  %v741_v40 = vsub.s32 2, %v4499_v9 }
  0xaa   :  { %1547 = vmatpush1.bf16.msra.mxu0 %v4319_v41  ;;  %1588 = vmatpush1.bf16.msra.mxu1 %v4326_v42  ;;  %v733_v41 = vsub.s32 0, %v4499_v9 }
  0xab   :  { %1548 = vmatprep.subr.bf16.mxu0 %v4331_v43  ;;  %1589 = vmatprep.subr.bf16.mxu1 %v4337_v44  ;;  %v4508_v44 = vld [vmem:[%s5592_s4] sm:$0xff] }
  0xac   :  { %v4515_v0 = vrot.slane %v4508_v44, %v741_v40  ;;  %v4520_v43 = vrot.slane %v4508_v44, %v733_v41 }
  0xae   :  { %1549 = vmatpush1.bf16.msra.mxu0 %v4345_v45  ;;  %1590 = vmatpush1.bf16.msra.mxu1 %v4355_v47  ;;  %v745_v47 = vsub.s32 3, %v4499_v9 }
  0xaf   :  { %1621 = vmatprep.subr.bf16.mxu0 %v4357_v48  ;;  %1662 = vmatprep.subr.bf16.mxu1 %v4361_v49  ;;  %v737_v49 = vsub.s32 1, %v4499_v9 }
  0xb0   :  { %v4525_v38 = vrot.slane %v4508_v44, %v745_v47 }
  0xb1   :  { %v4528_v36 = vrot.slane %v4508_v44, %v737_v49 }
  0xf1   :  { %v4503_v42 = vpop.f32.mrf.mxu0  ;;  %v4511_v45 = vpop.f32.mrf.mxu1 }
  0xf3   :  { %v4517_v48 = vpop.f32.mrf.mxu0  ;;  %v4522_v39 = vpop.f32.mrf.mxu1 }
  0xf5   :  { %v475_v37 = vpop.f32.mrf.mxu0  ;;  %v548_v34 = vpop.f32.mrf.mxu1 }
  0xf6   :  { %v4531_v35 = vadd.f32 %v4520_v43, %v475_v37  ;;  %v4534_v40 = vadd.f32 %v4515_v0, %v548_v34 }
  0xf7   :  { %v477_v33 = vpop.f32.mrf.mxu0  ;;  %v550_v32 = vpop.f32.mrf.mxu1 }
  0xf8   :  { %5721 = vst [vmem:[#allocation37_spill] sm:$0xff] %v4531_v35  ;;  %5722 = vst [vmem:[#allocation38_spill] sm:$0xff] %v4534_v40  ;;  %v4537_v41 = vadd.f32 %v4528_v36, %v477_v33  ;;  %v4540_v31 = vadd.f32 %v4525_v38, %v550_v32 }
  0xf9   :  { %v481_v47 = vpop.f32.mrf.mxu0  ;;  %v554_v49 = vpop.f32.mrf.mxu1 }
  0xfa   :  { %5723 = vst [vmem:[#allocation39_spill] sm:$0xff] %v4537_v41  ;;  %5724 = vst [vmem:[#allocation40_spill] sm:$0xff] %v4540_v31  ;;  %v4543_v30 = vadd.f32 %v4520_v43, %v481_v47  ;;  %v4546_v37 = vadd.f32 %v4515_v0, %v554_v49 }
  0xfb   :  { %v483_v35 = vpop.f32.mrf.mxu0  ;;  %v556_v40 = vpop.f32.mrf.mxu1 }
  0xfc   :  { %5725 = vst [vmem:[#allocation41_spill] sm:$0xff] %v4543_v30  ;;  %5726 = vst [vmem:[#allocation42_spill] sm:$0xff] %v4546_v37  ;;  %v4549_v34 = vadd.f32 %v4528_v36, %v483_v35  ;;  %v4552_v33 = vadd.f32 %v4525_v38, %v556_v40 }
  0xfd   :  { %v485_v41 = vpop.f32.mrf.mxu0  ;;  %v558_v31 = vpop.f32.mrf.mxu1 }
  0xfe   :  { %5727 = vst [vmem:[#allocation43_spill] sm:$0xff] %v4549_v34  ;;  %5728 = vst [vmem:[#allocation44_spill] sm:$0xff] %v4552_v33  ;;  %v4555_v32 = vadd.f32 %v4520_v43, %v485_v41  ;;  %v4558_v47 = vadd.f32 %v4515_v0, %v558_v31 }
  0xff   :  { %v487_v30 = vpop.f32.mrf.mxu0  ;;  %v560_v37 = vpop.f32.mrf.mxu1 }
 0x100   :  { %5729 = vst [vmem:[#allocation45_spill] sm:$0xff] %v4555_v32  ;;  %5730 = vst [vmem:[#allocation46_spill] sm:$0xff] %v4558_v47  ;;  %v4561_v49 = vadd.f32 %v4528_v36, %v487_v30  ;;  %v4564_v35 = vadd.f32 %v4525_v38, %v560_v37 }
 0x101   :  { %v491_v34 = vpop.f32.mrf.mxu0  ;;  %v564_v33 = vpop.f32.mrf.mxu1 }
 0x102   :  { %5731 = vst [vmem:[#allocation47_spill] sm:$0xff] %v4561_v49  ;;  %5732 = vst [vmem:[#allocation48_spill] sm:$0xff] %v4564_v35  ;;  %v4567_v40 = vadd.f32 %v4520_v43, %v491_v34  ;;  %v4570_v41 = vadd.f32 %v4515_v0, %v564_v33 }
 0x103   :  { %v493_v32 = vpop.f32.mrf.mxu0  ;;  %v566_v47 = vpop.f32.mrf.mxu1 }
 0x104   :  { %5733 = vst [vmem:[#allocation49_spill] sm:$0xff] %v4567_v40  ;;  %5734 = vst [vmem:[#allocation50_spill] sm:$0xff] %v4570_v41  ;;  %v4573_v31 = vadd.f32 %v4528_v36, %v493_v32  ;;  %v4576_v30 = vadd.f32 %v4525_v38, %v566_v47 }
 0x105   :  { %v495_v49 = vpop.f32.mrf.mxu0  ;;  %v568_v35 = vpop.f32.mrf.mxu1 }
 0x106   :  { %5735 = vst [vmem:[#allocation51_spill] sm:$0xff] %v4573_v31  ;;  %5736 = vst [vmem:[#allocation52_spill] sm:$0xff] %v4576_v30  ;;  %v4579_v37 = vadd.f32 %v4520_v43, %v495_v49  ;;  %v4582_v34 = vadd.f32 %v4515_v0, %v568_v35  ;;  %v749_v49 = vsub.s32 4, %v4499_v9 }
 0x107   :  { %v497_v40 = vpop.f32.mrf.mxu0  ;;  %v570_v41 = vpop.f32.mrf.mxu1 }
 0x108   :  { %5737 = vst [vmem:[#allocation53_spill] sm:$0xff] %v4579_v37  ;;  %5738 = vst [vmem:[#allocation54_spill] sm:$0xff] %v4582_v34  ;;  %v4585_v33 = vadd.f32 %v4528_v36, %v497_v40  ;;  %v4588_v32 = vadd.f32 %v4525_v38, %v570_v41  ;;  %v757_v34 = vsub.s32 6, %v4499_v9  ;;  %v753_v41 = vsub.s32 5, %v4499_v9 }
 0x109   :  { %v501_v31 = vpop.f32.mrf.mxu0  ;;  %v574_v30 = vpop.f32.mrf.mxu1 }
 0x10a   :  { %5739 = vst [vmem:[#allocation55_spill] sm:$0xff] %v4585_v33  ;;  %5740 = vst [vmem:[#allocation56_spill] sm:$0xff] %v4588_v32  ;;  %v4591_v47 = vadd.f32 %v4520_v43, %v501_v31  ;;  %v4595_v37 = vadd.f32 %v4515_v0, %v574_v30 }
 0x10b   :  { %v503_v35 = vpop.f32.mrf.mxu0  ;;  %v576_v33 = vpop.f32.mrf.mxu1 }
 0x10c   :  { %5741 = vst [vmem:[#allocation57_spill] sm:$0xff] %v4591_v47  ;;  %5742 = vst [vmem:[#allocation58_spill] sm:$0xff] %v4595_v37  ;;  %v4599_v40 = vadd.f32 %v4528_v36, %v503_v35  ;;  %v4603_v32 = vadd.f32 %v4525_v38, %v576_v33  ;;  %v761_v47 = vsub.s32 7, %v4499_v9  ;;  %v4610_v37 = vrot.slane %v4508_v44, %v749_v49 }
 0x10d   :  { %v505_v31 = vpop.f32.mrf.mxu0  ;;  %v578_v30 = vpop.f32.mrf.mxu1  ;;  %v4622_v9 = vrot.slane %v4508_v44, %v753_v41 }
 0x10e   :  { %5743 = vst [vmem:[#allocation59_spill] sm:$0xff] %v4599_v40  ;;  %5744 = vst [vmem:[#allocation60_spill] sm:$0xff] %v4603_v32  ;;  %v4607_v29 = vadd.f32 %v4520_v43, %v505_v31  ;;  %v4613_v28 = vadd.f32 %v4515_v0, %v578_v30  ;;  %v4616_v40 = vrot.slane %v4508_v44, %v757_v34 }
 0x10f   :  { %v507_v35 = vpop.f32.mrf.mxu0  ;;  %v580_v32 = vpop.f32.mrf.mxu1  ;;  %v4628_v49 = vrot.slane %v4508_v44, %v761_v47 }
 0x110   :  { %5745 = vst [vmem:[#allocation61_spill] sm:$0xff] %v4607_v29  ;;  %5746 = vst [vmem:[#allocation62_spill] sm:$0xff] %v4613_v28  ;;  %v4619_v33 = vadd.f32 %v4528_v36, %v507_v35  ;;  %v4625_v31 = vadd.f32 %v4525_v38, %v580_v32 }
 0x111   :  { %v617_v29 = vpop.f32.mrf.mxu0  ;;  %v690_v28 = vpop.f32.mrf.mxu1 }
 0x112   :  { %5747 = vst [vmem:[#allocation63_spill] sm:$0xff] %v4619_v33  ;;  %5748 = vst [vmem:[#allocation64_spill] sm:$0xff] %v4625_v31  ;;  %v4631_v30 = vadd.f32 %v4610_v37, %v617_v29  ;;  %v4634_v34 = vadd.f32 %v4616_v40, %v690_v28 }
 0x113   :  { %v619_v35 = vpop.f32.mrf.mxu0  ;;  %v692_v41 = vpop.f32.mrf.mxu1 }
 0x114   :  { %5749 = vst [vmem:[#allocation65_spill] sm:$0xff] %v4631_v30  ;;  %5750 = vst [vmem:[#allocation66_spill] sm:$0xff] %v4634_v34  ;;  %v4637_v33 = vadd.f32 %v4622_v9, %v619_v35  ;;  %v4640_v27 = vadd.f32 %v4628_v49, %v692_v41 }
 0x115   :  { %v621_v32 = vpop.f32.mrf.mxu0  ;;  %v694_v44 = vpop.f32.mrf.mxu1 }
 0x116   :  { %5751 = vst [vmem:[#allocation67_spill] sm:$0xff] %v4637_v33  ;;  %5752 = vst [vmem:[#allocation68_spill] sm:$0xff] %v4640_v27  ;;  %v4643_v31 = vadd.f32 %v4610_v37, %v621_v32  ;;  %v4646_v29 = vadd.f32 %v4616_v40, %v694_v44 }
 0x117   :  { %v623_v47 = vpop.f32.mrf.mxu0  ;;  %v696_v34 = vpop.f32.mrf.mxu1 }
 0x118   :  { %5753 = vst [vmem:[#allocation69_spill] sm:$0xff] %v4643_v31  ;;  %5754 = vst [vmem:[#allocation70_spill] sm:$0xff] %v4646_v29  ;;  %v4649_v28 = vadd.f32 %v4622_v9, %v623_v47  ;;  %v4652_v35 = vadd.f32 %v4628_v49, %v696_v34 }
 0x119   :  { %v627_v33 = vpop.f32.mrf.mxu0  ;;  %v700_v27 = vpop.f32.mrf.mxu1 }
 0x11a   :  { %5755 = vst [vmem:[#allocation71_spill] sm:$0xff] %v4649_v28  ;;  %5756 = vst [vmem:[#allocation72_spill] sm:$0xff] %v4652_v35  ;;  %v4655_v41 = vadd.f32 %v4610_v37, %v627_v33  ;;  %v4658_v32 = vadd.f32 %v4616_v40, %v700_v27 }
 0x11b   :  { %v629_v30 = vpop.f32.mrf.mxu0  ;;  %v702_v29 = vpop.f32.mrf.mxu1 }
 0x11c   :  { %5757 = vst [vmem:[#allocation73_spill] sm:$0xff] %v4655_v41  ;;  %5758 = vst [vmem:[#allocation74_spill] sm:$0xff] %v4658_v32  ;;  %v4661_v44 = vadd.f32 %v4622_v9, %v629_v30  ;;  %v4664_v47 = vadd.f32 %v4628_v49, %v702_v29 }
 0x11d   :  { %v631_v28 = vpop.f32.mrf.mxu0  ;;  %v704_v35 = vpop.f32.mrf.mxu1 }
 0x11e   :  { %5759 = vst [vmem:[#allocation75_spill] sm:$0xff] %v4661_v44  ;;  %5760 = vst [vmem:[#allocation76_spill] sm:$0xff] %v4664_v47  ;;  %v4667_v34 = vadd.f32 %v4610_v37, %v631_v28  ;;  %v4670_v33 = vadd.f32 %v4616_v40, %v704_v35 }
 0x11f   :  { %v633_v31 = vpop.f32.mrf.mxu0  ;;  %v706_v32 = vpop.f32.mrf.mxu1 }
 0x120   :  { %5761 = vst [vmem:[#allocation77_spill] sm:$0xff] %v4667_v34  ;;  %5762 = vst [vmem:[#allocation78_spill] sm:$0xff] %v4670_v33  ;;  %v4673_v27 = vadd.f32 %v4622_v9, %v633_v31  ;;  %v4676_v30 = vadd.f32 %v4628_v49, %v706_v32 }
 0x121   :  { %v637_v44 = vpop.f32.mrf.mxu0  ;;  %v710_v47 = vpop.f32.mrf.mxu1 }
 0x122   :  { %5763 = vst [vmem:[#allocation79_spill] sm:$0xff] %v4673_v27  ;;  %5764 = vst [vmem:[#allocation80_spill] sm:$0xff] %v4676_v30  ;;  %v4679_v29 = vadd.f32 %v4610_v37, %v637_v44  ;;  %v4682_v28 = vadd.f32 %v4616_v40, %v710_v47 }
 0x123   :  { %v639_v41 = vpop.f32.mrf.mxu0  ;;  %v712_v33 = vpop.f32.mrf.mxu1 }
 0x124   :  { %5765 = vst [vmem:[#allocation81_spill] sm:$0xff] %v4679_v29  ;;  %5766 = vst [vmem:[#allocation82_spill] sm:$0xff] %v4682_v28  ;;  %v4685_v35 = vadd.f32 %v4622_v9, %v639_v41  ;;  %v4688_v31 = vadd.f32 %v4628_v49, %v712_v33 }
 0x125   :  { %v641_v27 = vpop.f32.mrf.mxu0  ;;  %v714_v30 = vpop.f32.mrf.mxu1 }
 0x126   :  { %5767 = vst [vmem:[#allocation83_spill] sm:$0xff] %v4685_v35  ;;  %5768 = vst [vmem:[#allocation84_spill] sm:$0xff] %v4688_v31  ;;  %v4691_v32 = vadd.f32 %v4610_v37, %v641_v27  ;;  %v4694_v44 = vadd.f32 %v4616_v40, %v714_v30 }
 0x127   :  { %v643_v34 = vpop.f32.mrf.mxu0  ;;  %v716_v28 = vpop.f32.mrf.mxu1 }
 0x128   :  { %5769 = vst [vmem:[#allocation85_spill] sm:$0xff] %v4691_v32  ;;  %5770 = vst [vmem:[#allocation86_spill] sm:$0xff] %v4694_v44  ;;  %v4697_v47 = vadd.f32 %v4622_v9, %v643_v34  ;;  %v4700_v41 = vadd.f32 %v4628_v49, %v716_v28 }
 0x129   :  { %v647_v35 = vpop.f32.mrf.mxu0  ;;  %v720_v31 = vpop.f32.mrf.mxu1 }
 0x12a   :  { %5771 = vst [vmem:[#allocation87_spill] sm:$0xff] %v4697_v47  ;;  %5772 = vst [vmem:[#allocation88_spill] sm:$0xff] %v4700_v41  ;;  %v4703_v33 = vadd.f32 %v4610_v37, %v647_v35  ;;  %v4706_v27 = vadd.f32 %v4616_v40, %v720_v31  ;;  %v771_v41 = vadd.f32 %v4520_v43, %v4503_v42 }
 0x12b   :  { %v649_v29 = vpop.f32.mrf.mxu0  ;;  %v722_v44 = vpop.f32.mrf.mxu1  ;;  %v772_v31 = vadd.f32 %v4528_v36, %v4517_v48  ;;  %v774_v42 = vadd.f32 %v4525_v38, %v4522_v39  ;;  %v773_v36 = vadd.f32 %v4515_v0, %v4511_v45 }
 0x12c   :  { %5773 = vst [vmem:[#allocation89_spill] sm:$0xff] %v4703_v33  ;;  %5774 = vst [vmem:[#allocation90_spill] sm:$0xff] %v4706_v27  ;;  %v4709_v30 = vadd.f32 %v4622_v9, %v649_v29  ;;  %v4712_v34 = vadd.f32 %v4628_v49, %v722_v44 }
 0x12d   :  { %v651_v47 = vpop.f32.mrf.mxu0  ;;  %v724_v32 = vpop.f32.mrf.mxu1 }
 0x12e   :  { %5775 = vst [vmem:[#allocation91_spill] sm:$0xff] %v4709_v30  ;;  %5776 = vst [vmem:[#allocation92_spill] sm:$0xff] %v4712_v34 }
 0x12f   :  { %v653_v28 = vpop.f32.mrf.mxu0  ;;  %v726_v35 = vpop.f32.mrf.mxu1 }
 0x131   :  { %v1173_v33 = vpop.f32.mrf.mxu0  ;;  %v1214_v26 = vpop.f32.mrf.mxu1 }
 0x132   :  { %v1221_v27 = vadd.f32 %v1173_v33, %v771_v41  ;;  %v1223_v48 = vadd.f32 %v1214_v26, %v773_v36  ;;  %v964_v26 = vld [vmem:[%s5594_s6] sm:$0xff] }
 0x133   :  { %v1175_v25 = vpop.f32.mrf.mxu0  ;;  %v1216_v24 = vpop.f32.mrf.mxu1 }
 0x134   :  { %v3294_v29 = vmul.f32 -1.442695, %v1221_v27  ;;  %v1222_v30 = vadd.f32 %v1175_v25, %v772_v31  ;;  %v1224_v43 = vadd.f32 %v1216_v24, %v774_v42  ;;  %v832_v24 = vadd.f32 %v4622_v9, %v653_v28 }
 0x135   :  { %v1177_v12 = vpop.f32.mrf.mxu0  ;;  %v1218_v34 = vpop.f32.mrf.mxu1 }
 0x136   :  { %3456 = vpow2.f32 %v3294_v29  ;;  %v3295_v44 = vmul.f32 -1.442695, %v1222_v30  ;;  %v3296_v41 = vmul.f32 -1.442695, %v1224_v43 }
 0x137   :  { %v1178_v23 = vpop.f32.mrf.mxu0  ;;  %v1219_v22 = vpop.f32.mrf.mxu1 }
 0x138   :  { %3458 = vpow2.f32 %v3295_v44  ;;  %v831_v23 = vadd.f32 %v4610_v37, %v651_v47 }
 0x139   :  { %3460 = vtanh.f32 %v1223_v48 }
 0x13a   :  { %3462 = vpow2.f32 %v3296_v41 }
 0x143   :  { %v3457_v33 = vpop.eup %3456 }
 0x144   :  { %v1475_v27 = vadd.f32 1.0, %v3457_v33 }
 0x145   :  { %v3459_v25 = vpop.eup %3458 }
 0x146   :  { %3464 = vrcp.f32 %v1475_v27  ;;  %v1481_v12 = vadd.f32 1.0, %v3459_v25  ;;  %v3461_v22 = vpop.eup %3460  ;;  %v834_v27 = vadd.f32 %v4628_v49, %v726_v35  ;;  %v3229_v35 = vld [vmem:[%s5594_s6 + $0x8] sm:$0xff] }
 0x147   :  { %v3463_v34 = vpop.eup %3462 }
 0x148   :  { %3466 = vrcp.f32 %v1481_v12  ;;  %v1488_v36 = vadd.f32 1.0, %v3463_v34  ;;  %v833_v12 = vadd.f32 %v4616_v40, %v724_v32 }
 0x151   :  { %v1420_v30 = vpop.f32.mrf.mxu0  ;;  %v1461_v39 = vpop.f32.mrf.mxu1 }
 0x152   :  { %v1468_v38 = vadd.f32 %v1420_v30, %v831_v23  ;;  %v1470_v30 = vadd.f32 %v1461_v39, %v833_v12  ;;  %v5784_v12 = vld [vmem:[#allocation10_spill] sm:$0xff] }
 0x153   :  { %v3465_v45 = vpop.eup %3464  ;;  %v1422_v0 = vpop.f32.mrf.mxu0 }
 0x154   :  { %v1492_v31 = vmul.f32 %v3465_v45, %v3461_v22  ;;  %v3297_v29 = vmul.f32 -1.442695, %v1468_v38  ;;  %v1469_v44 = vadd.f32 %v1422_v0, %v832_v24  ;;  %v1463_v42 = vpop.f32.mrf.mxu1 }
 0x155   :  { %v3467_v43 = vpop.eup %3466  ;;  %v1424_v37 = vpop.f32.mrf.mxu0  ;;  %v1471_v25 = vadd.f32 %v1463_v42, %v834_v27  ;;  %v5780_v27 = vld [vmem:[#allocation6_spill] sm:$0xff] }
 0x156   :  { %v1491_v47 = vmul.f32 %v3467_v43, %v964_v26  ;;  %3468 = vpow2.f32 %v3297_v29  ;;  %v3298_v48 = vmul.f32 -1.442695, %v1469_v44  ;;  %v1465_v41 = vpop.f32.mrf.mxu1  ;;  %v5778_v37 = vld [vmem:[#allocation35_spill] sm:$0xff] }
 0x157   :  { %v1425_v9 = vpop.f32.mrf.mxu0  ;;  %v3299_v23 = vmul.f32 -1.442695, %v1471_v25  ;;  %v5781_v25 = vld [vmem:[#allocation7_spill] sm:$0xff] }
 0x158   :  { %v4727_v28 = vadd.f32 %v1492_v31, %v1491_v47  ;;  %3470 = vpow2.f32 %v3298_v48  ;;  %v1466_v33 = vpop.f32.mrf.mxu1  ;;  %v5779_v48 = vld [vmem:[#allocation36_spill] sm:$0xff] }
 0x159   :  { %3472 = vrcp.f32 %v1488_v36  ;;  %v5777_v36 = vld [vmem:[#allocation34_spill] sm:$0xff] }
 0x15a   :  { %3474 = vtanh.f32 %v4727_v28 }
 0x15b   :  { %3476 = vpow2.f32 %v3299_v23  ;;  %v5789_v23 = vld [vmem:[#allocation15_spill] sm:$0xff] }
 0x163   :  { %v3469_v22 = vpop.eup %3468 }
 0x164   :  { %v1499_v34 = vadd.f32 1.0, %v3469_v22  ;;  %v5790_v22 = vld [vmem:[#allocation16_spill] sm:$0xff] }
 0x165   :  { %v3471_v24 = vpop.eup %3470 }
 0x166   :  { %v3473_v38 = vpop.eup %3472  ;;  %3478 = vrcp.f32 %v1499_v34  ;;  %v1505_v45 = vadd.f32 1.0, %v3471_v24  ;;  %v5792_v34 = vld [vmem:[#allocation18_spill] sm:$0xff]  ;;  %v5793_v24 = vld [vmem:[#allocation19_spill] sm:$0xff] }
 0x167   :  { %v3475_v26 = vpop.eup %3474  ;;  %3480 = vtanh.f32 %v1470_v30  ;;  %v5791_v30 = vld [vmem:[#allocation17_spill] sm:$0xff] }
 0x168   :  { %3482 = vrcp.f32 %v1505_v45  ;;  %v1495_v0 = vmul.f32 %v3475_v26, %v3473_v38  ;;  %v3477_v40 = vpop.eup %3476  ;;  %v5794_v38 = vld [vmem:[#allocation20_spill] sm:$0xff]  ;;  %v5795_v45 = vld [vmem:[#allocation21_spill] sm:$0xff]  ;;  %v5796_v26 = vld [vmem:[#allocation22_spill] sm:$0xff] }
 0x169   :  { %v1512_v29 = vadd.f32 1.0, %v3477_v40  ;;  %v5799_v40 = vld [vmem:[#allocation25_spill] sm:$0xff] }
 0x16a   :  { %1520 = vst [vmem:[%s5595_s7] sm:$0xff] %v1495_v0  ;;  %v1533_v49 = vpack.c.bf16 %v1495_v0, %v1495_v0  ;;  %v5797_v0 = vld [vmem:[#allocation23_spill] sm:$0xff] }
 0x16b   :  { %3484 = vrcp.f32 %v1512_v29  ;;  %v5804_v29 = vld [vmem:[#allocation30_spill] sm:$0xff] }
 0x16c   :  { %1567 = vmatmul.mubr.bf16.vlgmr.msra.gmra.mxu0 %v1533_v49  ;;  %1608 = vmatmul.mubr.bf16.vlgmr.msra.gmra.mxu1 %v1533_v49  ;;  %v5798_v49 = vld [vmem:[#allocation24_spill] sm:$0xff] }
 0x16d   :  { %1622 = vmatpush1.bf16.msra.mxu0 %v4365_v51  ;;  %1663 = vmatpush1.bf16.msra.mxu1 %v4369_v52 }
 0x16e   :  { %1623 = vmatprep.subr.bf16.mxu0 %v4371_v53  ;;  %1664 = vmatprep.subr.bf16.mxu1 %v4374_v54 }
 0x16f   :  { %1653 = vmatprep.mubr.bf16.mxu0 %v5720_v46  ;;  %1694 = vmatprep.mubr.bf16.mxu1 %v5720_v46 }
 0x171   :  { %1624 = vmatpush1.bf16.msra.mxu0 %v4377_v55  ;;  %1665 = vmatpush1.bf16.msra.mxu1 %v4381_v56 }
 0x172   :  { %1625 = vmatprep.subr.bf16.mxu0 %v4383_v57  ;;  %1666 = vmatprep.subr.bf16.mxu1 %v4386_v58 }
 0x173   :  { %v3479_v32 = vpop.eup %3478 }
 0x174   :  { %v3481_v39 = vpop.eup %3480 }
 0x175   :  { %v3483_v31 = vpop.eup %3482  ;;  %1626 = vmatpush1.bf16.msra.mxu0 %v4391_v59  ;;  %1667 = vmatpush1.bf16.msra.mxu1 %v4395_v60  ;;  %v1516_v44 = vmul.f32 %v3481_v39, %v3479_v32  ;;  %v5800_v32 = vld [vmem:[#allocation26_spill] sm:$0xff]  ;;  %v5802_v39 = vld [vmem:[#allocation28_spill] sm:$0xff] }
 0x176   :  { %v1515_v42 = vmul.f32 %v3483_v31, %v3229_v35  ;;  %1627 = vmatprep.subr.bf16.mxu0 %v4397_v61  ;;  %1668 = vmatprep.subr.bf16.mxu1 %v4400_v62  ;;  %v5801_v35 = vld [vmem:[#allocation27_spill] sm:$0xff]  ;;  %v5803_v31 = vld [vmem:[#allocation29_spill] sm:$0xff] }
 0x178   :  { %v4752_v43 = vadd.f32 %v1516_v44, %v1515_v42  ;;  %v3485_v47 = vpop.eup %3484  ;;  %v5805_v44 = vld [vmem:[#allocation31_spill] sm:$0xff]  ;;  %v5806_v42 = vld [vmem:[#allocation32_spill] sm:$0xff] }
 0x179   :  { %1628 = vmatpush1.bf16.msra.mxu0 %v4403_v63  ;;  %1669 = vmatpush1.bf16.msra.mxu1 %v4407_v1 }
 0x17a   :  { %1629 = vmatprep.subr.bf16.mxu0 %v4409_v2  ;;  %1670 = vmatprep.subr.bf16.mxu1 %v4412_v3  ;;  %3486 = vtanh.f32 %v4752_v43 }
 0x17d   :  { %1630 = vmatpush1.bf16.msra.mxu0 %v4415_v4  ;;  %1671 = vmatpush1.bf16.msra.mxu1 %v4419_v5 }
 0x17e   :  { %1631 = vmatprep.subr.bf16.mxu0 %v4421_v6  ;;  %1672 = vmatprep.subr.bf16.mxu1 %v4424_v7 }
 0x181   :  { %1632 = vmatpush1.bf16.msra.mxu0 %v4427_v8  ;;  %1673 = vmatpush1.bf16.msra.mxu1 %v5777_v36 }
 0x182   :  { %1633 = vmatprep.subr.bf16.mxu0 %v5778_v37  ;;  %1674 = vmatprep.subr.bf16.mxu1 %v4436_v11 }
 0x185   :  { %1634 = vmatpush1.bf16.msra.mxu0 %v4439_v13  ;;  %1675 = vmatpush1.bf16.msra.mxu1 %v4443_v14 }
 0x186   :  { %1635 = vmatprep.subr.bf16.mxu0 %v4445_v15  ;;  %1676 = vmatprep.subr.bf16.mxu1 %v5779_v48 }
 0x187   :  { %v3487_v41 = vpop.eup %3486 }
 0x188   :  { %v1519_v9 = vmul.f32 %v3487_v41, %v3485_v47  ;;  %v5807_v47 = vld [vmem:[#allocation33_spill] sm:$0xff] }
 0x189   :  { %1636 = vmatpush1.bf16.msra.mxu0 %v4451_v50  ;;  %1677 = vmatpush1.bf16.msra.mxu1 %v4458_v10 }
 0x18a   :  { %3300 = vst [vmem:[%s5595_s7 + $0x78] sm:$0xff] %v1519_v9  ;;  %v1620_v33 = vpack.c.bf16 %v1519_v9, %v1519_v9  ;;  %1770 = vmatprep.subr.bf16.mxu0 %v4152_v16  ;;  %1811 = vmatprep.subr.bf16.mxu1 %v4158_v17  ;;  %v5782_v16 = vld [vmem:[#allocation8_spill] sm:$0xff]  ;;  %v5783_v17 = vld [vmem:[#allocation9_spill] sm:$0xff] }
 0x18c   :  { %1654 = vmatmul.mubr.bf16.vlgmr.msra.gmra.mxu0 %v1620_v33  ;;  %1695 = vmatmul.mubr.bf16.vlgmr.msra.gmra.mxu1 %v1620_v33  ;;  %v5808_v33 = vld [vmem:[#allocation37_spill] sm:$0xff] }
 0x18d   :  { %1771 = vmatpush1.bf16.msra.mxu0 %v4164_v18  ;;  %1812 = vmatpush1.bf16.msra.mxu1 %v4169_v19  ;;  %v5785_v18 = vld [vmem:[#allocation11_spill] sm:$0xff]  ;;  %v5786_v19 = vld [vmem:[#allocation12_spill] sm:$0xff] }
 0x18e   :  { %1772 = vmatprep.subr.bf16.mxu0 %v4175_v20  ;;  %1813 = vmatprep.subr.bf16.mxu1 %v4181_v21  ;;  %v5787_v20 = vld [vmem:[#allocation13_spill] sm:$0xff]  ;;  %v5788_v21 = vld [vmem:[#allocation14_spill] sm:$0xff] }
 0x18f   :  { %1802 = vmatprep.mubr.bf16.mxu0 %v5720_v46  ;;  %1843 = vmatprep.mubr.bf16.mxu1 %v5720_v46 }
 0x191   :  { %1773 = vmatpush1.bf16.msra.mxu0 %v5780_v27  ;;  %1814 = vmatpush1.bf16.msra.mxu1 %v5781_v25 }
 0x192   :  { %1774 = vmatprep.subr.bf16.mxu0 %v5782_v16  ;;  %1815 = vmatprep.subr.bf16.mxu1 %v5783_v17 }
 0x195   :  { %1775 = vmatpush1.bf16.msra.mxu0 %v5784_v12  ;;  %1816 = vmatpush1.bf16.msra.mxu1 %v5785_v18  ;;  %v5809_v12 = vld [vmem:[#allocation39_spill] sm:$0xff] }
 0x196   :  { %1776 = vmatprep.subr.bf16.mxu0 %v5786_v19  ;;  %1817 = vmatprep.subr.bf16.mxu1 %v5787_v20 }
 0x199   :  { %1777 = vmatpush1.bf16.msra.mxu0 %v5788_v21  ;;  %1818 = vmatpush1.bf16.msra.mxu1 %v5789_v23 }
 0x19a   :  { %1778 = vmatprep.subr.bf16.mxu0 %v5790_v22  ;;  %1819 = vmatprep.subr.bf16.mxu1 %v5791_v30  ;;  %v5810_v30 = vld [vmem:[#allocation40_spill] sm:$0xff] }
 0x19d   :  { %1779 = vmatpush1.bf16.msra.mxu0 %v5792_v34  ;;  %1820 = vmatpush1.bf16.msra.mxu1 %v5793_v24  ;;  %v5811_v24 = vld [vmem:[#allocation38_spill] sm:$0xff] }
 0x19e   :  { %1780 = vmatprep.subr.bf16.mxu0 %v5794_v38  ;;  %1821 = vmatprep.subr.bf16.mxu1 %v5795_v45 }
 0x1a1   :  { %1781 = vmatpush1.bf16.msra.mxu0 %v5796_v26  ;;  %1822 = vmatpush1.bf16.msra.mxu1 %v5797_v0 }
 0x1a2   :  { %1782 = vmatprep.subr.bf16.mxu0 %v5798_v49  ;;  %1823 = vmatprep.subr.bf16.mxu1 %v5799_v40 }
 0x1a5   :  { %1783 = vmatpush1.bf16.msra.mxu0 %v5800_v32  ;;  %1824 = vmatpush1.bf16.msra.mxu1 %v5801_v35 }
 0x1a6   :  { %1784 = vmatprep.subr.bf16.mxu0 %v5802_v39  ;;  %1825 = vmatprep.subr.bf16.mxu1 %v5803_v31 }
 0x1a9   :  { %1785 = vmatpush1.bf16.msra.mxu0 %v5804_v29  ;;  %1826 = vmatpush1.bf16.msra.mxu1 %v5805_v44  ;;  %v5812_v29 = vld [vmem:[#allocation89_spill] sm:$0xff] }
 0x1aa   :  { %1857 = vmatprep.subr.bf16.mxu0 %v5806_v42  ;;  %1898 = vmatprep.subr.bf16.mxu1 %v5807_v47 }
 0x22c   :  { %v1568_v41 = vpop.f32.mrf.mxu0  ;;  %v1609_v9 = vpop.f32.mrf.mxu1 }
 0x22d   :  { %v1616_v27 = vadd.f32 %v1568_v41, %v5808_v33  ;;  %v1618_v38 = vadd.f32 %v1609_v9, %v5811_v24  ;;  %v5815_v24 = vld [vmem:[#allocation90_spill] sm:$0xff] }
 0x22e   :  { %v1570_v25 = vpop.f32.mrf.mxu0  ;;  %v1611_v16 = vpop.f32.mrf.mxu1 }
 0x22f   :  { %v3301_v17 = vmul.f32 -1.442695, %v1616_v27  ;;  %v1617_v18 = vadd.f32 %v1570_v25, %v5809_v12  ;;  %v1619_v34 = vadd.f32 %v1611_v16, %v5810_v30  ;;  %v5813_v27 = vld [vmem:[#allocation91_spill] sm:$0xff]  ;;  %v5814_v30 = vld [vmem:[#allocation92_spill] sm:$0xff] }
 0x230   :  { %v1572_v19 = vpop.f32.mrf.mxu0  ;;  %v1613_v20 = vpop.f32.mrf.mxu1 }
 0x231   :  { %3488 = vpow2.f32 %v3301_v17  ;;  %v3302_v21 = vmul.f32 -1.442695, %v1617_v18  ;;  %v3303_v45 = vmul.f32 -1.442695, %v1619_v34 }
 0x232   :  { %v1573_v23 = vpop.f32.mrf.mxu0  ;;  %v1614_v22 = vpop.f32.mrf.mxu1 }
 0x233   :  { %3490 = vpow2.f32 %v3302_v21 }
 0x234   :  { %3492 = vtanh.f32 %v1618_v38 }
 0x235   :  { %3494 = vpow2.f32 %v3303_v45 }
 0x23e   :  { %v3489_v26 = vpop.eup %3488 }
 0x23f   :  { %v1710_v0 = vadd.f32 1.0, %v3489_v26 }
 0x240   :  { %v3491_v49 = vpop.eup %3490 }
 0x241   :  { %3496 = vrcp.f32 %v1710_v0  ;;  %v1716_v40 = vadd.f32 1.0, %v3491_v49  ;;  %v3493_v32 = vpop.eup %3492 }
 0x242   :  { %v3495_v31 = vpop.eup %3494 }
 0x243   :  { %3498 = vrcp.f32 %v1716_v40  ;;  %v1723_v17 = vadd.f32 1.0, %v3495_v31 }
 0x24c   :  { %v1655_v35 = vpop.f32.mrf.mxu0  ;;  %v1696_v39 = vpop.f32.mrf.mxu1 }
 0x24d   :  { %v1703_v44 = vadd.f32 %v1655_v35, %v5812_v29  ;;  %v1705_v38 = vadd.f32 %v1696_v39, %v5815_v24 }
 0x24e   :  { %v3497_v42 = vpop.eup %3496  ;;  %v1657_v47 = vpop.f32.mrf.mxu0 }
 0x24f   :  { %v1698_v41 = vpop.f32.mrf.mxu1  ;;  %v1727_v33 = vmul.f32 %v3497_v42, %v3493_v32  ;;  %v3304_v9 = vmul.f32 -1.442695, %v1703_v44  ;;  %v1704_v25 = vadd.f32 %v1657_v47, %v5813_v27  ;;  %v5003_v42 = vld [vmem:[%s5590_s2 + $0x40] ss:$16 sps:$4 sm:$0xff]   ;;  %v5009_v47 = vld [vmem:[%s5590_s2 + $0x48] ss:$16 sps:$4 sm:$0xff]  }
 0x250   :  { %v3499_v16 = vpop.eup %3498  ;;  %v1659_v12 = vpop.f32.mrf.mxu0  ;;  %v1706_v34 = vadd.f32 %v1698_v41, %v5814_v30  ;;  %5829 = vst [vmem:[#allocation16_spill] sm:$0xff] %v5003_v42  ;;  %5830 = vst [vmem:[#allocation17_spill] sm:$0xff] %v5009_v47  ;;  %v5015_v41 = vld [vmem:[%s5590_s2 + $0x24] ss:$16 sps:$4 sm:$0xff]   ;;  %v5033_v27 = vld [vmem:[%s5590_s2 + $0x28] ss:$16 sps:$4 sm:$0xff]  }
 0x251   :  { %v1700_v18 = vpop.f32.mrf.mxu1  ;;  %v1726_v19 = vmul.f32 %v3499_v16, %v4727_v28  ;;  %3500 = vpow2.f32 %v3304_v9  ;;  %v3305_v20 = vmul.f32 -1.442695, %v1704_v25  ;;  %5831 = vst [vmem:[#allocation18_spill] sm:$0xff] %v5015_v41  ;;  %v5027_v9 = vld [vmem:[%s5590_s2 + $0x20] ss:$16 sps:$4 sm:$0xff]   ;;  %5834 = vst [vmem:[#allocation21_spill] sm:$0xff] %v5033_v27 }
 0x252   :  { %v1660_v21 = vpop.f32.mrf.mxu0  ;;  %v3306_v45 = vmul.f32 -1.442695, %v1706_v34  ;;  %5833 = vst [vmem:[#allocation20_spill] sm:$0xff] %v5027_v9  ;;  %v5039_v25 = vld [vmem:[%s5590_s2 + $0x4] ss:$16 sps:$4 sm:$0xff]  }
 0x253   :  { %v1701_v23 = vpop.f32.mrf.mxu1  ;;  %v4819_v22 = vadd.f32 %v1727_v33, %v1726_v19  ;;  %3502 = vpow2.f32 %v3305_v20  ;;  %v5021_v33 = vld [vmem:[%s5590_s2 + $0x2c] ss:$16 sps:$4 sm:$0xff]   ;;  %5835 = vst [vmem:[#allocation22_spill] sm:$0xff] %v5039_v25  ;;  %v5057_v12 = vld [vmem:[%s5590_s2 + $0x8] ss:$16 sps:$4 sm:$0xff]  }
 0x254   :  { %3504 = vrcp.f32 %v1723_v17  ;;  %5832 = vst [vmem:[#allocation19_spill] sm:$0xff] %v5021_v33  ;;  %v5045_v16 = vld [vmem:[%s5590_s2 + $0xc] ss:$16 sps:$4 sm:$0xff]   ;;  %v5051_v17 = vld [vmem:[%s5590_s2] ss:$16 sps:$4 sm:$0xff]   ;;  %5838 = vst [vmem:[#allocation25_spill] sm:$0xff] %v5057_v12 }
 0x255   :  { %3506 = vtanh.f32 %v4819_v22  ;;  %5836 = vst [vmem:[#allocation23_spill] sm:$0xff] %v5045_v16  ;;  %5837 = vst [vmem:[#allocation24_spill] sm:$0xff] %v5051_v17  ;;  %v5060_v18 = vld [vmem:[#allocation3 + $0xe4] ss:$16 sps:$4 sm:$0xff]   ;;  %v5063_v19 = vld [vmem:[#allocation3 + $0xec] ss:$16 sps:$4 sm:$0xff]  }
 0x256   :  { %3508 = vtanh.f32 %v1705_v38  ;;  %5839 = vst [vmem:[#allocation26_spill] sm:$0xff] %v5060_v18  ;;  %5840 = vst [vmem:[#allocation27_spill] sm:$0xff] %v5063_v19  ;;  %v5841_v23 = vld [vmem:[#allocation41_spill] sm:$0xff] }
 0x257   :  { %3510 = vpow2.f32 %v3306_v45  ;;  %v5842_v45 = vld [vmem:[#allocation43_spill] sm:$0xff] }
 0x25e   :  { %v3501_v26 = vpop.eup %3500 }
 0x25f   :  { %v1734_v0 = vadd.f32 1.0, %v3501_v26 }
 0x260   :  { %v3503_v49 = vpop.eup %3502 }
 0x261   :  { %v3505_v28 = vpop.eup %3504  ;;  %3512 = vrcp.f32 %v1734_v0  ;;  %v1740_v40 = vadd.f32 1.0, %v3503_v49 }
 0x262   :  { %v3507_v32 = vpop.eup %3506 }
 0x263   :  { %3514 = vrcp.f32 %v1740_v40  ;;  %v1730_v35 = vmul.f32 %v3507_v32, %v3505_v28  ;;  %v3509_v39 = vpop.eup %3508 }
 0x264   :  { %v3511_v29 = vpop.eup %3510 }
 0x265   :  { %3307 = vst [vmem:[%s5595_s7 + $0x10] sm:$0xff] %v1730_v35  ;;  %v1769_v31 = vpack.c.bf16 %v1730_v35, %v1730_v35  ;;  %v5843_v35 = vld [vmem:[#allocation44_spill] sm:$0xff] }
 0x267   :  { %1803 = vmatmul.mubr.bf16.vlgmr.msra.gmra.mxu0 %v1769_v31  ;;  %1844 = vmatmul.mubr.bf16.vlgmr.msra.gmra.mxu1 %v1769_v31 }
 0x268   :  { %1858 = vmatpush1.bf16.msra.mxu0 %v4365_v51  ;;  %1899 = vmatpush1.bf16.msra.mxu1 %v4369_v52 }
 0x269   :  { %1859 = vmatprep.subr.bf16.mxu0 %v4371_v53  ;;  %1900 = vmatprep.subr.bf16.mxu1 %v4374_v54  ;;  %v1747_v53 = vadd.f32 1.0, %v3511_v29 }
 0x26a   :  { %1889 = vmatprep.mubr.bf16.mxu0 %v5720_v46  ;;  %1930 = vmatprep.mubr.bf16.mxu1 %v5720_v46 }
 0x26b   :  { %3516 = vrcp.f32 %v1747_v53 }
 0x26c   :  { %1860 = vmatpush1.bf16.msra.mxu0 %v4377_v55  ;;  %1901 = vmatpush1.bf16.msra.mxu1 %v4381_v56 }
 0x26d   :  { %1861 = vmatprep.subr.bf16.mxu0 %v4383_v57  ;;  %1902 = vmatprep.subr.bf16.mxu1 %v4386_v58 }
 0x26e   :  { %v3513_v51 = vpop.eup %3512 }
 0x26f   :  { %v1751_v52 = vmul.f32 %v3513_v51, %v3509_v39  ;;  %v5844_v39 = vld [vmem:[#allocation42_spill] sm:$0xff] }
 0x270   :  { %v3515_v44 = vpop.eup %3514  ;;  %1862 = vmatpush1.bf16.msra.mxu0 %v4391_v59  ;;  %1903 = vmatpush1.bf16.msra.mxu1 %v4395_v60  ;;  %v4869_v60 = vld [vmem:[%s5590_s2 + $0xe4] ss:$16 sps:$4 sm:$0xff]  }
 0x271   :  { %v1750_v54 = vmul.f32 %v3515_v44, %v4752_v43  ;;  %1863 = vmatprep.subr.bf16.mxu0 %v4397_v61  ;;  %1904 = vmatprep.subr.bf16.mxu1 %v4400_v62  ;;  %v4875_v61 = vld [vmem:[%s5590_s2 + $0xec] ss:$16 sps:$4 sm:$0xff]   ;;  %v4881_v62 = vld [vmem:[%s5590_s2 + $0xe0] ss:$16 sps:$4 sm:$0xff]  }
 0x272   :  { %v4979_v43 = vld [vmem:[%s5590_s2 + $0x60] ss:$16 sps:$4 sm:$0xff]  }
 0x273   :  { %v4842_v55 = vadd.f32 %v1751_v52, %v1750_v54  ;;  %5825 = vst [vmem:[#allocation12_spill] sm:$0xff] %v4979_v43 }
 0x274   :  { %1864 = vmatpush1.bf16.msra.mxu0 %v4403_v63  ;;  %1905 = vmatpush1.bf16.msra.mxu1 %v4407_v1  ;;  %v4887_v63 = vld [vmem:[%s5590_s2 + $0xe8] ss:$16 sps:$4 sm:$0xff]   ;;  %v4893_v1 = vld [vmem:[%s5590_s2 + $0xc4] ss:$16 sps:$4 sm:$0xff]  }
 0x275   :  { %1865 = vmatprep.subr.bf16.mxu0 %v4409_v2  ;;  %1906 = vmatprep.subr.bf16.mxu1 %v4412_v3  ;;  %3518 = vtanh.f32 %v4842_v55  ;;  %v4899_v2 = vld [vmem:[%s5590_s2 + $0xcc] ss:$16 sps:$4 sm:$0xff]   ;;  %v4907_v3 = vld [vmem:[%s5590_s2 + $0xc0] ss:$16 sps:$4 sm:$0xff]  }
 0x278   :  { %1866 = vmatpush1.bf16.msra.mxu0 %v4415_v4  ;;  %1907 = vmatpush1.bf16.msra.mxu1 %v4419_v5  ;;  %v3517_v56 = vpop.eup %3516  ;;  %v4913_v4 = vld [vmem:[%s5590_s2 + $0xc8] ss:$16 sps:$4 sm:$0xff]   ;;  %v4919_v5 = vld [vmem:[%s5590_s2 + $0xa4] ss:$16 sps:$4 sm:$0xff]  }
 0x279   :  { %1867 = vmatprep.subr.bf16.mxu0 %v4421_v6  ;;  %1908 = vmatprep.subr.bf16.mxu1 %v4424_v7  ;;  %v4925_v6 = vld [vmem:[%s5590_s2 + $0xac] ss:$16 sps:$4 sm:$0xff]   ;;  %v4931_v7 = vld [vmem:[%s5590_s2 + $0xa0] ss:$16 sps:$4 sm:$0xff]  }
 0x27a   :  { %5816 = vst [vmem:[#allocation34_spill] sm:$0xff] %v4925_v6  ;;  %5817 = vst [vmem:[#allocation35_spill] sm:$0xff] %v4931_v7 }
 0x27c   :  { %1868 = vmatpush1.bf16.msra.mxu0 %v4427_v8  ;;  %1909 = vmatpush1.bf16.msra.mxu1 %v5777_v36  ;;  %v4937_v8 = vld [vmem:[%s5590_s2 + $0xa8] ss:$16 sps:$4 sm:$0xff]  }
 0x27d   :  { %1869 = vmatprep.subr.bf16.mxu0 %v5778_v37  ;;  %1910 = vmatprep.subr.bf16.mxu1 %v4436_v11  ;;  %5818 = vst [vmem:[#allocation36_spill] sm:$0xff] %v4937_v8  ;;  %v4949_v11 = vld [vmem:[%s5590_s2 + $0x8c] ss:$16 sps:$4 sm:$0xff]   ;;  %v4985_v36 = vld [vmem:[%s5590_s2 + $0x68] ss:$16 sps:$4 sm:$0xff]  }
 0x27e   :  { %5820 = vst [vmem:[#allocation7_spill] sm:$0xff] %v4949_v11  ;;  %5826 = vst [vmem:[#allocation13_spill] sm:$0xff] %v4985_v36  ;;  %v4991_v37 = vld [vmem:[%s5590_s2 + $0x44] ss:$16 sps:$4 sm:$0xff]  }
 0x27f   :  { %5827 = vst [vmem:[#allocation14_spill] sm:$0xff] %v4991_v37 }
 0x280   :  { %1870 = vmatpush1.bf16.msra.mxu0 %v4439_v13  ;;  %1911 = vmatpush1.bf16.msra.mxu1 %v4443_v14  ;;  %v4955_v13 = vld [vmem:[%s5590_s2 + $0x80] ss:$16 sps:$4 sm:$0xff]   ;;  %v4961_v14 = vld [vmem:[%s5590_s2 + $0x88] ss:$16 sps:$4 sm:$0xff]  }
 0x281   :  { %1871 = vmatprep.subr.bf16.mxu0 %v4445_v15  ;;  %1912 = vmatprep.subr.bf16.mxu1 %v5779_v48  ;;  %5821 = vst [vmem:[#allocation8_spill] sm:$0xff] %v4955_v13  ;;  %5822 = vst [vmem:[#allocation9_spill] sm:$0xff] %v4961_v14  ;;  %v4967_v15 = vld [vmem:[%s5590_s2 + $0x64] ss:$16 sps:$4 sm:$0xff]   ;;  %v4997_v48 = vld [vmem:[%s5590_s2 + $0x4c] ss:$16 sps:$4 sm:$0xff]  }
 0x282   :  { %v3519_v57 = vpop.eup %3518  ;;  %5823 = vst [vmem:[#allocation10_spill] sm:$0xff] %v4967_v15  ;;  %5828 = vst [vmem:[#allocation15_spill] sm:$0xff] %v4997_v48 }
 0x283   :  { %v1754_v58 = vmul.f32 %v3519_v57, %v3517_v56 }
 0x284   :  { %1872 = vmatpush1.bf16.msra.mxu0 %v4451_v50  ;;  %1913 = vmatpush1.bf16.msra.mxu1 %v4458_v10  ;;  %v4943_v10 = vld [vmem:[%s5590_s2 + $0x84] ss:$16 sps:$4 sm:$0xff]   ;;  %v4973_v50 = vld [vmem:[%s5590_s2 + $0x6c] ss:$16 sps:$4 sm:$0xff]  }
 0x285   :  { %3308 = vst [vmem:[%s5595_s7 + $0x68] sm:$0xff] %v1754_v58  ;;  %v1856_v59 = vpack.c.bf16 %v1754_v58, %v1754_v58  ;;  %2006 = vmatprep.subr.bf16.mxu0 %v4869_v60  ;;  %2047 = vmatprep.subr.bf16.mxu1 %v4875_v61  ;;  %5819 = vst [vmem:[#allocation6_spill] sm:$0xff] %v4943_v10 }
 0x286   :  { %5824 = vst [vmem:[#allocation11_spill] sm:$0xff] %v4973_v50 }
 0x287   :  { %1890 = vmatmul.mubr.bf16.vlgmr.msra.gmra.mxu0 %v1856_v59  ;;  %1931 = vmatmul.mubr.bf16.vlgmr.msra.gmra.mxu1 %v1856_v59 }
 0x288   :  { %2007 = vmatpush1.bf16.msra.mxu0 %v4881_v62  ;;  %2048 = vmatpush1.bf16.msra.mxu1 %v4887_v63 }
 0x289   :  { %2008 = vmatprep.subr.bf16.mxu0 %v4893_v1  ;;  %2049 = vmatprep.subr.bf16.mxu1 %v4899_v2 }
 0x28a   :  { %2038 = vmatprep.mubr.bf16.mxu0 %v5720_v46  ;;  %2079 = vmatprep.mubr.bf16.mxu1 %v5720_v46 }
 0x28c   :  { %2009 = vmatpush1.bf16.msra.mxu0 %v4907_v3  ;;  %2050 = vmatpush1.bf16.msra.mxu1 %v4913_v4 }
 0x28d   :  { %2010 = vmatprep.subr.bf16.mxu0 %v4919_v5  ;;  %2051 = vmatprep.subr.bf16.mxu1 %v4925_v6 }
 0x290   :  { %2011 = vmatpush1.bf16.msra.mxu0 %v4931_v7  ;;  %2052 = vmatpush1.bf16.msra.mxu1 %v4937_v8 }
 0x291   :  { %2012 = vmatprep.subr.bf16.mxu0 %v4943_v10  ;;  %2053 = vmatprep.subr.bf16.mxu1 %v4949_v11 }
 0x294   :  { %2013 = vmatpush1.bf16.msra.mxu0 %v4955_v13  ;;  %2054 = vmatpush1.bf16.msra.mxu1 %v4961_v14 }
 0x295   :  { %2014 = vmatprep.subr.bf16.mxu0 %v4967_v15  ;;  %2055 = vmatprep.subr.bf16.mxu1 %v4973_v50 }
 0x298   :  { %2015 = vmatpush1.bf16.msra.mxu0 %v4979_v43  ;;  %2056 = vmatpush1.bf16.msra.mxu1 %v4985_v36 }
 0x299   :  { %2016 = vmatprep.subr.bf16.mxu0 %v4991_v37  ;;  %2057 = vmatprep.subr.bf16.mxu1 %v4997_v48 }
 0x29c   :  { %2017 = vmatpush1.bf16.msra.mxu0 %v5003_v42  ;;  %2058 = vmatpush1.bf16.msra.mxu1 %v5009_v47 }
 0x29d   :  { %2018 = vmatprep.subr.bf16.mxu0 %v5015_v41  ;;  %2059 = vmatprep.subr.bf16.mxu1 %v5021_v33 }
 0x2a0   :  { %2019 = vmatpush1.bf16.msra.mxu0 %v5027_v9  ;;  %2060 = vmatpush1.bf16.msra.mxu1 %v5033_v27 }
 0x2a1   :  { %2020 = vmatprep.subr.bf16.mxu0 %v5039_v25  ;;  %2061 = vmatprep.subr.bf16.mxu1 %v5045_v16 }
 0x2a4   :  { %2021 = vmatpush1.bf16.msra.mxu0 %v5051_v17  ;;  %2062 = vmatpush1.bf16.msra.mxu1 %v5057_v12 }
 0x2a5   :  { %2093 = vmatprep.subr.bf16.mxu0 %v5060_v18  ;;  %2134 = vmatprep.subr.bf16.mxu1 %v5063_v19 }
 0x327   :  { %v1804_v20 = vpop.f32.mrf.mxu0  ;;  %v1845_v21 = vpop.f32.mrf.mxu1 }
 0x328   :  { %v1852_v30 = vadd.f32 %v1804_v20, %v5841_v23  ;;  %v1854_v29 = vadd.f32 %v1845_v21, %v5844_v39  ;;  %v5845_v20 = vld [vmem:[#allocation85_spill] sm:$0xff] }
 0x329   :  { %v1806_v34 = vpop.f32.mrf.mxu0  ;;  %v1847_v24 = vpop.f32.mrf.mxu1 }
 0x32a   :  { %v3309_v38 = vmul.f32 -1.442695, %v1852_v30  ;;  %v1853_v26 = vadd.f32 %v1806_v34, %v5842_v45  ;;  %v1855_v31 = vadd.f32 %v1847_v24, %v5843_v35  ;;  %v5846_v45 = vld [vmem:[#allocation87_spill] sm:$0xff] }
 0x32b   :  { %v1808_v0 = vpop.f32.mrf.mxu0  ;;  %v1849_v49 = vpop.f32.mrf.mxu1 }
 0x32c   :  { %3520 = vpow2.f32 %v3309_v38  ;;  %v3310_v28 = vmul.f32 -1.442695, %v1853_v26  ;;  %v3311_v51 = vmul.f32 -1.442695, %v1855_v31 }
 0x32d   :  { %v1809_v40 = vpop.f32.mrf.mxu0  ;;  %v1850_v32 = vpop.f32.mrf.mxu1 }
 0x32e   :  { %3522 = vpow2.f32 %v3310_v28 }
 0x32f   :  { %3524 = vtanh.f32 %v1854_v29 }
 0x330   :  { %3526 = vpow2.f32 %v3311_v51  ;;  %v5847_v51 = vld [vmem:[#allocation88_spill] sm:$0xff] }
 0x339   :  { %v3521_v52 = vpop.eup %3520 }
 0x33a   :  { %v1946_v44 = vadd.f32 1.0, %v3521_v52 }
 0x33b   :  { %v3523_v53 = vpop.eup %3522 }
 0x33c   :  { %3528 = vrcp.f32 %v1946_v44  ;;  %v1952_v54 = vadd.f32 1.0, %v3523_v53  ;;  %v3525_v56 = vpop.eup %3524  ;;  %v5848_v44 = vld [vmem:[#allocation86_spill] sm:$0xff] }
 0x33d   :  { %v3527_v59 = vpop.eup %3526 }
 0x33e   :  { %3530 = vrcp.f32 %v1952_v54  ;;  %v1959_v49 = vadd.f32 1.0, %v3527_v59 }
 0x347   :  { %v1891_v57 = vpop.f32.mrf.mxu0  ;;  %v1932_v58 = vpop.f32.mrf.mxu1 }
 0x348   :  { %v1939_v23 = vadd.f32 %v1891_v57, %v5845_v20  ;;  %v1941_v53 = vadd.f32 %v1932_v58, %v5848_v44  ;;  %v5081_v58 = vld [vmem:[#allocation3 + $0xe0] ss:$16 sps:$4 sm:$0xff]  }
 0x349   :  { %v3529_v30 = vpop.eup %3528  ;;  %v1893_v34 = vpop.f32.mrf.mxu0 }
 0x34a   :  { %v1934_v24 = vpop.f32.mrf.mxu1  ;;  %v1963_v38 = vmul.f32 %v3529_v30, %v3525_v56  ;;  %v3312_v21 = vmul.f32 -1.442695, %v1939_v23  ;;  %v1940_v26 = vadd.f32 %v1893_v34, %v5846_v45 }
 0x34b   :  { %v3531_v0 = vpop.eup %3530  ;;  %v1895_v28 = vpop.f32.mrf.mxu0  ;;  %v1942_v52 = vadd.f32 %v1934_v24, %v5847_v51  ;;  %v5084_v24 = vld [vmem:[#allocation3 + $0xe8] ss:$16 sps:$4 sm:$0xff]   ;;  %v5107_v51 = vld [vmem:[#allocation3 + $0xa0] ss:$16 sps:$4 sm:$0xff]  }
 0x34c   :  { %v1936_v40 = vpop.f32.mrf.mxu1  ;;  %v1962_v32 = vmul.f32 %v3531_v0, %v4819_v22  ;;  %3532 = vpow2.f32 %v3312_v21  ;;  %v3313_v35 = vmul.f32 -1.442695, %v1940_v26  ;;  %v5090_v21 = vld [vmem:[#allocation3 + $0xcc] ss:$16 sps:$4 sm:$0xff]   ;;  %v5095_v26 = vld [vmem:[#allocation3 + $0xc0] ss:$16 sps:$4 sm:$0xff]  }
 0x34d   :  { %v1896_v31 = vpop.f32.mrf.mxu0  ;;  %v3314_v54 = vmul.f32 -1.442695, %v1942_v52  ;;  %v5098_v0 = vld [vmem:[#allocation3 + $0xc8] ss:$16 sps:$4 sm:$0xff]   ;;  %v5101_v28 = vld [vmem:[#allocation3 + $0xa4] ss:$16 sps:$4 sm:$0xff]  }
 0x34e   :  { %v1937_v39 = vpop.f32.mrf.mxu1  ;;  %v5073_v29 = vadd.f32 %v1963_v38, %v1962_v32  ;;  %3534 = vpow2.f32 %v3313_v35  ;;  %v5087_v38 = vld [vmem:[#allocation3 + $0xc4] ss:$16 sps:$4 sm:$0xff]   ;;  %v5104_v40 = vld [vmem:[#allocation3 + $0xac] ss:$16 sps:$4 sm:$0xff]   ;;  %v5110_v52 = vld [vmem:[#allocation3 + $0xa8] ss:$16 sps:$4 sm:$0xff]  }
 0x34f   :  { %3536 = vrcp.f32 %v1959_v49 }
 0x350   :  { %3538 = vtanh.f32 %v5073_v29 }
 0x351   :  { %3540 = vtanh.f32 %v1941_v53  ;;  %v5114_v53 = vld [vmem:[#allocation3 + $0x84] ss:$16 sps:$4 sm:$0xff]  }
 0x352   :  { %3542 = vpow2.f32 %v3314_v54  ;;  %v5117_v54 = vld [vmem:[#allocation3 + $0x8c] ss:$16 sps:$4 sm:$0xff]  }
 0x359   :  { %v3533_v56 = vpop.eup %3532 }
 0x35a   :  { %v1970_v57 = vadd.f32 1.0, %v3533_v56 }
 0x35b   :  { %v3535_v59 = vpop.eup %3534 }
 0x35c   :  { %v3537_v22 = vpop.eup %3536  ;;  %3544 = vrcp.f32 %v1970_v57  ;;  %v1976_v20 = vadd.f32 1.0, %v3535_v59  ;;  %v5122_v57 = vld [vmem:[#allocation3 + $0x80] ss:$16 sps:$4 sm:$0xff]   ;;  %v5125_v59 = vld [vmem:[#allocation3 + $0x88] ss:$16 sps:$4 sm:$0xff]  }
 0x35d   :  { %v3539_v23 = vpop.eup %3538 }
 0x35e   :  { %3546 = vrcp.f32 %v1976_v20  ;;  %v1966_v30 = vmul.f32 %v3539_v23, %v3537_v22  ;;  %v3541_v45 = vpop.eup %3540  ;;  %v5131_v22 = vld [vmem:[#allocation3 + $0x6c] ss:$16 sps:$4 sm:$0xff]   ;;  %v5135_v20 = vld [vmem:[#allocation3 + $0x60] ss:$16 sps:$4 sm:$0xff]   ;;  %v5138_v23 = vld [vmem:[#allocation3 + $0x68] ss:$16 sps:$4 sm:$0xff]  }
 0x35f   :  { %v3543_v49 = vpop.eup %3542 }
 0x360   :  { %3315 = vst [vmem:[%s5595_s7 + $0x20] sm:$0xff] %v1966_v30  ;;  %v2005_v34 = vpack.c.bf16 %v1966_v30, %v1966_v30  ;;  %v1983_v39 = vadd.f32 1.0, %v3543_v49  ;;  %v5141_v30 = vld [vmem:[#allocation3 + $0x44] ss:$16 sps:$4 sm:$0xff]   ;;  %v5150_v49 = vld [vmem:[#allocation3 + $0x48] ss:$16 sps:$4 sm:$0xff]  }
 0x361   :  { %5851 = vst [vmem:[#allocation30_spill] sm:$0xff] %v5150_v49 }
 0x362   :  { %2039 = vmatmul.mubr.bf16.vlgmr.msra.gmra.mxu0 %v2005_v34  ;;  %2080 = vmatmul.mubr.bf16.vlgmr.msra.gmra.mxu1 %v2005_v34  ;;  %3548 = vrcp.f32 %v1983_v39  ;;  %v5144_v34 = vld [vmem:[#allocation3 + $0x4c] ss:$16 sps:$4 sm:$0xff]   ;;  %v5162_v39 = vld [vmem:[#allocation3 + $0x28] ss:$16 sps:$4 sm:$0xff]  }
 0x363   :  { %2094 = vmatpush1.bf16.msra.mxu0 %v5081_v58  ;;  %2135 = vmatpush1.bf16.msra.mxu1 %v5084_v24  ;;  %5849 = vst [vmem:[#allocation28_spill] sm:$0xff] %v5144_v34  ;;  %5855 = vst [vmem:[#allocation37_spill] sm:$0xff] %v5162_v39 }
 0x364   :  { %2095 = vmatprep.subr.bf16.mxu0 %v5087_v38  ;;  %2136 = vmatprep.subr.bf16.mxu1 %v5090_v21 }
 0x365   :  { %2125 = vmatprep.mubr.bf16.mxu0 %v5720_v46  ;;  %2166 = vmatprep.mubr.bf16.mxu1 %v5720_v46 }
 0x367   :  { %2096 = vmatpush1.bf16.msra.mxu0 %v5095_v26  ;;  %2137 = vmatpush1.bf16.msra.mxu1 %v5098_v0 }
 0x368   :  { %2097 = vmatprep.subr.bf16.mxu0 %v5101_v28  ;;  %2138 = vmatprep.subr.bf16.mxu1 %v5104_v40 }
 0x369   :  { %v3545_v32 = vpop.eup %3544 }
 0x36a   :  { %v1987_v35 = vmul.f32 %v3545_v32, %v3541_v45  ;;  %v5147_v45 = vld [vmem:[#allocation3 + $0x40] ss:$16 sps:$4 sm:$0xff]   ;;  %v5153_v32 = vld [vmem:[#allocation3 + $0x24] ss:$16 sps:$4 sm:$0xff]  }
 0x36b   :  { %v3547_v31 = vpop.eup %3546  ;;  %2098 = vmatpush1.bf16.msra.mxu0 %v5107_v51  ;;  %2139 = vmatpush1.bf16.msra.mxu1 %v5110_v52  ;;  %5850 = vst [vmem:[#allocation29_spill] sm:$0xff] %v5147_v45  ;;  %5852 = vst [vmem:[#allocation31_spill] sm:$0xff] %v5153_v32 }
 0x36c   :  { %v1986_v44 = vmul.f32 %v3547_v31, %v4842_v55  ;;  %2099 = vmatprep.subr.bf16.mxu0 %v5114_v53  ;;  %2140 = vmatprep.subr.bf16.mxu1 %v5117_v54  ;;  %v5128_v55 = vld [vmem:[#allocation3 + $0x64] ss:$16 sps:$4 sm:$0xff]   ;;  %v5159_v31 = vld [vmem:[#allocation3 + $0x20] ss:$16 sps:$4 sm:$0xff]  }
 0x36d   :  { %5854 = vst [vmem:[#allocation33_spill] sm:$0xff] %v5159_v31 }
 0x36e   :  { %v5120_v56 = vadd.f32 %v1987_v35, %v1986_v44  ;;  %v5156_v35 = vld [vmem:[#allocation3 + $0x2c] ss:$16 sps:$4 sm:$0xff]  }
 0x36f   :  { %2100 = vmatpush1.bf16.msra.mxu0 %v5122_v57  ;;  %2141 = vmatpush1.bf16.msra.mxu1 %v5125_v59  ;;  %5853 = vst [vmem:[#allocation32_spill] sm:$0xff] %v5156_v35  ;;  %v3549_v44 = vpop.eup %3548 }
 0x370   :  { %2101 = vmatprep.subr.bf16.mxu0 %v5128_v55  ;;  %2142 = vmatprep.subr.bf16.mxu1 %v5131_v22  ;;  %3550 = vtanh.f32 %v5120_v56 }
 0x373   :  { %2102 = vmatpush1.bf16.msra.mxu0 %v5135_v20  ;;  %2143 = vmatpush1.bf16.msra.mxu1 %v5138_v23 }
 0x374   :  { %2103 = vmatprep.subr.bf16.mxu0 %v5141_v30  ;;  %2144 = vmatprep.subr.bf16.mxu1 %v5144_v34 }
 0x377   :  { %2104 = vmatpush1.bf16.msra.mxu0 %v5147_v45  ;;  %2145 = vmatpush1.bf16.msra.mxu1 %v5150_v49  ;;  %v5165_v45 = vld [vmem:[#allocation3 + $0x4] ss:$16 sps:$4 sm:$0xff]   ;;  %v5168_v49 = vld [vmem:[#allocation3 + $0xc] ss:$16 sps:$4 sm:$0xff]  }
 0x378   :  { %2105 = vmatprep.subr.bf16.mxu0 %v5153_v32  ;;  %2146 = vmatprep.subr.bf16.mxu1 %v5156_v35  ;;  %v5171_v35 = vld [vmem:[#allocation3] ss:$16 sps:$4 sm:$0xff]  }
 0x37b   :  { %2106 = vmatpush1.bf16.msra.mxu0 %v5159_v31  ;;  %2147 = vmatpush1.bf16.msra.mxu1 %v5162_v39  ;;  %v5174_v31 = vld [vmem:[#allocation3 + $0x8] ss:$16 sps:$4 sm:$0xff]  }
 0x37c   :  { %2107 = vmatprep.subr.bf16.mxu0 %v5165_v45  ;;  %2148 = vmatprep.subr.bf16.mxu1 %v5168_v49 }
 0x37d   :  { %v3551_v32 = vpop.eup %3550 }
 0x37e   :  { %v1990_v34 = vmul.f32 %v3551_v32, %v3549_v44 }
 0x37f   :  { %2108 = vmatpush1.bf16.msra.mxu0 %v5171_v35  ;;  %2149 = vmatpush1.bf16.msra.mxu1 %v5174_v31 }
 0x380   :  { %3316 = vst [vmem:[%s5595_s7 + $0x58] sm:$0xff] %v1990_v34  ;;  %v2092_v39 = vpack.c.bf16 %v1990_v34, %v1990_v34  ;;  %2240 = vmatprep.subr.bf16.mxu0 %v4869_v60  ;;  %2281 = vmatprep.subr.bf16.mxu1 %v4875_v61 }
 0x382   :  { %2126 = vmatmul.mubr.bf16.vlgmr.msra.gmra.mxu0 %v2092_v39  ;;  %2167 = vmatmul.mubr.bf16.vlgmr.msra.gmra.mxu1 %v2092_v39  ;;  %v5856_v39 = vld [vmem:[#allocation45_spill] sm:$0xff] }
 0x383   :  { %2241 = vmatpush1.bf16.msra.mxu0 %v4881_v62  ;;  %2282 = vmatpush1.bf16.msra.mxu1 %v4887_v63 }
 0x384   :  { %2242 = vmatprep.subr.bf16.mxu0 %v4893_v1  ;;  %2283 = vmatprep.subr.bf16.mxu1 %v4899_v2 }
 0x385   :  { %2272 = vmatprep.mubr.bf16.mxu0 %v5720_v46  ;;  %2313 = vmatprep.mubr.bf16.mxu1 %v5720_v46 }
 0x387   :  { %2243 = vmatpush1.bf16.msra.mxu0 %v4907_v3  ;;  %2284 = vmatpush1.bf16.msra.mxu1 %v4913_v4 }
 0x388   :  { %2244 = vmatprep.subr.bf16.mxu0 %v4919_v5  ;;  %2285 = vmatprep.subr.bf16.mxu1 %v4925_v6 }
 0x38b   :  { %2245 = vmatpush1.bf16.msra.mxu0 %v4931_v7  ;;  %2286 = vmatpush1.bf16.msra.mxu1 %v4937_v8 }
 0x38c   :  { %2246 = vmatprep.subr.bf16.mxu0 %v4943_v10  ;;  %2287 = vmatprep.subr.bf16.mxu1 %v4949_v11 }
 0x38f   :  { %2247 = vmatpush1.bf16.msra.mxu0 %v4955_v13  ;;  %2288 = vmatpush1.bf16.msra.mxu1 %v4961_v14 }
 0x390   :  { %2248 = vmatprep.subr.bf16.mxu0 %v4967_v15  ;;  %2289 = vmatprep.subr.bf16.mxu1 %v4973_v50 }
 0x393   :  { %2249 = vmatpush1.bf16.msra.mxu0 %v4979_v43  ;;  %2290 = vmatpush1.bf16.msra.mxu1 %v4985_v36 }
 0x394   :  { %2250 = vmatprep.subr.bf16.mxu0 %v4991_v37  ;;  %2291 = vmatprep.subr.bf16.mxu1 %v4997_v48  ;;  %v5859_v37 = vld [vmem:[#allocation46_spill] sm:$0xff] }
 0x397   :  { %2251 = vmatpush1.bf16.msra.mxu0 %v5003_v42  ;;  %2292 = vmatpush1.bf16.msra.mxu1 %v5009_v47 }
 0x398   :  { %2252 = vmatprep.subr.bf16.mxu0 %v5015_v41  ;;  %2293 = vmatprep.subr.bf16.mxu1 %v5021_v33 }
 0x39b   :  { %2253 = vmatpush1.bf16.msra.mxu0 %v5027_v9  ;;  %2294 = vmatpush1.bf16.msra.mxu1 %v5033_v27  ;;  %v5857_v27 = vld [vmem:[#allocation47_spill] sm:$0xff] }
 0x39c   :  { %2254 = vmatprep.subr.bf16.mxu0 %v5039_v25  ;;  %2295 = vmatprep.subr.bf16.mxu1 %v5045_v16 }
 0x39f   :  { %2255 = vmatpush1.bf16.msra.mxu0 %v5051_v17  ;;  %2296 = vmatpush1.bf16.msra.mxu1 %v5057_v12  ;;  %v5858_v12 = vld [vmem:[#allocation48_spill] sm:$0xff] }
 0x3a0   :  { %2327 = vmatprep.subr.bf16.mxu0 %v5060_v18  ;;  %2368 = vmatprep.subr.bf16.mxu1 %v5063_v19 }
 0x422   :  { %v2040_v34 = vpop.f32.mrf.mxu0  ;;  %v2081_v32 = vpop.f32.mrf.mxu1 }
 0x423   :  { %v2088_v44 = vadd.f32 %v2040_v34, %v5856_v39  ;;  %v2090_v19 = vadd.f32 %v2081_v32, %v5859_v37 }
 0x424   :  { %v2042_v33 = vpop.f32.mrf.mxu0  ;;  %v2083_v9 = vpop.f32.mrf.mxu1 }
 0x425   :  { %v3317_v41 = vmul.f32 -1.442695, %v2088_v44  ;;  %v2089_v47 = vadd.f32 %v2042_v33, %v5857_v27  ;;  %v2091_v18 = vadd.f32 %v2083_v9, %v5858_v12  ;;  %v5860_v27 = vld [vmem:[#allocation81_spill] sm:$0xff]  ;;  %v5861_v12 = vld [vmem:[#allocation83_spill] sm:$0xff] }
 0x426   :  { %v2044_v25 = vpop.f32.mrf.mxu0  ;;  %v2085_v42 = vpop.f32.mrf.mxu1 }
 0x427   :  { %3552 = vpow2.f32 %v3317_v41  ;;  %v3318_v16 = vmul.f32 -1.442695, %v2089_v47  ;;  %v3319_v36 = vmul.f32 -1.442695, %v2091_v18 }
 0x428   :  { %v2045_v17 = vpop.f32.mrf.mxu0  ;;  %v2086_v48 = vpop.f32.mrf.mxu1 }
 0x429   :  { %3554 = vpow2.f32 %v3318_v16 }
 0x42a   :  { %3556 = vtanh.f32 %v2090_v19 }
 0x42b   :  { %3558 = vpow2.f32 %v3319_v36 }
 0x434   :  { %v3553_v43 = vpop.eup %3552 }
 0x435   :  { %v2182_v50 = vadd.f32 1.0, %v3553_v43 }
 0x436   :  { %v3555_v34 = vpop.eup %3554 }
 0x437   :  { %3560 = vrcp.f32 %v2182_v50  ;;  %v2188_v39 = vadd.f32 1.0, %v3555_v34  ;;  %v3557_v33 = vpop.eup %3556 }
 0x438   :  { %v3559_v47 = vpop.eup %3558 }
 0x439   :  { %3562 = vrcp.f32 %v2188_v39  ;;  %v2195_v19 = vadd.f32 1.0, %v3559_v47 }
 0x442   :  { %v2127_v42 = vpop.f32.mrf.mxu0  ;;  %v2168_v41 = vpop.f32.mrf.mxu1 }
 0x443   :  { %v2175_v48 = vadd.f32 %v2127_v42, %v5860_v27  ;;  %v5863_v27 = vld [vmem:[#allocation82_spill] sm:$0xff] }
 0x444   :  { %v3561_v25 = vpop.eup %3560  ;;  %v2129_v16 = vpop.f32.mrf.mxu0 }
 0x445   :  { %v2170_v9 = vpop.f32.mrf.mxu1  ;;  %v2199_v17 = vmul.f32 %v3561_v25, %v3557_v33  ;;  %v3320_v37 = vmul.f32 -1.442695, %v2175_v48  ;;  %v2176_v18 = vadd.f32 %v2129_v16, %v5861_v12  ;;  %v5862_v33 = vld [vmem:[#allocation84_spill] sm:$0xff]  ;;  %v2177_v48 = vadd.f32 %v2168_v41, %v5863_v27 }
 0x446   :  { %v3563_v43 = vpop.eup %3562  ;;  %v2131_v32 = vpop.f32.mrf.mxu0  ;;  %v2178_v42 = vadd.f32 %v2170_v9, %v5862_v33  ;;  %v5866_v33 = vld [vmem:[#allocation30_spill] sm:$0xff]  ;;  %v5868_v27 = vld [vmem:[#allocation32_spill] sm:$0xff] }
 0x447   :  { %v2172_v36 = vpop.f32.mrf.mxu1  ;;  %v2198_v50 = vmul.f32 %v3563_v43, %v5073_v29  ;;  %3564 = vpow2.f32 %v3320_v37  ;;  %v3321_v44 = vmul.f32 -1.442695, %v2176_v18 }
 0x448   :  { %v2132_v34 = vpop.f32.mrf.mxu0  ;;  %v3322_v25 = vmul.f32 -1.442695, %v2178_v42  ;;  %v5867_v42 = vld [vmem:[#allocation31_spill] sm:$0xff] }
 0x449   :  { %v2173_v39 = vpop.f32.mrf.mxu1  ;;  %v5223_v15 = vadd.f32 %v2199_v17, %v2198_v50  ;;  %3566 = vpow2.f32 %v3321_v44 }
 0x44a   :  { %3568 = vrcp.f32 %v2195_v19  ;;  %v5865_v39 = vld [vmem:[#allocation29_spill] sm:$0xff] }
 0x44b   :  { %3570 = vtanh.f32 %v5223_v15 }
 0x44c   :  { %3572 = vtanh.f32 %v2177_v48  ;;  %v5869_v48 = vld [vmem:[#allocation33_spill] sm:$0xff] }
 0x44d   :  { %3574 = vpow2.f32 %v3322_v25  ;;  %v5870_v25 = vld [vmem:[#allocation37_spill] sm:$0xff] }
 0x454   :  { %v3565_v47 = vpop.eup %3564 }
 0x455   :  { %v2206_v16 = vadd.f32 1.0, %v3565_v47 }
 0x456   :  { %v3567_v12 = vpop.eup %3566 }
 0x457   :  { %v3569_v29 = vpop.eup %3568  ;;  %3576 = vrcp.f32 %v2206_v16  ;;  %v2212_v37 = vadd.f32 1.0, %v3567_v12 }
 0x458   :  { %v3571_v18 = vpop.eup %3570 }
 0x459   :  { %3578 = vrcp.f32 %v2212_v37  ;;  %v2202_v17 = vmul.f32 %v3571_v18, %v3569_v29  ;;  %v3573_v41 = vpop.eup %3572  ;;  %v5871_v37 = vld [vmem:[#allocation10_spill] sm:$0xff]  ;;  %v5872_v18 = vld [vmem:[#allocation11_spill] sm:$0xff] }
 0x45a   :  { %v3575_v9 = vpop.eup %3574 }
 0x45b   :  { %3323 = vst [vmem:[%s5595_s7 + $0x30] sm:$0xff] %v2202_v17  ;;  %v2239_v43 = vpack.c.bf16 %v2202_v17, %v2202_v17  ;;  %v2219_v50 = vadd.f32 1.0, %v3575_v9  ;;  %v5873_v17 = vld [vmem:[#allocation12_spill] sm:$0xff]  ;;  %v5876_v9 = vld [vmem:[#allocation15_spill] sm:$0xff] }
 0x45d   :  { %2273 = vmatmul.mubr.bf16.vlgmr.msra.gmra.mxu0 %v2239_v43  ;;  %2314 = vmatmul.mubr.bf16.vlgmr.msra.gmra.mxu1 %v2239_v43  ;;  %3580 = vrcp.f32 %v2219_v50  ;;  %v5874_v43 = vld [vmem:[#allocation13_spill] sm:$0xff]  ;;  %v5880_v50 = vld [vmem:[#allocation19_spill] sm:$0xff] }
 0x45e   :  { %2328 = vmatpush1.bf16.msra.mxu0 %v5081_v58  ;;  %2369 = vmatpush1.bf16.msra.mxu1 %v5084_v24 }
 0x45f   :  { %2329 = vmatprep.subr.bf16.mxu0 %v5087_v38  ;;  %2370 = vmatprep.subr.bf16.mxu1 %v5090_v21 }
 0x460   :  { %2359 = vmatprep.mubr.bf16.mxu0 %v5720_v46  ;;  %2400 = vmatprep.mubr.bf16.mxu1 %v5720_v46 }
 0x462   :  { %2330 = vmatpush1.bf16.msra.mxu0 %v5095_v26  ;;  %2371 = vmatpush1.bf16.msra.mxu1 %v5098_v0 }
 0x463   :  { %2331 = vmatprep.subr.bf16.mxu0 %v5101_v28  ;;  %2372 = vmatprep.subr.bf16.mxu1 %v5104_v40 }
 0x464   :  { %v3577_v19 = vpop.eup %3576 }
 0x465   :  { %v2223_v32 = vmul.f32 %v3577_v19, %v3573_v41  ;;  %v5875_v41 = vld [vmem:[#allocation14_spill] sm:$0xff]  ;;  %v5877_v19 = vld [vmem:[#allocation16_spill] sm:$0xff] }
 0x466   :  { %v3579_v36 = vpop.eup %3578  ;;  %2332 = vmatpush1.bf16.msra.mxu0 %v5107_v51  ;;  %2373 = vmatpush1.bf16.msra.mxu1 %v5110_v52 }
 0x467   :  { %v2222_v44 = vmul.f32 %v3579_v36, %v5120_v56  ;;  %2333 = vmatprep.subr.bf16.mxu0 %v5114_v53  ;;  %2374 = vmatprep.subr.bf16.mxu1 %v5117_v54  ;;  %v5864_v56 = vld [vmem:[#allocation28_spill] sm:$0xff]  ;;  %v5879_v36 = vld [vmem:[#allocation18_spill] sm:$0xff] }
 0x469   :  { %v5246_v34 = vadd.f32 %v2223_v32, %v2222_v44  ;;  %v5878_v32 = vld [vmem:[#allocation17_spill] sm:$0xff]  ;;  %v5881_v44 = vld [vmem:[#allocation20_spill] sm:$0xff] }
 0x46a   :  { %2334 = vmatpush1.bf16.msra.mxu0 %v5122_v57  ;;  %2375 = vmatpush1.bf16.msra.mxu1 %v5125_v59  ;;  %v3581_v47 = vpop.eup %3580 }
 0x46b   :  { %2335 = vmatprep.subr.bf16.mxu0 %v5128_v55  ;;  %2376 = vmatprep.subr.bf16.mxu1 %v5131_v22  ;;  %3582 = vtanh.f32 %v5246_v34 }
 0x46e   :  { %2336 = vmatpush1.bf16.msra.mxu0 %v5135_v20  ;;  %2377 = vmatpush1.bf16.msra.mxu1 %v5138_v23 }
 0x46f   :  { %2337 = vmatprep.subr.bf16.mxu0 %v5141_v30  ;;  %2378 = vmatprep.subr.bf16.mxu1 %v5864_v56 }
 0x472   :  { %2338 = vmatpush1.bf16.msra.mxu0 %v5865_v39  ;;  %2379 = vmatpush1.bf16.msra.mxu1 %v5866_v33 }
 0x473   :  { %2339 = vmatprep.subr.bf16.mxu0 %v5867_v42  ;;  %2380 = vmatprep.subr.bf16.mxu1 %v5868_v27 }
 0x476   :  { %2340 = vmatpush1.bf16.msra.mxu0 %v5869_v48  ;;  %2381 = vmatpush1.bf16.msra.mxu1 %v5870_v25 }
 0x477   :  { %2341 = vmatprep.subr.bf16.mxu0 %v5165_v45  ;;  %2382 = vmatprep.subr.bf16.mxu1 %v5168_v49 }
 0x478   :  { %v3583_v16 = vpop.eup %3582 }
 0x479   :  { %v2226_v12 = vmul.f32 %v3583_v16, %v3581_v47  ;;  %v5882_v47 = vld [vmem:[#allocation21_spill] sm:$0xff]  ;;  %v5883_v16 = vld [vmem:[#allocation22_spill] sm:$0xff] }
 0x47a   :  { %2342 = vmatpush1.bf16.msra.mxu0 %v5171_v35  ;;  %2383 = vmatpush1.bf16.msra.mxu1 %v5174_v31 }
 0x47b   :  { %3324 = vst [vmem:[%s5595_s7 + $0x48] sm:$0xff] %v2226_v12  ;;  %v2326_v29 = vpack.c.bf16 %v2226_v12, %v2226_v12  ;;  %2472 = vmatprep.subr.bf16.mxu0 %v4869_v60  ;;  %2513 = vmatprep.subr.bf16.mxu1 %v4875_v61  ;;  %v5884_v12 = vld [vmem:[#allocation23_spill] sm:$0xff] }
 0x47d   :  { %2360 = vmatmul.mubr.bf16.vlgmr.msra.gmra.mxu0 %v2326_v29  ;;  %2401 = vmatmul.mubr.bf16.vlgmr.msra.gmra.mxu1 %v2326_v29  ;;  %v5885_v29 = vld [vmem:[#allocation24_spill] sm:$0xff] }
 0x47e   :  { %2473 = vmatpush1.bf16.msra.mxu0 %v4881_v62  ;;  %2514 = vmatpush1.bf16.msra.mxu1 %v4887_v63 }
 0x47f   :  { %2474 = vmatprep.subr.bf16.mxu0 %v4893_v1  ;;  %2515 = vmatprep.subr.bf16.mxu1 %v4899_v2 }
 0x480   :  { %2504 = vmatprep.mubr.bf16.mxu0 %v5720_v46  ;;  %2545 = vmatprep.mubr.bf16.mxu1 %v5720_v46 }
 0x482   :  { %2475 = vmatpush1.bf16.msra.mxu0 %v4907_v3  ;;  %2516 = vmatpush1.bf16.msra.mxu1 %v4913_v4 }
 0x483   :  { %2476 = vmatprep.subr.bf16.mxu0 %v4919_v5  ;;  %2517 = vmatprep.subr.bf16.mxu1 %v4925_v6 }
 0x486   :  { %2477 = vmatpush1.bf16.msra.mxu0 %v4931_v7  ;;  %2518 = vmatpush1.bf16.msra.mxu1 %v4937_v8 }
 0x487   :  { %2478 = vmatprep.subr.bf16.mxu0 %v4943_v10  ;;  %2519 = vmatprep.subr.bf16.mxu1 %v4949_v11  ;;  %v5892_v11 = vld [vmem:[#allocation50_spill] sm:$0xff] }
 0x48a   :  { %2479 = vmatpush1.bf16.msra.mxu0 %v4955_v13  ;;  %2520 = vmatpush1.bf16.msra.mxu1 %v4961_v14 }
 0x48b   :  { %2480 = vmatprep.subr.bf16.mxu0 %v5871_v37  ;;  %2521 = vmatprep.subr.bf16.mxu1 %v5872_v18 }
 0x48e   :  { %2481 = vmatpush1.bf16.msra.mxu0 %v5873_v17  ;;  %2522 = vmatpush1.bf16.msra.mxu1 %v5874_v43  ;;  %v5889_v43 = vld [vmem:[#allocation49_spill] sm:$0xff] }
 0x48f   :  { %2482 = vmatprep.subr.bf16.mxu0 %v5875_v41  ;;  %2523 = vmatprep.subr.bf16.mxu1 %v5876_v9  ;;  %v5886_v41 = vld [vmem:[#allocation25_spill] sm:$0xff]  ;;  %v5887_v9 = vld [vmem:[#allocation26_spill] sm:$0xff] }
 0x492   :  { %2483 = vmatpush1.bf16.msra.mxu0 %v5877_v19  ;;  %2524 = vmatpush1.bf16.msra.mxu1 %v5878_v32  ;;  %v5888_v19 = vld [vmem:[#allocation27_spill] sm:$0xff] }
 0x493   :  { %2484 = vmatprep.subr.bf16.mxu0 %v5879_v36  ;;  %2525 = vmatprep.subr.bf16.mxu1 %v5880_v50 }
 0x496   :  { %2485 = vmatpush1.bf16.msra.mxu0 %v5881_v44  ;;  %2526 = vmatpush1.bf16.msra.mxu1 %v5882_v47  ;;  %v5890_v47 = vld [vmem:[#allocation51_spill] sm:$0xff] }
 0x497   :  { %2486 = vmatprep.subr.bf16.mxu0 %v5883_v16  ;;  %2527 = vmatprep.subr.bf16.mxu1 %v5884_v12 }
 0x49a   :  { %2487 = vmatpush1.bf16.msra.mxu0 %v5885_v29  ;;  %2528 = vmatpush1.bf16.msra.mxu1 %v5886_v41  ;;  %v5891_v41 = vld [vmem:[#allocation52_spill] sm:$0xff] }
 0x49b   :  { %2559 = vmatprep.subr.bf16.mxu0 %v5887_v9  ;;  %2600 = vmatprep.subr.bf16.mxu1 %v5888_v19 }
 0x51d   :  { %v2274_v32 = vpop.f32.mrf.mxu0  ;;  %v2315_v36 = vpop.f32.mrf.mxu1 }
 0x51e   :  { %v2322_v50 = vadd.f32 %v2274_v32, %v5889_v43  ;;  %v2324_v19 = vadd.f32 %v2315_v36, %v5892_v11 }
 0x51f   :  { %v2276_v17 = vpop.f32.mrf.mxu0  ;;  %v2317_v44 = vpop.f32.mrf.mxu1 }
 0x520   :  { %v3325_v18 = vmul.f32 -1.442695, %v2322_v50  ;;  %v2323_v37 = vadd.f32 %v2276_v17, %v5890_v47  ;;  %v2325_v9 = vadd.f32 %v2317_v44, %v5891_v41  ;;  %v5893_v50 = vld [vmem:[#allocation77_spill] sm:$0xff] }
 0x521   :  { %v2278_v16 = vpop.f32.mrf.mxu0  ;;  %v2319_v14 = vpop.f32.mrf.mxu1 }
 0x522   :  { %3584 = vpow2.f32 %v3325_v18  ;;  %v3326_v12 = vmul.f32 -1.442695, %v2323_v37  ;;  %v3327_v10 = vmul.f32 -1.442695, %v2325_v9  ;;  %v5894_v9 = vld [vmem:[#allocation79_spill] sm:$0xff] }
 0x523   :  { %v2279_v29 = vpop.f32.mrf.mxu0  ;;  %v2320_v13 = vpop.f32.mrf.mxu1 }
 0x524   :  { %3586 = vpow2.f32 %v3326_v12 }
 0x525   :  { %3588 = vtanh.f32 %v2324_v19 }
 0x526   :  { %3590 = vpow2.f32 %v3327_v10 }
 0x52f   :  { %v3585_v8 = vpop.eup %3584 }
 0x530   :  { %v2416_v7 = vadd.f32 1.0, %v3585_v8 }
 0x531   :  { %v3587_v43 = vpop.eup %3586 }
 0x532   :  { %3592 = vrcp.f32 %v2416_v7  ;;  %v2422_v32 = vadd.f32 1.0, %v3587_v43  ;;  %v3589_v17 = vpop.eup %3588 }
 0x533   :  { %v3591_v37 = vpop.eup %3590 }
 0x534   :  { %3594 = vrcp.f32 %v2422_v32  ;;  %v2429_v19 = vadd.f32 1.0, %v3591_v37 }
 0x53d   :  { %v2361_v14 = vpop.f32.mrf.mxu0  ;;  %v2402_v18 = vpop.f32.mrf.mxu1 }
 0x53e   :  { %v2409_v13 = vadd.f32 %v2361_v14, %v5893_v50  ;;  %v5896_v50 = vld [vmem:[#allocation78_spill] sm:$0xff] }
 0x53f   :  { %v3593_v47 = vpop.eup %3592  ;;  %v2363_v16 = vpop.f32.mrf.mxu0 }
 0x540   :  { %v2404_v41 = vpop.f32.mrf.mxu1  ;;  %v2433_v44 = vmul.f32 %v3593_v47, %v3589_v17  ;;  %v3328_v11 = vmul.f32 -1.442695, %v2409_v13  ;;  %v2410_v36 = vadd.f32 %v2363_v16, %v5894_v9  ;;  %v5895_v17 = vld [vmem:[#allocation80_spill] sm:$0xff]  ;;  %v2411_v13 = vadd.f32 %v2402_v18, %v5896_v50  ;;  %v5903_v50 = vld [vmem:[#allocation9_spill] sm:$0xff] }
 0x541   :  { %v3595_v8 = vpop.eup %3594  ;;  %v2365_v12 = vpop.f32.mrf.mxu0  ;;  %v2412_v14 = vadd.f32 %v2404_v41, %v5895_v17 }
 0x542   :  { %v2406_v10 = vpop.f32.mrf.mxu1  ;;  %v2432_v7 = vmul.f32 %v3595_v8, %v5223_v15  ;;  %3596 = vpow2.f32 %v3328_v11  ;;  %v3329_v29 = vmul.f32 -1.442695, %v2410_v36 }
 0x543   :  { %v2366_v43 = vpop.f32.mrf.mxu0  ;;  %v3330_v47 = vmul.f32 -1.442695, %v2412_v14 }
 0x544   :  { %v2407_v32 = vpop.f32.mrf.mxu1  ;;  %v5313_v6 = vadd.f32 %v2433_v44, %v2432_v7  ;;  %3598 = vpow2.f32 %v3329_v29 }
 0x545   :  { %3600 = vrcp.f32 %v2429_v19 }
 0x546   :  { %3602 = vtanh.f32 %v5313_v6 }
 0x547   :  { %3604 = vtanh.f32 %v2411_v13  ;;  %v5904_v13 = vld [vmem:[#allocation10_spill] sm:$0xff] }
 0x548   :  { %3606 = vpow2.f32 %v3330_v47  ;;  %v5908_v47 = vld [vmem:[#allocation14_spill] sm:$0xff] }
 0x54f   :  { %v3597_v37 = vpop.eup %3596 }
 0x550   :  { %v2440_v16 = vadd.f32 1.0, %v3597_v37  ;;  %v5909_v37 = vld [vmem:[#allocation15_spill] sm:$0xff] }
 0x551   :  { %v3599_v9 = vpop.eup %3598 }
 0x552   :  { %v3601_v15 = vpop.eup %3600  ;;  %3608 = vrcp.f32 %v2440_v16  ;;  %v2446_v11 = vadd.f32 1.0, %v3599_v9  ;;  %v5910_v16 = vld [vmem:[#allocation16_spill] sm:$0xff]  ;;  %v5911_v9 = vld [vmem:[#allocation17_spill] sm:$0xff] }
 0x553   :  { %v3603_v36 = vpop.eup %3602 }
 0x554   :  { %3610 = vrcp.f32 %v2446_v11  ;;  %v2436_v44 = vmul.f32 %v3603_v36, %v3601_v15  ;;  %v3605_v18 = vpop.eup %3604  ;;  %v5912_v15 = vld [vmem:[#allocation18_spill] sm:$0xff]  ;;  %v5913_v11 = vld [vmem:[#allocation19_spill] sm:$0xff]  ;;  %v5914_v36 = vld [vmem:[#allocation20_spill] sm:$0xff] }
 0x555   :  { %v3607_v41 = vpop.eup %3606 }
 0x556   :  { %3331 = vst [vmem:[%s5595_s7 + $0x40] sm:$0xff] %v2436_v44  ;;  %v2471_v8 = vpack.c.bf16 %v2436_v44, %v2436_v44  ;;  %v2453_v7 = vadd.f32 1.0, %v3607_v41  ;;  %v5915_v44 = vld [vmem:[#allocation21_spill] sm:$0xff]  ;;  %v5918_v41 = vld [vmem:[#allocation24_spill] sm:$0xff] }
 0x558   :  { %2505 = vmatmul.mubr.bf16.vlgmr.msra.gmra.mxu0 %v2471_v8  ;;  %2546 = vmatmul.mubr.bf16.vlgmr.msra.gmra.mxu1 %v2471_v8  ;;  %3612 = vrcp.f32 %v2453_v7  ;;  %v5916_v8 = vld [vmem:[#allocation22_spill] sm:$0xff] }
 0x559   :  { %2560 = vmatpush1.bf16.msra.mxu0 %v5081_v58  ;;  %2601 = vmatpush1.bf16.msra.mxu1 %v5084_v24 }
 0x55a   :  { %2561 = vmatprep.subr.bf16.mxu0 %v5087_v38  ;;  %2602 = vmatprep.subr.bf16.mxu1 %v5090_v21 }
 0x55b   :  { %2591 = vmatprep.mubr.bf16.mxu0 %v5720_v46  ;;  %2632 = vmatprep.mubr.bf16.mxu1 %v5720_v46 }
 0x55d   :  { %2562 = vmatpush1.bf16.msra.mxu0 %v5095_v26  ;;  %2603 = vmatpush1.bf16.msra.mxu1 %v5098_v0 }
 0x55e   :  { %2563 = vmatprep.subr.bf16.mxu0 %v5101_v28  ;;  %2604 = vmatprep.subr.bf16.mxu1 %v5104_v40 }
 0x55f   :  { %v3609_v19 = vpop.eup %3608 }
 0x560   :  { %v2457_v12 = vmul.f32 %v3609_v19, %v3605_v18  ;;  %v5917_v18 = vld [vmem:[#allocation23_spill] sm:$0xff]  ;;  %v5919_v19 = vld [vmem:[#allocation25_spill] sm:$0xff] }
 0x561   :  { %v3611_v10 = vpop.eup %3610  ;;  %2564 = vmatpush1.bf16.msra.mxu0 %v5107_v51  ;;  %2605 = vmatpush1.bf16.msra.mxu1 %v5110_v52 }
 0x562   :  { %v2456_v29 = vmul.f32 %v3611_v10, %v5246_v34  ;;  %2565 = vmatprep.subr.bf16.mxu0 %v5114_v53  ;;  %2606 = vmatprep.subr.bf16.mxu1 %v5117_v54  ;;  %v5921_v10 = vld [vmem:[#allocation27_spill] sm:$0xff] }
 0x564   :  { %v5336_v43 = vadd.f32 %v2457_v12, %v2456_v29  ;;  %v5920_v12 = vld [vmem:[#allocation26_spill] sm:$0xff] }
 0x565   :  { %2566 = vmatpush1.bf16.msra.mxu0 %v5122_v57  ;;  %2607 = vmatpush1.bf16.msra.mxu1 %v5125_v59  ;;  %v3613_v34 = vpop.eup %3612 }
 0x566   :  { %2567 = vmatprep.subr.bf16.mxu0 %v5128_v55  ;;  %2608 = vmatprep.subr.bf16.mxu1 %v5131_v22  ;;  %3614 = vtanh.f32 %v5336_v43 }
 0x569   :  { %2568 = vmatpush1.bf16.msra.mxu0 %v5135_v20  ;;  %2609 = vmatpush1.bf16.msra.mxu1 %v5138_v23 }
 0x56a   :  { %2569 = vmatprep.subr.bf16.mxu0 %v5141_v30  ;;  %2610 = vmatprep.subr.bf16.mxu1 %v5864_v56 }
 0x56d   :  { %2570 = vmatpush1.bf16.msra.mxu0 %v5865_v39  ;;  %2611 = vmatpush1.bf16.msra.mxu1 %v5866_v33 }
 0x56e   :  { %2571 = vmatprep.subr.bf16.mxu0 %v5867_v42  ;;  %2612 = vmatprep.subr.bf16.mxu1 %v5868_v27 }
 0x571   :  { %2572 = vmatpush1.bf16.msra.mxu0 %v5869_v48  ;;  %2613 = vmatpush1.bf16.msra.mxu1 %v5870_v25 }
 0x572   :  { %2573 = vmatprep.subr.bf16.mxu0 %v5165_v45  ;;  %2614 = vmatprep.subr.bf16.mxu1 %v5168_v49 }
 0x573   :  { %v3615_v32 = vpop.eup %3614 }
 0x574   :  { %v2460_v17 = vmul.f32 %v3615_v32, %v3613_v34  ;;  %v5922_v34 = vld [vmem:[#allocation53_spill] sm:$0xff] }
 0x575   :  { %2574 = vmatpush1.bf16.msra.mxu0 %v5171_v35  ;;  %2615 = vmatpush1.bf16.msra.mxu1 %v5174_v31 }
 0x576   :  { %3332 = vst [vmem:[%s5595_s7 + $0x38] sm:$0xff] %v2460_v17  ;;  %v2558_v14 = vpack.c.bf16 %v2460_v17, %v2460_v17  ;;  %2704 = vmatprep.subr.bf16.mxu0 %v4869_v60  ;;  %2745 = vmatprep.subr.bf16.mxu1 %v4875_v61  ;;  %v5897_v60 = vld [vmem:[#allocation34_spill] sm:$0xff]  ;;  %v5898_v61 = vld [vmem:[#allocation35_spill] sm:$0xff] }
 0x578   :  { %2592 = vmatmul.mubr.bf16.vlgmr.msra.gmra.mxu0 %v2558_v14  ;;  %2633 = vmatmul.mubr.bf16.vlgmr.msra.gmra.mxu1 %v2558_v14 }
 0x579   :  { %2705 = vmatpush1.bf16.msra.mxu0 %v4881_v62  ;;  %2746 = vmatpush1.bf16.msra.mxu1 %v4887_v63  ;;  %v5899_v62 = vld [vmem:[#allocation36_spill] sm:$0xff]  ;;  %v5900_v63 = vld [vmem:[#allocation6_spill] sm:$0xff] }
 0x57a   :  { %2706 = vmatprep.subr.bf16.mxu0 %v4893_v1  ;;  %2747 = vmatprep.subr.bf16.mxu1 %v4899_v2  ;;  %v5901_v1 = vld [vmem:[#allocation7_spill] sm:$0xff]  ;;  %v5902_v2 = vld [vmem:[#allocation8_spill] sm:$0xff] }
 0x57b   :  { %2736 = vmatprep.mubr.bf16.mxu0 %v5720_v46  ;;  %2777 = vmatprep.mubr.bf16.mxu1 %v5720_v46 }
 0x57d   :  { %2707 = vmatpush1.bf16.msra.mxu0 %v4907_v3  ;;  %2748 = vmatpush1.bf16.msra.mxu1 %v4913_v4  ;;  %v5905_v3 = vld [vmem:[#allocation11_spill] sm:$0xff]  ;;  %v5906_v4 = vld [vmem:[#allocation12_spill] sm:$0xff] }
 0x57e   :  { %2708 = vmatprep.subr.bf16.mxu0 %v4919_v5  ;;  %2749 = vmatprep.subr.bf16.mxu1 %v5897_v60  ;;  %v5907_v5 = vld [vmem:[#allocation13_spill] sm:$0xff] }
 0x581   :  { %2709 = vmatpush1.bf16.msra.mxu0 %v5898_v61  ;;  %2750 = vmatpush1.bf16.msra.mxu1 %v5899_v62  ;;  %v5923_v61 = vld [vmem:[#allocation55_spill] sm:$0xff] }
 0x582   :  { %2710 = vmatprep.subr.bf16.mxu0 %v5900_v63  ;;  %2751 = vmatprep.subr.bf16.mxu1 %v5901_v1 }
 0x585   :  { %2711 = vmatpush1.bf16.msra.mxu0 %v5902_v2  ;;  %2752 = vmatpush1.bf16.msra.mxu1 %v5903_v50 }
 0x586   :  { %2712 = vmatprep.subr.bf16.mxu0 %v5904_v13  ;;  %2753 = vmatprep.subr.bf16.mxu1 %v5905_v3  ;;  %v5924_v3 = vld [vmem:[#allocation56_spill] sm:$0xff] }
 0x589   :  { %2713 = vmatpush1.bf16.msra.mxu0 %v5906_v4  ;;  %2754 = vmatpush1.bf16.msra.mxu1 %v5907_v5  ;;  %v5925_v5 = vld [vmem:[#allocation54_spill] sm:$0xff] }
 0x58a   :  { %2714 = vmatprep.subr.bf16.mxu0 %v5908_v47  ;;  %2755 = vmatprep.subr.bf16.mxu1 %v5909_v37 }
 0x58d   :  { %2715 = vmatpush1.bf16.msra.mxu0 %v5910_v16  ;;  %2756 = vmatpush1.bf16.msra.mxu1 %v5911_v9 }
 0x58e   :  { %2716 = vmatprep.subr.bf16.mxu0 %v5912_v15  ;;  %2757 = vmatprep.subr.bf16.mxu1 %v5913_v11 }
 0x591   :  { %2717 = vmatpush1.bf16.msra.mxu0 %v5914_v36  ;;  %2758 = vmatpush1.bf16.msra.mxu1 %v5915_v44 }
 0x592   :  { %2718 = vmatprep.subr.bf16.mxu0 %v5916_v8  ;;  %2759 = vmatprep.subr.bf16.mxu1 %v5917_v18 }
 0x595   :  { %2719 = vmatpush1.bf16.msra.mxu0 %v5918_v41  ;;  %2760 = vmatpush1.bf16.msra.mxu1 %v5919_v19  ;;  %v5926_v41 = vld [vmem:[#allocation73_spill] sm:$0xff] }
 0x596   :  { %2791 = vmatprep.subr.bf16.mxu0 %v5920_v12  ;;  %2832 = vmatprep.subr.bf16.mxu1 %v5921_v10 }
 0x618   :  { %v2506_v7 = vpop.f32.mrf.mxu0  ;;  %v2547_v29 = vpop.f32.mrf.mxu1 }
 0x619   :  { %v2554_v32 = vadd.f32 %v2506_v7, %v5922_v34  ;;  %v2556_v47 = vadd.f32 %v2547_v29, %v5925_v5  ;;  %v5929_v5 = vld [vmem:[#allocation74_spill] sm:$0xff] }
 0x61a   :  { %v2508_v17 = vpop.f32.mrf.mxu0  ;;  %v2549_v14 = vpop.f32.mrf.mxu1 }
 0x61b   :  { %v3333_v60 = vmul.f32 -1.442695, %v2554_v32  ;;  %v2555_v62 = vadd.f32 %v2508_v17, %v5923_v61  ;;  %v2557_v4 = vadd.f32 %v2549_v14, %v5924_v3  ;;  %v5927_v32 = vld [vmem:[#allocation75_spill] sm:$0xff]  ;;  %v5928_v3 = vld [vmem:[#allocation76_spill] sm:$0xff] }
 0x61c   :  { %v2510_v63 = vpop.f32.mrf.mxu0  ;;  %v2551_v1 = vpop.f32.mrf.mxu1 }
 0x61d   :  { %3616 = vpow2.f32 %v3333_v60  ;;  %v3334_v2 = vmul.f32 -1.442695, %v2555_v62  ;;  %v3335_v37 = vmul.f32 -1.442695, %v2557_v4 }
 0x61e   :  { %v2511_v50 = vpop.f32.mrf.mxu0  ;;  %v2552_v13 = vpop.f32.mrf.mxu1 }
 0x61f   :  { %3618 = vpow2.f32 %v3334_v2 }
 0x620   :  { %3620 = vtanh.f32 %v2556_v47 }
 0x621   :  { %3622 = vpow2.f32 %v3335_v37 }
 0x62a   :  { %v3617_v16 = vpop.eup %3616 }
 0x62b   :  { %v2648_v9 = vadd.f32 1.0, %v3617_v16 }
 0x62c   :  { %v3619_v15 = vpop.eup %3618 }
 0x62d   :  { %3624 = vrcp.f32 %v2648_v9  ;;  %v2654_v11 = vadd.f32 1.0, %v3619_v15  ;;  %v3621_v36 = vpop.eup %3620 }
 0x62e   :  { %v3623_v18 = vpop.eup %3622 }
 0x62f   :  { %3626 = vrcp.f32 %v2654_v11  ;;  %v2661_v60 = vadd.f32 1.0, %v3623_v18 }
 0x638   :  { %v2593_v44 = vpop.f32.mrf.mxu0  ;;  %v2634_v8 = vpop.f32.mrf.mxu1 }
 0x639   :  { %v2641_v19 = vadd.f32 %v2593_v44, %v5926_v41  ;;  %v2643_v47 = vadd.f32 %v2634_v8, %v5929_v5 }
 0x63a   :  { %v3625_v12 = vpop.eup %3624  ;;  %v2595_v10 = vpop.f32.mrf.mxu0 }
 0x63b   :  { %v2636_v7 = vpop.f32.mrf.mxu1  ;;  %v2665_v34 = vmul.f32 %v3625_v12, %v3621_v36  ;;  %v3336_v29 = vmul.f32 -1.442695, %v2641_v19  ;;  %v2642_v17 = vadd.f32 %v2595_v10, %v5927_v32  ;;  %v3798_v12 = vld [vmem:[%s5590_s2 + $0x40] ss:$16 sps:$4 sm:$0xff]   ;;  %v3799_v10 = vld [vmem:[%s5590_s2 + $0x48] ss:$16 sps:$4 sm:$0xff]  }
 0x63c   :  { %v3627_v14 = vpop.eup %3626  ;;  %v2597_v61 = vpop.f32.mrf.mxu0  ;;  %v2644_v4 = vadd.f32 %v2636_v7, %v5928_v3  ;;  %v3800_v7 = vld [vmem:[%s5590_s2 + $0x24] ss:$16 sps:$4 sm:$0xff]   ;;  %v3803_v32 = vld [vmem:[%s5590_s2 + $0x28] ss:$16 sps:$4 sm:$0xff]  }
 0x63d   :  { %v2638_v62 = vpop.f32.mrf.mxu1  ;;  %v2664_v63 = vmul.f32 %v3627_v14, %v5313_v6  ;;  %3628 = vpow2.f32 %v3336_v29  ;;  %v3337_v1 = vmul.f32 -1.442695, %v2642_v17  ;;  %v3802_v29 = vld [vmem:[%s5590_s2 + $0x20] ss:$16 sps:$4 sm:$0xff]   ;;  %v3804_v17 = vld [vmem:[%s5590_s2 + $0x4] ss:$16 sps:$4 sm:$0xff]  }
 0x63e   :  { %v2598_v2 = vpop.f32.mrf.mxu0  ;;  %v3338_v37 = vmul.f32 -1.442695, %v2644_v4  ;;  %v3805_v14 = vld [vmem:[%s5590_s2 + $0xc] ss:$16 sps:$4 sm:$0xff]   ;;  %v3807_v61 = vld [vmem:[%s5590_s2 + $0x8] ss:$16 sps:$4 sm:$0xff]  }
 0x63f   :  { %v2639_v50 = vpop.f32.mrf.mxu1  ;;  %v5403_v13 = vadd.f32 %v2665_v34, %v2664_v63  ;;  %3630 = vpow2.f32 %v3337_v1  ;;  %v3801_v34 = vld [vmem:[%s5590_s2 + $0x2c] ss:$16 sps:$4 sm:$0xff]   ;;  %v3808_v62 = vld [vmem:[#allocation3 + $0xe4] ss:$16 sps:$4 sm:$0xff]  }
 0x640   :  { %3632 = vrcp.f32 %v2661_v60  ;;  %v3806_v60 = vld [vmem:[%s5590_s2] ss:$16 sps:$4 sm:$0xff]   ;;  %v3809_v63 = vld [vmem:[#allocation3 + $0xec] ss:$16 sps:$4 sm:$0xff]  }
 0x641   :  { %3634 = vtanh.f32 %v5403_v13  ;;  %v5930_v50 = vld [vmem:[#allocation57_spill] sm:$0xff] }
 0x642   :  { %3636 = vtanh.f32 %v2643_v47 }
 0x643   :  { %3638 = vpow2.f32 %v3338_v37  ;;  %v5931_v37 = vld [vmem:[#allocation59_spill] sm:$0xff] }
 0x64a   :  { %v3629_v16 = vpop.eup %3628 }
 0x64b   :  { %v2672_v9 = vadd.f32 1.0, %v3629_v16 }
 0x64c   :  { %v3631_v15 = vpop.eup %3630 }
 0x64d   :  { %v3633_v6 = vpop.eup %3632  ;;  %3640 = vrcp.f32 %v2672_v9  ;;  %v2678_v11 = vadd.f32 1.0, %v3631_v15 }
 0x64e   :  { %v3635_v36 = vpop.eup %3634 }
 0x64f   :  { %3642 = vrcp.f32 %v2678_v11  ;;  %v2668_v44 = vmul.f32 %v3635_v36, %v3633_v6  ;;  %v3637_v8 = vpop.eup %3636 }
 0x650   :  { %v3639_v41 = vpop.eup %3638 }
 0x651   :  { %3339 = vst [vmem:[%s5595_s7 + $0x50] sm:$0xff] %v2668_v44  ;;  %v2703_v18 = vpack.c.bf16 %v2668_v44, %v2668_v44  ;;  %v5932_v44 = vld [vmem:[#allocation60_spill] sm:$0xff] }
 0x653   :  { %2737 = vmatmul.mubr.bf16.vlgmr.msra.gmra.mxu0 %v2703_v18  ;;  %2778 = vmatmul.mubr.bf16.vlgmr.msra.gmra.mxu1 %v2703_v18 }
 0x654   :  { %2792 = vmatpush1.bf16.msra.mxu0 %v5081_v58  ;;  %2833 = vmatpush1.bf16.msra.mxu1 %v5084_v24 }
 0x655   :  { %2793 = vmatprep.subr.bf16.mxu0 %v5087_v38  ;;  %2834 = vmatprep.subr.bf16.mxu1 %v5090_v21  ;;  %v2685_v38 = vadd.f32 1.0, %v3639_v41 }
 0x656   :  { %2823 = vmatprep.mubr.bf16.mxu0 %v5720_v46  ;;  %2864 = vmatprep.mubr.bf16.mxu1 %v5720_v46 }
 0x657   :  { %3644 = vrcp.f32 %v2685_v38 }
 0x658   :  { %2794 = vmatpush1.bf16.msra.mxu0 %v5095_v26  ;;  %2835 = vmatpush1.bf16.msra.mxu1 %v5098_v0 }
 0x659   :  { %2795 = vmatprep.subr.bf16.mxu0 %v5101_v28  ;;  %2836 = vmatprep.subr.bf16.mxu1 %v5104_v40 }
 0x65a   :  { %v3641_v58 = vpop.eup %3640 }
 0x65b   :  { %v2689_v24 = vmul.f32 %v3641_v58, %v3637_v8  ;;  %v5933_v8 = vld [vmem:[#allocation58_spill] sm:$0xff] }
 0x65c   :  { %v3643_v19 = vpop.eup %3642  ;;  %2796 = vmatpush1.bf16.msra.mxu0 %v5107_v51  ;;  %2837 = vmatpush1.bf16.msra.mxu1 %v5110_v52  ;;  %v3776_v52 = vld [vmem:[%s5590_s2 + $0xe4] ss:$16 sps:$4 sm:$0xff]  }
 0x65d   :  { %v2688_v21 = vmul.f32 %v3643_v19, %v5336_v43  ;;  %2797 = vmatprep.subr.bf16.mxu0 %v5114_v53  ;;  %2838 = vmatprep.subr.bf16.mxu1 %v5117_v54  ;;  %v3777_v53 = vld [vmem:[%s5590_s2 + $0xec] ss:$16 sps:$4 sm:$0xff]   ;;  %v3778_v54 = vld [vmem:[%s5590_s2 + $0xe0] ss:$16 sps:$4 sm:$0xff]  }
 0x65e   :  { %v3797_v43 = vld [vmem:[%s5590_s2 + $0x4c] ss:$16 sps:$4 sm:$0xff]  }
 0x65f   :  { %v5426_v26 = vadd.f32 %v2689_v24, %v2688_v21 }
 0x660   :  { %2798 = vmatpush1.bf16.msra.mxu0 %v5122_v57  ;;  %2839 = vmatpush1.bf16.msra.mxu1 %v5125_v59  ;;  %v3779_v57 = vld [vmem:[%s5590_s2 + $0xe8] ss:$16 sps:$4 sm:$0xff]   ;;  %v3780_v59 = vld [vmem:[%s5590_s2 + $0xc4] ss:$16 sps:$4 sm:$0xff]  }
 0x661   :  { %2799 = vmatprep.subr.bf16.mxu0 %v5128_v55  ;;  %2840 = vmatprep.subr.bf16.mxu1 %v5131_v22  ;;  %3646 = vtanh.f32 %v5426_v26  ;;  %v3781_v55 = vld [vmem:[%s5590_s2 + $0xcc] ss:$16 sps:$4 sm:$0xff]   ;;  %v3782_v22 = vld [vmem:[%s5590_s2 + $0xc0] ss:$16 sps:$4 sm:$0xff]  }
 0x664   :  { %2800 = vmatpush1.bf16.msra.mxu0 %v5135_v20  ;;  %2841 = vmatpush1.bf16.msra.mxu1 %v5138_v23  ;;  %v3645_v0 = vpop.eup %3644  ;;  %v3783_v20 = vld [vmem:[%s5590_s2 + $0xc8] ss:$16 sps:$4 sm:$0xff]   ;;  %v3784_v23 = vld [vmem:[%s5590_s2 + $0xa4] ss:$16 sps:$4 sm:$0xff]  }
 0x665   :  { %2801 = vmatprep.subr.bf16.mxu0 %v5141_v30  ;;  %2842 = vmatprep.subr.bf16.mxu1 %v5864_v56  ;;  %v3785_v30 = vld [vmem:[%s5590_s2 + $0xac] ss:$16 sps:$4 sm:$0xff]   ;;  %v3790_v56 = vld [vmem:[%s5590_s2 + $0x80] ss:$16 sps:$4 sm:$0xff]  }
 0x668   :  { %2802 = vmatpush1.bf16.msra.mxu0 %v5865_v39  ;;  %2843 = vmatpush1.bf16.msra.mxu1 %v5866_v33  ;;  %v3791_v39 = vld [vmem:[%s5590_s2 + $0x88] ss:$16 sps:$4 sm:$0xff]   ;;  %v3792_v33 = vld [vmem:[%s5590_s2 + $0x64] ss:$16 sps:$4 sm:$0xff]  }
 0x669   :  { %2803 = vmatprep.subr.bf16.mxu0 %v5867_v42  ;;  %2844 = vmatprep.subr.bf16.mxu1 %v5868_v27  ;;  %v3793_v42 = vld [vmem:[%s5590_s2 + $0x6c] ss:$16 sps:$4 sm:$0xff]   ;;  %v3794_v27 = vld [vmem:[%s5590_s2 + $0x60] ss:$16 sps:$4 sm:$0xff]  }
 0x66c   :  { %2804 = vmatpush1.bf16.msra.mxu0 %v5869_v48  ;;  %2845 = vmatpush1.bf16.msra.mxu1 %v5870_v25  ;;  %v3795_v48 = vld [vmem:[%s5590_s2 + $0x68] ss:$16 sps:$4 sm:$0xff]   ;;  %v3796_v25 = vld [vmem:[%s5590_s2 + $0x44] ss:$16 sps:$4 sm:$0xff]  }
 0x66d   :  { %2805 = vmatprep.subr.bf16.mxu0 %v5165_v45  ;;  %2846 = vmatprep.subr.bf16.mxu1 %v5168_v49  ;;  %v3786_v45 = vld [vmem:[%s5590_s2 + $0xa0] ss:$16 sps:$4 sm:$0xff]   ;;  %v3787_v49 = vld [vmem:[%s5590_s2 + $0xa8] ss:$16 sps:$4 sm:$0xff]  }
 0x66e   :  { %v3647_v28 = vpop.eup %3646 }
 0x66f   :  { %v2692_v40 = vmul.f32 %v3647_v28, %v3645_v0 }
 0x670   :  { %2806 = vmatpush1.bf16.msra.mxu0 %v5171_v35  ;;  %2847 = vmatpush1.bf16.msra.mxu1 %v5174_v31  ;;  %v3788_v35 = vld [vmem:[%s5590_s2 + $0x84] ss:$16 sps:$4 sm:$0xff]   ;;  %v3789_v31 = vld [vmem:[%s5590_s2 + $0x8c] ss:$16 sps:$4 sm:$0xff]  }
 0x671   :  { %3340 = vst [vmem:[%s5595_s7 + $0x28] sm:$0xff] %v2692_v40  ;;  %v2790_v51 = vpack.c.bf16 %v2692_v40, %v2692_v40  ;;  %2936 = vmatprep.subr.bf16.mxu0 %v3776_v52  ;;  %2977 = vmatprep.subr.bf16.mxu1 %v3777_v53  ;;  %v5934_v52 = vld [vmem:[#allocation69_spill] sm:$0xff] }
 0x673   :  { %2824 = vmatmul.mubr.bf16.vlgmr.msra.gmra.mxu0 %v2790_v51  ;;  %2865 = vmatmul.mubr.bf16.vlgmr.msra.gmra.mxu1 %v2790_v51 }
 0x674   :  { %2937 = vmatpush1.bf16.msra.mxu0 %v3778_v54  ;;  %2978 = vmatpush1.bf16.msra.mxu1 %v3779_v57 }
 0x675   :  { %2938 = vmatprep.subr.bf16.mxu0 %v3780_v59  ;;  %2979 = vmatprep.subr.bf16.mxu1 %v3781_v55 }
 0x676   :  { %2968 = vmatprep.mubr.bf16.mxu0 %v5720_v46  ;;  %3009 = vmatprep.mubr.bf16.mxu1 %v5720_v46 }
 0x678   :  { %2939 = vmatpush1.bf16.msra.mxu0 %v3782_v22  ;;  %2980 = vmatpush1.bf16.msra.mxu1 %v3783_v20  ;;  %v5935_v20 = vld [vmem:[#allocation71_spill] sm:$0xff] }
 0x679   :  { %2940 = vmatprep.subr.bf16.mxu0 %v3784_v23  ;;  %2981 = vmatprep.subr.bf16.mxu1 %v3785_v30 }
 0x67c   :  { %2941 = vmatpush1.bf16.msra.mxu0 %v3786_v45  ;;  %2982 = vmatpush1.bf16.msra.mxu1 %v3787_v49 }
 0x67d   :  { %2942 = vmatprep.subr.bf16.mxu0 %v3788_v35  ;;  %2983 = vmatprep.subr.bf16.mxu1 %v3789_v31 }
 0x680   :  { %2943 = vmatpush1.bf16.msra.mxu0 %v3790_v56  ;;  %2984 = vmatpush1.bf16.msra.mxu1 %v3791_v39 }
 0x681   :  { %2944 = vmatprep.subr.bf16.mxu0 %v3792_v33  ;;  %2985 = vmatprep.subr.bf16.mxu1 %v3793_v42 }
 0x684   :  { %2945 = vmatpush1.bf16.msra.mxu0 %v3794_v27  ;;  %2986 = vmatpush1.bf16.msra.mxu1 %v3795_v48  ;;  %v5936_v27 = vld [vmem:[#allocation72_spill] sm:$0xff] }
 0x685   :  { %2946 = vmatprep.subr.bf16.mxu0 %v3796_v25  ;;  %2987 = vmatprep.subr.bf16.mxu1 %v3797_v43  ;;  %v5937_v25 = vld [vmem:[#allocation70_spill] sm:$0xff] }
 0x688   :  { %2947 = vmatpush1.bf16.msra.mxu0 %v3798_v12  ;;  %2988 = vmatpush1.bf16.msra.mxu1 %v3799_v10 }
 0x689   :  { %2948 = vmatprep.subr.bf16.mxu0 %v3800_v7  ;;  %2989 = vmatprep.subr.bf16.mxu1 %v3801_v34 }
 0x68c   :  { %2949 = vmatpush1.bf16.msra.mxu0 %v3802_v29  ;;  %2990 = vmatpush1.bf16.msra.mxu1 %v3803_v32 }
 0x68d   :  { %2950 = vmatprep.subr.bf16.mxu0 %v3804_v17  ;;  %2991 = vmatprep.subr.bf16.mxu1 %v3805_v14 }
 0x690   :  { %2951 = vmatpush1.bf16.msra.mxu0 %v3806_v60  ;;  %2992 = vmatpush1.bf16.msra.mxu1 %v3807_v61  ;;  %v3810_v60 = vld [vmem:[#allocation3 + $0xe0] ss:$16 sps:$4 sm:$0xff]   ;;  %v3811_v61 = vld [vmem:[#allocation3 + $0xe8] ss:$16 sps:$4 sm:$0xff]  }
 0x691   :  { %3023 = vmatprep.subr.bf16.mxu0 %v3808_v62  ;;  %3064 = vmatprep.subr.bf16.mxu1 %v3809_v63  ;;  %v3812_v62 = vld [vmem:[#allocation3 + $0xc4] ss:$16 sps:$4 sm:$0xff]   ;;  %v3813_v63 = vld [vmem:[#allocation3 + $0xcc] ss:$16 sps:$4 sm:$0xff]  }
 0x713   :  { %v2738_v1 = vpop.f32.mrf.mxu0  ;;  %v2779_v2 = vpop.f32.mrf.mxu1 }
 0x714   :  { %v2786_v3 = vadd.f32 %v2738_v1, %v5930_v50  ;;  %v2788_v41 = vadd.f32 %v2779_v2, %v5933_v8  ;;  %v3814_v2 = vld [vmem:[#allocation3 + $0xc0] ss:$16 sps:$4 sm:$0xff]   ;;  %v3815_v50 = vld [vmem:[#allocation3 + $0xc8] ss:$16 sps:$4 sm:$0xff]  }
 0x715   :  { %v2740_v4 = vpop.f32.mrf.mxu0  ;;  %v2781_v5 = vpop.f32.mrf.mxu1  ;;  %v3823_v8 = vld [vmem:[#allocation3 + $0x88] ss:$16 sps:$4 sm:$0xff]  }
 0x716   :  { %v3341_v47 = vmul.f32 -1.442695, %v2786_v3  ;;  %v2787_v16 = vadd.f32 %v2740_v4, %v5931_v37  ;;  %v2789_v18 = vadd.f32 %v2781_v5, %v5932_v44  ;;  %v3816_v4 = vld [vmem:[#allocation3 + $0xa4] ss:$16 sps:$4 sm:$0xff]   ;;  %v3817_v5 = vld [vmem:[#allocation3 + $0xac] ss:$16 sps:$4 sm:$0xff]  }
 0x717   :  { %v2742_v9 = vpop.f32.mrf.mxu0  ;;  %v2783_v15 = vpop.f32.mrf.mxu1 }
 0x718   :  { %3648 = vpow2.f32 %v3341_v47  ;;  %v3342_v6 = vmul.f32 -1.442695, %v2787_v16  ;;  %v3343_v58 = vmul.f32 -1.442695, %v2789_v18  ;;  %v3818_v15 = vld [vmem:[#allocation3 + $0xa0] ss:$16 sps:$4 sm:$0xff]  }
 0x719   :  { %v2743_v11 = vpop.f32.mrf.mxu0  ;;  %v2784_v36 = vpop.f32.mrf.mxu1  ;;  %v3822_v18 = vld [vmem:[#allocation3 + $0x80] ss:$16 sps:$4 sm:$0xff]  }
 0x71a   :  { %3650 = vpow2.f32 %v3342_v6  ;;  %v3819_v6 = vld [vmem:[#allocation3 + $0xa8] ss:$16 sps:$4 sm:$0xff]   ;;  %v3820_v11 = vld [vmem:[#allocation3 + $0x84] ss:$16 sps:$4 sm:$0xff]   ;;  %v3821_v36 = vld [vmem:[#allocation3 + $0x8c] ss:$16 sps:$4 sm:$0xff]  }
 0x71b   :  { %3652 = vtanh.f32 %v2788_v41  ;;  %v3824_v41 = vld [vmem:[#allocation3 + $0x64] ss:$16 sps:$4 sm:$0xff]  }
 0x71c   :  { %3654 = vpow2.f32 %v3343_v58  ;;  %v3825_v58 = vld [vmem:[#allocation3 + $0x6c] ss:$16 sps:$4 sm:$0xff]  }
 0x725   :  { %v3649_v24 = vpop.eup %3648 }
 0x726   :  { %v2880_v19 = vadd.f32 1.0, %v3649_v24  ;;  %v3826_v24 = vld [vmem:[#allocation3 + $0x60] ss:$16 sps:$4 sm:$0xff]  }
 0x727   :  { %v3651_v38 = vpop.eup %3650 }
 0x728   :  { %3656 = vrcp.f32 %v2880_v19  ;;  %v2886_v21 = vadd.f32 1.0, %v3651_v38  ;;  %v3653_v0 = vpop.eup %3652  ;;  %v3828_v19 = vld [vmem:[#allocation3 + $0x44] ss:$16 sps:$4 sm:$0xff]   ;;  %v3829_v38 = vld [vmem:[#allocation3 + $0x4c] ss:$16 sps:$4 sm:$0xff]  }
 0x729   :  { %v3655_v51 = vpop.eup %3654 }
 0x72a   :  { %3658 = vrcp.f32 %v2886_v21  ;;  %v2893_v45 = vadd.f32 1.0, %v3655_v51  ;;  %v3830_v21 = vld [vmem:[#allocation3 + $0x40] ss:$16 sps:$4 sm:$0xff]  }
 0x72b   :  { %v3834_v51 = vld [vmem:[#allocation3 + $0x20] ss:$16 sps:$4 sm:$0xff]  }
 0x733   :  { %v2825_v28 = vpop.f32.mrf.mxu0  ;;  %v2866_v40 = vpop.f32.mrf.mxu1 }
 0x734   :  { %v2873_v53 = vadd.f32 %v2825_v28, %v5934_v52  ;;  %v2875_v43 = vadd.f32 %v2866_v40, %v5937_v25  ;;  %v3832_v28 = vld [vmem:[#allocation3 + $0x24] ss:$16 sps:$4 sm:$0xff]   ;;  %v3833_v40 = vld [vmem:[#allocation3 + $0x2c] ss:$16 sps:$4 sm:$0xff]   ;;  %v3835_v52 = vld [vmem:[#allocation3 + $0x28] ss:$16 sps:$4 sm:$0xff]  }
 0x735   :  { %v3657_v54 = vpop.eup %3656  ;;  %v2827_v57 = vpop.f32.mrf.mxu0 }
 0x736   :  { %v2868_v59 = vpop.f32.mrf.mxu1  ;;  %v2897_v55 = vmul.f32 %v3657_v54, %v3653_v0  ;;  %v3344_v22 = vmul.f32 -1.442695, %v2873_v53  ;;  %v2874_v23 = vadd.f32 %v2827_v57, %v5935_v20  ;;  %v3831_v0 = vld [vmem:[#allocation3 + $0x48] ss:$16 sps:$4 sm:$0xff]   ;;  %v3836_v54 = vld [vmem:[#allocation3 + $0x4] ss:$16 sps:$4 sm:$0xff]  }
 0x737   :  { %v3659_v30 = vpop.eup %3658  ;;  %v2829_v49 = vpop.f32.mrf.mxu0  ;;  %v2876_v48 = vadd.f32 %v2868_v59, %v5936_v27  ;;  %v3837_v57 = vld [vmem:[#allocation3 + $0xc] ss:$16 sps:$4 sm:$0xff]   ;;  %v3839_v20 = vld [vmem:[#allocation3 + $0x8] ss:$16 sps:$4 sm:$0xff]  }
 0x738   :  { %v2870_v35 = vpop.f32.mrf.mxu1  ;;  %v2896_v31 = vmul.f32 %v3659_v30, %v5403_v13  ;;  %3660 = vpow2.f32 %v3344_v22  ;;  %v3345_v56 = vmul.f32 -1.442695, %v2874_v23  ;;  %v3838_v22 = vld [vmem:[#allocation3] ss:$16 sps:$4 sm:$0xff]   ;;  %v5938_v49 = vld [vmem:[#allocation61_spill] sm:$0xff] }
 0x739   :  { %v2830_v39 = vpop.f32.mrf.mxu0  ;;  %v3346_v12 = vmul.f32 -1.442695, %v2876_v48 }
 0x73a   :  { %v2871_v33 = vpop.f32.mrf.mxu1  ;;  %v5555_v42 = vadd.f32 %v2897_v55, %v2896_v31  ;;  %3662 = vpow2.f32 %v3345_v56 }
 0x73b   :  { %3664 = vrcp.f32 %v2893_v45  ;;  %v5939_v33 = vld [vmem:[#allocation63_spill] sm:$0xff] }
 0x73c   :  { %3666 = vtanh.f32 %v5555_v42 }
 0x73d   :  { %3668 = vtanh.f32 %v2875_v43 }
 0x73e   :  { %3670 = vpow2.f32 %v3346_v12 }
 0x745   :  { %v3661_v10 = vpop.eup %3660 }
 0x746   :  { %v2904_v7 = vadd.f32 1.0, %v3661_v10 }
 0x747   :  { %v3663_v34 = vpop.eup %3662 }
 0x748   :  { %v3665_v13 = vpop.eup %3664  ;;  %3672 = vrcp.f32 %v2904_v7  ;;  %v2910_v29 = vadd.f32 1.0, %v3663_v34  ;;  %v5940_v7 = vld [vmem:[#allocation64_spill] sm:$0xff] }
 0x749   :  { %v3667_v32 = vpop.eup %3666 }
 0x74a   :  { %3674 = vrcp.f32 %v2910_v29  ;;  %v2900_v17 = vmul.f32 %v3667_v32, %v3665_v13  ;;  %v3669_v1 = vpop.eup %3668  ;;  %v5941_v13 = vld [vmem:[#allocation62_spill] sm:$0xff] }
 0x74b   :  { %v3671_v3 = vpop.eup %3670 }
 0x74c   :  { %3347 = vst [vmem:[%s5595_s7 + $0x60] sm:$0xff] %v2900_v17  ;;  %v2935_v14 = vpack.c.bf16 %v2900_v17, %v2900_v17  ;;  %v2917_v9 = vadd.f32 1.0, %v3671_v3 }
 0x74e   :  { %2969 = vmatmul.mubr.bf16.vlgmr.msra.gmra.mxu0 %v2935_v14  ;;  %3010 = vmatmul.mubr.bf16.vlgmr.msra.gmra.mxu1 %v2935_v14  ;;  %3676 = vrcp.f32 %v2917_v9  ;;  %v5943_v9 = vld [vmem:[#allocation67_spill] sm:$0xff] }
 0x74f   :  { %3024 = vmatpush1.bf16.msra.mxu0 %v3810_v60  ;;  %3065 = vmatpush1.bf16.msra.mxu1 %v3811_v61 }
 0x750   :  { %3025 = vmatprep.subr.bf16.mxu0 %v3812_v62  ;;  %3066 = vmatprep.subr.bf16.mxu1 %v3813_v63 }
 0x751   :  { %3055 = vmatprep.mubr.bf16.mxu0 %v5720_v46  ;;  %3096 = vmatprep.mubr.bf16.mxu1 %v5720_v46 }
 0x753   :  { %3026 = vmatpush1.bf16.msra.mxu0 %v3814_v2  ;;  %3067 = vmatpush1.bf16.msra.mxu1 %v3815_v50  ;;  %v5942_v50 = vld [vmem:[#allocation65_spill] sm:$0xff] }
 0x754   :  { %3027 = vmatprep.subr.bf16.mxu0 %v3816_v4  ;;  %3068 = vmatprep.subr.bf16.mxu1 %v3817_v5 }
 0x755   :  { %v3673_v47 = vpop.eup %3672 }
 0x756   :  { %v2921_v37 = vmul.f32 %v3673_v47, %v3669_v1 }
 0x757   :  { %v3675_v16 = vpop.eup %3674  ;;  %3028 = vmatpush1.bf16.msra.mxu0 %v3818_v15  ;;  %3069 = vmatpush1.bf16.msra.mxu1 %v3819_v6 }
 0x758   :  { %v2920_v46 = vmul.f32 %v3675_v16, %v5426_v26  ;;  %3029 = vmatprep.subr.bf16.mxu0 %v3820_v11  ;;  %3070 = vmatprep.subr.bf16.mxu1 %v3821_v36  ;;  %v3827_v26 = vld [vmem:[#allocation3 + $0x68] ss:$16 sps:$4 sm:$0xff]  }
 0x75a   :  { %v5566_v44 = vadd.f32 %v2921_v37, %v2920_v46 }
 0x75b   :  { %3030 = vmatpush1.bf16.msra.mxu0 %v3822_v18  ;;  %3071 = vmatpush1.bf16.msra.mxu1 %v3823_v8  ;;  %v3677_v53 = vpop.eup %3676 }
 0x75c   :  { %3031 = vmatprep.subr.bf16.mxu0 %v3824_v41  ;;  %3072 = vmatprep.subr.bf16.mxu1 %v3825_v58  ;;  %3678 = vtanh.f32 %v5566_v44 }
 0x75f   :  { %3032 = vmatpush1.bf16.msra.mxu0 %v3826_v24  ;;  %3073 = vmatpush1.bf16.msra.mxu1 %v3827_v26  ;;  %v5944_v26 = vld [vmem:[#allocation68_spill] sm:$0xff] }
 0x760   :  { %3033 = vmatprep.subr.bf16.mxu0 %v3828_v19  ;;  %3074 = vmatprep.subr.bf16.mxu1 %v3829_v38  ;;  %v5945_v38 = vld [vmem:[#allocation66_spill] sm:$0xff] }
 0x763   :  { %3034 = vmatpush1.bf16.msra.mxu0 %v3830_v21  ;;  %3075 = vmatpush1.bf16.msra.mxu1 %v3831_v0 }
 0x764   :  { %3035 = vmatprep.subr.bf16.mxu0 %v3832_v28  ;;  %3076 = vmatprep.subr.bf16.mxu1 %v3833_v40 }
 0x767   :  { %3036 = vmatpush1.bf16.msra.mxu0 %v3834_v51  ;;  %3077 = vmatpush1.bf16.msra.mxu1 %v3835_v52 }
 0x768   :  { %3037 = vmatprep.subr.bf16.mxu0 %v3836_v54  ;;  %3078 = vmatprep.subr.bf16.mxu1 %v3837_v57 }
 0x769   :  { %v3679_v59 = vpop.eup %3678 }
 0x76a   :  { %v2924_v55 = vmul.f32 %v3679_v59, %v3677_v53 }
 0x76b   :  { %3038 = vmatpush1.bf16.msra.mxu0 %v3838_v22  ;;  %3079 = vmatpush1.bf16.msra.mxu1 %v3839_v20 }
 0x76c   :  { %3348 = vst [vmem:[%s5595_s7 + $0x18] sm:$0xff] %v2924_v55  ;;  %v3022_v23 = vpack.c.bf16 %v2924_v55, %v2924_v55 }
 0x76e   :  { %3056 = vmatmul.mubr.bf16.vlgmr.msra.gmra.mxu0 %v3022_v23  ;;  %3097 = vmatmul.mubr.bf16.vlgmr.msra.gmra.mxu1 %v3022_v23 }
 0x80e   :  { %v2970_v30 = vpop.f32.mrf.mxu0  ;;  %v3011_v45 = vpop.f32.mrf.mxu1 }
 0x80f   :  { %v3018_v35 = vadd.f32 %v2970_v30, %v5938_v49  ;;  %v3020_v29 = vadd.f32 %v3011_v45, %v5941_v13 }
 0x810   :  { %v2972_v31 = vpop.f32.mrf.mxu0  ;;  %v3013_v56 = vpop.f32.mrf.mxu1 }
 0x811   :  { %v3349_v39 = vmul.f32 -1.442695, %v3018_v35  ;;  %v3019_v27 = vadd.f32 %v2972_v31, %v5939_v33  ;;  %v3021_v34 = vadd.f32 %v3013_v56, %v5940_v7 }
 0x812   :  { %v2974_v48 = vpop.f32.mrf.mxu0  ;;  %v3015_v25 = vpop.f32.mrf.mxu1 }
 0x813   :  { %3680 = vpow2.f32 %v3349_v39  ;;  %v3350_v43 = vmul.f32 -1.442695, %v3019_v27  ;;  %v3351_v32 = vmul.f32 -1.442695, %v3021_v34 }
 0x814   :  { %v2975_v12 = vpop.f32.mrf.mxu0  ;;  %v3016_v10 = vpop.f32.mrf.mxu1 }
 0x815   :  { %3682 = vpow2.f32 %v3350_v43 }
 0x816   :  { %3684 = vtanh.f32 %v3020_v29 }
 0x817   :  { %3686 = vpow2.f32 %v3351_v32 }
 0x820   :  { %v3681_v17 = vpop.eup %3680 }
 0x821   :  { %v3112_v14 = vadd.f32 1.0, %v3681_v17 }
 0x822   :  { %v3683_v60 = vpop.eup %3682 }
 0x823   :  { %3688 = vrcp.f32 %v3112_v14  ;;  %v3118_v61 = vadd.f32 1.0, %v3683_v60  ;;  %v3685_v62 = vpop.eup %3684 }
 0x824   :  { %v3687_v2 = vpop.eup %3686 }
 0x825   :  { %3690 = vrcp.f32 %v3118_v61  ;;  %v3125_v46 = vadd.f32 1.0, %v3687_v2 }
 0x82e   :  { %v3057_v63 = vpop.f32.mrf.mxu0  ;;  %v3098_v1 = vpop.f32.mrf.mxu1 }
 0x82f   :  { %v3105_v3 = vadd.f32 %v3057_v63, %v5942_v50  ;;  %v3107_v21 = vadd.f32 %v3098_v1, %v5945_v38 }
 0x830   :  { %v3689_v4 = vpop.eup %3688  ;;  %v3059_v5 = vpop.f32.mrf.mxu0 }
 0x831   :  { %v3100_v47 = vpop.f32.mrf.mxu1  ;;  %v3129_v37 = vmul.f32 %v3689_v4, %v3685_v62  ;;  %v3352_v16 = vmul.f32 -1.442695, %v3105_v3  ;;  %v3106_v15 = vadd.f32 %v3059_v5, %v5943_v9 }
 0x832   :  { %v3691_v6 = vpop.eup %3690  ;;  %v3061_v11 = vpop.f32.mrf.mxu0  ;;  %v3108_v19 = vadd.f32 %v3100_v47, %v5944_v26 }
 0x833   :  { %v3102_v36 = vpop.f32.mrf.mxu1  ;;  %v3128_v18 = vmul.f32 %v3691_v6, %v5555_v42  ;;  %3692 = vpow2.f32 %v3352_v16  ;;  %v3353_v8 = vmul.f32 -1.442695, %v3106_v15 }
 0x834   :  { %v3062_v41 = vpop.f32.mrf.mxu0  ;;  %v3354_v0 = vmul.f32 -1.442695, %v3108_v19 }
 0x835   :  { %v3103_v58 = vpop.f32.mrf.mxu1  ;;  %v3130_v24 = vadd.f32 %v3129_v37, %v3128_v18  ;;  %3694 = vpow2.f32 %v3353_v8 }
 0x836   :  { %3696 = vrcp.f32 %v3125_v46 }
 0x837   :  { %3698 = vtanh.f32 %v3130_v24 }
 0x838   :  { %3700 = vtanh.f32 %v3107_v21 }
 0x839   :  { %3702 = vpow2.f32 %v3354_v0 }
 0x840   :  { %v3693_v28 = vpop.eup %3692 }
 0x841   :  { %v3136_v40 = vadd.f32 1.0, %v3693_v28 }
 0x842   :  { %v3695_v51 = vpop.eup %3694 }
 0x843   :  { %v3697_v52 = vpop.eup %3696  ;;  %3704 = vrcp.f32 %v3136_v40  ;;  %v3142_v42 = vadd.f32 1.0, %v3695_v51 }
 0x844   :  { %v3699_v53 = vpop.eup %3698 }
 0x845   :  { %v3132_v54 = vmul.f32 %v3699_v53, %v3697_v52  ;;  %3706 = vrcp.f32 %v3142_v42  ;;  %v3701_v57 = vpop.eup %3700 }
 0x846   :  { %v3703_v59 = vpop.eup %3702 }
 0x847   :  { %3355 = vst [vmem:[%s5595_s7 + $0x70] sm:$0xff] %v3132_v54  ;;  %v3149_v23 = vadd.f32 1.0, %v3703_v59 }
 0x849   :  { %3708 = vrcp.f32 %v3149_v23 }
 0x850   :  { %v3705_v55 = vpop.eup %3704 }
 0x851   :  { %v3153_v22 = vmul.f32 %v3705_v55, %v3701_v57 }
 0x852   :  { %v3707_v20 = vpop.eup %3706 }
 0x853   :  { %v3152_v30 = vmul.f32 %v3707_v20, %v5566_v44 }
 0x855   :  { %v3154_v45 = vadd.f32 %v3153_v22, %v3152_v30 }
 0x856   :  { %v3709_v49 = vpop.eup %3708 }
 0x857   :  { %3710 = vtanh.f32 %v3154_v45 }
 0x864   :  { %v3711_v35 = vpop.eup %3710 }
 0x865   :  { %v3156_v31 = vmul.f32 %v3711_v35, %v3709_v49 }
 0x867   :  { %3158 = vst [vmem:[%s5595_s7 + $0x8] sm:$0xff] %v3156_v31 }
 0x868   :  { %3163 = vsyncpa [#allocation4], 1 }

</bundles_post_ra>
